<compile_context>
chip_gen: v7x
topology: tpu7x:2x2x1
jax: 0.10.0
libtpu: 0.0.40
codegen_flags: <defaults>
</compile_context>

<pallas_src>
import functools
import math

import jax
import jax.numpy as jnp
from jax.experimental import pallas as pl
from jax.experimental.pallas import tpu as pltpu

MULTIRES  = 4                       # get_embedder(4)
N_CAMERA  = 6
D_FEATURE = 32                      # d_feature (small synthetic size)
D_MLP1    = 64                      # mlp1: n_neurons = n_output_dims = 64
D_MLP2    = 32                      # mlp2 / orig_rgb: n_neurons = 32
D_OUT     = 4
D_FUSED   = D_MLP1 + D_MLP2         # 96: fused width of (mlp1 || orig_rgb)
D_PACK    = 16                      # packed epilogue lanes
_HALF_PI  = math.pi / 2.0

# ---- kernel-side rin layout (order differs from the torch concat; the packed
# ---- first-layer weights are row-permuted to match) --------------------------
OFF_PTS  = 0                        # points                      (3)
OFF_NRM  = 3                        # normals                     (3)
OFF_VD   = 6                        # view_dirs (identity part)   (3)
OFF_FV   = 9                        # feature_vectors             (32)
OFF_SIN  = OFF_FV + D_FEATURE       # 41: per k: [sin(vd*2^k)(3), sin(xy*2^k)(2)]
OFF_COS  = OFF_SIN + 5 * MULTIRES   # 61: same pattern with cos
D_RIN    = OFF_COS + 5 * MULTIRES   # 81
D_IN_PAD = 96                       # sublane-aligned padded rin width

# ---- original (torch) rin layout = [pts, nrm, view_e, fv, xy_e] --------------
_T_VIEW_E = 6                               # start of view_e
_T_FV     = _T_VIEW_E + 3 + 6 * MULTIRES    # 33
_T_XY_E   = _T_FV + D_FEATURE               # 65
D_RIN_T   = _T_XY_E + 2 + 4 * MULTIRES      # 83


def _cdiv(a, b):
    return -(-a // b)


def _round_up(x, m):
    return _cdiv(x, m) * m


def _embed(x):
    """NeRF positional embedding: [x, sin(2^k x), cos(2^k x)], k = 0..MULTIRES-1."""
    outs = [x]
    for k in range(MULTIRES):
        f = jnp.float32(2.0 ** k)
        outs.append(jnp.sin(x * f))
        outs.append(jnp.cos(x * f))
    return jnp.concatenate(outs, axis=-1)


def _rendering_kernel(pts_ref, nrm_ref, vd_ref, fv_ref, wbig_ref, wsm_ref,
                      b2_ref, out_ref, rin_ref):
    dot  = functools.partial(jnp.dot, preferred_element_type=jnp.float32)
    bf   = lambda v: v.astype(jnp.bfloat16)
    relu = lambda v: jnp.maximum(v, 0.0)

    p  = pts_ref[...]                                  # (TN, 3) f32
    xy = p[:, 0:2]                                     # (TN, 2)
    vd = vd_ref[...]                                   # (TN, 3)

    # ---- assemble the 96-wide MLP input in VMEM (one lane-dense MXU LHS).
    rin_ref[:, OFF_PTS:OFF_PTS + 3] = p
    rin_ref[:, OFF_NRM:OFF_NRM + 3] = nrm_ref[...]
    rin_ref[:, OFF_VD:OFF_VD + 3]   = vd
    rin_ref[:, OFF_FV:OFF_FV + D_FEATURE] = fv_ref[...]
    for k in range(MULTIRES):
        f = float(2.0 ** k)
        o = OFF_SIN + 5 * k
        rin_ref[:, o:o + 3]     = vd * f
        rin_ref[:, o + 3:o + 5] = xy * f
    # cos(x) == sin(x + pi/2): one packed EUP pass covers both trig halves.
    rin_ref[:, OFF_COS:D_RIN] = rin_ref[:, OFF_SIN:OFF_COS] + _HALF_PI
    rin_ref[:, OFF_SIN:D_RIN] = jnp.sin(rin_ref[:, OFF_SIN:D_RIN])
    rin_ref[:, D_RIN:D_IN_PAD] = jnp.zeros(
        (rin_ref.shape[0], D_IN_PAD - D_RIN), jnp.float32)

    # ---- fused (mlp1 || orig_rgb): three 96-wide block-diagonal layers.
    x  = bf(rin_ref[...])                                              # (TN, 96)
    l1 = relu(dot(x, wbig_ref[0:D_IN_PAD, :]))                         # (TN, 96)
    l2 = relu(dot(bf(l1), wbig_ref[D_IN_PAD:D_IN_PAD + D_FUSED, :]))   # (TN, 96)
    l3 = dot(bf(l2), wbig_ref[D_IN_PAD + D_FUSED:D_IN_PAD + 2 * D_FUSED, :])
    m1  = l3[:, 0:D_MLP1]                              # mlp1 output        (TN, 64)
    o16 = l3[:, D_MLP1:D_MLP1 + D_PACK]                # [o4 | 0 | o4 | o4] (TN, 16)

    # ---- mlp2(cat([m1, camera_one_hot])): one-hot term is a constant bias row.
    g = relu(dot(bf(m1), wsm_ref[0:D_MLP1, :]) + b2_ref[...])          # (TN, 32)
    g = relu(dot(bf(g), wsm_ref[D_MLP1:D_MLP1 + D_MLP2, :]))           # (TN, 32)
    x32 = dot(bf(g), wsm_ref[D_MLP1 + D_MLP2:D_MLP1 + 2 * D_MLP2, :])  # (TN, 32)
    lin16 = x32[:, 0:D_PACK] + o16                     # [x4+o4 | x4 | o4 | o4]

    lane = jax.lax.broadcasted_iota(jnp.int32, lin16.shape, 1)
    use_sig = (lane < 4) | ((lane >= 8) & (lane < 12))
    packed = jnp.where(use_sig, jax.nn.sigmoid(lin16), lin16)          # (TN, 16)

    # Lane-dense store: (16, TN) slab, rows on the lane axis, bf16 writeback.
    out_ref[...] = jnp.transpose(packed).astype(out_ref.dtype)


def _pack_params(params):
    """Block-diagonal fusion of (mlp1 || orig_rgb) with the first layer's rows
    permuted to the kernel's in-VMEM rin layout, plus the padded mlp2 stack."""
    f32 = jnp.float32
    w1a = params['w1a'].astype(f32)
    d_feature = params['woa'].shape[0]

    b1 = jnp.zeros((D_IN_PAD, D_FUSED), f32)
    # mlp1 columns (0:64): permute w1a rows from the torch rin order.
    b1 = b1.at[OFF_PTS:OFF_PTS + 3, :D_MLP1].set(w1a[0:3])                       # points
    b1 = b1.at[OFF_PTS:OFF_PTS + 2, :D_MLP1].add(w1a[_T_XY_E:_T_XY_E + 2])       # xy identity == points[:, :2]
    b1 = b1.at[OFF_NRM:OFF_NRM + 3, :D_MLP1].set(w1a[3:6])                       # normals
    b1 = b1.at[OFF_VD:OFF_VD + 3, :D_MLP1].set(w1a[_T_VIEW_E:_T_VIEW_E + 3])     # vd identity
    b1 = b1.at[OFF_FV:OFF_FV + d_feature, :D_MLP1].set(w1a[_T_FV:_T_FV + d_feature])
    for k in range(MULTIRES):
        o = OFF_SIN + 5 * k
        b1 = b1.at[o:o + 3, :D_MLP1].set(w1a[_T_VIEW_E + 3 + 6 * k:_T_VIEW_E + 6 + 6 * k])
        b1 = b1.at[o + 3:o + 5, :D_MLP1].set(w1a[_T_XY_E + 2 + 4 * k:_T_XY_E + 4 + 4 * k])
        o = OFF_COS + 5 * k
        b1 = b1.at[o:o + 3, :D_MLP1].set(w1a[_T_VIEW_E + 6 + 6 * k:_T_VIEW_E + 9 + 6 * k])
        b1 = b1.at[o + 3:o + 5, :D_MLP1].set(w1a[_T_XY_E + 4 + 4 * k:_T_XY_E + 6 + 4 * k])
    # orig_rgb columns (64:96) read feature_vectors directly.
    b1 = b1.at[OFF_FV:OFF_FV + d_feature, D_MLP1:].set(params['woa'])

    b2 = jnp.zeros((D_FUSED, D_FUSED), f32)
    b2 = b2.at[:D_MLP1, :D_MLP1].set(params['w1b'])
    b2 = b2.at[D_MLP1:, D_MLP1:].set(params['wob'])

    # layer-3 columns: [ m1 (64) | o4 | 0 | o4 | o4 | 0 pad ]
    b3 = jnp.zeros((D_FUSED, D_FUSED), f32)
    b3 = b3.at[:D_MLP1, :D_MLP1].set(params['w1c'])
    b3 = b3.at[D_MLP1:, D_MLP1 + 0:D_MLP1 + 4].set(params['woc'])
    b3 = b3.at[D_MLP1:, D_MLP1 + 8:D_MLP1 + 12].set(params['woc'])
    b3 = b3.at[D_MLP1:, D_MLP1 + 12:D_MLP1 + 16].set(params['woc'])

    wbig = jnp.concatenate([b1, b2, b3], axis=0).astype(jnp.bfloat16)  # (288, 96)

    # mlp2 stack; last layer duplicated into columns 0:4 and 4:8 of a 32-wide slab.
    w2c_pad = jnp.zeros((D_MLP2, D_MLP2), f32)
    w2c_pad = w2c_pad.at[:, 0:4].set(params['w2c'])
    w2c_pad = w2c_pad.at[:, 4:8].set(params['w2c'])
    wsm = jnp.concatenate([params['w2a'], params['w2b'], w2c_pad],
                          axis=0).astype(jnp.bfloat16)                 # (128, 32)
    return wbig, wsm


def _chip_config():
    """(max rows per tile, scoped-VMEM limit bytes, #TensorCores sharing the grid)."""
    try:
        kind = jax.devices()[0].device_kind.lower()
    except Exception:
        kind = ""
    single_tc = any(t in kind for t in ("v5e", "v5 lite", "v5lite",
                                        "v6e", "v6 lite", "v6lite"))
    if single_tc:
        # v5e / v6e: one TensorCore, 128 MiB physical VMEM -> big tiles, 1 tile
        # for small N (avoid a serial grid step's ~0.35 us fixed overhead).
        return 8192, 96 * 1024 * 1024, 1
    # v7x (and unknown chips): 2 TensorCores, 64 MiB VMEM per core -> 4096-row
    # tiles and >=2 steps per core so the input DMAs stay double-buffered.
    return 4096, 48 * 1024 * 1024, 2


def rendering_forward(params, feature_vectors, points, normals, view_dirs, camera_encod):
    # TODO(synk): the early-return branch of the torch module (points is None or
    # camera_encod is None -> orig_rgb-only output) is not wired into this wrapper.
    n = feature_vectors.shape[0]
    assert feature_vectors.shape[1] == D_FEATURE

    tile_max, vmem_limit, n_tc = _chip_config()
    if n_tc <= 1:
        min_tiles = 1
    else:
        min_tiles = 4 if n >= 1024 else min(2, _cdiv(n, 256))
    num_tiles = max(_cdiv(n, tile_max), min_tiles, 1)
    tile = _round_up(_cdiv(n, num_tiles), 256)         # MXU M-fill quantum
    num_tiles = _cdiv(n, tile)                         # drop all-padding tiles
    n_pad = num_tiles * tile

    wbig, wsm = _pack_params(params)
    # torch: one_hot(camera_encod[:1]) @ w2e  ==  row camera_encod[0] of w2e
    # (bf16-rounded to match what a bf16 MXU matmul against the one-hot gives).
    bias2 = params['w2e'].astype(jnp.bfloat16).astype(jnp.float32)[camera_encod[0]][None, :]

    pts = points.astype(jnp.float32)
    nrm = normals.astype(jnp.float32)
    vd  = view_dirs.astype(jnp.float32)
    fv  = feature_vectors.astype(jnp.float32)

    def row_spec(w):
        return pl.BlockSpec((tile, w), lambda i: (i, 0))

    def full_spec(a):
        return pl.BlockSpec(a.shape, lambda i: (0, 0))

    packed_t = pl.pallas_call(
        _rendering_kernel,
        out_shape=jax.ShapeDtypeStruct((D_PACK, n_pad), jnp.bfloat16),
        grid_spec=pltpu.PrefetchScalarGridSpec(
            num_scalar_prefetch=0,
            grid=(num_tiles,),
            in_specs=[
                row_spec(3),            # points
                row_spec(3),            # normals
                row_spec(3),            # view_dirs
                row_spec(D_FEATURE),    # feature_vectors
                full_spec(wbig),        # fused mlp1 || orig_rgb weights (bf16)
                full_spec(wsm),         # mlp2 weights (bf16)
                full_spec(bias2),       # camera one-hot bias row (f32)
            ],
            out_specs=pl.BlockSpec((D_PACK, tile), lambda i: (0, i)),
            scratch_shapes=[pltpu.VMEM((tile, D_IN_PAD), jnp.float32)],
        ),
        compiler_params=pltpu.CompilerParams(
            dimension_semantics=("parallel",),
            vmem_limit_bytes=vmem_limit,
        ),
    )(pts, nrm, vd, fv, wbig, wsm, bias2)

    packed = packed_t[:, :n].astype(jnp.float32)
    return {
        'rgb':      jnp.transpose(packed[0:3, :]),   # sigmoid(x4 + o4)[:, :3]
        'delta':    jnp.transpose(packed[4:7, :]),   # x4[:, :3]
        'rgb_orig': jnp.transpose(packed[8:11, :]),  # sigmoid(o4)[:, :3]
        'beta':     packed[15, :],                   # o4[:, 3]
    }


def rendering_forward_ref(params, feature_vectors, points, normals, view_dirs,
                          camera_encod, matmul_dtype=jnp.float32):
    """Pure-JAX reference mirroring the PyTorch forward literally.
    matmul_dtype=bfloat16 reproduces the kernel's MXU precision (f32 accumulation)."""
    n = feature_vectors.shape[0]
    mm = lambda a, w: jnp.dot(a.astype(matmul_dtype), w.astype(matmul_dtype),
                              preferred_element_type=jnp.float32)
    relu = jax.nn.relu
    view_e = _embed(view_dirs)
    xy_e = _embed(points[:, :2])
    rin = jnp.concatenate([points, normals, view_e, feature_vectors, xy_e], axis=-1)
    enc = jnp.broadcast_to(
        jax.nn.one_hot(camera_encod[0], N_CAMERA, dtype=jnp.float32)[None, :],
        (n, N_CAMERA))
    h = relu(mm(rin, params['w1a']))
    h = relu(mm(h, params['w1b']))
    m1 = mm(h, params['w1c'])
    w2_full = jnp.concatenate([params['w2a'], params['w2e']], axis=0)
    g = relu(mm(jnp.concatenate([m1, enc], axis=-1), w2_full))
    g = relu(mm(g, params['w2b']))
    x4 = mm(g, params['w2c'])
    o = relu(mm(feature_vectors, params['woa']))
    o = relu(mm(o, params['wob']))
    o4 = mm(o, params['woc'])
    x3, xo3, beta = x4[:, :3], o4[:, :3], o4[:, 3]
    return {'rgb': jax.nn.sigmoid(x3 + xo3), 'delta': x3,
            'rgb_orig': jax.nn.sigmoid(xo3), 'beta': beta}


def init_params(key):
    d1 = D_RIN_T                                      # 83
    shapes = {
        'w1a': (d1, D_MLP1), 'w1b': (D_MLP1, D_MLP1), 'w1c': (D_MLP1, D_MLP1),
        'w2a': (D_MLP1, D_MLP2), 'w2e': (N_CAMERA, D_MLP2),
        'w2b': (D_MLP2, D_MLP2), 'w2c': (D_MLP2, D_OUT),
        'woa': (D_FEATURE, D_MLP2), 'wob': (D_MLP2, D_MLP2), 'woc': (D_MLP2, D_OUT),
    }
    keys = jax.random.split(key, len(shapes))
    return {name: jax.random.normal(k, s, jnp.float32) / jnp.sqrt(s[0])
            for (name, s), k in zip(shapes.items(), keys)}


if __name__ == "__main__":
    key = jax.random.PRNGKey(0)
    params = init_params(jax.random.fold_in(key, 0))
    fwd = jax.jit(rendering_forward)

    # Small primary case + a multi-tile / clamped-edge-tile case.
    for n in (256, 2500):
        kp, kn, kv, kf, kc = jax.random.split(jax.random.fold_in(key, n), 5)
        points          = jax.random.normal(kp, (n, 3), jnp.float32)
        normals         = jax.random.normal(kn, (n, 3), jnp.float32)
        view_dirs       = jax.random.normal(kv, (n, 3), jnp.float32)
        feature_vectors = jax.random.normal(kf, (n, D_FEATURE), jnp.float32)
        camera_encod    = jax.random.randint(kc, (n,), 0, N_CAMERA, jnp.int32)

        out = fwd(params, feature_vectors, points, normals, view_dirs, camera_encod)
        out = jax.tree_util.tree_map(jax.block_until_ready, out)

        ref_f32 = rendering_forward_ref(params, feature_vectors, points, normals,
                                        view_dirs, camera_encod)
        ref_bf16 = rendering_forward_ref(params, feature_vectors, points, normals,
                                         view_dirs, camera_encod,
                                         matmul_dtype=jnp.bfloat16)
        for name in ('rgb', 'delta', 'rgb_orig', 'beta'):
            assert out[name].shape == ref_f32[name].shape, (n, name, out[name].shape)
            # Tight vs. a reference matching the kernel's bf16 MXU precision.
            assert jnp.allclose(out[name], ref_bf16[name], atol=1e-2, rtol=1e-2), (n, name)
            # Loose vs. the pure-f32 reference (bf16 quantization only; tcnn is fp16).
            assert jnp.allclose(out[name], ref_f32[name], atol=5e-2, rtol=5e-2), (n, name)

    print("KERNEL_OK")
</pallas_src>

<mosaic_0001>
module attributes {stable_mosaic.version = 11 : i64} {
  func.func @_rendering_kernel(%arg0: i32, %arg1: memref<256x3xf32, #tpu.memory_space<vmem>>, %arg2: memref<256x3xf32, #tpu.memory_space<vmem>>, %arg3: memref<256x3xf32, #tpu.memory_space<vmem>>, %arg4: memref<256x32xf32, #tpu.memory_space<vmem>>, %arg5: memref<288x96xbf16, #tpu.memory_space<vmem>>, %arg6: memref<128x32xbf16, #tpu.memory_space<vmem>>, %arg7: memref<1x32xf32, #tpu.memory_space<vmem>>, %arg8: memref<16x256xbf16, #tpu.memory_space<vmem>>, %arg9: memref<256x96xf32, #tpu.memory_space<vmem>>) attributes {dimension_semantics = [#tpu.dimension_semantics<parallel>], iteration_bounds = array<i64: 1>, scalar_prefetch = 0 : i64, scratch_operands = 1 : i64, tpu.core_type = #tpu.core_type<tc>, window_params = [{transform_indices = @transform_0, window_bounds = array<i64: 256, 3>}, {transform_indices = @transform_1, window_bounds = array<i64: 256, 3>}, {transform_indices = @transform_2, window_bounds = array<i64: 256, 3>}, {transform_indices = @transform_3, window_bounds = array<i64: 256, 32>}, {pipeline_mode = #tpu.pipeline_mode<synchronous>, transform_indices = @transform_4, window_bounds = array<i64: 288, 96>}, {pipeline_mode = #tpu.pipeline_mode<synchronous>, transform_indices = @transform_5, window_bounds = array<i64: 128, 32>}, {pipeline_mode = #tpu.pipeline_mode<synchronous>, transform_indices = @transform_6, window_bounds = array<i64: 1, 32>}, {transform_indices = @transform_7, window_bounds = array<i64: 16, 256>}]} {
    %c0 = arith.constant 0 : index
    %c0_0 = arith.constant 0 : index
    %0 = vector.load %arg1[%c0, %c0_0] : memref<256x3xf32, #tpu.memory_space<vmem>>, vector<256x3xf32>
    %1 = vector.extract_strided_slice %0 {offsets = [0, 0], sizes = [256, 2], strides = [1, 1]} : vector<256x3xf32> to vector<256x2xf32>
    %c0_1 = arith.constant 0 : index
    %c0_2 = arith.constant 0 : index
    %2 = vector.load %arg3[%c0_1, %c0_2] : memref<256x3xf32, #tpu.memory_space<vmem>>, vector<256x3xf32>
    %c0_3 = arith.constant 0 : index
    %c0_4 = arith.constant 0 : index
    %3 = vector.load %arg9[%c0_3, %c0_4] : memref<256x96xf32, #tpu.memory_space<vmem>>, vector<256x3xf32>
    tpu.vector_store %arg9[%c0_3, %c0_4], %0 {strides = array<i32>} : memref<256x96xf32, #tpu.memory_space<vmem>>, vector<256x3xf32>,
    %c0_5 = arith.constant 0 : index
    %c0_6 = arith.constant 0 : index
    %4 = vector.load %arg2[%c0_5, %c0_6] : memref<256x3xf32, #tpu.memory_space<vmem>>, vector<256x3xf32>
    %c0_7 = arith.constant 0 : index
    %c3 = arith.constant 3 : index
    %5 = vector.load %arg9[%c0_7, %c3] : memref<256x96xf32, #tpu.memory_space<vmem>>, vector<256x3xf32>
    tpu.vector_store %arg9[%c0_7, %c3], %4 {strides = array<i32>} : memref<256x96xf32, #tpu.memory_space<vmem>>, vector<256x3xf32>,
    %c0_8 = arith.constant 0 : index
    %c6 = arith.constant 6 : index
    %6 = vector.load %arg9[%c0_8, %c6] : memref<256x96xf32, #tpu.memory_space<vmem>>, vector<256x3xf32>
    tpu.vector_store %arg9[%c0_8, %c6], %2 {strides = array<i32>} : memref<256x96xf32, #tpu.memory_space<vmem>>, vector<256x3xf32>,
    %c0_9 = arith.constant 0 : index
    %c0_10 = arith.constant 0 : index
    %7 = vector.load %arg4[%c0_9, %c0_10] : memref<256x32xf32, #tpu.memory_space<vmem>>, vector<256x32xf32>
    %c0_11 = arith.constant 0 : index
    %c9 = arith.constant 9 : index
    %8 = vector.load %arg9[%c0_11, %c9] : memref<256x96xf32, #tpu.memory_space<vmem>>, vector<256x32xf32>
    tpu.vector_store %arg9[%c0_11, %c9], %7 {strides = array<i32>} : memref<256x96xf32, #tpu.memory_space<vmem>>, vector<256x32xf32>,
    %cst = arith.constant 1.000000e+00 : f32
    %9 = vector.broadcast %cst : f32 to vector<256x3xf32>
    %10 = arith.mulf %2, %9 : vector<256x3xf32>
    %c0_12 = arith.constant 0 : index
    %c41 = arith.constant 41 : index
    %11 = vector.load %arg9[%c0_12, %c41] : memref<256x96xf32, #tpu.memory_space<vmem>>, vector<256x3xf32>
    tpu.vector_store %arg9[%c0_12, %c41], %10 {strides = array<i32>} : memref<256x96xf32, #tpu.memory_space<vmem>>, vector<256x3xf32>,
    %cst_13 = arith.constant 1.000000e+00 : f32
    %12 = vector.broadcast %cst_13 : f32 to vector<256x2xf32>
    %13 = arith.mulf %1, %12 : vector<256x2xf32>
    %c0_14 = arith.constant 0 : index
    %c44 = arith.constant 44 : index
    %14 = vector.load %arg9[%c0_14, %c44] : memref<256x96xf32, #tpu.memory_space<vmem>>, vector<256x2xf32>
    tpu.vector_store %arg9[%c0_14, %c44], %13 {strides = array<i32>} : memref<256x96xf32, #tpu.memory_space<vmem>>, vector<256x2xf32>,
    %cst_15 = arith.constant 2.000000e+00 : f32
    %15 = vector.broadcast %cst_15 : f32 to vector<256x3xf32>
    %16 = arith.mulf %2, %15 : vector<256x3xf32>
    %c0_16 = arith.constant 0 : index
    %c46 = arith.constant 46 : index
    %17 = vector.load %arg9[%c0_16, %c46] : memref<256x96xf32, #tpu.memory_space<vmem>>, vector<256x3xf32>
    tpu.vector_store %arg9[%c0_16, %c46], %16 {strides = array<i32>} : memref<256x96xf32, #tpu.memory_space<vmem>>, vector<256x3xf32>,
    %cst_17 = arith.constant 2.000000e+00 : f32
    %18 = vector.broadcast %cst_17 : f32 to vector<256x2xf32>
    %19 = arith.mulf %1, %18 : vector<256x2xf32>
    %c0_18 = arith.constant 0 : index
    %c49 = arith.constant 49 : index
    %20 = vector.load %arg9[%c0_18, %c49] : memref<256x96xf32, #tpu.memory_space<vmem>>, vector<256x2xf32>
    tpu.vector_store %arg9[%c0_18, %c49], %19 {strides = array<i32>} : memref<256x96xf32, #tpu.memory_space<vmem>>, vector<256x2xf32>,
    %cst_19 = arith.constant 4.000000e+00 : f32
    %21 = vector.broadcast %cst_19 : f32 to vector<256x3xf32>
    %22 = arith.mulf %2, %21 : vector<256x3xf32>
    %c0_20 = arith.constant 0 : index
    %c51 = arith.constant 51 : index
    %23 = vector.load %arg9[%c0_20, %c51] : memref<256x96xf32, #tpu.memory_space<vmem>>, vector<256x3xf32>
    tpu.vector_store %arg9[%c0_20, %c51], %22 {strides = array<i32>} : memref<256x96xf32, #tpu.memory_space<vmem>>, vector<256x3xf32>,
    %cst_21 = arith.constant 4.000000e+00 : f32
    %24 = vector.broadcast %cst_21 : f32 to vector<256x2xf32>
    %25 = arith.mulf %1, %24 : vector<256x2xf32>
    %c0_22 = arith.constant 0 : index
    %c54 = arith.constant 54 : index
    %26 = vector.load %arg9[%c0_22, %c54] : memref<256x96xf32, #tpu.memory_space<vmem>>, vector<256x2xf32>
    tpu.vector_store %arg9[%c0_22, %c54], %25 {strides = array<i32>} : memref<256x96xf32, #tpu.memory_space<vmem>>, vector<256x2xf32>,
    %cst_23 = arith.constant 8.000000e+00 : f32
    %27 = vector.broadcast %cst_23 : f32 to vector<256x3xf32>
    %28 = arith.mulf %2, %27 : vector<256x3xf32>
    %c0_24 = arith.constant 0 : index
    %c56 = arith.constant 56 : index
    %29 = vector.load %arg9[%c0_24, %c56] : memref<256x96xf32, #tpu.memory_space<vmem>>, vector<256x3xf32>
    tpu.vector_store %arg9[%c0_24, %c56], %28 {strides = array<i32>} : memref<256x96xf32, #tpu.memory_space<vmem>>, vector<256x3xf32>,
    %cst_25 = arith.constant 8.000000e+00 : f32
    %30 = vector.broadcast %cst_25 : f32 to vector<256x2xf32>
    %31 = arith.mulf %1, %30 : vector<256x2xf32>
    %c0_26 = arith.constant 0 : index
    %c59 = arith.constant 59 : index
    %32 = vector.load %arg9[%c0_26, %c59] : memref<256x96xf32, #tpu.memory_space<vmem>>, vector<256x2xf32>
    tpu.vector_store %arg9[%c0_26, %c59], %31 {strides = array<i32>} : memref<256x96xf32, #tpu.memory_space<vmem>>, vector<256x2xf32>,
    %c0_27 = arith.constant 0 : index
    %c41_28 = arith.constant 41 : index
    %33 = vector.load %arg9[%c0_27, %c41_28] : memref<256x96xf32, #tpu.memory_space<vmem>>, vector<256x20xf32>
    %cst_29 = arith.constant 1.57079637 : f32
    %34 = vector.broadcast %cst_29 : f32 to vector<256x20xf32>
    %35 = arith.addf %33, %34 : vector<256x20xf32>
    %c0_30 = arith.constant 0 : index
    %c61 = arith.constant 61 : index
    %36 = vector.load %arg9[%c0_30, %c61] : memref<256x96xf32, #tpu.memory_space<vmem>>, vector<256x20xf32>
    tpu.vector_store %arg9[%c0_30, %c61], %35 {strides = array<i32>} : memref<256x96xf32, #tpu.memory_space<vmem>>, vector<256x20xf32>,
    %c0_31 = arith.constant 0 : index
    %c41_32 = arith.constant 41 : index
    %37 = vector.load %arg9[%c0_31, %c41_32] : memref<256x96xf32, #tpu.memory_space<vmem>>, vector<256x40xf32>
    %38 = math.sin %37 : vector<256x40xf32>
    %c0_33 = arith.constant 0 : index
    %c41_34 = arith.constant 41 : index
    %39 = vector.load %arg9[%c0_33, %c41_34] : memref<256x96xf32, #tpu.memory_space<vmem>>, vector<256x40xf32>
    tpu.vector_store %arg9[%c0_33, %c41_34], %38 {strides = array<i32>} : memref<256x96xf32, #tpu.memory_space<vmem>>, vector<256x40xf32>,
    %cst_35 = arith.constant 0.000000e+00 : f32
    %40 = vector.broadcast %cst_35 : f32 to vector<256x15xf32>
    %c0_36 = arith.constant 0 : index
    %c81 = arith.constant 81 : index
    %41 = vector.load %arg9[%c0_36, %c81] : memref<256x96xf32, #tpu.memory_space<vmem>>, vector<256x15xf32>
    tpu.vector_store %arg9[%c0_36, %c81], %40 {strides = array<i32>} : memref<256x96xf32, #tpu.memory_space<vmem>>, vector<256x15xf32>,
    %c0_37 = arith.constant 0 : index
    %c0_38 = arith.constant 0 : index
    %42 = vector.load %arg9[%c0_37, %c0_38] : memref<256x96xf32, #tpu.memory_space<vmem>>, vector<256x96xf32>
    %43 = arith.truncf %42 : vector<256x96xf32> to vector<256x96xbf16>
    %c0_39 = arith.constant 0 : index
    %c0_40 = arith.constant 0 : index
    %44 = vector.load %arg5[%c0_39, %c0_40] : memref<288x96xbf16, #tpu.memory_space<vmem>>, vector<96x96xbf16>
    %cst_41 = arith.constant dense<0.000000e+00> : vector<256x96xf32>
    %45 = tpu.matmul %43, %44, %cst_41 {dimension_numbers = #tpu.dot_dimension_numbers<[1], [0], [0], [1], [0, 0, 1, 1], [], []>} : vector<256x96xbf16>, vector<96x96xbf16>, vector<256x96xf32> -> vector<256x96xf32>
    %cst_42 = arith.constant 0.000000e+00 : f32
    %46 = vector.broadcast %cst_42 : f32 to vector<256x96xf32>
    %47 = arith.maximumf %45, %46 : vector<256x96xf32>
    %48 = arith.truncf %47 : vector<256x96xf32> to vector<256x96xbf16>
    %c96 = arith.constant 96 : index
    %c0_43 = arith.constant 0 : index
    %49 = vector.load %arg5[%c96, %c0_43] : memref<288x96xbf16, #tpu.memory_space<vmem>>, vector<96x96xbf16>
    %cst_44 = arith.constant dense<0.000000e+00> : vector<256x96xf32>
    %50 = tpu.matmul %48, %49, %cst_44 {dimension_numbers = #tpu.dot_dimension_numbers<[1], [0], [0], [1], [0, 0, 1, 1], [], []>} : vector<256x96xbf16>, vector<96x96xbf16>, vector<256x96xf32> -> vector<256x96xf32>
    %cst_45 = arith.constant 0.000000e+00 : f32
    %51 = vector.broadcast %cst_45 : f32 to vector<256x96xf32>
    %52 = arith.maximumf %50, %51 : vector<256x96xf32>
    %53 = arith.truncf %52 : vector<256x96xf32> to vector<256x96xbf16>
    %c192 = arith.constant 192 : index
    %c0_46 = arith.constant 0 : index
    %54 = vector.load %arg5[%c192, %c0_46] : memref<288x96xbf16, #tpu.memory_space<vmem>>, vector<96x96xbf16>
    %cst_47 = arith.constant dense<0.000000e+00> : vector<256x96xf32>
    %55 = tpu.matmul %53, %54, %cst_47 {dimension_numbers = #tpu.dot_dimension_numbers<[1], [0], [0], [1], [0, 0, 1, 1], [], []>} : vector<256x96xbf16>, vector<96x96xbf16>, vector<256x96xf32> -> vector<256x96xf32>
    %56 = vector.extract_strided_slice %55 {offsets = [0, 0], sizes = [256, 64], strides = [1, 1]} : vector<256x96xf32> to vector<256x64xf32>
    %57 = vector.extract_strided_slice %55 {offsets = [0, 64], sizes = [256, 16], strides = [1, 1]} : vector<256x96xf32> to vector<256x16xf32>
    %58 = arith.truncf %56 : vector<256x64xf32> to vector<256x64xbf16>
    %c0_48 = arith.constant 0 : index
    %c0_49 = arith.constant 0 : index
    %59 = vector.load %arg6[%c0_48, %c0_49] : memref<128x32xbf16, #tpu.memory_space<vmem>>, vector<64x32xbf16>
    %cst_50 = arith.constant dense<0.000000e+00> : vector<256x32xf32>
    %60 = tpu.matmul %58, %59, %cst_50 {dimension_numbers = #tpu.dot_dimension_numbers<[1], [0], [0], [1], [0, 0, 1, 1], [], []>} : vector<256x64xbf16>, vector<64x32xbf16>, vector<256x32xf32> -> vector<256x32xf32>
    %c0_51 = arith.constant 0 : index
    %c0_52 = arith.constant 0 : index
    %61 = vector.load %arg7[%c0_51, %c0_52] : memref<1x32xf32, #tpu.memory_space<vmem>>, vector<1x32xf32>
    %62 = vector.broadcast %61 : vector<1x32xf32> to vector<256x32xf32>
    %63 = arith.addf %60, %62 : vector<256x32xf32>
    %cst_53 = arith.constant 0.000000e+00 : f32
    %64 = vector.broadcast %cst_53 : f32 to vector<256x32xf32>
    %65 = arith.maximumf %63, %64 : vector<256x32xf32>
    %66 = arith.truncf %65 : vector<256x32xf32> to vector<256x32xbf16>
    %c64 = arith.constant 64 : index
    %c0_54 = arith.constant 0 : index
    %67 = vector.load %arg6[%c64, %c0_54] : memref<128x32xbf16, #tpu.memory_space<vmem>>, vector<32x32xbf16>
    %cst_55 = arith.constant dense<0.000000e+00> : vector<256x32xf32>
    %68 = tpu.matmul %66, %67, %cst_55 {dimension_numbers = #tpu.dot_dimension_numbers<[1], [0], [0], [1], [0, 0, 1, 1], [], []>} : vector<256x32xbf16>, vector<32x32xbf16>, vector<256x32xf32> -> vector<256x32xf32>
    %cst_56 = arith.constant 0.000000e+00 : f32
    %69 = vector.broadcast %cst_56 : f32 to vector<256x32xf32>
    %70 = arith.maximumf %68, %69 : vector<256x32xf32>
    %71 = arith.truncf %70 : vector<256x32xf32> to vector<256x32xbf16>
    %c96_57 = arith.constant 96 : index
    %c0_58 = arith.constant 0 : index
    %72 = vector.load %arg6[%c96_57, %c0_58] : memref<128x32xbf16, #tpu.memory_space<vmem>>, vector<32x32xbf16>
    %cst_59 = arith.constant dense<0.000000e+00> : vector<256x32xf32>
    %73 = tpu.matmul %71, %72, %cst_59 {dimension_numbers = #tpu.dot_dimension_numbers<[1], [0], [0], [1], [0, 0, 1, 1], [], []>} : vector<256x32xbf16>, vector<32x32xbf16>, vector<256x32xf32> -> vector<256x32xf32>
    %74 = vector.extract_strided_slice %73 {offsets = [0, 0], sizes = [256, 16], strides = [1, 1]} : vector<256x32xf32> to vector<256x16xf32>
    %75 = arith.addf %74, %57 : vector<256x16xf32>
    %76 = tpu.iota {dimensions = array<i32: 1>} : vector<256x16xi32>
    %c4_i32 = arith.constant 4 : i32
    %77 = vector.broadcast %c4_i32 : i32 to vector<256x16xi32>
    %78 = arith.cmpi slt, %76, %77 : vector<256x16xi32>
    %c8_i32 = arith.constant 8 : i32
    %79 = vector.broadcast %c8_i32 : i32 to vector<256x16xi32>
    %80 = arith.cmpi sge, %76, %79 : vector<256x16xi32>
    %c12_i32 = arith.constant 12 : i32
    %81 = vector.broadcast %c12_i32 : i32 to vector<256x16xi32>
    %82 = arith.cmpi slt, %76, %81 : vector<256x16xi32>
    %83 = arith.andi %80, %82 : vector<256x16xi1>
    %84 = arith.ori %78, %83 : vector<256x16xi1>
    %85 = arith.negf %75 : vector<256x16xf32>
    %86 = math.exp %85 : vector<256x16xf32>
    %cst_60 = arith.constant 1.000000e+00 : f32
    %87 = vector.broadcast %cst_60 : f32 to vector<256x16xf32>
    %88 = arith.addf %87, %86 : vector<256x16xf32>
    %89 = arith.divf %87, %88 : vector<256x16xf32>
    %90 = arith.select %84, %89, %75 : vector<256x16xi1>, vector<256x16xf32>
    %91 = tpu.transpose %90, [1, 0] : vector<256x16xf32> -> vector<16x256xf32>
    %92 = arith.truncf %91 : vector<16x256xf32> to vector<16x256xbf16>
    %c0_61 = arith.constant 0 : index
    %c0_62 = arith.constant 0 : index
    %93 = vector.load %arg8[%c0_61, %c0_62] : memref<16x256xbf16, #tpu.memory_space<vmem>>, vector<16x256xbf16>
    tpu.vector_store %arg8[%c0_61, %c0_62], %92 {strides = array<i32>} : memref<16x256xbf16, #tpu.memory_space<vmem>>, vector<16x256xbf16>,
    return
  }
  func.func @transform_0(%arg0: i32) -> (i32, i32) {
    %c0_i32 = arith.constant 0 : i32
    %c0_i32_0 = arith.constant 0 : i32
    return %arg0, %c0_i32 : i32, i32
  }
  func.func @transform_1(%arg0: i32) -> (i32, i32) {
    %c0_i32 = arith.constant 0 : i32
    %c0_i32_0 = arith.constant 0 : i32
    return %arg0, %c0_i32 : i32, i32
  }
  func.func @transform_2(%arg0: i32) -> (i32, i32) {
    %c0_i32 = arith.constant 0 : i32
    %c0_i32_0 = arith.constant 0 : i32
    return %arg0, %c0_i32 : i32, i32
  }
  func.func @transform_3(%arg0: i32) -> (i32, i32) {
    %c0_i32 = arith.constant 0 : i32
    %c0_i32_0 = arith.constant 0 : i32
    return %arg0, %c0_i32 : i32, i32
  }
  func.func @transform_4(%arg0: i32) -> (i32, i32) {
    %c0_i32 = arith.constant 0 : i32
    %c0_i32_0 = arith.constant 0 : i32
    %c0_i32_1 = arith.constant 0 : i32
    return %c0_i32, %c0_i32_0 : i32, i32
  }
  func.func @transform_5(%arg0: i32) -> (i32, i32) {
    %c0_i32 = arith.constant 0 : i32
    %c0_i32_0 = arith.constant 0 : i32
    %c0_i32_1 = arith.constant 0 : i32
    return %c0_i32, %c0_i32_0 : i32, i32
  }
  func.func @transform_6(%arg0: i32) -> (i32, i32) {
    %c0_i32 = arith.constant 0 : i32
    %c0_i32_0 = arith.constant 0 : i32
    %c0_i32_1 = arith.constant 0 : i32
    return %c0_i32, %c0_i32_0 : i32, i32
  }
  func.func @transform_7(%arg0: i32) -> (i32, i32) {
    %c0_i32 = arith.constant 0 : i32
    %c0_i32_0 = arith.constant 0 : i32
    return %c0_i32, %arg0 : i32, i32
  }
}

</mosaic_0001>

<bundles_post_ra>
// kernel: rendering_forward.1
= control target key start
LH: loop header
LB: loop body
LE: loop exit
PB: predicated region body
PF: predicated region fallthrough
CT: control target
= control target key end

     0   :  { %s9096_s28 = smov 3   ;;  %vm91_vm0 = vcmask 23552   ;;  %s9097_s22 = smov 6   ;;  %vm284_vm1 = vcmask 48152   ;;  %vm445_vm2 = vcmask 72752   ;;  %vm638_vm3 = vcmask 334920   ;;  %s14004_s1 = inlined_call_operand.vmem [shape: f32[256,3], index: 1, kind: input, shape index: {}]   ;;  %s14005_s0 = inlined_call_operand.vmem [shape: f32[256,3], index: 0, kind: input, shape index: {}]   ;;  %s14006_s2 = inlined_call_operand.vmem [shape: f32[256,3], index: 2, kind: input, shape index: {}]   ;;  %s14007_s3 = inlined_call_operand.vmem [shape: f32[256,32], index: 3, kind: input, shape index: {}]   ;;  %s14008_s4 = inlined_call_operand.vmem [shape: bf16[288,96], index: 4, kind: input, shape index: {}]   ;;  %s14009_s5 = inlined_call_operand.vmem [shape: bf16[128,32], index: 5, kind: input, shape index: {}]   ;;  %s14010_s6 = inlined_call_operand.vmem [shape: f32[1,32], index: 6, kind: input, shape index: {}]   ;;  %s14011_s7 = inlined_call_operand.vmem [shape: bf16[16,256], index: 7, kind: output, shape index: {}]  }
   0x1   :  { %v126_v0 = vld [vmem:[%s14004_s1 + $0x10] sm:$0xff]  ;;  %v124_v1 = vld [vmem:[%s14004_s1] sm:$0xff]  ;;  %v127_v2 = vld [vmem:[%s14004_s1 + $0x18] sm:$0xff]  ;;  %s9098_s17 = smov 9   ;;  %s9099_s23 = smov 41   ;;  %vm767_vm4 = vcmask 359752  }
   0x2   :  { %192 = vrot.lane.b32.xlu1 %v126_v0, %s9096_s28  ;;  %188 = vrot.lane.b32.xlu0 %v124_v1, %s9096_s28  ;;  %v125_v3 = vld [vmem:[%s14004_s1 + $0x8] sm:$0xff]  ;;  %v9178_v5 = vld [vmem:[%s14005_s0] sm:$0xff]  ;;  %s9100_s24 = smov 44   ;;  %s9101_s25 = smov 46   ;;  %vm928_vm5 = vcmask 376160   ;;  %vm1121_vm6 = vcmask 400752  }
   0x3   :  { %v9173_v4 = vld [vmem:[%s14005_s0 + $0x8] sm:$0xff]  ;;  %v9185_v6 = vld [vmem:[%s14005_s0 + $0x18] sm:$0xff]  ;;  %v9190_v7 = vld [vmem:[%s14005_s0 + $0x10] sm:$0xff]  ;;  %92 = vst.msk [vmem:[#allocation2] sm:$0xff] %vm91_vm0, %v9178_v5  ;;  %v1154_v25 = vmul.f32 2.0, %v9178_v5  ;;  %s9102_s26 = smov 49  }
   0x4   :  { %93 = vst.msk [vmem:[#allocation2 + $0x8] sm:$0xff] %vm91_vm0, %v9173_v4  ;;  %v9199_v8 = vld [vmem:[%s14006_s2 + $0x8] sm:$0xff]  ;;  %v9204_v9 = vld [vmem:[%s14006_s2] sm:$0xff]  ;;  %94 = vst.msk [vmem:[#allocation2 + $0x10] sm:$0xff] %vm91_vm0, %v9190_v7  ;;  %v1155_v24 = vmul.f32 2.0, %v9173_v4  ;;  %v1157_v26 = vmul.f32 2.0, %v9185_v6 }
   0x5   :  { %95 = vst.msk [vmem:[#allocation2 + $0x18] sm:$0xff] %vm91_vm0, %v9185_v6  ;;  %v9217_v10 = vld [vmem:[%s14006_s2 + $0x18] sm:$0xff]  ;;  %v9222_v11 = vld [vmem:[%s14006_s2 + $0x10] sm:$0xff]  ;;  %v9227_v12 = vld [vmem:[%s14005_s0 + $0x28] sm:$0xff]  ;;  %v962_v20 = vmul.f32 2.0, %v9199_v8  ;;  %v961_v21 = vmul.f32 2.0, %v9204_v9 }
   0x6   :  { %194 = vrot.lane.b32.xlu1 %v127_v2, %s9096_s28  ;;  %190 = vrot.lane.b32.xlu0 %v125_v3, %s9096_s28  ;;  %97 = vst.msk [vmem:[#allocation2 + $0x28] sm:$0xff] %vm91_vm0, %v9227_v12  ;;  %v9234_v13 = vld [vmem:[%s14005_s0 + $0x20] sm:$0xff]  ;;  %v9239_v14 = vld [vmem:[%s14005_s0 + $0x38] sm:$0xff]  ;;  %v964_v22 = vmul.f32 2.0, %v9217_v10  ;;  %v963_v23 = vmul.f32 2.0, %v9222_v11  ;;  %v1156_v27 = vmul.f32 2.0, %v9190_v7 }
   0x7   :  { %v9244_v15 = vld [vmem:[%s14005_s0 + $0x30] sm:$0xff]  ;;  %96 = vst.msk [vmem:[#allocation2 + $0x20] sm:$0xff] %vm91_vm0, %v9234_v13  ;;  %99 = vst.msk [vmem:[#allocation2 + $0x38] sm:$0xff] %vm91_vm0, %v9239_v14  ;;  %v479_v16 = vld [vmem:[%s14007_s3 + $0x8] sm:$0xff]  ;;  %v1348_v28 = vmul.f32 4.0, %v9199_v8  ;;  %v1347_v29 = vmul.f32 4.0, %v9204_v9 }
   0x8   :  { %98 = vst.msk [vmem:[#allocation2 + $0x30] sm:$0xff] %vm91_vm0, %v9244_v15  ;;  %v478_v17 = vld [vmem:[%s14007_s3] sm:$0xff]  ;;  %v481_v18 = vld [vmem:[%s14007_s3 + $0x18] sm:$0xff]  ;;  %v480_v19 = vld [vmem:[%s14007_s3 + $0x10] sm:$0xff]  ;;  %s9103_s27 = smov 51   ;;  %v1350_v32 = vmul.f32 4.0, %v9217_v10 }
   0x9   :  { %v129_v30 = vld [vmem:[%s14004_s1 + $0x28] sm:$0xff]  ;;  %v128_v31 = vld [vmem:[%s14004_s1 + $0x20] sm:$0xff]  ;;  %v1349_v33 = vmul.f32 4.0, %v9222_v11  ;;  %v1541_v34 = vmul.f32 4.0, %v9173_v4  ;;  %v1540_v35 = vmul.f32 4.0, %v9178_v5  ;;  %s9104_s10 = smov 54  }
   0xa   :  { %351 = vrot.lane.b32.xlu1 %v9199_v8, %s9097_s22  ;;  %349 = vrot.lane.b32.xlu0 %v9204_v9, %s9097_s22  ;;  %v131_v36 = vld [vmem:[%s14004_s1 + $0x38] sm:$0xff]  ;;  %v130_v37 = vld [vmem:[%s14004_s1 + $0x30] sm:$0xff]  ;;  %v1543_v40 = vmul.f32 4.0, %v9185_v6  ;;  %v1542_v41 = vmul.f32 4.0, %v9190_v7  ;;  %v1734_v44 = vmul.f32 8.0, %v9199_v8  ;;  %v1733_v45 = vmul.f32 8.0, %v9204_v9 }
   0xb   :  { %v9335_v38 = vld [vmem:[%s14006_s2 + $0x28] sm:$0xff]  ;;  %v9340_v39 = vld [vmem:[%s14006_s2 + $0x20] sm:$0xff]  ;;  %v9369_v46 = vld [vmem:[%s14005_s0 + $0x58] sm:$0xff]  ;;  %s9105_s13 = smov 56   ;;  %v1736_v52 = vmul.f32 8.0, %v9217_v10  ;;  %v1735_v53 = vmul.f32 8.0, %v9222_v11 }
   0xc   :  { %v9351_v42 = vld [vmem:[%s14005_s0 + $0x48] sm:$0xff]  ;;  %v9356_v43 = vld [vmem:[%s14005_s0 + $0x40] sm:$0xff]  ;;  %v9374_v47 = vld [vmem:[%s14005_s0 + $0x50] sm:$0xff]  ;;  %103 = vst.msk [vmem:[#allocation2 + $0x58] sm:$0xff] %vm91_vm0, %v9369_v46  ;;  %v1927_v54 = vmul.f32 8.0, %v9173_v4  ;;  %v1926_v55 = vmul.f32 8.0, %v9178_v5 }
   0xd   :  { %101 = vst.msk [vmem:[#allocation2 + $0x48] sm:$0xff] %vm91_vm0, %v9351_v42  ;;  %100 = vst.msk [vmem:[#allocation2 + $0x40] sm:$0xff] %vm91_vm0, %v9356_v43  ;;  %v9385_v48 = vld [vmem:[%s14006_s2 + $0x38] sm:$0xff]  ;;  %v9390_v49 = vld [vmem:[%s14006_s2 + $0x30] sm:$0xff]  ;;  %s9106_s30 = smov 59   ;;  %v1929_v58 = vmul.f32 8.0, %v9185_v6 }
   0xe   :  { %355 = vrot.lane.b32.xlu1 %v9217_v10, %s9097_s22  ;;  %353 = vrot.lane.b32.xlu0 %v9222_v11, %s9097_s22  ;;  %102 = vst.msk [vmem:[#allocation2 + $0x50] sm:$0xff] %vm91_vm0, %v9374_v47  ;;  %v483_v50 = vld [vmem:[%s14007_s3 + $0x28] sm:$0xff]  ;;  %v482_v51 = vld [vmem:[%s14007_s3 + $0x20] sm:$0xff]  ;;  %v1928_v59 = vmul.f32 8.0, %v9190_v7  ;;  %v966_v2 = vmul.f32 2.0, %v9335_v38  ;;  %v965_v3 = vmul.f32 2.0, %v9340_v39 }
   0xf   :  { %v485_v56 = vld [vmem:[%s14007_s3 + $0x38] sm:$0xff]  ;;  %v484_v57 = vld [vmem:[%s14007_s3 + $0x30] sm:$0xff]  ;;  %vm1314_vm7 = vcmask 417160   ;;  %vm1507_vm8 = vcmask 441752   ;;  %vm1700_vm9 = vcmask 458160   ;;  %vm1893_vm10 = vcmask 482752  }
  0x10   :  { %vm2086_vm11 = vcmask 499160   ;;  %vm2311_vm12 = vcmask 663016   ;;  %s9115_s16 = smov 64  }
  0x12   :  { %544 = vrot.lane.b32.xlu1 %v479_v16, %s9098_s17  ;;  %542 = vrot.lane.b32.xlu0 %v478_v17, %s9098_s17 }
  0x16   :  { %548 = vrot.lane.b32.xlu1 %v481_v18, %s9098_s17  ;;  %546 = vrot.lane.b32.xlu0 %v480_v19, %s9098_s17  ;;  %v1161_v18 = vmul.f32 2.0, %v9239_v14  ;;  %v1160_v19 = vmul.f32 2.0, %v9244_v15 }
  0x1a   :  { %673 = vrot.lane.b32.xlu1 %v9199_v8, %s9099_s23  ;;  %671 = vrot.lane.b32.xlu0 %v9204_v9, %s9099_s23 }
  0x1e   :  { %677 = vrot.lane.b32.xlu1 %v9217_v10, %s9099_s23  ;;  %675 = vrot.lane.b32.xlu0 %v9222_v11, %s9099_s23  ;;  %v1159_v10 = vmul.f32 2.0, %v9227_v12  ;;  %v1158_v11 = vmul.f32 2.0, %v9234_v13 }
  0x22   :  { %834 = vrot.lane.b32.xlu1 %v9173_v4, %s9100_s24  ;;  %832 = vrot.lane.b32.xlu0 %v9178_v5, %s9100_s24 }
  0x26   :  { %838 = vrot.lane.b32.xlu1 %v9185_v6, %s9100_s24  ;;  %836 = vrot.lane.b32.xlu0 %v9190_v7, %s9100_s24  ;;  %v968_v6 = vmul.f32 2.0, %v9385_v48  ;;  %v967_v7 = vmul.f32 2.0, %v9390_v49 }
  0x2a   :  { %1027 = vrot.lane.b32.xlu1 %v962_v20, %s9101_s25  ;;  %1025 = vrot.lane.b32.xlu0 %v961_v21, %s9101_s25 }
  0x2e   :  { %1031 = vrot.lane.b32.xlu1 %v964_v22, %s9101_s25  ;;  %1029 = vrot.lane.b32.xlu0 %v963_v23, %s9101_s25  ;;  %v1352_v22 = vmul.f32 4.0, %v9335_v38  ;;  %v1351_v23 = vmul.f32 4.0, %v9340_v39 }
  0x32   :  { %1220 = vrot.lane.b32.xlu1 %v1155_v24, %s9102_s26  ;;  %1218 = vrot.lane.b32.xlu0 %v1154_v25, %s9102_s26 }
  0x36   :  { %1224 = vrot.lane.b32.xlu1 %v1157_v26, %s9102_s26  ;;  %1222 = vrot.lane.b32.xlu0 %v1156_v27, %s9102_s26  ;;  %v133_v26 = vld [vmem:[%s14004_s1 + $0x48] sm:$0xff]  ;;  %v132_v27 = vld [vmem:[%s14004_s1 + $0x40] sm:$0xff] }
  0x3a   :  { %1413 = vrot.lane.b32.xlu1 %v1348_v28, %s9103_s27  ;;  %1411 = vrot.lane.b32.xlu0 %v1347_v29, %s9103_s27 }
  0x3e   :  { %198 = vrot.lane.b32.xlu1 %v129_v30, %s9096_s28  ;;  %196 = vrot.lane.b32.xlu0 %v128_v31, %s9096_s28  ;;  %v1354_v30 = vmul.f32 4.0, %v9385_v48  ;;  %v1353_v31 = vmul.f32 4.0, %v9390_v49 }
  0x42   :  { %1417 = vrot.lane.b32.xlu1 %v1350_v32, %s9103_s27  ;;  %1415 = vrot.lane.b32.xlu0 %v1349_v33, %s9103_s27 }
  0x46   :  { %1606 = vrot.lane.b32.xlu1 %v1541_v34, %s9104_s10  ;;  %1604 = vrot.lane.b32.xlu0 %v1540_v35, %s9104_s10  ;;  %v1545_v34 = vmul.f32 4.0, %v9227_v12  ;;  %v1544_v35 = vmul.f32 4.0, %v9234_v13 }
  0x4a   :  { %202 = vrot.lane.b32.xlu1 %v131_v36, %s9096_s28  ;;  %200 = vrot.lane.b32.xlu0 %v130_v37, %s9096_s28 }
  0x4e   :  { %359 = vrot.lane.b32.xlu1 %v9335_v38, %s9097_s22  ;;  %357 = vrot.lane.b32.xlu0 %v9340_v39, %s9097_s22 }
  0x52   :  { %1610 = vrot.lane.b32.xlu1 %v1543_v40, %s9104_s10  ;;  %1608 = vrot.lane.b32.xlu0 %v1542_v41, %s9104_s10  ;;  %v135_v40 = vld [vmem:[%s14004_s1 + $0x58] sm:$0xff]  ;;  %v134_v41 = vld [vmem:[%s14004_s1 + $0x50] sm:$0xff] }
  0x56   :  { %1799 = vrot.lane.b32.xlu1 %v1734_v44, %s9105_s13  ;;  %1797 = vrot.lane.b32.xlu0 %v1733_v45, %s9105_s13 }
  0x5a   :  { %363 = vrot.lane.b32.xlu1 %v9385_v48, %s9097_s22  ;;  %361 = vrot.lane.b32.xlu0 %v9390_v49, %s9097_s22 }
  0x5e   :  { %552 = vrot.lane.b32.xlu1 %v483_v50, %s9098_s17  ;;  %550 = vrot.lane.b32.xlu0 %v482_v51, %s9098_s17  ;;  %v9511_v50 = vld [vmem:[%s14006_s2 + $0x48] sm:$0xff]  ;;  %v9516_v51 = vld [vmem:[%s14006_s2 + $0x40] sm:$0xff] }
  0x62   :  { %1803 = vrot.lane.b32.xlu1 %v1736_v52, %s9105_s13  ;;  %1801 = vrot.lane.b32.xlu0 %v1735_v53, %s9105_s13 }
  0x66   :  { %1992 = vrot.lane.b32.xlu1 %v1927_v54, %s9106_s30  ;;  %1990 = vrot.lane.b32.xlu0 %v1926_v55, %s9106_s30  ;;  %v1547_v54 = vmul.f32 4.0, %v9239_v14  ;;  %v1546_v55 = vmul.f32 4.0, %v9244_v15 }
  0x6a   :  { %556 = vrot.lane.b32.xlu1 %v485_v56, %s9098_s17  ;;  %554 = vrot.lane.b32.xlu0 %v484_v57, %s9098_s17 }
  0x6e   :  { %681 = vrot.lane.b32.xlu1 %v9335_v38, %s9099_s23  ;;  %679 = vrot.lane.b32.xlu0 %v9340_v39, %s9099_s23 }
  0x72   :  { %1996 = vrot.lane.b32.xlu1 %v1929_v58, %s9106_s30  ;;  %1994 = vrot.lane.b32.xlu0 %v1928_v59, %s9106_s30  ;;  %v9531_v58 = vld [vmem:[%s14005_s0 + $0x68] sm:$0xff]  ;;  %v9536_v59 = vld [vmem:[%s14005_s0 + $0x60] sm:$0xff] }
  0x73   :  { %105 = vst.msk [vmem:[#allocation2 + $0x68] sm:$0xff] %vm91_vm0, %v9531_v58  ;;  %104 = vst.msk [vmem:[#allocation2 + $0x60] sm:$0xff] %vm91_vm0, %v9536_v59 }
  0x74   :  { %v193_v60 = vpop.permute.xlu1 %192  ;;  %v189_v61 = vpop.permute.xlu0 %188 }
  0x75   :  { %287 = vst.msk [vmem:[#allocation2 + $0x10] sm:$0xff] %vm284_vm1, %v193_v60  ;;  %285 = vst.msk [vmem:[#allocation2] sm:$0xff] %vm284_vm1, %v189_v61  ;;  %v1738_v60 = vmul.f32 8.0, %v9335_v38  ;;  %v1737_v61 = vmul.f32 8.0, %v9340_v39  ;;  %v9556_v38 = vld [vmem:[%s14005_s0 + $0x70] sm:$0xff]  ;;  %v9567_v39 = vld [vmem:[%s14006_s2 + $0x58] sm:$0xff] }
  0x76   :  { %685 = vrot.lane.b32.xlu1 %v9385_v48, %s9099_s23  ;;  %683 = vrot.lane.b32.xlu0 %v9390_v49, %s9099_s23  ;;  %106 = vst.msk [vmem:[#allocation2 + $0x70] sm:$0xff] %vm91_vm0, %v9556_v38 }
  0x78   :  { %v195_v62 = vpop.permute.xlu1 %194  ;;  %v191_v63 = vpop.permute.xlu0 %190 }
  0x79   :  { %288 = vst.msk [vmem:[#allocation2 + $0x18] sm:$0xff] %vm284_vm1, %v195_v62  ;;  %286 = vst.msk [vmem:[#allocation2 + $0x8] sm:$0xff] %vm284_vm1, %v191_v63 }
  0x7a   :  { %842 = vrot.lane.b32.xlu1 %v9227_v12, %s9100_s24  ;;  %840 = vrot.lane.b32.xlu0 %v9234_v13, %s9100_s24 }
  0x7c   :  { %v352_v0 = vpop.permute.xlu1 %351  ;;  %v350_v1 = vpop.permute.xlu0 %349 }
  0x7d   :  { %447 = vst.msk [vmem:[#allocation2 + $0x8] sm:$0xff] %vm445_vm2, %v352_v0  ;;  %446 = vst.msk [vmem:[#allocation2] sm:$0xff] %vm445_vm2, %v350_v1  ;;  %v9551_v0 = vld [vmem:[%s14005_s0 + $0x78] sm:$0xff]  ;;  %v9572_v1 = vld [vmem:[%s14006_s2 + $0x50] sm:$0xff] }
  0x7e   :  { %846 = vrot.lane.b32.xlu1 %v9239_v14, %s9100_s24  ;;  %844 = vrot.lane.b32.xlu0 %v9244_v15, %s9100_s24  ;;  %107 = vst.msk [vmem:[#allocation2 + $0x78] sm:$0xff] %vm91_vm0, %v9551_v0 }
  0x80   :  { %v356_v4 = vpop.permute.xlu1 %355  ;;  %v354_v5 = vpop.permute.xlu0 %353 }
  0x81   :  { %449 = vst.msk [vmem:[#allocation2 + $0x18] sm:$0xff] %vm445_vm2, %v356_v4  ;;  %448 = vst.msk [vmem:[#allocation2 + $0x10] sm:$0xff] %vm445_vm2, %v354_v5  ;;  %v487_v4 = vld [vmem:[%s14007_s3 + $0x48] sm:$0xff]  ;;  %v486_v5 = vld [vmem:[%s14007_s3 + $0x40] sm:$0xff] }
  0x82   :  { %1035 = vrot.lane.b32.xlu1 %v966_v2, %s9101_s25  ;;  %1033 = vrot.lane.b32.xlu0 %v965_v3, %s9101_s25 }
  0x84   :  { %v545_v8 = vpop.permute.xlu1 %544  ;;  %v543_v9 = vpop.permute.xlu0 %542 }
  0x85   :  { %640 = vst.msk [vmem:[#allocation2 + $0x8] sm:$0xff] %vm638_vm3, %v545_v8  ;;  %639 = vst.msk [vmem:[#allocation2] sm:$0xff] %vm638_vm3, %v543_v9  ;;  %v1740_v8 = vmul.f32 8.0, %v9385_v48  ;;  %v1739_v9 = vmul.f32 8.0, %v9390_v49  ;;  %v489_v48 = vld [vmem:[%s14007_s3 + $0x58] sm:$0xff] }
  0x86   :  { %1039 = vrot.lane.b32.xlu1 %v968_v6, %s9101_s25  ;;  %1037 = vrot.lane.b32.xlu0 %v967_v7, %s9101_s25 }
  0x88   :  { %v549_v16 = vpop.permute.xlu1 %548  ;;  %v547_v17 = vpop.permute.xlu0 %546 }
  0x89   :  { %642 = vst.msk [vmem:[#allocation2 + $0x18] sm:$0xff] %vm638_vm3, %v549_v16  ;;  %641 = vst.msk [vmem:[#allocation2 + $0x10] sm:$0xff] %vm638_vm3, %v547_v17  ;;  %v1931_v16 = vmul.f32 8.0, %v9227_v12  ;;  %v1930_v17 = vmul.f32 8.0, %v9234_v13  ;;  %v488_v12 = vld [vmem:[%s14007_s3 + $0x50] sm:$0xff] }
  0x8a   :  { %1228 = vrot.lane.b32.xlu1 %v1159_v10, %s9102_s26  ;;  %1226 = vrot.lane.b32.xlu0 %v1158_v11, %s9102_s26 }
  0x8c   :  { %v674_v20 = vpop.permute.xlu1 %673  ;;  %v672_v21 = vpop.permute.xlu0 %671 }
  0x8d   :  { %769 = vst.msk [vmem:[#allocation2 + $0x8] sm:$0xff] %vm767_vm4, %v674_v20  ;;  %768 = vst.msk [vmem:[#allocation2] sm:$0xff] %vm767_vm4, %v672_v21 }
  0x8e   :  { %1232 = vrot.lane.b32.xlu1 %v1161_v18, %s9102_s26  ;;  %1230 = vrot.lane.b32.xlu0 %v1160_v19, %s9102_s26 }
  0x90   :  { %v678_v24 = vpop.permute.xlu1 %677  ;;  %v676_v25 = vpop.permute.xlu0 %675 }
  0x91   :  { %771 = vst.msk [vmem:[#allocation2 + $0x18] sm:$0xff] %vm767_vm4, %v678_v24  ;;  %770 = vst.msk [vmem:[#allocation2 + $0x10] sm:$0xff] %vm767_vm4, %v676_v25 }
  0x92   :  { %1421 = vrot.lane.b32.xlu1 %v1352_v22, %s9103_s27  ;;  %1419 = vrot.lane.b32.xlu0 %v1351_v23, %s9103_s27  ;;  %v1933_v22 = vmul.f32 8.0, %v9239_v14  ;;  %v1932_v23 = vmul.f32 8.0, %v9244_v15 }
  0x94   :  { %v835_v28 = vpop.permute.xlu1 %834  ;;  %v833_v29 = vpop.permute.xlu0 %832 }
  0x95   :  { %930 = vst.msk [vmem:[#allocation2 + $0x8] sm:$0xff] %vm928_vm5, %v835_v28  ;;  %929 = vst.msk [vmem:[#allocation2] sm:$0xff] %vm928_vm5, %v833_v29 }
  0x96   :  { %206 = vrot.lane.b32.xlu1 %v133_v26, %s9096_s28  ;;  %204 = vrot.lane.b32.xlu0 %v132_v27, %s9096_s28 }
  0x98   :  { %v839_v32 = vpop.permute.xlu1 %838  ;;  %v837_v33 = vpop.permute.xlu0 %836 }
  0x99   :  { %932 = vst.msk [vmem:[#allocation2 + $0x18] sm:$0xff] %vm928_vm5, %v839_v32  ;;  %931 = vst.msk [vmem:[#allocation2 + $0x10] sm:$0xff] %vm928_vm5, %v837_v33 }
  0x9a   :  { %1425 = vrot.lane.b32.xlu1 %v1354_v30, %s9103_s27  ;;  %1423 = vrot.lane.b32.xlu0 %v1353_v31, %s9103_s27  ;;  %v970_v30 = vmul.f32 2.0, %v9511_v50  ;;  %v969_v31 = vmul.f32 2.0, %v9516_v51 }
  0x9c   :  { %v1028_v36 = vpop.permute.xlu1 %1027  ;;  %v1026_v37 = vpop.permute.xlu0 %1025 }
  0x9d   :  { %1123 = vst.msk [vmem:[#allocation2 + $0x8] sm:$0xff] %vm1121_vm6, %v1028_v36  ;;  %1122 = vst.msk [vmem:[#allocation2] sm:$0xff] %vm1121_vm6, %v1026_v37 }
  0x9e   :  { %1614 = vrot.lane.b32.xlu1 %v1545_v34, %s9104_s10  ;;  %1612 = vrot.lane.b32.xlu0 %v1544_v35, %s9104_s10  ;;  %v972_v34 = vmul.f32 2.0, %v9567_v39  ;;  %v971_v35 = vmul.f32 2.0, %v9572_v1 }
  0xa0   :  { %v1032_v44 = vpop.permute.xlu1 %1031  ;;  %v1030_v45 = vpop.permute.xlu0 %1029 }
  0xa1   :  { %1125 = vst.msk [vmem:[#allocation2 + $0x18] sm:$0xff] %vm1121_vm6, %v1032_v44  ;;  %1124 = vst.msk [vmem:[#allocation2 + $0x10] sm:$0xff] %vm1121_vm6, %v1030_v45 }
  0xa2   :  { %210 = vrot.lane.b32.xlu1 %v135_v40, %s9096_s28  ;;  %208 = vrot.lane.b32.xlu0 %v134_v41, %s9096_s28  ;;  %v1163_v40 = vmul.f32 2.0, %v9351_v42  ;;  %v1162_v41 = vmul.f32 2.0, %v9356_v43 }
  0xa4   :  { %v1221_v52 = vpop.permute.xlu1 %1220  ;;  %v1219_v53 = vpop.permute.xlu0 %1218 }
  0xa5   :  { %1316 = vst.msk [vmem:[#allocation2 + $0x8] sm:$0xff] %vm1314_vm7, %v1221_v52  ;;  %1315 = vst.msk [vmem:[#allocation2] sm:$0xff] %vm1314_vm7, %v1219_v53  ;;  %v1165_v52 = vmul.f32 2.0, %v9369_v46  ;;  %v1164_v53 = vmul.f32 2.0, %v9374_v47 }
  0xa6   :  { %367 = vrot.lane.b32.xlu1 %v9511_v50, %s9097_s22  ;;  %365 = vrot.lane.b32.xlu0 %v9516_v51, %s9097_s22 }
  0xa8   :  { %v1225_v56 = vpop.permute.xlu1 %1224  ;;  %v1223_v57 = vpop.permute.xlu0 %1222 }
  0xa9   :  { %1318 = vst.msk [vmem:[#allocation2 + $0x18] sm:$0xff] %vm1314_vm7, %v1225_v56  ;;  %1317 = vst.msk [vmem:[#allocation2 + $0x10] sm:$0xff] %vm1314_vm7, %v1223_v57  ;;  %v1356_v56 = vmul.f32 4.0, %v9511_v50  ;;  %v1355_v57 = vmul.f32 4.0, %v9516_v51 }
  0xaa   :  { %1618 = vrot.lane.b32.xlu1 %v1547_v54, %s9104_s10  ;;  %1616 = vrot.lane.b32.xlu0 %v1546_v55, %s9104_s10 }
  0xac   :  { %v1414_v62 = vpop.permute.xlu1 %1413  ;;  %v1412_v63 = vpop.permute.xlu0 %1411 }
  0xad   :  { %1509 = vst.msk [vmem:[#allocation2 + $0x8] sm:$0xff] %vm1507_vm8, %v1414_v62  ;;  %1508 = vst.msk [vmem:[#allocation2] sm:$0xff] %vm1507_vm8, %v1412_v63  ;;  %v137_v62 = vld [vmem:[%s14004_s1 + $0x68] sm:$0xff]  ;;  %v136_v63 = vld [vmem:[%s14004_s1 + $0x60] sm:$0xff] }
  0xae   :  { %1807 = vrot.lane.b32.xlu1 %v1738_v60, %s9105_s13  ;;  %1805 = vrot.lane.b32.xlu0 %v1737_v61, %s9105_s13 }
  0xb0   :  { %v199_v2 = vpop.permute.xlu1 %198  ;;  %v197_v3 = vpop.permute.xlu0 %196 }
  0xb1   :  { %290 = vst.msk [vmem:[#allocation2 + $0x28] sm:$0xff] %vm284_vm1, %v199_v2  ;;  %289 = vst.msk [vmem:[#allocation2 + $0x20] sm:$0xff] %vm284_vm1, %v197_v3 }
  0xb2   :  { %371 = vrot.lane.b32.xlu1 %v9567_v39, %s9097_s22  ;;  %369 = vrot.lane.b32.xlu0 %v9572_v1, %s9097_s22 }
  0xb4   :  { %v1418_v6 = vpop.permute.xlu1 %1417  ;;  %v1416_v7 = vpop.permute.xlu0 %1415 }
  0xb5   :  { %1511 = vst.msk [vmem:[#allocation2 + $0x18] sm:$0xff] %vm1507_vm8, %v1418_v6  ;;  %1510 = vst.msk [vmem:[#allocation2 + $0x10] sm:$0xff] %vm1507_vm8, %v1416_v7 }
  0xb6   :  { %560 = vrot.lane.b32.xlu1 %v487_v4, %s9098_s17  ;;  %558 = vrot.lane.b32.xlu0 %v486_v5, %s9098_s17  ;;  %v1358_v4 = vmul.f32 4.0, %v9567_v39  ;;  %v1357_v5 = vmul.f32 4.0, %v9572_v1 }
  0xb8   :  { %v1607_v10 = vpop.permute.xlu1 %1606  ;;  %v1605_v11 = vpop.permute.xlu0 %1604 }
  0xb9   :  { %1702 = vst.msk [vmem:[#allocation2 + $0x8] sm:$0xff] %vm1700_vm9, %v1607_v10  ;;  %1701 = vst.msk [vmem:[#allocation2] sm:$0xff] %vm1700_vm9, %v1605_v11 }
  0xba   :  { %1811 = vrot.lane.b32.xlu1 %v1740_v8, %s9105_s13  ;;  %1809 = vrot.lane.b32.xlu0 %v1739_v9, %s9105_s13  ;;  %v1549_v8 = vmul.f32 4.0, %v9351_v42  ;;  %v1548_v9 = vmul.f32 4.0, %v9356_v43 }
  0xbc   :  { %v203_v18 = vpop.permute.xlu1 %202  ;;  %v201_v19 = vpop.permute.xlu0 %200 }
  0xbd   :  { %292 = vst.msk [vmem:[#allocation2 + $0x38] sm:$0xff] %vm284_vm1, %v203_v18  ;;  %291 = vst.msk [vmem:[#allocation2 + $0x30] sm:$0xff] %vm284_vm1, %v201_v19 }
  0xbe   :  { %2000 = vrot.lane.b32.xlu1 %v1931_v16, %s9106_s30  ;;  %1998 = vrot.lane.b32.xlu0 %v1930_v17, %s9106_s30  ;;  %v139_v16 = vld [vmem:[%s14004_s1 + $0x78] sm:$0xff]  ;;  %v138_v17 = vld [vmem:[%s14004_s1 + $0x70] sm:$0xff] }
  0xc0   :  { %v360_v49 = vpop.permute.xlu1 %359  ;;  %v358_v13 = vpop.permute.xlu0 %357 }
  0xc1   :  { %451 = vst.msk [vmem:[#allocation2 + $0x28] sm:$0xff] %vm445_vm2, %v360_v49  ;;  %450 = vst.msk [vmem:[#allocation2 + $0x20] sm:$0xff] %vm445_vm2, %v358_v13 }
  0xc2   :  { %564 = vrot.lane.b32.xlu1 %v489_v48, %s9098_s17  ;;  %562 = vrot.lane.b32.xlu0 %v488_v12, %s9098_s17  ;;  %v9707_v48 = vld [vmem:[%s14006_s2 + $0x68] sm:$0xff]  ;;  %v9712_v12 = vld [vmem:[%s14006_s2 + $0x60] sm:$0xff] }
  0xc4   :  { %v1611_v20 = vpop.permute.xlu1 %1610  ;;  %v1609_v21 = vpop.permute.xlu0 %1608 }
  0xc5   :  { %1704 = vst.msk [vmem:[#allocation2 + $0x18] sm:$0xff] %vm1700_vm9, %v1611_v20  ;;  %1703 = vst.msk [vmem:[#allocation2 + $0x10] sm:$0xff] %vm1700_vm9, %v1609_v21  ;;  %v1551_v20 = vmul.f32 4.0, %v9369_v46  ;;  %v1550_v21 = vmul.f32 4.0, %v9374_v47 }
  0xc6   :  { %689 = vrot.lane.b32.xlu1 %v9511_v50, %s9099_s23  ;;  %687 = vrot.lane.b32.xlu0 %v9516_v51, %s9099_s23 }
  0xc8   :  { %v1800_v24 = vpop.permute.xlu1 %1799  ;;  %v1798_v25 = vpop.permute.xlu0 %1797 }
  0xc9   :  { %1895 = vst.msk [vmem:[#allocation2 + $0x8] sm:$0xff] %vm1893_vm10, %v1800_v24  ;;  %1894 = vst.msk [vmem:[#allocation2] sm:$0xff] %vm1893_vm10, %v1798_v25  ;;  %v9727_v24 = vld [vmem:[%s14005_s0 + $0x88] sm:$0xff]  ;;  %v9732_v25 = vld [vmem:[%s14005_s0 + $0x80] sm:$0xff] }
  0xca   :  { %2004 = vrot.lane.b32.xlu1 %v1933_v22, %s9106_s30  ;;  %2002 = vrot.lane.b32.xlu0 %v1932_v23, %s9106_s30  ;;  %109 = vst.msk [vmem:[#allocation2 + $0x88] sm:$0xff] %vm91_vm0, %v9727_v24  ;;  %108 = vst.msk [vmem:[#allocation2 + $0x80] sm:$0xff] %vm91_vm0, %v9732_v25 }
  0xcc   :  { %v364_v26 = vpop.permute.xlu1 %363  ;;  %v362_v27 = vpop.permute.xlu0 %361 }
  0xcd   :  { %453 = vst.msk [vmem:[#allocation2 + $0x38] sm:$0xff] %vm445_vm2, %v364_v26  ;;  %452 = vst.msk [vmem:[#allocation2 + $0x30] sm:$0xff] %vm445_vm2, %v362_v27  ;;  %v1742_v26 = vmul.f32 8.0, %v9511_v50  ;;  %v1741_v27 = vmul.f32 8.0, %v9516_v51  ;;  %v9752_v50 = vld [vmem:[%s14005_s0 + $0x90] sm:$0xff]  ;;  %v9763_v51 = vld [vmem:[%s14006_s2 + $0x78] sm:$0xff] }
  0xce   :  { %693 = vrot.lane.b32.xlu1 %v9567_v39, %s9099_s23  ;;  %691 = vrot.lane.b32.xlu0 %v9572_v1, %s9099_s23  ;;  %110 = vst.msk [vmem:[#allocation2 + $0x90] sm:$0xff] %vm91_vm0, %v9752_v50 }
  0xd0   :  { %v553_v14 = vpop.permute.xlu1 %552  ;;  %v551_v15 = vpop.permute.xlu0 %550 }
  0xd1   :  { %644 = vst.msk [vmem:[#allocation2 + $0x28] sm:$0xff] %vm638_vm3, %v553_v14  ;;  %643 = vst.msk [vmem:[#allocation2 + $0x20] sm:$0xff] %vm638_vm3, %v551_v15 }
  0xd2   :  { %850 = vrot.lane.b32.xlu1 %v9351_v42, %s9100_s24  ;;  %848 = vrot.lane.b32.xlu0 %v9356_v43, %s9100_s24 }
  0xd4   :  { %v1804_v28 = vpop.permute.xlu1 %1803  ;;  %v1802_v29 = vpop.permute.xlu0 %1801 }
  0xd5   :  { %1897 = vst.msk [vmem:[#allocation2 + $0x18] sm:$0xff] %vm1893_vm10, %v1804_v28  ;;  %1896 = vst.msk [vmem:[#allocation2 + $0x10] sm:$0xff] %vm1893_vm10, %v1802_v29  ;;  %v9747_v28 = vld [vmem:[%s14005_s0 + $0x98] sm:$0xff]  ;;  %v9768_v29 = vld [vmem:[%s14006_s2 + $0x70] sm:$0xff] }
  0xd6   :  { %854 = vrot.lane.b32.xlu1 %v9369_v46, %s9100_s24  ;;  %852 = vrot.lane.b32.xlu0 %v9374_v47, %s9100_s24  ;;  %111 = vst.msk [vmem:[#allocation2 + $0x98] sm:$0xff] %vm91_vm0, %v9747_v28 }
  0xd8   :  { %v1993_v32 = vpop.permute.xlu1 %1992  ;;  %v1991_v33 = vpop.permute.xlu0 %1990 }
  0xd9   :  { %2088 = vst.msk [vmem:[#allocation2 + $0x8] sm:$0xff] %vm2086_vm11, %v1993_v32  ;;  %2087 = vst.msk [vmem:[#allocation2] sm:$0xff] %vm2086_vm11, %v1991_v33  ;;  %v491_v32 = vld [vmem:[%s14007_s3 + $0x68] sm:$0xff]  ;;  %v490_v33 = vld [vmem:[%s14007_s3 + $0x60] sm:$0xff] }
  0xda   :  { %1043 = vrot.lane.b32.xlu1 %v970_v30, %s9101_s25  ;;  %1041 = vrot.lane.b32.xlu0 %v969_v31, %s9101_s25 }
  0xdc   :  { %v557_v36 = vpop.permute.xlu1 %556  ;;  %v555_v37 = vpop.permute.xlu0 %554 }
  0xdd   :  { %646 = vst.msk [vmem:[#allocation2 + $0x38] sm:$0xff] %vm638_vm3, %v557_v36  ;;  %645 = vst.msk [vmem:[#allocation2 + $0x30] sm:$0xff] %vm638_vm3, %v555_v37  ;;  %v1744_v36 = vmul.f32 8.0, %v9567_v39  ;;  %v1743_v37 = vmul.f32 8.0, %v9572_v1  ;;  %v493_v39 = vld [vmem:[%s14007_s3 + $0x78] sm:$0xff] }
  0xde   :  { %1047 = vrot.lane.b32.xlu1 %v972_v34, %s9101_s25  ;;  %1045 = vrot.lane.b32.xlu0 %v971_v35, %s9101_s25 }
  0xe0   :  { %v682_v44 = vpop.permute.xlu1 %681  ;;  %v680_v45 = vpop.permute.xlu0 %679 }
  0xe1   :  { %773 = vst.msk [vmem:[#allocation2 + $0x28] sm:$0xff] %vm767_vm4, %v682_v44  ;;  %772 = vst.msk [vmem:[#allocation2 + $0x20] sm:$0xff] %vm767_vm4, %v680_v45  ;;  %v1935_v44 = vmul.f32 8.0, %v9351_v42  ;;  %v1934_v45 = vmul.f32 8.0, %v9356_v43  ;;  %v492_v42 = vld [vmem:[%s14007_s3 + $0x70] sm:$0xff] }
  0xe2   :  { %1236 = vrot.lane.b32.xlu1 %v1163_v40, %s9102_s26  ;;  %1234 = vrot.lane.b32.xlu0 %v1162_v41, %s9102_s26 }
  0xe4   :  { %v1997_v54 = vpop.permute.xlu1 %1996  ;;  %v1995_v55 = vpop.permute.xlu0 %1994 }
  0xe5   :  { %2090 = vst.msk [vmem:[#allocation2 + $0x18] sm:$0xff] %vm2086_vm11, %v1997_v54  ;;  %2089 = vst.msk [vmem:[#allocation2 + $0x10] sm:$0xff] %vm2086_vm11, %v1995_v55 }
  0xe6   :  { %1240 = vrot.lane.b32.xlu1 %v1165_v52, %s9102_s26  ;;  %1238 = vrot.lane.b32.xlu0 %v1164_v53, %s9102_s26 }
  0xe8   :  { %v686_v60 = vpop.permute.xlu1 %685  ;;  %v684_v61 = vpop.permute.xlu0 %683 }
  0xe9   :  { %775 = vst.msk [vmem:[#allocation2 + $0x38] sm:$0xff] %vm767_vm4, %v686_v60  ;;  %774 = vst.msk [vmem:[#allocation2 + $0x30] sm:$0xff] %vm767_vm4, %v684_v61 }
  0xea   :  { %1429 = vrot.lane.b32.xlu1 %v1356_v56, %s9103_s27  ;;  %1427 = vrot.lane.b32.xlu0 %v1355_v57, %s9103_s27  ;;  %v1937_v56 = vmul.f32 8.0, %v9369_v46  ;;  %v1936_v57 = vmul.f32 8.0, %v9374_v47 }
  0xec   :  { %v843_v2 = vpop.permute.xlu1 %842  ;;  %v841_v3 = vpop.permute.xlu0 %840 }
  0xed   :  { %934 = vst.msk [vmem:[#allocation2 + $0x28] sm:$0xff] %vm928_vm5, %v843_v2  ;;  %933 = vst.msk [vmem:[#allocation2 + $0x20] sm:$0xff] %vm928_vm5, %v841_v3 }
  0xee   :  { %214 = vrot.lane.b32.xlu1 %v137_v62, %s9096_s28  ;;  %212 = vrot.lane.b32.xlu0 %v136_v63, %s9096_s28 }
  0xf0   :  { %v847_v6 = vpop.permute.xlu1 %846  ;;  %v845_v7 = vpop.permute.xlu0 %844 }
  0xf1   :  { %936 = vst.msk [vmem:[#allocation2 + $0x38] sm:$0xff] %vm928_vm5, %v847_v6  ;;  %935 = vst.msk [vmem:[#allocation2 + $0x30] sm:$0xff] %vm928_vm5, %v845_v7 }
  0xf2   :  { %1433 = vrot.lane.b32.xlu1 %v1358_v4, %s9103_s27  ;;  %1431 = vrot.lane.b32.xlu0 %v1357_v5, %s9103_s27  ;;  %v974_v4 = vmul.f32 2.0, %v9707_v48  ;;  %v973_v5 = vmul.f32 2.0, %v9712_v12 }
  0xf4   :  { %v1036_v10 = vpop.permute.xlu1 %1035  ;;  %v1034_v11 = vpop.permute.xlu0 %1033 }
  0xf5   :  { %1127 = vst.msk [vmem:[#allocation2 + $0x28] sm:$0xff] %vm1121_vm6, %v1036_v10  ;;  %1126 = vst.msk [vmem:[#allocation2 + $0x20] sm:$0xff] %vm1121_vm6, %v1034_v11 }
  0xf6   :  { %1622 = vrot.lane.b32.xlu1 %v1549_v8, %s9104_s10  ;;  %1620 = vrot.lane.b32.xlu0 %v1548_v9, %s9104_s10  ;;  %v976_v8 = vmul.f32 2.0, %v9763_v51  ;;  %v975_v9 = vmul.f32 2.0, %v9768_v29 }
  0xf8   :  { %v1040_v18 = vpop.permute.xlu1 %1039  ;;  %v1038_v19 = vpop.permute.xlu0 %1037 }
  0xf9   :  { %1129 = vst.msk [vmem:[#allocation2 + $0x38] sm:$0xff] %vm1121_vm6, %v1040_v18  ;;  %1128 = vst.msk [vmem:[#allocation2 + $0x30] sm:$0xff] %vm1121_vm6, %v1038_v19 }
  0xfa   :  { %218 = vrot.lane.b32.xlu1 %v139_v16, %s9096_s28  ;;  %216 = vrot.lane.b32.xlu0 %v138_v17, %s9096_s28  ;;  %v1167_v16 = vmul.f32 2.0, %v9531_v58  ;;  %v1166_v17 = vmul.f32 2.0, %v9536_v59 }
  0xfc   :  { %v1229_v49 = vpop.permute.xlu1 %1228  ;;  %v1227_v13 = vpop.permute.xlu0 %1226 }
  0xfd   :  { %1320 = vst.msk [vmem:[#allocation2 + $0x28] sm:$0xff] %vm1314_vm7, %v1229_v49  ;;  %1319 = vst.msk [vmem:[#allocation2 + $0x20] sm:$0xff] %vm1314_vm7, %v1227_v13  ;;  %v1169_v49 = vmul.f32 2.0, %v9551_v0  ;;  %v1168_v13 = vmul.f32 2.0, %v9556_v38 }
  0xfe   :  { %375 = vrot.lane.b32.xlu1 %v9707_v48, %s9097_s22  ;;  %373 = vrot.lane.b32.xlu0 %v9712_v12, %s9097_s22 }
 0x100   :  { %v1233_v22 = vpop.permute.xlu1 %1232  ;;  %v1231_v23 = vpop.permute.xlu0 %1230 }
 0x101   :  { %1322 = vst.msk [vmem:[#allocation2 + $0x38] sm:$0xff] %vm1314_vm7, %v1233_v22  ;;  %1321 = vst.msk [vmem:[#allocation2 + $0x30] sm:$0xff] %vm1314_vm7, %v1231_v23  ;;  %v1360_v22 = vmul.f32 4.0, %v9707_v48  ;;  %v1359_v23 = vmul.f32 4.0, %v9712_v12 }
 0x102   :  { %1626 = vrot.lane.b32.xlu1 %v1551_v20, %s9104_s10  ;;  %1624 = vrot.lane.b32.xlu0 %v1550_v21, %s9104_s10 }
 0x104   :  { %v1422_v14 = vpop.permute.xlu1 %1421  ;;  %v1420_v15 = vpop.permute.xlu0 %1419 }
 0x105   :  { %1513 = vst.msk [vmem:[#allocation2 + $0x28] sm:$0xff] %vm1507_vm8, %v1422_v14  ;;  %1512 = vst.msk [vmem:[#allocation2 + $0x20] sm:$0xff] %vm1507_vm8, %v1420_v15  ;;  %v141_v14 = vld [vmem:[%s14004_s1 + $0x88] sm:$0xff]  ;;  %v140_v15 = vld [vmem:[%s14004_s1 + $0x80] sm:$0xff] }
 0x106   :  { %1815 = vrot.lane.b32.xlu1 %v1742_v26, %s9105_s13  ;;  %1813 = vrot.lane.b32.xlu0 %v1741_v27, %s9105_s13 }
 0x108   :  { %v207_v30 = vpop.permute.xlu1 %206  ;;  %v205_v31 = vpop.permute.xlu0 %204 }
 0x109   :  { %294 = vst.msk [vmem:[#allocation2 + $0x48] sm:$0xff] %vm284_vm1, %v207_v30  ;;  %293 = vst.msk [vmem:[#allocation2 + $0x40] sm:$0xff] %vm284_vm1, %v205_v31 }
 0x10a   :  { %379 = vrot.lane.b32.xlu1 %v9763_v51, %s9097_s22  ;;  %377 = vrot.lane.b32.xlu0 %v9768_v29, %s9097_s22 }
 0x10c   :  { %v1426_v34 = vpop.permute.xlu1 %1425  ;;  %v1424_v35 = vpop.permute.xlu0 %1423 }
 0x10d   :  { %1515 = vst.msk [vmem:[#allocation2 + $0x38] sm:$0xff] %vm1507_vm8, %v1426_v34  ;;  %1514 = vst.msk [vmem:[#allocation2 + $0x30] sm:$0xff] %vm1507_vm8, %v1424_v35 }
 0x10e   :  { %568 = vrot.lane.b32.xlu1 %v491_v32, %s9098_s17  ;;  %566 = vrot.lane.b32.xlu0 %v490_v33, %s9098_s17  ;;  %v1362_v32 = vmul.f32 4.0, %v9763_v51  ;;  %v1361_v33 = vmul.f32 4.0, %v9768_v29 }
 0x110   :  { %v1615_v40 = vpop.permute.xlu1 %1614  ;;  %v1613_v41 = vpop.permute.xlu0 %1612 }
 0x111   :  { %1706 = vst.msk [vmem:[#allocation2 + $0x28] sm:$0xff] %vm1700_vm9, %v1615_v40  ;;  %1705 = vst.msk [vmem:[#allocation2 + $0x20] sm:$0xff] %vm1700_vm9, %v1613_v41 }
 0x112   :  { %1819 = vrot.lane.b32.xlu1 %v1744_v36, %s9105_s13  ;;  %1817 = vrot.lane.b32.xlu0 %v1743_v37, %s9105_s13  ;;  %v1553_v36 = vmul.f32 4.0, %v9531_v58  ;;  %v1552_v37 = vmul.f32 4.0, %v9536_v59 }
 0x114   :  { %v211_v52 = vpop.permute.xlu1 %210  ;;  %v209_v53 = vpop.permute.xlu0 %208 }
 0x115   :  { %296 = vst.msk [vmem:[#allocation2 + $0x58] sm:$0xff] %vm284_vm1, %v211_v52  ;;  %295 = vst.msk [vmem:[#allocation2 + $0x50] sm:$0xff] %vm284_vm1, %v209_v53 }
 0x116   :  { %2008 = vrot.lane.b32.xlu1 %v1935_v44, %s9106_s30  ;;  %2006 = vrot.lane.b32.xlu0 %v1934_v45, %s9106_s30  ;;  %v143_v44 = vld [vmem:[%s14004_s1 + $0x98] sm:$0xff]  ;;  %v142_v45 = vld [vmem:[%s14004_s1 + $0x90] sm:$0xff] }
 0x118   :  { %v368_v1 = vpop.permute.xlu1 %367  ;;  %v366_v43 = vpop.permute.xlu0 %365 }
 0x119   :  { %455 = vst.msk [vmem:[#allocation2 + $0x48] sm:$0xff] %vm445_vm2, %v368_v1  ;;  %454 = vst.msk [vmem:[#allocation2 + $0x40] sm:$0xff] %vm445_vm2, %v366_v43 }
 0x11a   :  { %572 = vrot.lane.b32.xlu1 %v493_v39, %s9098_s17  ;;  %570 = vrot.lane.b32.xlu0 %v492_v42, %s9098_s17  ;;  %v9903_v39 = vld [vmem:[%s14006_s2 + $0x88] sm:$0xff]  ;;  %v9908_v42 = vld [vmem:[%s14006_s2 + $0x80] sm:$0xff] }
 0x11c   :  { %v1619_v54 = vpop.permute.xlu1 %1618  ;;  %v1617_v55 = vpop.permute.xlu0 %1616 }
 0x11d   :  { %1708 = vst.msk [vmem:[#allocation2 + $0x38] sm:$0xff] %vm1700_vm9, %v1619_v54  ;;  %1707 = vst.msk [vmem:[#allocation2 + $0x30] sm:$0xff] %vm1700_vm9, %v1617_v55  ;;  %v1555_v54 = vmul.f32 4.0, %v9551_v0  ;;  %v1554_v55 = vmul.f32 4.0, %v9556_v38 }
 0x11e   :  { %697 = vrot.lane.b32.xlu1 %v9707_v48, %s9099_s23  ;;  %695 = vrot.lane.b32.xlu0 %v9712_v12, %s9099_s23 }
 0x120   :  { %v1808_v60 = vpop.permute.xlu1 %1807  ;;  %v1806_v61 = vpop.permute.xlu0 %1805 }
 0x121   :  { %1899 = vst.msk [vmem:[#allocation2 + $0x28] sm:$0xff] %vm1893_vm10, %v1808_v60  ;;  %1898 = vst.msk [vmem:[#allocation2 + $0x20] sm:$0xff] %vm1893_vm10, %v1806_v61  ;;  %v9923_v60 = vld [vmem:[%s14005_s0 + $0xa8] sm:$0xff]  ;;  %v9928_v61 = vld [vmem:[%s14005_s0 + $0xa0] sm:$0xff] }
 0x122   :  { %2012 = vrot.lane.b32.xlu1 %v1937_v56, %s9106_s30  ;;  %2010 = vrot.lane.b32.xlu0 %v1936_v57, %s9106_s30  ;;  %113 = vst.msk [vmem:[#allocation2 + $0xa8] sm:$0xff] %vm91_vm0, %v9923_v60  ;;  %112 = vst.msk [vmem:[#allocation2 + $0xa0] sm:$0xff] %vm91_vm0, %v9928_v61 }
 0x124   :  { %v372_v62 = vpop.permute.xlu1 %371  ;;  %v370_v63 = vpop.permute.xlu0 %369 }
 0x125   :  { %457 = vst.msk [vmem:[#allocation2 + $0x58] sm:$0xff] %vm445_vm2, %v372_v62  ;;  %456 = vst.msk [vmem:[#allocation2 + $0x50] sm:$0xff] %vm445_vm2, %v370_v63  ;;  %v1746_v62 = vmul.f32 8.0, %v9707_v48  ;;  %v1745_v63 = vmul.f32 8.0, %v9712_v12  ;;  %v9948_v48 = vld [vmem:[%s14005_s0 + $0xb0] sm:$0xff]  ;;  %v9959_v12 = vld [vmem:[%s14006_s2 + $0x98] sm:$0xff] }
 0x126   :  { %701 = vrot.lane.b32.xlu1 %v9763_v51, %s9099_s23  ;;  %699 = vrot.lane.b32.xlu0 %v9768_v29, %s9099_s23  ;;  %114 = vst.msk [vmem:[#allocation2 + $0xb0] sm:$0xff] %vm91_vm0, %v9948_v48 }
 0x128   :  { %v561_v46 = vpop.permute.xlu1 %560  ;;  %v559_v47 = vpop.permute.xlu0 %558 }
 0x129   :  { %648 = vst.msk [vmem:[#allocation2 + $0x48] sm:$0xff] %vm638_vm3, %v561_v46  ;;  %647 = vst.msk [vmem:[#allocation2 + $0x40] sm:$0xff] %vm638_vm3, %v559_v47 }
 0x12a   :  { %858 = vrot.lane.b32.xlu1 %v9531_v58, %s9100_s24  ;;  %856 = vrot.lane.b32.xlu0 %v9536_v59, %s9100_s24 }
 0x12c   :  { %v1812_v2 = vpop.permute.xlu1 %1811  ;;  %v1810_v3 = vpop.permute.xlu0 %1809 }
 0x12d   :  { %1901 = vst.msk [vmem:[#allocation2 + $0x38] sm:$0xff] %vm1893_vm10, %v1812_v2  ;;  %1900 = vst.msk [vmem:[#allocation2 + $0x30] sm:$0xff] %vm1893_vm10, %v1810_v3  ;;  %v9943_v2 = vld [vmem:[%s14005_s0 + $0xb8] sm:$0xff]  ;;  %v9964_v3 = vld [vmem:[%s14006_s2 + $0x90] sm:$0xff] }
 0x12e   :  { %862 = vrot.lane.b32.xlu1 %v9551_v0, %s9100_s24  ;;  %860 = vrot.lane.b32.xlu0 %v9556_v38, %s9100_s24  ;;  %115 = vst.msk [vmem:[#allocation2 + $0xb8] sm:$0xff] %vm91_vm0, %v9943_v2 }
 0x130   :  { %v2001_v6 = vpop.permute.xlu1 %2000  ;;  %v1999_v7 = vpop.permute.xlu0 %1998 }
 0x131   :  { %2092 = vst.msk [vmem:[#allocation2 + $0x28] sm:$0xff] %vm2086_vm11, %v2001_v6  ;;  %2091 = vst.msk [vmem:[#allocation2 + $0x20] sm:$0xff] %vm2086_vm11, %v1999_v7  ;;  %v495_v6 = vld [vmem:[%s14007_s3 + $0x88] sm:$0xff]  ;;  %v494_v7 = vld [vmem:[%s14007_s3 + $0x80] sm:$0xff] }
 0x132   :  { %1051 = vrot.lane.b32.xlu1 %v974_v4, %s9101_s25  ;;  %1049 = vrot.lane.b32.xlu0 %v973_v5, %s9101_s25 }
 0x134   :  { %v565_v10 = vpop.permute.xlu1 %564  ;;  %v563_v11 = vpop.permute.xlu0 %562 }
 0x135   :  { %650 = vst.msk [vmem:[#allocation2 + $0x58] sm:$0xff] %vm638_vm3, %v565_v10  ;;  %649 = vst.msk [vmem:[#allocation2 + $0x50] sm:$0xff] %vm638_vm3, %v563_v11  ;;  %v1748_v10 = vmul.f32 8.0, %v9763_v51  ;;  %v1747_v11 = vmul.f32 8.0, %v9768_v29  ;;  %v497_v51 = vld [vmem:[%s14007_s3 + $0x98] sm:$0xff] }
 0x136   :  { %1055 = vrot.lane.b32.xlu1 %v976_v8, %s9101_s25  ;;  %1053 = vrot.lane.b32.xlu0 %v975_v9, %s9101_s25 }
 0x138   :  { %v690_v18 = vpop.permute.xlu1 %689  ;;  %v688_v19 = vpop.permute.xlu0 %687 }
 0x139   :  { %777 = vst.msk [vmem:[#allocation2 + $0x48] sm:$0xff] %vm767_vm4, %v690_v18  ;;  %776 = vst.msk [vmem:[#allocation2 + $0x40] sm:$0xff] %vm767_vm4, %v688_v19  ;;  %v1939_v18 = vmul.f32 8.0, %v9531_v58  ;;  %v1938_v19 = vmul.f32 8.0, %v9536_v59  ;;  %v496_v58 = vld [vmem:[%s14007_s3 + $0x90] sm:$0xff] }
 0x13a   :  { %1244 = vrot.lane.b32.xlu1 %v1167_v16, %s9102_s26  ;;  %1242 = vrot.lane.b32.xlu0 %v1166_v17, %s9102_s26 }
 0x13c   :  { %v2005_v20 = vpop.permute.xlu1 %2004  ;;  %v2003_v21 = vpop.permute.xlu0 %2002 }
 0x13d   :  { %2094 = vst.msk [vmem:[#allocation2 + $0x38] sm:$0xff] %vm2086_vm11, %v2005_v20  ;;  %2093 = vst.msk [vmem:[#allocation2 + $0x30] sm:$0xff] %vm2086_vm11, %v2003_v21 }
 0x13e   :  { %1248 = vrot.lane.b32.xlu1 %v1169_v49, %s9102_s26  ;;  %1246 = vrot.lane.b32.xlu0 %v1168_v13, %s9102_s26 }
 0x140   :  { %v694_v26 = vpop.permute.xlu1 %693  ;;  %v692_v27 = vpop.permute.xlu0 %691 }
 0x141   :  { %779 = vst.msk [vmem:[#allocation2 + $0x58] sm:$0xff] %vm767_vm4, %v694_v26  ;;  %778 = vst.msk [vmem:[#allocation2 + $0x50] sm:$0xff] %vm767_vm4, %v692_v27 }
 0x142   :  { %1437 = vrot.lane.b32.xlu1 %v1360_v22, %s9103_s27  ;;  %1435 = vrot.lane.b32.xlu0 %v1359_v23, %s9103_s27  ;;  %v1941_v22 = vmul.f32 8.0, %v9551_v0  ;;  %v1940_v23 = vmul.f32 8.0, %v9556_v38 }
 0x144   :  { %v851_v30 = vpop.permute.xlu1 %850  ;;  %v849_v31 = vpop.permute.xlu0 %848 }
 0x145   :  { %938 = vst.msk [vmem:[#allocation2 + $0x48] sm:$0xff] %vm928_vm5, %v851_v30  ;;  %937 = vst.msk [vmem:[#allocation2 + $0x40] sm:$0xff] %vm928_vm5, %v849_v31 }
 0x146   :  { %222 = vrot.lane.b32.xlu1 %v141_v14, %s9096_s28  ;;  %220 = vrot.lane.b32.xlu0 %v140_v15, %s9096_s28 }
 0x148   :  { %v855_v34 = vpop.permute.xlu1 %854  ;;  %v853_v35 = vpop.permute.xlu0 %852 }
 0x149   :  { %940 = vst.msk [vmem:[#allocation2 + $0x58] sm:$0xff] %vm928_vm5, %v855_v34  ;;  %939 = vst.msk [vmem:[#allocation2 + $0x50] sm:$0xff] %vm928_vm5, %v853_v35 }
 0x14a   :  { %1441 = vrot.lane.b32.xlu1 %v1362_v32, %s9103_s27  ;;  %1439 = vrot.lane.b32.xlu0 %v1361_v33, %s9103_s27  ;;  %v978_v32 = vmul.f32 2.0, %v9903_v39  ;;  %v977_v33 = vmul.f32 2.0, %v9908_v42 }
 0x14c   :  { %v1044_v40 = vpop.permute.xlu1 %1043  ;;  %v1042_v41 = vpop.permute.xlu0 %1041 }
 0x14d   :  { %1131 = vst.msk [vmem:[#allocation2 + $0x48] sm:$0xff] %vm1121_vm6, %v1044_v40  ;;  %1130 = vst.msk [vmem:[#allocation2 + $0x40] sm:$0xff] %vm1121_vm6, %v1042_v41 }
 0x14e   :  { %1630 = vrot.lane.b32.xlu1 %v1553_v36, %s9104_s10  ;;  %1628 = vrot.lane.b32.xlu0 %v1552_v37, %s9104_s10  ;;  %v980_v36 = vmul.f32 2.0, %v9959_v12  ;;  %v979_v37 = vmul.f32 2.0, %v9964_v3 }
 0x150   :  { %v1048_v52 = vpop.permute.xlu1 %1047  ;;  %v1046_v53 = vpop.permute.xlu0 %1045 }
 0x151   :  { %1133 = vst.msk [vmem:[#allocation2 + $0x58] sm:$0xff] %vm1121_vm6, %v1048_v52  ;;  %1132 = vst.msk [vmem:[#allocation2 + $0x50] sm:$0xff] %vm1121_vm6, %v1046_v53 }
 0x152   :  { %226 = vrot.lane.b32.xlu1 %v143_v44, %s9096_s28  ;;  %224 = vrot.lane.b32.xlu0 %v142_v45, %s9096_s28  ;;  %v1171_v44 = vmul.f32 2.0, %v9727_v24  ;;  %v1170_v45 = vmul.f32 2.0, %v9732_v25 }
 0x154   :  { %v1237_v1 = vpop.permute.xlu1 %1236  ;;  %v1235_v43 = vpop.permute.xlu0 %1234 }
 0x155   :  { %1324 = vst.msk [vmem:[#allocation2 + $0x48] sm:$0xff] %vm1314_vm7, %v1237_v1  ;;  %1323 = vst.msk [vmem:[#allocation2 + $0x40] sm:$0xff] %vm1314_vm7, %v1235_v43  ;;  %v1173_v1 = vmul.f32 2.0, %v9747_v28  ;;  %v1172_v43 = vmul.f32 2.0, %v9752_v50 }
 0x156   :  { %383 = vrot.lane.b32.xlu1 %v9903_v39, %s9097_s22  ;;  %381 = vrot.lane.b32.xlu0 %v9908_v42, %s9097_s22 }
 0x158   :  { %v1241_v56 = vpop.permute.xlu1 %1240  ;;  %v1239_v57 = vpop.permute.xlu0 %1238 }
 0x159   :  { %1326 = vst.msk [vmem:[#allocation2 + $0x58] sm:$0xff] %vm1314_vm7, %v1241_v56  ;;  %1325 = vst.msk [vmem:[#allocation2 + $0x50] sm:$0xff] %vm1314_vm7, %v1239_v57  ;;  %v1364_v56 = vmul.f32 4.0, %v9903_v39  ;;  %v1363_v57 = vmul.f32 4.0, %v9908_v42 }
 0x15a   :  { %1634 = vrot.lane.b32.xlu1 %v1555_v54, %s9104_s10  ;;  %1632 = vrot.lane.b32.xlu0 %v1554_v55, %s9104_s10 }
 0x15c   :  { %v1430_v46 = vpop.permute.xlu1 %1429  ;;  %v1428_v47 = vpop.permute.xlu0 %1427 }
 0x15d   :  { %1517 = vst.msk [vmem:[#allocation2 + $0x48] sm:$0xff] %vm1507_vm8, %v1430_v46  ;;  %1516 = vst.msk [vmem:[#allocation2 + $0x40] sm:$0xff] %vm1507_vm8, %v1428_v47  ;;  %v145_v46 = vld [vmem:[%s14004_s1 + $0xa8] sm:$0xff]  ;;  %v144_v47 = vld [vmem:[%s14004_s1 + $0xa0] sm:$0xff] }
 0x15e   :  { %1823 = vrot.lane.b32.xlu1 %v1746_v62, %s9105_s13  ;;  %1821 = vrot.lane.b32.xlu0 %v1745_v63, %s9105_s13 }
 0x160   :  { %v215_v4 = vpop.permute.xlu1 %214  ;;  %v213_v5 = vpop.permute.xlu0 %212 }
 0x161   :  { %298 = vst.msk [vmem:[#allocation2 + $0x68] sm:$0xff] %vm284_vm1, %v215_v4  ;;  %297 = vst.msk [vmem:[#allocation2 + $0x60] sm:$0xff] %vm284_vm1, %v213_v5 }
 0x162   :  { %387 = vrot.lane.b32.xlu1 %v9959_v12, %s9097_s22  ;;  %385 = vrot.lane.b32.xlu0 %v9964_v3, %s9097_s22 }
 0x164   :  { %v1434_v8 = vpop.permute.xlu1 %1433  ;;  %v1432_v9 = vpop.permute.xlu0 %1431 }
 0x165   :  { %1519 = vst.msk [vmem:[#allocation2 + $0x58] sm:$0xff] %vm1507_vm8, %v1434_v8  ;;  %1518 = vst.msk [vmem:[#allocation2 + $0x50] sm:$0xff] %vm1507_vm8, %v1432_v9 }
 0x166   :  { %576 = vrot.lane.b32.xlu1 %v495_v6, %s9098_s17  ;;  %574 = vrot.lane.b32.xlu0 %v494_v7, %s9098_s17  ;;  %v1366_v6 = vmul.f32 4.0, %v9959_v12  ;;  %v1365_v7 = vmul.f32 4.0, %v9964_v3 }
 0x168   :  { %v1623_v16 = vpop.permute.xlu1 %1622  ;;  %v1621_v17 = vpop.permute.xlu0 %1620 }
 0x169   :  { %1710 = vst.msk [vmem:[#allocation2 + $0x48] sm:$0xff] %vm1700_vm9, %v1623_v16  ;;  %1709 = vst.msk [vmem:[#allocation2 + $0x40] sm:$0xff] %vm1700_vm9, %v1621_v17 }
 0x16a   :  { %1827 = vrot.lane.b32.xlu1 %v1748_v10, %s9105_s13  ;;  %1825 = vrot.lane.b32.xlu0 %v1747_v11, %s9105_s13  ;;  %v1557_v10 = vmul.f32 4.0, %v9727_v24  ;;  %v1556_v11 = vmul.f32 4.0, %v9732_v25 }
 0x16c   :  { %v219_v49 = vpop.permute.xlu1 %218  ;;  %v217_v13 = vpop.permute.xlu0 %216 }
 0x16d   :  { %300 = vst.msk [vmem:[#allocation2 + $0x78] sm:$0xff] %vm284_vm1, %v219_v49  ;;  %299 = vst.msk [vmem:[#allocation2 + $0x70] sm:$0xff] %vm284_vm1, %v217_v13 }
 0x16e   :  { %2016 = vrot.lane.b32.xlu1 %v1939_v18, %s9106_s30  ;;  %2014 = vrot.lane.b32.xlu0 %v1938_v19, %s9106_s30  ;;  %v147_v18 = vld [vmem:[%s14004_s1 + $0xb8] sm:$0xff]  ;;  %v146_v19 = vld [vmem:[%s14004_s1 + $0xb0] sm:$0xff] }
 0x170   :  { %v376_v29 = vpop.permute.xlu1 %375  ;;  %v374_v59 = vpop.permute.xlu0 %373 }
 0x171   :  { %459 = vst.msk [vmem:[#allocation2 + $0x68] sm:$0xff] %vm445_vm2, %v376_v29  ;;  %458 = vst.msk [vmem:[#allocation2 + $0x60] sm:$0xff] %vm445_vm2, %v374_v59 }
 0x172   :  { %580 = vrot.lane.b32.xlu1 %v497_v51, %s9098_s17  ;;  %578 = vrot.lane.b32.xlu0 %v496_v58, %s9098_s17  ;;  %v10099_v51 = vld [vmem:[%s14006_s2 + $0xa8] sm:$0xff]  ;;  %v10104_v58 = vld [vmem:[%s14006_s2 + $0xa0] sm:$0xff] }
 0x174   :  { %v1627_v20 = vpop.permute.xlu1 %1626  ;;  %v1625_v21 = vpop.permute.xlu0 %1624 }
 0x175   :  { %1712 = vst.msk [vmem:[#allocation2 + $0x58] sm:$0xff] %vm1700_vm9, %v1627_v20  ;;  %1711 = vst.msk [vmem:[#allocation2 + $0x50] sm:$0xff] %vm1700_vm9, %v1625_v21  ;;  %v1559_v20 = vmul.f32 4.0, %v9747_v28  ;;  %v1558_v21 = vmul.f32 4.0, %v9752_v50 }
 0x176   :  { %705 = vrot.lane.b32.xlu1 %v9903_v39, %s9099_s23  ;;  %703 = vrot.lane.b32.xlu0 %v9908_v42, %s9099_s23 }
 0x178   :  { %v1816_v26 = vpop.permute.xlu1 %1815  ;;  %v1814_v27 = vpop.permute.xlu0 %1813 }
 0x179   :  { %1903 = vst.msk [vmem:[#allocation2 + $0x48] sm:$0xff] %vm1893_vm10, %v1816_v26  ;;  %1902 = vst.msk [vmem:[#allocation2 + $0x40] sm:$0xff] %vm1893_vm10, %v1814_v27  ;;  %v10119_v26 = vld [vmem:[%s14005_s0 + $0xc8] sm:$0xff]  ;;  %v10124_v27 = vld [vmem:[%s14005_s0 + $0xc0] sm:$0xff] }
 0x17a   :  { %2020 = vrot.lane.b32.xlu1 %v1941_v22, %s9106_s30  ;;  %2018 = vrot.lane.b32.xlu0 %v1940_v23, %s9106_s30  ;;  %117 = vst.msk [vmem:[#allocation2 + $0xc8] sm:$0xff] %vm91_vm0, %v10119_v26  ;;  %116 = vst.msk [vmem:[#allocation2 + $0xc0] sm:$0xff] %vm91_vm0, %v10124_v27 }
 0x17c   :  { %v380_v14 = vpop.permute.xlu1 %379  ;;  %v378_v15 = vpop.permute.xlu0 %377 }
 0x17d   :  { %461 = vst.msk [vmem:[#allocation2 + $0x78] sm:$0xff] %vm445_vm2, %v380_v14  ;;  %460 = vst.msk [vmem:[#allocation2 + $0x70] sm:$0xff] %vm445_vm2, %v378_v15  ;;  %v1750_v14 = vmul.f32 8.0, %v9903_v39  ;;  %v1749_v15 = vmul.f32 8.0, %v9908_v42  ;;  %v10144_v39 = vld [vmem:[%s14005_s0 + $0xd0] sm:$0xff]  ;;  %v10155_v42 = vld [vmem:[%s14006_s2 + $0xb8] sm:$0xff] }
 0x17e   :  { %709 = vrot.lane.b32.xlu1 %v9959_v12, %s9099_s23  ;;  %707 = vrot.lane.b32.xlu0 %v9964_v3, %s9099_s23  ;;  %118 = vst.msk [vmem:[#allocation2 + $0xd0] sm:$0xff] %vm91_vm0, %v10144_v39 }
 0x180   :  { %v569_v0 = vpop.permute.xlu1 %568  ;;  %v567_v38 = vpop.permute.xlu0 %566 }
 0x181   :  { %652 = vst.msk [vmem:[#allocation2 + $0x68] sm:$0xff] %vm638_vm3, %v569_v0  ;;  %651 = vst.msk [vmem:[#allocation2 + $0x60] sm:$0xff] %vm638_vm3, %v567_v38 }
 0x182   :  { %866 = vrot.lane.b32.xlu1 %v9727_v24, %s9100_s24  ;;  %864 = vrot.lane.b32.xlu0 %v9732_v25, %s9100_s24 }
 0x184   :  { %v1820_v30 = vpop.permute.xlu1 %1819  ;;  %v1818_v31 = vpop.permute.xlu0 %1817 }
 0x185   :  { %1905 = vst.msk [vmem:[#allocation2 + $0x58] sm:$0xff] %vm1893_vm10, %v1820_v30  ;;  %1904 = vst.msk [vmem:[#allocation2 + $0x50] sm:$0xff] %vm1893_vm10, %v1818_v31  ;;  %v10139_v30 = vld [vmem:[%s14005_s0 + $0xd8] sm:$0xff]  ;;  %v10160_v31 = vld [vmem:[%s14006_s2 + $0xb0] sm:$0xff] }
 0x186   :  { %870 = vrot.lane.b32.xlu1 %v9747_v28, %s9100_s24  ;;  %868 = vrot.lane.b32.xlu0 %v9752_v50, %s9100_s24  ;;  %119 = vst.msk [vmem:[#allocation2 + $0xd8] sm:$0xff] %vm91_vm0, %v10139_v30 }
 0x188   :  { %v2009_v34 = vpop.permute.xlu1 %2008  ;;  %v2007_v35 = vpop.permute.xlu0 %2006 }
 0x189   :  { %2096 = vst.msk [vmem:[#allocation2 + $0x48] sm:$0xff] %vm2086_vm11, %v2009_v34  ;;  %2095 = vst.msk [vmem:[#allocation2 + $0x40] sm:$0xff] %vm2086_vm11, %v2007_v35  ;;  %v499_v34 = vld [vmem:[%s14007_s3 + $0xa8] sm:$0xff]  ;;  %v498_v35 = vld [vmem:[%s14007_s3 + $0xa0] sm:$0xff] }
 0x18a   :  { %1059 = vrot.lane.b32.xlu1 %v978_v32, %s9101_s25  ;;  %1057 = vrot.lane.b32.xlu0 %v977_v33, %s9101_s25 }
 0x18c   :  { %v573_v40 = vpop.permute.xlu1 %572  ;;  %v571_v41 = vpop.permute.xlu0 %570 }
 0x18d   :  { %654 = vst.msk [vmem:[#allocation2 + $0x78] sm:$0xff] %vm638_vm3, %v573_v40  ;;  %653 = vst.msk [vmem:[#allocation2 + $0x70] sm:$0xff] %vm638_vm3, %v571_v41  ;;  %v1752_v40 = vmul.f32 8.0, %v9959_v12  ;;  %v1751_v41 = vmul.f32 8.0, %v9964_v3  ;;  %v501_v12 = vld [vmem:[%s14007_s3 + $0xb8] sm:$0xff] }
 0x18e   :  { %1063 = vrot.lane.b32.xlu1 %v980_v36, %s9101_s25  ;;  %1061 = vrot.lane.b32.xlu0 %v979_v37, %s9101_s25 }
 0x190   :  { %v698_v52 = vpop.permute.xlu1 %697  ;;  %v696_v53 = vpop.permute.xlu0 %695 }
 0x191   :  { %781 = vst.msk [vmem:[#allocation2 + $0x68] sm:$0xff] %vm767_vm4, %v698_v52  ;;  %780 = vst.msk [vmem:[#allocation2 + $0x60] sm:$0xff] %vm767_vm4, %v696_v53  ;;  %v1943_v52 = vmul.f32 8.0, %v9727_v24  ;;  %v1942_v53 = vmul.f32 8.0, %v9732_v25  ;;  %v500_v24 = vld [vmem:[%s14007_s3 + $0xb0] sm:$0xff] }
 0x192   :  { %1252 = vrot.lane.b32.xlu1 %v1171_v44, %s9102_s26  ;;  %1250 = vrot.lane.b32.xlu0 %v1170_v45, %s9102_s26 }
 0x194   :  { %v2013_v54 = vpop.permute.xlu1 %2012  ;;  %v2011_v55 = vpop.permute.xlu0 %2010 }
 0x195   :  { %2098 = vst.msk [vmem:[#allocation2 + $0x58] sm:$0xff] %vm2086_vm11, %v2013_v54  ;;  %2097 = vst.msk [vmem:[#allocation2 + $0x50] sm:$0xff] %vm2086_vm11, %v2011_v55 }
 0x196   :  { %1256 = vrot.lane.b32.xlu1 %v1173_v1, %s9102_s26  ;;  %1254 = vrot.lane.b32.xlu0 %v1172_v43, %s9102_s26 }
 0x198   :  { %v702_v62 = vpop.permute.xlu1 %701  ;;  %v700_v63 = vpop.permute.xlu0 %699 }
 0x199   :  { %783 = vst.msk [vmem:[#allocation2 + $0x78] sm:$0xff] %vm767_vm4, %v702_v62  ;;  %782 = vst.msk [vmem:[#allocation2 + $0x70] sm:$0xff] %vm767_vm4, %v700_v63 }
 0x19a   :  { %1445 = vrot.lane.b32.xlu1 %v1364_v56, %s9103_s27  ;;  %1443 = vrot.lane.b32.xlu0 %v1363_v57, %s9103_s27  ;;  %v1945_v56 = vmul.f32 8.0, %v9747_v28  ;;  %v1944_v57 = vmul.f32 8.0, %v9752_v50 }
 0x19c   :  { %v859_v4 = vpop.permute.xlu1 %858  ;;  %v857_v5 = vpop.permute.xlu0 %856 }
 0x19d   :  { %942 = vst.msk [vmem:[#allocation2 + $0x68] sm:$0xff] %vm928_vm5, %v859_v4  ;;  %941 = vst.msk [vmem:[#allocation2 + $0x60] sm:$0xff] %vm928_vm5, %v857_v5 }
 0x19e   :  { %230 = vrot.lane.b32.xlu1 %v145_v46, %s9096_s28  ;;  %228 = vrot.lane.b32.xlu0 %v144_v47, %s9096_s28 }
 0x1a0   :  { %v863_v8 = vpop.permute.xlu1 %862  ;;  %v861_v9 = vpop.permute.xlu0 %860 }
 0x1a1   :  { %944 = vst.msk [vmem:[#allocation2 + $0x78] sm:$0xff] %vm928_vm5, %v863_v8  ;;  %943 = vst.msk [vmem:[#allocation2 + $0x70] sm:$0xff] %vm928_vm5, %v861_v9 }
 0x1a2   :  { %1449 = vrot.lane.b32.xlu1 %v1366_v6, %s9103_s27  ;;  %1447 = vrot.lane.b32.xlu0 %v1365_v7, %s9103_s27  ;;  %v982_v6 = vmul.f32 2.0, %v10099_v51  ;;  %v981_v7 = vmul.f32 2.0, %v10104_v58 }
 0x1a4   :  { %v1052_v16 = vpop.permute.xlu1 %1051  ;;  %v1050_v17 = vpop.permute.xlu0 %1049 }
 0x1a5   :  { %1135 = vst.msk [vmem:[#allocation2 + $0x68] sm:$0xff] %vm1121_vm6, %v1052_v16  ;;  %1134 = vst.msk [vmem:[#allocation2 + $0x60] sm:$0xff] %vm1121_vm6, %v1050_v17 }
 0x1a6   :  { %1638 = vrot.lane.b32.xlu1 %v1557_v10, %s9104_s10  ;;  %1636 = vrot.lane.b32.xlu0 %v1556_v11, %s9104_s10  ;;  %v984_v10 = vmul.f32 2.0, %v10155_v42  ;;  %v983_v11 = vmul.f32 2.0, %v10160_v31 }
 0x1a8   :  { %v1056_v49 = vpop.permute.xlu1 %1055  ;;  %v1054_v13 = vpop.permute.xlu0 %1053 }
 0x1a9   :  { %1137 = vst.msk [vmem:[#allocation2 + $0x78] sm:$0xff] %vm1121_vm6, %v1056_v49  ;;  %1136 = vst.msk [vmem:[#allocation2 + $0x70] sm:$0xff] %vm1121_vm6, %v1054_v13 }
 0x1aa   :  { %234 = vrot.lane.b32.xlu1 %v147_v18, %s9096_s28  ;;  %232 = vrot.lane.b32.xlu0 %v146_v19, %s9096_s28  ;;  %v1175_v18 = vmul.f32 2.0, %v9923_v60  ;;  %v1174_v19 = vmul.f32 2.0, %v9928_v61 }
 0x1ac   :  { %v1245_v29 = vpop.permute.xlu1 %1244  ;;  %v1243_v59 = vpop.permute.xlu0 %1242 }
 0x1ad   :  { %1328 = vst.msk [vmem:[#allocation2 + $0x68] sm:$0xff] %vm1314_vm7, %v1245_v29  ;;  %1327 = vst.msk [vmem:[#allocation2 + $0x60] sm:$0xff] %vm1314_vm7, %v1243_v59  ;;  %v1177_v29 = vmul.f32 2.0, %v9943_v2  ;;  %v1176_v59 = vmul.f32 2.0, %v9948_v48 }
 0x1ae   :  { %391 = vrot.lane.b32.xlu1 %v10099_v51, %s9097_s22  ;;  %389 = vrot.lane.b32.xlu0 %v10104_v58, %s9097_s22 }
 0x1b0   :  { %v1249_v22 = vpop.permute.xlu1 %1248  ;;  %v1247_v23 = vpop.permute.xlu0 %1246 }
 0x1b1   :  { %1330 = vst.msk [vmem:[#allocation2 + $0x78] sm:$0xff] %vm1314_vm7, %v1249_v22  ;;  %1329 = vst.msk [vmem:[#allocation2 + $0x70] sm:$0xff] %vm1314_vm7, %v1247_v23  ;;  %v1368_v22 = vmul.f32 4.0, %v10099_v51  ;;  %v1367_v23 = vmul.f32 4.0, %v10104_v58 }
 0x1b2   :  { %1642 = vrot.lane.b32.xlu1 %v1559_v20, %s9104_s10  ;;  %1640 = vrot.lane.b32.xlu0 %v1558_v21, %s9104_s10 }
 0x1b4   :  { %v1438_v0 = vpop.permute.xlu1 %1437  ;;  %v1436_v38 = vpop.permute.xlu0 %1435 }
 0x1b5   :  { %1521 = vst.msk [vmem:[#allocation2 + $0x68] sm:$0xff] %vm1507_vm8, %v1438_v0  ;;  %1520 = vst.msk [vmem:[#allocation2 + $0x60] sm:$0xff] %vm1507_vm8, %v1436_v38  ;;  %v149_v0 = vld [vmem:[%s14004_s1 + $0xc8] sm:$0xff]  ;;  %v148_v38 = vld [vmem:[%s14004_s1 + $0xc0] sm:$0xff] }
 0x1b6   :  { %1831 = vrot.lane.b32.xlu1 %v1750_v14, %s9105_s13  ;;  %1829 = vrot.lane.b32.xlu0 %v1749_v15, %s9105_s13 }
 0x1b8   :  { %v223_v32 = vpop.permute.xlu1 %222  ;;  %v221_v33 = vpop.permute.xlu0 %220 }
 0x1b9   :  { %302 = vst.msk [vmem:[#allocation2 + $0x88] sm:$0xff] %vm284_vm1, %v223_v32  ;;  %301 = vst.msk [vmem:[#allocation2 + $0x80] sm:$0xff] %vm284_vm1, %v221_v33 }
 0x1ba   :  { %395 = vrot.lane.b32.xlu1 %v10155_v42, %s9097_s22  ;;  %393 = vrot.lane.b32.xlu0 %v10160_v31, %s9097_s22 }
 0x1bc   :  { %v1442_v36 = vpop.permute.xlu1 %1441  ;;  %v1440_v37 = vpop.permute.xlu0 %1439 }
 0x1bd   :  { %1523 = vst.msk [vmem:[#allocation2 + $0x78] sm:$0xff] %vm1507_vm8, %v1442_v36  ;;  %1522 = vst.msk [vmem:[#allocation2 + $0x70] sm:$0xff] %vm1507_vm8, %v1440_v37 }
 0x1be   :  { %584 = vrot.lane.b32.xlu1 %v499_v34, %s9098_s17  ;;  %582 = vrot.lane.b32.xlu0 %v498_v35, %s9098_s17  ;;  %v1370_v34 = vmul.f32 4.0, %v10155_v42  ;;  %v1369_v35 = vmul.f32 4.0, %v10160_v31 }
 0x1c0   :  { %v1631_v44 = vpop.permute.xlu1 %1630  ;;  %v1629_v45 = vpop.permute.xlu0 %1628 }
 0x1c1   :  { %1714 = vst.msk [vmem:[#allocation2 + $0x68] sm:$0xff] %vm1700_vm9, %v1631_v44  ;;  %1713 = vst.msk [vmem:[#allocation2 + $0x60] sm:$0xff] %vm1700_vm9, %v1629_v45 }
 0x1c2   :  { %1835 = vrot.lane.b32.xlu1 %v1752_v40, %s9105_s13  ;;  %1833 = vrot.lane.b32.xlu0 %v1751_v41, %s9105_s13  ;;  %v1561_v40 = vmul.f32 4.0, %v9923_v60  ;;  %v1560_v41 = vmul.f32 4.0, %v9928_v61 }
 0x1c4   :  { %v227_v1 = vpop.permute.xlu1 %226  ;;  %v225_v43 = vpop.permute.xlu0 %224 }
 0x1c5   :  { %304 = vst.msk [vmem:[#allocation2 + $0x98] sm:$0xff] %vm284_vm1, %v227_v1  ;;  %303 = vst.msk [vmem:[#allocation2 + $0x90] sm:$0xff] %vm284_vm1, %v225_v43 }
 0x1c6   :  { %2024 = vrot.lane.b32.xlu1 %v1943_v52, %s9106_s30  ;;  %2022 = vrot.lane.b32.xlu0 %v1942_v53, %s9106_s30  ;;  %v151_v52 = vld [vmem:[%s14004_s1 + $0xd8] sm:$0xff]  ;;  %v150_v53 = vld [vmem:[%s14004_s1 + $0xd0] sm:$0xff] }
 0x1c8   :  { %v384_v3 = vpop.permute.xlu1 %383  ;;  %v382_v25 = vpop.permute.xlu0 %381 }
 0x1c9   :  { %463 = vst.msk [vmem:[#allocation2 + $0x88] sm:$0xff] %vm445_vm2, %v384_v3  ;;  %462 = vst.msk [vmem:[#allocation2 + $0x80] sm:$0xff] %vm445_vm2, %v382_v25 }
 0x1ca   :  { %588 = vrot.lane.b32.xlu1 %v501_v12, %s9098_s17  ;;  %586 = vrot.lane.b32.xlu0 %v500_v24, %s9098_s17  ;;  %v10295_v12 = vld [vmem:[%s14006_s2 + $0xc8] sm:$0xff]  ;;  %v10300_v24 = vld [vmem:[%s14006_s2 + $0xc0] sm:$0xff] }
 0x1cc   :  { %v1635_v54 = vpop.permute.xlu1 %1634  ;;  %v1633_v55 = vpop.permute.xlu0 %1632 }
 0x1cd   :  { %1716 = vst.msk [vmem:[#allocation2 + $0x78] sm:$0xff] %vm1700_vm9, %v1635_v54  ;;  %1715 = vst.msk [vmem:[#allocation2 + $0x70] sm:$0xff] %vm1700_vm9, %v1633_v55  ;;  %v1563_v54 = vmul.f32 4.0, %v9943_v2  ;;  %v1562_v55 = vmul.f32 4.0, %v9948_v48 }
 0x1ce   :  { %713 = vrot.lane.b32.xlu1 %v10099_v51, %s9099_s23  ;;  %711 = vrot.lane.b32.xlu0 %v10104_v58, %s9099_s23 }
 0x1d0   :  { %v1824_v62 = vpop.permute.xlu1 %1823  ;;  %v1822_v63 = vpop.permute.xlu0 %1821 }
 0x1d1   :  { %1907 = vst.msk [vmem:[#allocation2 + $0x68] sm:$0xff] %vm1893_vm10, %v1824_v62  ;;  %1906 = vst.msk [vmem:[#allocation2 + $0x60] sm:$0xff] %vm1893_vm10, %v1822_v63  ;;  %v10315_v62 = vld [vmem:[%s14005_s0 + $0xe8] sm:$0xff]  ;;  %v10320_v63 = vld [vmem:[%s14005_s0 + $0xe0] sm:$0xff] }
 0x1d2   :  { %2028 = vrot.lane.b32.xlu1 %v1945_v56, %s9106_s30  ;;  %2026 = vrot.lane.b32.xlu0 %v1944_v57, %s9106_s30  ;;  %121 = vst.msk [vmem:[#allocation2 + $0xe8] sm:$0xff] %vm91_vm0, %v10315_v62  ;;  %120 = vst.msk [vmem:[#allocation2 + $0xe0] sm:$0xff] %vm91_vm0, %v10320_v63 }
 0x1d4   :  { %v388_v46 = vpop.permute.xlu1 %387  ;;  %v386_v47 = vpop.permute.xlu0 %385 }
 0x1d5   :  { %465 = vst.msk [vmem:[#allocation2 + $0x98] sm:$0xff] %vm445_vm2, %v388_v46  ;;  %464 = vst.msk [vmem:[#allocation2 + $0x90] sm:$0xff] %vm445_vm2, %v386_v47  ;;  %v1754_v46 = vmul.f32 8.0, %v10099_v51  ;;  %v1753_v47 = vmul.f32 8.0, %v10104_v58  ;;  %v10340_v51 = vld [vmem:[%s14005_s0 + $0xf0] sm:$0xff]  ;;  %v10351_v58 = vld [vmem:[%s14006_s2 + $0xd8] sm:$0xff] }
 0x1d6   :  { %717 = vrot.lane.b32.xlu1 %v10155_v42, %s9099_s23  ;;  %715 = vrot.lane.b32.xlu0 %v10160_v31, %s9099_s23  ;;  %122 = vst.msk [vmem:[#allocation2 + $0xf0] sm:$0xff] %vm91_vm0, %v10340_v51 }
 0x1d8   :  { %v577_v28 = vpop.permute.xlu1 %576  ;;  %v575_v50 = vpop.permute.xlu0 %574 }
 0x1d9   :  { %656 = vst.msk [vmem:[#allocation2 + $0x88] sm:$0xff] %vm638_vm3, %v577_v28  ;;  %655 = vst.msk [vmem:[#allocation2 + $0x80] sm:$0xff] %vm638_vm3, %v575_v50 }
 0x1da   :  { %874 = vrot.lane.b32.xlu1 %v9923_v60, %s9100_s24  ;;  %872 = vrot.lane.b32.xlu0 %v9928_v61, %s9100_s24 }
 0x1dc   :  { %v1828_v4 = vpop.permute.xlu1 %1827  ;;  %v1826_v5 = vpop.permute.xlu0 %1825 }
 0x1dd   :  { %1909 = vst.msk [vmem:[#allocation2 + $0x78] sm:$0xff] %vm1893_vm10, %v1828_v4  ;;  %1908 = vst.msk [vmem:[#allocation2 + $0x70] sm:$0xff] %vm1893_vm10, %v1826_v5  ;;  %v10335_v4 = vld [vmem:[%s14005_s0 + $0xf8] sm:$0xff]  ;;  %v10356_v5 = vld [vmem:[%s14006_s2 + $0xd0] sm:$0xff] }
 0x1de   :  { %878 = vrot.lane.b32.xlu1 %v9943_v2, %s9100_s24  ;;  %876 = vrot.lane.b32.xlu0 %v9948_v48, %s9100_s24  ;;  %123 = vst.msk [vmem:[#allocation2 + $0xf8] sm:$0xff] %vm91_vm0, %v10335_v4 }
 0x1e0   :  { %v2017_v8 = vpop.permute.xlu1 %2016  ;;  %v2015_v9 = vpop.permute.xlu0 %2014 }
 0x1e1   :  { %2100 = vst.msk [vmem:[#allocation2 + $0x68] sm:$0xff] %vm2086_vm11, %v2017_v8  ;;  %2099 = vst.msk [vmem:[#allocation2 + $0x60] sm:$0xff] %vm2086_vm11, %v2015_v9  ;;  %v503_v8 = vld [vmem:[%s14007_s3 + $0xc8] sm:$0xff]  ;;  %v502_v9 = vld [vmem:[%s14007_s3 + $0xc0] sm:$0xff] }
 0x1e2   :  { %1067 = vrot.lane.b32.xlu1 %v982_v6, %s9101_s25  ;;  %1065 = vrot.lane.b32.xlu0 %v981_v7, %s9101_s25 }
 0x1e4   :  { %v581_v16 = vpop.permute.xlu1 %580  ;;  %v579_v17 = vpop.permute.xlu0 %578 }
 0x1e5   :  { %658 = vst.msk [vmem:[#allocation2 + $0x98] sm:$0xff] %vm638_vm3, %v581_v16  ;;  %657 = vst.msk [vmem:[#allocation2 + $0x90] sm:$0xff] %vm638_vm3, %v579_v17  ;;  %v1756_v16 = vmul.f32 8.0, %v10155_v42  ;;  %v1755_v17 = vmul.f32 8.0, %v10160_v31  ;;  %v505_v42 = vld [vmem:[%s14007_s3 + $0xd8] sm:$0xff] }
 0x1e6   :  { %1071 = vrot.lane.b32.xlu1 %v984_v10, %s9101_s25  ;;  %1069 = vrot.lane.b32.xlu0 %v983_v11, %s9101_s25 }
 0x1e8   :  { %v706_v49 = vpop.permute.xlu1 %705  ;;  %v704_v13 = vpop.permute.xlu0 %703 }
 0x1e9   :  { %785 = vst.msk [vmem:[#allocation2 + $0x88] sm:$0xff] %vm767_vm4, %v706_v49  ;;  %784 = vst.msk [vmem:[#allocation2 + $0x80] sm:$0xff] %vm767_vm4, %v704_v13  ;;  %v1947_v49 = vmul.f32 8.0, %v9923_v60  ;;  %v1946_v13 = vmul.f32 8.0, %v9928_v61  ;;  %v504_v60 = vld [vmem:[%s14007_s3 + $0xd0] sm:$0xff] }
 0x1ea   :  { %1260 = vrot.lane.b32.xlu1 %v1175_v18, %s9102_s26  ;;  %1258 = vrot.lane.b32.xlu0 %v1174_v19, %s9102_s26 }
 0x1ec   :  { %v2021_v20 = vpop.permute.xlu1 %2020  ;;  %v2019_v21 = vpop.permute.xlu0 %2018 }
 0x1ed   :  { %2102 = vst.msk [vmem:[#allocation2 + $0x78] sm:$0xff] %vm2086_vm11, %v2021_v20  ;;  %2101 = vst.msk [vmem:[#allocation2 + $0x70] sm:$0xff] %vm2086_vm11, %v2019_v21 }
 0x1ee   :  { %1264 = vrot.lane.b32.xlu1 %v1177_v29, %s9102_s26  ;;  %1262 = vrot.lane.b32.xlu0 %v1176_v59, %s9102_s26 }
 0x1f0   :  { %v710_v14 = vpop.permute.xlu1 %709  ;;  %v708_v15 = vpop.permute.xlu0 %707 }
 0x1f1   :  { %787 = vst.msk [vmem:[#allocation2 + $0x98] sm:$0xff] %vm767_vm4, %v710_v14  ;;  %786 = vst.msk [vmem:[#allocation2 + $0x90] sm:$0xff] %vm767_vm4, %v708_v15 }
 0x1f2   :  { %1453 = vrot.lane.b32.xlu1 %v1368_v22, %s9103_s27  ;;  %1451 = vrot.lane.b32.xlu0 %v1367_v23, %s9103_s27  ;;  %v1949_v22 = vmul.f32 8.0, %v9943_v2  ;;  %v1948_v23 = vmul.f32 8.0, %v9948_v48 }
 0x1f4   :  { %v867_v32 = vpop.permute.xlu1 %866  ;;  %v865_v33 = vpop.permute.xlu0 %864 }
 0x1f5   :  { %946 = vst.msk [vmem:[#allocation2 + $0x88] sm:$0xff] %vm928_vm5, %v867_v32  ;;  %945 = vst.msk [vmem:[#allocation2 + $0x80] sm:$0xff] %vm928_vm5, %v865_v33 }
 0x1f6   :  { %238 = vrot.lane.b32.xlu1 %v149_v0, %s9096_s28  ;;  %236 = vrot.lane.b32.xlu0 %v148_v38, %s9096_s28 }
 0x1f8   :  { %v871_v36 = vpop.permute.xlu1 %870  ;;  %v869_v37 = vpop.permute.xlu0 %868 }
 0x1f9   :  { %948 = vst.msk [vmem:[#allocation2 + $0x98] sm:$0xff] %vm928_vm5, %v871_v36  ;;  %947 = vst.msk [vmem:[#allocation2 + $0x90] sm:$0xff] %vm928_vm5, %v869_v37 }
 0x1fa   :  { %1457 = vrot.lane.b32.xlu1 %v1370_v34, %s9103_s27  ;;  %1455 = vrot.lane.b32.xlu0 %v1369_v35, %s9103_s27  ;;  %v986_v34 = vmul.f32 2.0, %v10295_v12  ;;  %v985_v35 = vmul.f32 2.0, %v10300_v24 }
 0x1fc   :  { %v1060_v44 = vpop.permute.xlu1 %1059  ;;  %v1058_v45 = vpop.permute.xlu0 %1057 }
 0x1fd   :  { %1139 = vst.msk [vmem:[#allocation2 + $0x88] sm:$0xff] %vm1121_vm6, %v1060_v44  ;;  %1138 = vst.msk [vmem:[#allocation2 + $0x80] sm:$0xff] %vm1121_vm6, %v1058_v45 }
 0x1fe   :  { %1646 = vrot.lane.b32.xlu1 %v1561_v40, %s9104_s10  ;;  %1644 = vrot.lane.b32.xlu0 %v1560_v41, %s9104_s10  ;;  %v988_v40 = vmul.f32 2.0, %v10351_v58  ;;  %v987_v41 = vmul.f32 2.0, %v10356_v5 }
 0x200   :  { %v1064_v1 = vpop.permute.xlu1 %1063  ;;  %v1062_v43 = vpop.permute.xlu0 %1061 }
 0x201   :  { %1141 = vst.msk [vmem:[#allocation2 + $0x98] sm:$0xff] %vm1121_vm6, %v1064_v1  ;;  %1140 = vst.msk [vmem:[#allocation2 + $0x90] sm:$0xff] %vm1121_vm6, %v1062_v43 }
 0x202   :  { %242 = vrot.lane.b32.xlu1 %v151_v52, %s9096_s28  ;;  %240 = vrot.lane.b32.xlu0 %v150_v53, %s9096_s28  ;;  %v1179_v52 = vmul.f32 2.0, %v10119_v26  ;;  %v1178_v53 = vmul.f32 2.0, %v10124_v27 }
 0x204   :  { %v1253_v3 = vpop.permute.xlu1 %1252  ;;  %v1251_v25 = vpop.permute.xlu0 %1250 }
 0x205   :  { %1332 = vst.msk [vmem:[#allocation2 + $0x88] sm:$0xff] %vm1314_vm7, %v1253_v3  ;;  %1331 = vst.msk [vmem:[#allocation2 + $0x80] sm:$0xff] %vm1314_vm7, %v1251_v25  ;;  %v1181_v3 = vmul.f32 2.0, %v10139_v30  ;;  %v1180_v25 = vmul.f32 2.0, %v10144_v39 }
 0x206   :  { %399 = vrot.lane.b32.xlu1 %v10295_v12, %s9097_s22  ;;  %397 = vrot.lane.b32.xlu0 %v10300_v24, %s9097_s22 }
 0x208   :  { %v1257_v56 = vpop.permute.xlu1 %1256  ;;  %v1255_v57 = vpop.permute.xlu0 %1254 }
 0x209   :  { %1334 = vst.msk [vmem:[#allocation2 + $0x98] sm:$0xff] %vm1314_vm7, %v1257_v56  ;;  %1333 = vst.msk [vmem:[#allocation2 + $0x90] sm:$0xff] %vm1314_vm7, %v1255_v57  ;;  %v1372_v56 = vmul.f32 4.0, %v10295_v12  ;;  %v1371_v57 = vmul.f32 4.0, %v10300_v24 }
 0x20a   :  { %1650 = vrot.lane.b32.xlu1 %v1563_v54, %s9104_s10  ;;  %1648 = vrot.lane.b32.xlu0 %v1562_v55, %s9104_s10 }
 0x20c   :  { %v1446_v28 = vpop.permute.xlu1 %1445  ;;  %v1444_v50 = vpop.permute.xlu0 %1443 }
 0x20d   :  { %1525 = vst.msk [vmem:[#allocation2 + $0x88] sm:$0xff] %vm1507_vm8, %v1446_v28  ;;  %1524 = vst.msk [vmem:[#allocation2 + $0x80] sm:$0xff] %vm1507_vm8, %v1444_v50  ;;  %v153_v28 = vld [vmem:[%s14004_s1 + $0xe8] sm:$0xff]  ;;  %v152_v50 = vld [vmem:[%s14004_s1 + $0xe0] sm:$0xff] }
 0x20e   :  { %1839 = vrot.lane.b32.xlu1 %v1754_v46, %s9105_s13  ;;  %1837 = vrot.lane.b32.xlu0 %v1753_v47, %s9105_s13 }
 0x210   :  { %v231_v6 = vpop.permute.xlu1 %230  ;;  %v229_v7 = vpop.permute.xlu0 %228 }
 0x211   :  { %306 = vst.msk [vmem:[#allocation2 + $0xa8] sm:$0xff] %vm284_vm1, %v231_v6  ;;  %305 = vst.msk [vmem:[#allocation2 + $0xa0] sm:$0xff] %vm284_vm1, %v229_v7 }
 0x212   :  { %403 = vrot.lane.b32.xlu1 %v10351_v58, %s9097_s22  ;;  %401 = vrot.lane.b32.xlu0 %v10356_v5, %s9097_s22 }
 0x214   :  { %v1450_v10 = vpop.permute.xlu1 %1449  ;;  %v1448_v11 = vpop.permute.xlu0 %1447 }
 0x215   :  { %1527 = vst.msk [vmem:[#allocation2 + $0x98] sm:$0xff] %vm1507_vm8, %v1450_v10  ;;  %1526 = vst.msk [vmem:[#allocation2 + $0x90] sm:$0xff] %vm1507_vm8, %v1448_v11 }
 0x216   :  { %592 = vrot.lane.b32.xlu1 %v503_v8, %s9098_s17  ;;  %590 = vrot.lane.b32.xlu0 %v502_v9, %s9098_s17  ;;  %v1374_v8 = vmul.f32 4.0, %v10351_v58  ;;  %v1373_v9 = vmul.f32 4.0, %v10356_v5 }
 0x218   :  { %v1639_v18 = vpop.permute.xlu1 %1638  ;;  %v1637_v19 = vpop.permute.xlu0 %1636 }
 0x219   :  { %1718 = vst.msk [vmem:[#allocation2 + $0x88] sm:$0xff] %vm1700_vm9, %v1639_v18  ;;  %1717 = vst.msk [vmem:[#allocation2 + $0x80] sm:$0xff] %vm1700_vm9, %v1637_v19 }
 0x21a   :  { %1843 = vrot.lane.b32.xlu1 %v1756_v16, %s9105_s13  ;;  %1841 = vrot.lane.b32.xlu0 %v1755_v17, %s9105_s13  ;;  %v1565_v16 = vmul.f32 4.0, %v10119_v26  ;;  %v1564_v17 = vmul.f32 4.0, %v10124_v27 }
 0x21c   :  { %v235_v29 = vpop.permute.xlu1 %234  ;;  %v233_v59 = vpop.permute.xlu0 %232 }
 0x21d   :  { %308 = vst.msk [vmem:[#allocation2 + $0xb8] sm:$0xff] %vm284_vm1, %v235_v29  ;;  %307 = vst.msk [vmem:[#allocation2 + $0xb0] sm:$0xff] %vm284_vm1, %v233_v59 }
 0x21e   :  { %2032 = vrot.lane.b32.xlu1 %v1947_v49, %s9106_s30  ;;  %2030 = vrot.lane.b32.xlu0 %v1946_v13, %s9106_s30  ;;  %v155_v49 = vld [vmem:[%s14004_s1 + $0xf8] sm:$0xff]  ;;  %v154_v13 = vld [vmem:[%s14004_s1 + $0xf0] sm:$0xff] }
 0x220   :  { %v392_v31 = vpop.permute.xlu1 %391  ;;  %v390_v61 = vpop.permute.xlu0 %389 }
 0x221   :  { %467 = vst.msk [vmem:[#allocation2 + $0xa8] sm:$0xff] %vm445_vm2, %v392_v31  ;;  %466 = vst.msk [vmem:[#allocation2 + $0xa0] sm:$0xff] %vm445_vm2, %v390_v61 }
 0x222   :  { %596 = vrot.lane.b32.xlu1 %v505_v42, %s9098_s17  ;;  %594 = vrot.lane.b32.xlu0 %v504_v60, %s9098_s17  ;;  %v10491_v42 = vld [vmem:[%s14006_s2 + $0xe8] sm:$0xff]  ;;  %v10496_v60 = vld [vmem:[%s14006_s2 + $0xe0] sm:$0xff] }
 0x224   :  { %v1643_v20 = vpop.permute.xlu1 %1642  ;;  %v1641_v21 = vpop.permute.xlu0 %1640 }
 0x225   :  { %1720 = vst.msk [vmem:[#allocation2 + $0x98] sm:$0xff] %vm1700_vm9, %v1643_v20  ;;  %1719 = vst.msk [vmem:[#allocation2 + $0x90] sm:$0xff] %vm1700_vm9, %v1641_v21  ;;  %v1567_v20 = vmul.f32 4.0, %v10139_v30  ;;  %v1566_v21 = vmul.f32 4.0, %v10144_v39 }
 0x226   :  { %721 = vrot.lane.b32.xlu1 %v10295_v12, %s9099_s23  ;;  %719 = vrot.lane.b32.xlu0 %v10300_v24, %s9099_s23 }
 0x228   :  { %v1832_v14 = vpop.permute.xlu1 %1831  ;;  %v1830_v15 = vpop.permute.xlu0 %1829 }
 0x229   :  { %1911 = vst.msk [vmem:[#allocation2 + $0x88] sm:$0xff] %vm1893_vm10, %v1832_v14  ;;  %1910 = vst.msk [vmem:[#allocation2 + $0x80] sm:$0xff] %vm1893_vm10, %v1830_v15  ;;  %v1758_v14 = vmul.f32 8.0, %v10295_v12  ;;  %v1757_v15 = vmul.f32 8.0, %v10300_v24  ;;  %v10524_v12 = vld [vmem:[%s14006_s2 + $0xf0] sm:$0xff] }
 0x22a   :  { %2036 = vrot.lane.b32.xlu1 %v1949_v22, %s9106_s30  ;;  %2034 = vrot.lane.b32.xlu0 %v1948_v23, %s9106_s30 }
 0x22c   :  { %v396_v0 = vpop.permute.xlu1 %395  ;;  %v394_v38 = vpop.permute.xlu0 %393 }
 0x22d   :  { %469 = vst.msk [vmem:[#allocation2 + $0xb8] sm:$0xff] %vm445_vm2, %v396_v0  ;;  %468 = vst.msk [vmem:[#allocation2 + $0xb0] sm:$0xff] %vm445_vm2, %v394_v38 }
 0x22e   :  { %725 = vrot.lane.b32.xlu1 %v10351_v58, %s9099_s23  ;;  %723 = vrot.lane.b32.xlu0 %v10356_v5, %s9099_s23 }
 0x230   :  { %v585_v2 = vpop.permute.xlu1 %584  ;;  %v583_v48 = vpop.permute.xlu0 %582 }
 0x231   :  { %660 = vst.msk [vmem:[#allocation2 + $0xa8] sm:$0xff] %vm638_vm3, %v585_v2  ;;  %659 = vst.msk [vmem:[#allocation2 + $0xa0] sm:$0xff] %vm638_vm3, %v583_v48  ;;  %v10519_v2 = vld [vmem:[%s14006_s2 + $0xf8] sm:$0xff] }
 0x232   :  { %882 = vrot.lane.b32.xlu1 %v10119_v26, %s9100_s24  ;;  %880 = vrot.lane.b32.xlu0 %v10124_v27, %s9100_s24 }
 0x234   :  { %v1836_v32 = vpop.permute.xlu1 %1835  ;;  %v1834_v33 = vpop.permute.xlu0 %1833 }
 0x235   :  { %1913 = vst.msk [vmem:[#allocation2 + $0x98] sm:$0xff] %vm1893_vm10, %v1836_v32  ;;  %1912 = vst.msk [vmem:[#allocation2 + $0x90] sm:$0xff] %vm1893_vm10, %v1834_v33  ;;  %v507_v32 = vld [vmem:[%s14007_s3 + $0xe8] sm:$0xff]  ;;  %v506_v33 = vld [vmem:[%s14007_s3 + $0xe0] sm:$0xff] }
 0x236   :  { %886 = vrot.lane.b32.xlu1 %v10139_v30, %s9100_s24  ;;  %884 = vrot.lane.b32.xlu0 %v10144_v39, %s9100_s24 }
 0x238   :  { %v2025_v36 = vpop.permute.xlu1 %2024  ;;  %v2023_v37 = vpop.permute.xlu0 %2022 }
 0x239   :  { %2104 = vst.msk [vmem:[#allocation2 + $0x88] sm:$0xff] %vm2086_vm11, %v2025_v36  ;;  %2103 = vst.msk [vmem:[#allocation2 + $0x80] sm:$0xff] %vm2086_vm11, %v2023_v37  ;;  %v1760_v36 = vmul.f32 8.0, %v10351_v58  ;;  %v1759_v37 = vmul.f32 8.0, %v10356_v5  ;;  %v509_v58 = vld [vmem:[%s14007_s3 + $0xf8] sm:$0xff] }
 0x23a   :  { %1075 = vrot.lane.b32.xlu1 %v986_v34, %s9101_s25  ;;  %1073 = vrot.lane.b32.xlu0 %v985_v35, %s9101_s25 }
 0x23c   :  { %v589_v44 = vpop.permute.xlu1 %588  ;;  %v587_v45 = vpop.permute.xlu0 %586 }
 0x23d   :  { %662 = vst.msk [vmem:[#allocation2 + $0xb8] sm:$0xff] %vm638_vm3, %v589_v44  ;;  %661 = vst.msk [vmem:[#allocation2 + $0xb0] sm:$0xff] %vm638_vm3, %v587_v45  ;;  %v1951_v44 = vmul.f32 8.0, %v10119_v26  ;;  %v1950_v45 = vmul.f32 8.0, %v10124_v27  ;;  %v508_v26 = vld [vmem:[%s14007_s3 + $0xf0] sm:$0xff]  ;;  %s9107_s3 = smov 20  }
 0x23e   :  { %1079 = vrot.lane.b32.xlu1 %v988_v40, %s9101_s25  ;;  %1077 = vrot.lane.b32.xlu0 %v987_v41, %s9101_s25 }
 0x240   :  { %v714_v1 = vpop.permute.xlu1 %713  ;;  %v712_v43 = vpop.permute.xlu0 %711 }
 0x241   :  { %789 = vst.msk [vmem:[#allocation2 + $0xa8] sm:$0xff] %vm767_vm4, %v714_v1  ;;  %788 = vst.msk [vmem:[#allocation2 + $0xa0] sm:$0xff] %vm767_vm4, %v712_v43 }
 0x242   :  { %1268 = vrot.lane.b32.xlu1 %v1179_v52, %s9102_s26  ;;  %1266 = vrot.lane.b32.xlu0 %v1178_v53, %s9102_s26 }
 0x244   :  { %v2029_v54 = vpop.permute.xlu1 %2028  ;;  %v2027_v55 = vpop.permute.xlu0 %2026 }
 0x245   :  { %2106 = vst.msk [vmem:[#allocation2 + $0x98] sm:$0xff] %vm2086_vm11, %v2029_v54  ;;  %2105 = vst.msk [vmem:[#allocation2 + $0x90] sm:$0xff] %vm2086_vm11, %v2027_v55 }
 0x246   :  { %1272 = vrot.lane.b32.xlu1 %v1181_v3, %s9102_s26  ;;  %1270 = vrot.lane.b32.xlu0 %v1180_v25, %s9102_s26  ;;  %v1953_v3 = vmul.f32 8.0, %v10139_v30  ;;  %v1952_v25 = vmul.f32 8.0, %v10144_v39 }
 0x248   :  { %v718_v46 = vpop.permute.xlu1 %717  ;;  %v716_v47 = vpop.permute.xlu0 %715 }
 0x249   :  { %791 = vst.msk [vmem:[#allocation2 + $0xb8] sm:$0xff] %vm767_vm4, %v718_v46  ;;  %790 = vst.msk [vmem:[#allocation2 + $0xb0] sm:$0xff] %vm767_vm4, %v716_v47 }
 0x24a   :  { %1461 = vrot.lane.b32.xlu1 %v1372_v56, %s9103_s27  ;;  %1459 = vrot.lane.b32.xlu0 %v1371_v57, %s9103_s27 }
 0x24c   :  { %v875_v6 = vpop.permute.xlu1 %874  ;;  %v873_v7 = vpop.permute.xlu0 %872 }
 0x24d   :  { %950 = vst.msk [vmem:[#allocation2 + $0xa8] sm:$0xff] %vm928_vm5, %v875_v6  ;;  %949 = vst.msk [vmem:[#allocation2 + $0xa0] sm:$0xff] %vm928_vm5, %v873_v7 }
 0x24e   :  { %246 = vrot.lane.b32.xlu1 %v153_v28, %s9096_s28  ;;  %244 = vrot.lane.b32.xlu0 %v152_v50, %s9096_s28  ;;  %v990_v28 = vmul.f32 2.0, %v10491_v42  ;;  %v989_v50 = vmul.f32 2.0, %v10496_v60 }
 0x250   :  { %v879_v10 = vpop.permute.xlu1 %878  ;;  %v877_v11 = vpop.permute.xlu0 %876 }
 0x251   :  { %952 = vst.msk [vmem:[#allocation2 + $0xb8] sm:$0xff] %vm928_vm5, %v879_v10  ;;  %951 = vst.msk [vmem:[#allocation2 + $0xb0] sm:$0xff] %vm928_vm5, %v877_v11 }
 0x252   :  { %1465 = vrot.lane.b32.xlu1 %v1374_v8, %s9103_s27  ;;  %1463 = vrot.lane.b32.xlu0 %v1373_v9, %s9103_s27  ;;  %v992_v8 = vmul.f32 2.0, %v10519_v2  ;;  %v991_v9 = vmul.f32 2.0, %v10524_v12 }
 0x254   :  { %v1068_v18 = vpop.permute.xlu1 %1067  ;;  %v1066_v19 = vpop.permute.xlu0 %1065 }
 0x255   :  { %1143 = vst.msk [vmem:[#allocation2 + $0xa8] sm:$0xff] %vm1121_vm6, %v1068_v18  ;;  %1142 = vst.msk [vmem:[#allocation2 + $0xa0] sm:$0xff] %vm1121_vm6, %v1066_v19 }
 0x256   :  { %1654 = vrot.lane.b32.xlu1 %v1565_v16, %s9104_s10  ;;  %1652 = vrot.lane.b32.xlu0 %v1564_v17, %s9104_s10  ;;  %v1183_v16 = vmul.f32 2.0, %v10315_v62  ;;  %v1182_v17 = vmul.f32 2.0, %v10320_v63 }
 0x258   :  { %v1072_v29 = vpop.permute.xlu1 %1071  ;;  %v1070_v59 = vpop.permute.xlu0 %1069 }
 0x259   :  { %1145 = vst.msk [vmem:[#allocation2 + $0xb8] sm:$0xff] %vm1121_vm6, %v1072_v29  ;;  %1144 = vst.msk [vmem:[#allocation2 + $0xb0] sm:$0xff] %vm1121_vm6, %v1070_v59 }
 0x25a   :  { %250 = vrot.lane.b32.xlu1 %v155_v49, %s9096_s28  ;;  %248 = vrot.lane.b32.xlu0 %v154_v13, %s9096_s28  ;;  %v1185_v49 = vmul.f32 2.0, %v10335_v4  ;;  %v1184_v13 = vmul.f32 2.0, %v10340_v51 }
 0x25c   :  { %v1261_v31 = vpop.permute.xlu1 %1260  ;;  %v1259_v61 = vpop.permute.xlu0 %1258 }
 0x25d   :  { %1336 = vst.msk [vmem:[#allocation2 + $0xa8] sm:$0xff] %vm1314_vm7, %v1261_v31  ;;  %1335 = vst.msk [vmem:[#allocation2 + $0xa0] sm:$0xff] %vm1314_vm7, %v1259_v61  ;;  %v1376_v31 = vmul.f32 4.0, %v10491_v42  ;;  %v1375_v61 = vmul.f32 4.0, %v10496_v60 }
 0x25e   :  { %407 = vrot.lane.b32.xlu1 %v10491_v42, %s9097_s22  ;;  %405 = vrot.lane.b32.xlu0 %v10496_v60, %s9097_s22 }
 0x260   :  { %v1265_v22 = vpop.permute.xlu1 %1264  ;;  %v1263_v23 = vpop.permute.xlu0 %1262 }
 0x261   :  { %1338 = vst.msk [vmem:[#allocation2 + $0xb8] sm:$0xff] %vm1314_vm7, %v1265_v22  ;;  %1337 = vst.msk [vmem:[#allocation2 + $0xb0] sm:$0xff] %vm1314_vm7, %v1263_v23  ;;  %v1378_v22 = vmul.f32 4.0, %v10519_v2  ;;  %v1377_v23 = vmul.f32 4.0, %v10524_v12 }
 0x262   :  { %1658 = vrot.lane.b32.xlu1 %v1567_v20, %s9104_s10  ;;  %1656 = vrot.lane.b32.xlu0 %v1566_v21, %s9104_s10 }
 0x264   :  { %v1454_v0 = vpop.permute.xlu1 %1453  ;;  %v1452_v38 = vpop.permute.xlu0 %1451 }
 0x265   :  { %1529 = vst.msk [vmem:[#allocation2 + $0xa8] sm:$0xff] %vm1507_vm8, %v1454_v0  ;;  %1528 = vst.msk [vmem:[#allocation2 + $0xa0] sm:$0xff] %vm1507_vm8, %v1452_v38  ;;  %v1569_v0 = vmul.f32 4.0, %v10315_v62  ;;  %v1568_v38 = vmul.f32 4.0, %v10320_v63 }
 0x266   :  { %1847 = vrot.lane.b32.xlu1 %v1758_v14, %s9105_s13  ;;  %1845 = vrot.lane.b32.xlu0 %v1757_v15, %s9105_s13 }
 0x268   :  { %v239_v24 = vpop.permute.xlu1 %238  ;;  %v237_v48 = vpop.permute.xlu0 %236 }
 0x269   :  { %310 = vst.msk [vmem:[#allocation2 + $0xc8] sm:$0xff] %vm284_vm1, %v239_v24  ;;  %309 = vst.msk [vmem:[#allocation2 + $0xc0] sm:$0xff] %vm284_vm1, %v237_v48 }
 0x26a   :  { %411 = vrot.lane.b32.xlu1 %v10519_v2, %s9097_s22  ;;  %409 = vrot.lane.b32.xlu0 %v10524_v12, %s9097_s22 }
 0x26c   :  { %v1458_v34 = vpop.permute.xlu1 %1457  ;;  %v1456_v35 = vpop.permute.xlu0 %1455 }
 0x26d   :  { %1531 = vst.msk [vmem:[#allocation2 + $0xb8] sm:$0xff] %vm1507_vm8, %v1458_v34  ;;  %1530 = vst.msk [vmem:[#allocation2 + $0xb0] sm:$0xff] %vm1507_vm8, %v1456_v35 }
 0x26e   :  { %600 = vrot.lane.b32.xlu1 %v507_v32, %s9098_s17  ;;  %598 = vrot.lane.b32.xlu0 %v506_v33, %s9098_s17  ;;  %v1571_v32 = vmul.f32 4.0, %v10335_v4  ;;  %v1570_v33 = vmul.f32 4.0, %v10340_v51 }
 0x270   :  { %v1647_v40 = vpop.permute.xlu1 %1646  ;;  %v1645_v41 = vpop.permute.xlu0 %1644 }
 0x271   :  { %1722 = vst.msk [vmem:[#allocation2 + $0xa8] sm:$0xff] %vm1700_vm9, %v1647_v40  ;;  %1721 = vst.msk [vmem:[#allocation2 + $0xa0] sm:$0xff] %vm1700_vm9, %v1645_v41 }
 0x272   :  { %1851 = vrot.lane.b32.xlu1 %v1760_v36, %s9105_s13  ;;  %1849 = vrot.lane.b32.xlu0 %v1759_v37, %s9105_s13  ;;  %v1762_v36 = vmul.f32 8.0, %v10491_v42  ;;  %v1761_v37 = vmul.f32 8.0, %v10496_v60 }
 0x274   :  { %v243_v52 = vpop.permute.xlu1 %242  ;;  %v241_v53 = vpop.permute.xlu0 %240 }
 0x275   :  { %312 = vst.msk [vmem:[#allocation2 + $0xd8] sm:$0xff] %vm284_vm1, %v243_v52  ;;  %311 = vst.msk [vmem:[#allocation2 + $0xd0] sm:$0xff] %vm284_vm1, %v241_v53 }
 0x276   :  { %2040 = vrot.lane.b32.xlu1 %v1951_v44, %s9106_s30  ;;  %2038 = vrot.lane.b32.xlu0 %v1950_v45, %s9106_s30  ;;  %v1764_v44 = vmul.f32 8.0, %v10519_v2  ;;  %v1763_v45 = vmul.f32 8.0, %v10524_v12 }
 0x278   :  { %v400_v5 = vpop.permute.xlu1 %399  ;;  %v398_v27 = vpop.permute.xlu0 %397 }
 0x279   :  { %471 = vst.msk [vmem:[#allocation2 + $0xc8] sm:$0xff] %vm445_vm2, %v400_v5  ;;  %470 = vst.msk [vmem:[#allocation2 + $0xc0] sm:$0xff] %vm445_vm2, %v398_v27 }
 0x27a   :  { %604 = vrot.lane.b32.xlu1 %v509_v58, %s9098_s17  ;;  %602 = vrot.lane.b32.xlu0 %v508_v26, %s9098_s17 }
 0x27c   :  { %v1651_v1 = vpop.permute.xlu1 %1650  ;;  %v1649_v43 = vpop.permute.xlu0 %1648 }
 0x27d   :  { %1724 = vst.msk [vmem:[#allocation2 + $0xb8] sm:$0xff] %vm1700_vm9, %v1651_v1  ;;  %1723 = vst.msk [vmem:[#allocation2 + $0xb0] sm:$0xff] %vm1700_vm9, %v1649_v43 }
 0x27e   :  { %729 = vrot.lane.b32.xlu1 %v10491_v42, %s9099_s23  ;;  %727 = vrot.lane.b32.xlu0 %v10496_v60, %s9099_s23  ;;  %v1955_v42 = vmul.f32 8.0, %v10315_v62  ;;  %v1954_v60 = vmul.f32 8.0, %v10320_v63 }
 0x280   :  { %v1840_v54 = vpop.permute.xlu1 %1839  ;;  %v1838_v55 = vpop.permute.xlu0 %1837 }
 0x281   :  { %1915 = vst.msk [vmem:[#allocation2 + $0xa8] sm:$0xff] %vm1893_vm10, %v1840_v54  ;;  %1914 = vst.msk [vmem:[#allocation2 + $0xa0] sm:$0xff] %vm1893_vm10, %v1838_v55 }
 0x282   :  { %2044 = vrot.lane.b32.xlu1 %v1953_v3, %s9106_s30  ;;  %2042 = vrot.lane.b32.xlu0 %v1952_v25, %s9106_s30 }
 0x284   :  { %v404_v56 = vpop.permute.xlu1 %403  ;;  %v402_v57 = vpop.permute.xlu0 %401 }
 0x285   :  { %473 = vst.msk [vmem:[#allocation2 + $0xd8] sm:$0xff] %vm445_vm2, %v404_v56  ;;  %472 = vst.msk [vmem:[#allocation2 + $0xd0] sm:$0xff] %vm445_vm2, %v402_v57 }
 0x286   :  { %733 = vrot.lane.b32.xlu1 %v10519_v2, %s9099_s23  ;;  %731 = vrot.lane.b32.xlu0 %v10524_v12, %s9099_s23  ;;  %v1957_v2 = vmul.f32 8.0, %v10335_v4  ;;  %v1956_v12 = vmul.f32 8.0, %v10340_v51 }
 0x288   :  { %v593_v30 = vpop.permute.xlu1 %592  ;;  %v591_v39 = vpop.permute.xlu0 %590 }
 0x289   :  { %664 = vst.msk [vmem:[#allocation2 + $0xc8] sm:$0xff] %vm638_vm3, %v593_v30  ;;  %663 = vst.msk [vmem:[#allocation2 + $0xc0] sm:$0xff] %vm638_vm3, %v591_v39  ;;  %v2124_v30 = vld [vmem:[#allocation2 + $0x28] sm:$0xff]  ;;  %v2123_v39 = vld [vmem:[#allocation2 + $0x20] sm:$0xff] }
 0x28a   :  { %890 = vrot.lane.b32.xlu1 %v10315_v62, %s9100_s24  ;;  %888 = vrot.lane.b32.xlu0 %v10320_v63, %s9100_s24  ;;  %v2120_v62 = vld [vmem:[#allocation2 + $0x8] sm:$0xff]  ;;  %v2119_v63 = vld [vmem:[#allocation2] sm:$0xff] }
 0x28b   :  { %v2152_v3 = vadd.f32 1.5707964, %v2120_v62  ;;  %v2151_v25 = vadd.f32 1.5707964, %v2119_v63 }
 0x28c   :  { %v1844_v46 = vpop.permute.xlu1 %1843  ;;  %v1842_v47 = vpop.permute.xlu0 %1841 }
 0x28d   :  { %1917 = vst.msk [vmem:[#allocation2 + $0xb8] sm:$0xff] %vm1893_vm10, %v1844_v46  ;;  %1916 = vst.msk [vmem:[#allocation2 + $0xb0] sm:$0xff] %vm1893_vm10, %v1842_v47 }
 0x28e   :  { %894 = vrot.lane.b32.xlu1 %v10335_v4, %s9100_s24  ;;  %892 = vrot.lane.b32.xlu0 %v10340_v51, %s9100_s24  ;;  %v2122_v4 = vld [vmem:[#allocation2 + $0x18] sm:$0xff]  ;;  %v2121_v51 = vld [vmem:[#allocation2 + $0x10] sm:$0xff] }
 0x28f   :  { %v2154_v56 = vadd.f32 1.5707964, %v2122_v4  ;;  %v2153_v57 = vadd.f32 1.5707964, %v2121_v51 }
 0x290   :  { %v2033_v6 = vpop.permute.xlu1 %2032  ;;  %v2031_v7 = vpop.permute.xlu0 %2030 }
 0x291   :  { %2108 = vst.msk [vmem:[#allocation2 + $0xa8] sm:$0xff] %vm2086_vm11, %v2033_v6  ;;  %2107 = vst.msk [vmem:[#allocation2 + $0xa0] sm:$0xff] %vm2086_vm11, %v2031_v7  ;;  %v2126_v6 = vld [vmem:[#allocation2 + $0x38] sm:$0xff]  ;;  %v2125_v7 = vld [vmem:[#allocation2 + $0x30] sm:$0xff] }
 0x292   :  { %1083 = vrot.lane.b32.xlu1 %v990_v28, %s9101_s25  ;;  %1081 = vrot.lane.b32.xlu0 %v989_v50, %s9101_s25  ;;  %v2156_v28 = vadd.f32 1.5707964, %v2124_v30  ;;  %v2155_v50 = vadd.f32 1.5707964, %v2123_v39 }
 0x294   :  { %v597_v10 = vpop.permute.xlu1 %596  ;;  %v595_v11 = vpop.permute.xlu0 %594 }
 0x295   :  { %666 = vst.msk [vmem:[#allocation2 + $0xd8] sm:$0xff] %vm638_vm3, %v597_v10  ;;  %665 = vst.msk [vmem:[#allocation2 + $0xd0] sm:$0xff] %vm638_vm3, %v595_v11  ;;  %v2158_v10 = vadd.f32 1.5707964, %v2126_v6  ;;  %v2157_v11 = vadd.f32 1.5707964, %v2125_v7 }
 0x296   :  { %1087 = vrot.lane.b32.xlu1 %v992_v8, %s9101_s25  ;;  %1085 = vrot.lane.b32.xlu0 %v991_v9, %s9101_s25 }
 0x298   :  { %v722_v18 = vpop.permute.xlu1 %721  ;;  %v720_v19 = vpop.permute.xlu0 %719 }
 0x299   :  { %793 = vst.msk [vmem:[#allocation2 + $0xc8] sm:$0xff] %vm767_vm4, %v722_v18  ;;  %792 = vst.msk [vmem:[#allocation2 + $0xc0] sm:$0xff] %vm767_vm4, %v720_v19 }
 0x29a   :  { %1276 = vrot.lane.b32.xlu1 %v1183_v16, %s9102_s26  ;;  %1274 = vrot.lane.b32.xlu0 %v1182_v17, %s9102_s26  ;;  %v2128_v16 = vld [vmem:[#allocation2 + $0x48] sm:$0xff]  ;;  %v2127_v17 = vld [vmem:[#allocation2 + $0x40] sm:$0xff] }
 0x29c   :  { %v2037_v29 = vpop.permute.xlu1 %2036  ;;  %v2035_v59 = vpop.permute.xlu0 %2034 }
 0x29d   :  { %2110 = vst.msk [vmem:[#allocation2 + $0xb8] sm:$0xff] %vm2086_vm11, %v2037_v29  ;;  %2109 = vst.msk [vmem:[#allocation2 + $0xb0] sm:$0xff] %vm2086_vm11, %v2035_v59  ;;  %v2130_v29 = vld [vmem:[#allocation2 + $0x58] sm:$0xff]  ;;  %v2129_v59 = vld [vmem:[#allocation2 + $0x50] sm:$0xff] }
 0x29e   :  { %1280 = vrot.lane.b32.xlu1 %v1185_v49, %s9102_s26  ;;  %1278 = vrot.lane.b32.xlu0 %v1184_v13, %s9102_s26  ;;  %v2160_v49 = vadd.f32 1.5707964, %v2128_v16  ;;  %v2159_v13 = vadd.f32 1.5707964, %v2127_v17 }
 0x2a0   :  { %v726_v20 = vpop.permute.xlu1 %725  ;;  %v724_v21 = vpop.permute.xlu0 %723 }
 0x2a1   :  { %795 = vst.msk [vmem:[#allocation2 + $0xd8] sm:$0xff] %vm767_vm4, %v726_v20  ;;  %794 = vst.msk [vmem:[#allocation2 + $0xd0] sm:$0xff] %vm767_vm4, %v724_v21  ;;  %v2162_v20 = vadd.f32 1.5707964, %v2130_v29  ;;  %v2161_v21 = vadd.f32 1.5707964, %v2129_v59 }
 0x2a2   :  { %1469 = vrot.lane.b32.xlu1 %v1376_v31, %s9103_s27  ;;  %1467 = vrot.lane.b32.xlu0 %v1375_v61, %s9103_s27 }
 0x2a4   :  { %v883_v14 = vpop.permute.xlu1 %882  ;;  %v881_v15 = vpop.permute.xlu0 %880 }
 0x2a5   :  { %954 = vst.msk [vmem:[#allocation2 + $0xc8] sm:$0xff] %vm928_vm5, %v883_v14  ;;  %953 = vst.msk [vmem:[#allocation2 + $0xc0] sm:$0xff] %vm928_vm5, %v881_v15 }
 0x2a6   :  { %1473 = vrot.lane.b32.xlu1 %v1378_v22, %s9103_s27  ;;  %1471 = vrot.lane.b32.xlu0 %v1377_v23, %s9103_s27  ;;  %v2132_v22 = vld [vmem:[#allocation2 + $0x68] sm:$0xff]  ;;  %v2131_v23 = vld [vmem:[#allocation2 + $0x60] sm:$0xff] }
 0x2a8   :  { %v887_v24 = vpop.permute.xlu1 %886  ;;  %v885_v48 = vpop.permute.xlu0 %884 }
 0x2a9   :  { %956 = vst.msk [vmem:[#allocation2 + $0xd8] sm:$0xff] %vm928_vm5, %v887_v24  ;;  %955 = vst.msk [vmem:[#allocation2 + $0xd0] sm:$0xff] %vm928_vm5, %v885_v48  ;;  %v2134_v24 = vld [vmem:[#allocation2 + $0x78] sm:$0xff]  ;;  %v2133_v48 = vld [vmem:[#allocation2 + $0x70] sm:$0xff] }
 0x2aa   :  { %1662 = vrot.lane.b32.xlu1 %v1569_v0, %s9104_s10  ;;  %1660 = vrot.lane.b32.xlu0 %v1568_v38, %s9104_s10  ;;  %v2164_v0 = vadd.f32 1.5707964, %v2132_v22  ;;  %v2163_v38 = vadd.f32 1.5707964, %v2131_v23 }
 0x2ac   :  { %v1076_v34 = vpop.permute.xlu1 %1075  ;;  %v1074_v35 = vpop.permute.xlu0 %1073 }
 0x2ad   :  { %1147 = vst.msk [vmem:[#allocation2 + $0xc8] sm:$0xff] %vm1121_vm6, %v1076_v34  ;;  %1146 = vst.msk [vmem:[#allocation2 + $0xc0] sm:$0xff] %vm1121_vm6, %v1074_v35  ;;  %v2166_v34 = vadd.f32 1.5707964, %v2134_v24  ;;  %v2165_v35 = vadd.f32 1.5707964, %v2133_v48 }
 0x2ae   :  { %1666 = vrot.lane.b32.xlu1 %v1571_v32, %s9104_s10  ;;  %1664 = vrot.lane.b32.xlu0 %v1570_v33, %s9104_s10 }
 0x2b0   :  { %v1080_v40 = vpop.permute.xlu1 %1079  ;;  %v1078_v41 = vpop.permute.xlu0 %1077 }
 0x2b1   :  { %1149 = vst.msk [vmem:[#allocation2 + $0xd8] sm:$0xff] %vm1121_vm6, %v1080_v40  ;;  %1148 = vst.msk [vmem:[#allocation2 + $0xd0] sm:$0xff] %vm1121_vm6, %v1078_v41 }
 0x2b2   :  { %1855 = vrot.lane.b32.xlu1 %v1762_v36, %s9105_s13  ;;  %1853 = vrot.lane.b32.xlu0 %v1761_v37, %s9105_s13  ;;  %v2136_v36 = vld [vmem:[#allocation2 + $0x88] sm:$0xff]  ;;  %v2135_v37 = vld [vmem:[#allocation2 + $0x80] sm:$0xff] }
 0x2b4   :  { %v1269_v52 = vpop.permute.xlu1 %1268  ;;  %v1267_v53 = vpop.permute.xlu0 %1266 }
 0x2b5   :  { %1340 = vst.msk [vmem:[#allocation2 + $0xc8] sm:$0xff] %vm1314_vm7, %v1269_v52  ;;  %1339 = vst.msk [vmem:[#allocation2 + $0xc0] sm:$0xff] %vm1314_vm7, %v1267_v53  ;;  %v2138_v52 = vld [vmem:[#allocation2 + $0x98] sm:$0xff]  ;;  %v2137_v53 = vld [vmem:[#allocation2 + $0x90] sm:$0xff] }
 0x2b6   :  { %1859 = vrot.lane.b32.xlu1 %v1764_v44, %s9105_s13  ;;  %1857 = vrot.lane.b32.xlu0 %v1763_v45, %s9105_s13  ;;  %v2168_v44 = vadd.f32 1.5707964, %v2136_v36  ;;  %v2167_v45 = vadd.f32 1.5707964, %v2135_v37 }
 0x2b8   :  { %v1273_v58 = vpop.permute.xlu1 %1272  ;;  %v1271_v26 = vpop.permute.xlu0 %1270 }
 0x2b9   :  { %1342 = vst.msk [vmem:[#allocation2 + $0xd8] sm:$0xff] %vm1314_vm7, %v1273_v58  ;;  %1341 = vst.msk [vmem:[#allocation2 + $0xd0] sm:$0xff] %vm1314_vm7, %v1271_v26  ;;  %v2170_v58 = vadd.f32 1.5707964, %v2138_v52  ;;  %v2169_v26 = vadd.f32 1.5707964, %v2137_v53 }
 0x2ba   :  { %2048 = vrot.lane.b32.xlu1 %v1955_v42, %s9106_s30  ;;  %2046 = vrot.lane.b32.xlu0 %v1954_v60, %s9106_s30 }
 0x2bc   :  { %v1462_v5 = vpop.permute.xlu1 %1461  ;;  %v1460_v27 = vpop.permute.xlu0 %1459 }
 0x2bd   :  { %1533 = vst.msk [vmem:[#allocation2 + $0xc8] sm:$0xff] %vm1507_vm8, %v1462_v5  ;;  %1532 = vst.msk [vmem:[#allocation2 + $0xc0] sm:$0xff] %vm1507_vm8, %v1460_v27 }
 0x2be   :  { %2052 = vrot.lane.b32.xlu1 %v1957_v2, %s9106_s30  ;;  %2050 = vrot.lane.b32.xlu0 %v1956_v12, %s9106_s30  ;;  %v2140_v2 = vld [vmem:[#allocation2 + $0xa8] sm:$0xff]  ;;  %v2139_v12 = vld [vmem:[#allocation2 + $0xa0] sm:$0xff] }
 0x2bf   :  { %v2172_v62 = vadd.f32 1.5707964, %v2140_v2  ;;  %v2171_v63 = vadd.f32 1.5707964, %v2139_v12 }
 0x2c0   :  { %v247_v1 = vpop.permute.xlu1 %246  ;;  %v245_v43 = vpop.permute.xlu0 %244 }
 0x2c1   :  { %314 = vst.msk [vmem:[#allocation2 + $0xe8] sm:$0xff] %vm284_vm1, %v247_v1  ;;  %313 = vst.msk [vmem:[#allocation2 + $0xe0] sm:$0xff] %vm284_vm1, %v245_v43  ;;  %v2142_v1 = vld [vmem:[#allocation2 + $0xb8] sm:$0xff]  ;;  %v2141_v43 = vld [vmem:[#allocation2 + $0xb0] sm:$0xff] }
 0x2c2   :  { %2217 = vrot.lane.b32.xlu1 %v2152_v3, %s9107_s3  ;;  %2215 = vrot.lane.b32.xlu0 %v2151_v25, %s9107_s3  ;;  %v2174_v4 = vadd.f32 1.5707964, %v2142_v1  ;;  %v2173_v51 = vadd.f32 1.5707964, %v2141_v43 }
 0x2c4   :  { %v1466_v54 = vpop.permute.xlu1 %1465  ;;  %v1464_v55 = vpop.permute.xlu0 %1463 }
 0x2c5   :  { %1535 = vst.msk [vmem:[#allocation2 + $0xd8] sm:$0xff] %vm1507_vm8, %v1466_v54  ;;  %1534 = vst.msk [vmem:[#allocation2 + $0xd0] sm:$0xff] %vm1507_vm8, %v1464_v55 }
 0x2c6   :  { %2221 = vrot.lane.b32.xlu1 %v2154_v56, %s9107_s3  ;;  %2219 = vrot.lane.b32.xlu0 %v2153_v57, %s9107_s3 }
 0x2c8   :  { %v1655_v46 = vpop.permute.xlu1 %1654  ;;  %v1653_v47 = vpop.permute.xlu0 %1652 }
 0x2c9   :  { %1726 = vst.msk [vmem:[#allocation2 + $0xc8] sm:$0xff] %vm1700_vm9, %v1655_v46  ;;  %1725 = vst.msk [vmem:[#allocation2 + $0xc0] sm:$0xff] %vm1700_vm9, %v1653_v47 }
 0x2ca   :  { %2225 = vrot.lane.b32.xlu1 %v2156_v28, %s9107_s3  ;;  %2223 = vrot.lane.b32.xlu0 %v2155_v50, %s9107_s3 }
 0x2cc   :  { %v251_v8 = vpop.permute.xlu1 %250  ;;  %v249_v9 = vpop.permute.xlu0 %248 }
 0x2cd   :  { %316 = vst.msk [vmem:[#allocation2 + $0xf8] sm:$0xff] %vm284_vm1, %v251_v8  ;;  %315 = vst.msk [vmem:[#allocation2 + $0xf0] sm:$0xff] %vm284_vm1, %v249_v9 }
 0x2ce   :  { %2229 = vrot.lane.b32.xlu1 %v2158_v10, %s9107_s3  ;;  %2227 = vrot.lane.b32.xlu0 %v2157_v11, %s9107_s3 }
 0x2d0   :  { %v408_v18 = vpop.permute.xlu1 %407  ;;  %v406_v19 = vpop.permute.xlu0 %405 }
 0x2d1   :  { %475 = vst.msk [vmem:[#allocation2 + $0xe8] sm:$0xff] %vm445_vm2, %v408_v18  ;;  %474 = vst.msk [vmem:[#allocation2 + $0xe0] sm:$0xff] %vm445_vm2, %v406_v19 }
 0x2d2   :  { %2233 = vrot.lane.b32.xlu1 %v2160_v49, %s9107_s3  ;;  %2231 = vrot.lane.b32.xlu0 %v2159_v13, %s9107_s3 }
 0x2d4   :  { %v1659_v31 = vpop.permute.xlu1 %1658  ;;  %v1657_v61 = vpop.permute.xlu0 %1656 }
 0x2d5   :  { %1728 = vst.msk [vmem:[#allocation2 + $0xd8] sm:$0xff] %vm1700_vm9, %v1659_v31  ;;  %1727 = vst.msk [vmem:[#allocation2 + $0xd0] sm:$0xff] %vm1700_vm9, %v1657_v61 }
 0x2d6   :  { %2237 = vrot.lane.b32.xlu1 %v2162_v20, %s9107_s3  ;;  %2235 = vrot.lane.b32.xlu0 %v2161_v21, %s9107_s3 }
 0x2d8   :  { %v1848_v14 = vpop.permute.xlu1 %1847  ;;  %v1846_v15 = vpop.permute.xlu0 %1845 }
 0x2d9   :  { %1919 = vst.msk [vmem:[#allocation2 + $0xc8] sm:$0xff] %vm1893_vm10, %v1848_v14  ;;  %1918 = vst.msk [vmem:[#allocation2 + $0xc0] sm:$0xff] %vm1893_vm10, %v1846_v15 }
 0x2da   :  { %2241 = vrot.lane.b32.xlu1 %v2164_v0, %s9107_s3  ;;  %2239 = vrot.lane.b32.xlu0 %v2163_v38, %s9107_s3 }
 0x2dc   :  { %v412_v32 = vpop.permute.xlu1 %411  ;;  %v410_v33 = vpop.permute.xlu0 %409 }
 0x2dd   :  { %477 = vst.msk [vmem:[#allocation2 + $0xf8] sm:$0xff] %vm445_vm2, %v412_v32  ;;  %476 = vst.msk [vmem:[#allocation2 + $0xf0] sm:$0xff] %vm445_vm2, %v410_v33 }
 0x2de   :  { %2245 = vrot.lane.b32.xlu1 %v2166_v34, %s9107_s3  ;;  %2243 = vrot.lane.b32.xlu0 %v2165_v35, %s9107_s3 }
 0x2e0   :  { %v601_v40 = vpop.permute.xlu1 %600  ;;  %v599_v41 = vpop.permute.xlu0 %598 }
 0x2e1   :  { %668 = vst.msk [vmem:[#allocation2 + $0xe8] sm:$0xff] %vm638_vm3, %v601_v40  ;;  %667 = vst.msk [vmem:[#allocation2 + $0xe0] sm:$0xff] %vm638_vm3, %v599_v41 }
 0x2e2   :  { %2249 = vrot.lane.b32.xlu1 %v2168_v44, %s9107_s3  ;;  %2247 = vrot.lane.b32.xlu0 %v2167_v45, %s9107_s3 }
 0x2e4   :  { %v1852_v42 = vpop.permute.xlu1 %1851  ;;  %v1850_v60 = vpop.permute.xlu0 %1849 }
 0x2e5   :  { %1921 = vst.msk [vmem:[#allocation2 + $0xd8] sm:$0xff] %vm1893_vm10, %v1852_v42  ;;  %1920 = vst.msk [vmem:[#allocation2 + $0xd0] sm:$0xff] %vm1893_vm10, %v1850_v60 }
 0x2e6   :  { %2253 = vrot.lane.b32.xlu1 %v2170_v58, %s9107_s3  ;;  %2251 = vrot.lane.b32.xlu0 %v2169_v26, %s9107_s3 }
 0x2e8   :  { %v2041_v5 = vpop.permute.xlu1 %2040  ;;  %v2039_v27 = vpop.permute.xlu0 %2038 }
 0x2e9   :  { %2112 = vst.msk [vmem:[#allocation2 + $0xc8] sm:$0xff] %vm2086_vm11, %v2041_v5  ;;  %2111 = vst.msk [vmem:[#allocation2 + $0xc0] sm:$0xff] %vm2086_vm11, %v2039_v27 }
 0x2ea   :  { %2257 = vrot.lane.b32.xlu1 %v2172_v62, %s9107_s3  ;;  %2255 = vrot.lane.b32.xlu0 %v2171_v63, %s9107_s3 }
 0x2ec   :  { %v605_v3 = vpop.permute.xlu1 %604  ;;  %v603_v25 = vpop.permute.xlu0 %602 }
 0x2ed   :  { %670 = vst.msk [vmem:[#allocation2 + $0xf8] sm:$0xff] %vm638_vm3, %v605_v3  ;;  %669 = vst.msk [vmem:[#allocation2 + $0xf0] sm:$0xff] %vm638_vm3, %v603_v25 }
 0x2ee   :  { %2261 = vrot.lane.b32.xlu1 %v2174_v4, %s9107_s3  ;;  %2259 = vrot.lane.b32.xlu0 %v2173_v51, %s9107_s3 }
 0x2f0   :  { %v730_v54 = vpop.permute.xlu1 %729  ;;  %v728_v55 = vpop.permute.xlu0 %727  ;;  %v2144_v56 = vld [vmem:[#allocation2 + $0xc8] sm:$0xff]  ;;  %v2143_v57 = vld [vmem:[#allocation2 + $0xc0] sm:$0xff] }
 0x2f1   :  { %797 = vst.msk [vmem:[#allocation2 + $0xe8] sm:$0xff] %vm767_vm4, %v730_v54  ;;  %796 = vst.msk [vmem:[#allocation2 + $0xe0] sm:$0xff] %vm767_vm4, %v728_v55  ;;  %v2176_v30 = vadd.f32 1.5707964, %v2144_v56  ;;  %v2175_v39 = vadd.f32 1.5707964, %v2143_v57 }
 0x2f3   :  { %2265 = vrot.lane.b32.xlu1 %v2176_v30, %s9107_s3  ;;  %2263 = vrot.lane.b32.xlu0 %v2175_v39, %s9107_s3 }
 0x2f4   :  { %v2045_v46 = vpop.permute.xlu1 %2044  ;;  %v2043_v47 = vpop.permute.xlu0 %2042 }
 0x2f5   :  { %2114 = vst.msk [vmem:[#allocation2 + $0xd8] sm:$0xff] %vm2086_vm11, %v2045_v46  ;;  %2113 = vst.msk [vmem:[#allocation2 + $0xd0] sm:$0xff] %vm2086_vm11, %v2043_v47 }
 0x2f8   :  { %v734_v28 = vpop.permute.xlu1 %733  ;;  %v732_v50 = vpop.permute.xlu0 %731 }
 0x2f9   :  { %799 = vst.msk [vmem:[#allocation2 + $0xf8] sm:$0xff] %vm767_vm4, %v734_v28  ;;  %798 = vst.msk [vmem:[#allocation2 + $0xf0] sm:$0xff] %vm767_vm4, %v732_v50 }
 0x2fc   :  { %v891_v6 = vpop.permute.xlu1 %890  ;;  %v889_v7 = vpop.permute.xlu0 %888  ;;  %v2146_v8 = vld [vmem:[#allocation2 + $0xd8] sm:$0xff]  ;;  %v2145_v9 = vld [vmem:[#allocation2 + $0xd0] sm:$0xff] }
 0x2fd   :  { %958 = vst.msk [vmem:[#allocation2 + $0xe8] sm:$0xff] %vm928_vm5, %v891_v6  ;;  %957 = vst.msk [vmem:[#allocation2 + $0xe0] sm:$0xff] %vm928_vm5, %v889_v7  ;;  %v2178_v10 = vadd.f32 1.5707964, %v2146_v8  ;;  %v2177_v11 = vadd.f32 1.5707964, %v2145_v9 }
 0x2ff   :  { %2269 = vrot.lane.b32.xlu1 %v2178_v10, %s9107_s3  ;;  %2267 = vrot.lane.b32.xlu0 %v2177_v11, %s9107_s3 }
 0x300   :  { %v895_v16 = vpop.permute.xlu1 %894  ;;  %v893_v17 = vpop.permute.xlu0 %892 }
 0x301   :  { %960 = vst.msk [vmem:[#allocation2 + $0xf8] sm:$0xff] %vm928_vm5, %v895_v16  ;;  %959 = vst.msk [vmem:[#allocation2 + $0xf0] sm:$0xff] %vm928_vm5, %v893_v17 }
 0x304   :  { %v1084_v18 = vpop.permute.xlu1 %1083  ;;  %v1082_v19 = vpop.permute.xlu0 %1081 }
 0x305   :  { %1151 = vst.msk [vmem:[#allocation2 + $0xe8] sm:$0xff] %vm1121_vm6, %v1084_v18  ;;  %1150 = vst.msk [vmem:[#allocation2 + $0xe0] sm:$0xff] %vm1121_vm6, %v1082_v19 }
 0x308   :  { %v1088_v49 = vpop.permute.xlu1 %1087  ;;  %v1086_v13 = vpop.permute.xlu0 %1085 }
 0x309   :  { %1153 = vst.msk [vmem:[#allocation2 + $0xf8] sm:$0xff] %vm1121_vm6, %v1088_v49  ;;  %1152 = vst.msk [vmem:[#allocation2 + $0xf0] sm:$0xff] %vm1121_vm6, %v1086_v13 }
 0x30c   :  { %v1277_v29 = vpop.permute.xlu1 %1276  ;;  %v1275_v59 = vpop.permute.xlu0 %1274 }
 0x30d   :  { %1344 = vst.msk [vmem:[#allocation2 + $0xe8] sm:$0xff] %vm1314_vm7, %v1277_v29  ;;  %1343 = vst.msk [vmem:[#allocation2 + $0xe0] sm:$0xff] %vm1314_vm7, %v1275_v59 }
 0x310   :  { %v1281_v31 = vpop.permute.xlu1 %1280  ;;  %v1279_v61 = vpop.permute.xlu0 %1278 }
 0x311   :  { %1346 = vst.msk [vmem:[#allocation2 + $0xf8] sm:$0xff] %vm1314_vm7, %v1281_v31  ;;  %1345 = vst.msk [vmem:[#allocation2 + $0xf0] sm:$0xff] %vm1314_vm7, %v1279_v61  ;;  %v9108_v31 = vmov 683565275  }
 0x314   :  { %v1470_v20 = vpop.permute.xlu1 %1469  ;;  %v1468_v21 = vpop.permute.xlu0 %1467 }
 0x315   :  { %1537 = vst.msk [vmem:[#allocation2 + $0xe8] sm:$0xff] %vm1507_vm8, %v1470_v20  ;;  %1536 = vst.msk [vmem:[#allocation2 + $0xe0] sm:$0xff] %vm1507_vm8, %v1468_v21 }
 0x318   :  { %v1474_v22 = vpop.permute.xlu1 %1473  ;;  %v1472_v23 = vpop.permute.xlu0 %1471 }
 0x319   :  { %1539 = vst.msk [vmem:[#allocation2 + $0xf8] sm:$0xff] %vm1507_vm8, %v1474_v22  ;;  %1538 = vst.msk [vmem:[#allocation2 + $0xf0] sm:$0xff] %vm1507_vm8, %v1472_v23  ;;  %v9109_v22 = vmov 2475754826  }
 0x31c   :  { %v1663_v14 = vpop.permute.xlu1 %1662  ;;  %v1661_v15 = vpop.permute.xlu0 %1660 }
 0x31d   :  { %1730 = vst.msk [vmem:[#allocation2 + $0xe8] sm:$0xff] %vm1700_vm9, %v1663_v14  ;;  %1729 = vst.msk [vmem:[#allocation2 + $0xe0] sm:$0xff] %vm1700_vm9, %v1661_v15  ;;  %v9110_v14 = vmov 2131351028  }
 0x320   :  { %v1667_v0 = vpop.permute.xlu1 %1666  ;;  %v1665_v38 = vpop.permute.xlu0 %1664 }
 0x321   :  { %1732 = vst.msk [vmem:[#allocation2 + $0xf8] sm:$0xff] %vm1700_vm9, %v1667_v0  ;;  %1731 = vst.msk [vmem:[#allocation2 + $0xf0] sm:$0xff] %vm1700_vm9, %v1665_v38  ;;  %v9111_v0 = vmov 2102212464  }
 0x324   :  { %v1856_v24 = vpop.permute.xlu1 %1855  ;;  %v1854_v48 = vpop.permute.xlu0 %1853 }
 0x325   :  { %1923 = vst.msk [vmem:[#allocation2 + $0xe8] sm:$0xff] %vm1893_vm10, %v1856_v24  ;;  %1922 = vst.msk [vmem:[#allocation2 + $0xe0] sm:$0xff] %vm1893_vm10, %v1854_v48  ;;  %v9112_v24 = vmov 920167782  }
 0x328   :  { %v1860_v32 = vpop.permute.xlu1 %1859  ;;  %v1858_v33 = vpop.permute.xlu0 %1857 }
 0x329   :  { %1925 = vst.msk [vmem:[#allocation2 + $0xf8] sm:$0xff] %vm1893_vm10, %v1860_v32  ;;  %1924 = vst.msk [vmem:[#allocation2 + $0xf0] sm:$0xff] %vm1893_vm10, %v1858_v33 }
 0x32c   :  { %v2049_v34 = vpop.permute.xlu1 %2048  ;;  %v2047_v35 = vpop.permute.xlu0 %2046 }
 0x32d   :  { %2116 = vst.msk [vmem:[#allocation2 + $0xe8] sm:$0xff] %vm2086_vm11, %v2049_v34  ;;  %2115 = vst.msk [vmem:[#allocation2 + $0xe0] sm:$0xff] %vm2086_vm11, %v2047_v35 }
 0x330   :  { %v2053_v36 = vpop.permute.xlu1 %2052  ;;  %v2051_v37 = vpop.permute.xlu0 %2050 }
 0x331   :  { %2118 = vst.msk [vmem:[#allocation2 + $0xf8] sm:$0xff] %vm2086_vm11, %v2053_v36  ;;  %2117 = vst.msk [vmem:[#allocation2 + $0xf0] sm:$0xff] %vm2086_vm11, %v2051_v37  ;;  %v9113_v37 = vmov 1326507024  }
 0x334   :  { %v2218_v40 = vpop.permute.xlu1 %2217  ;;  %v2216_v41 = vpop.permute.xlu0 %2215  ;;  %v2148_v44 = vld [vmem:[#allocation2 + $0xe8] sm:$0xff]  ;;  %v2147_v45 = vld [vmem:[#allocation2 + $0xe0] sm:$0xff] }
 0x335   :  { %2313 = vst.msk [vmem:[#allocation2 + $0x8] sm:$0xff] %vm2311_vm12, %v2218_v40  ;;  %2312 = vst.msk [vmem:[#allocation2] sm:$0xff] %vm2311_vm12, %v2216_v41  ;;  %v2180_v52 = vadd.f32 1.5707964, %v2148_v44  ;;  %v2179_v53 = vadd.f32 1.5707964, %v2147_v45 }
 0x337   :  { %2273 = vrot.lane.b32.xlu1 %v2180_v52, %s9107_s3  ;;  %2271 = vrot.lane.b32.xlu0 %v2179_v53, %s9107_s3 }
 0x338   :  { %v2222_v42 = vpop.permute.xlu1 %2221  ;;  %v2220_v60 = vpop.permute.xlu0 %2219  ;;  %v2150_v58 = vld [vmem:[#allocation2 + $0xf8] sm:$0xff]  ;;  %v2149_v26 = vld [vmem:[#allocation2 + $0xf0] sm:$0xff] }
 0x339   :  { %2315 = vst.msk [vmem:[#allocation2 + $0x18] sm:$0xff] %vm2311_vm12, %v2222_v42  ;;  %2314 = vst.msk [vmem:[#allocation2 + $0x10] sm:$0xff] %vm2311_vm12, %v2220_v60  ;;  %v2182_v2 = vadd.f32 1.5707964, %v2150_v58  ;;  %v2181_v12 = vadd.f32 1.5707964, %v2149_v26 }
 0x33b   :  { %2277 = vrot.lane.b32.xlu1 %v2182_v2, %s9107_s3  ;;  %2275 = vrot.lane.b32.xlu0 %v2181_v12, %s9107_s3 }
 0x33c   :  { %v10760_v5 = vld [vmem:[#allocation2 + $0x8] sm:$0xff]  ;;  %v10762_v27 = vld [vmem:[#allocation2] sm:$0xff]  ;;  %v2226_v62 = vpop.permute.xlu1 %2225  ;;  %v2224_v63 = vpop.permute.xlu0 %2223 }
 0x33d   :  { %v2480_v1 = vand.u32 2147483647, %v10760_v5  ;;  %v2483_v43 = vand.u32 2139095040, %v10760_v5  ;;  %2317 = vst.msk [vmem:[#allocation2 + $0x28] sm:$0xff] %vm2311_vm12, %v2226_v62  ;;  %2316 = vst.msk [vmem:[#allocation2 + $0x20] sm:$0xff] %vm2311_vm12, %v2224_v63  ;;  %v2379_v25 = vand.u32 2139095040, %v10762_v27 }
 0x33e   :  { %v2376_v3 = vand.u32 2147483647, %v10762_v27  ;;  %vm2482_vm10 = vcmp.lt.s32.totalorder %v10760_v5, 0 }
 0x33f   :  { %v2484_v4 = vshrl.u32 %v2483_v43, 23  ;;  %v2487_v51 = vand.u32 8388607, %v2480_v1  ;;  %v2380_v54 = vshrl.u32 %v2379_v25, 23  ;;  %vm10894_vm11 = vcmp.le.f32.partialorder %v2480_v1, 0.7853982 }
 0x340   :  { %v2383_v55 = vand.u32 8388607, %v2376_v3  ;;  %v10774_v56 = vld [vmem:[#allocation2 + $0x18] sm:$0xff]  ;;  %v2230_v57 = vpop.permute.xlu1 %2229  ;;  %v2228_v30 = vpop.permute.xlu0 %2227 }
 0x341   :  { %v7975_v39 = vadd.s32 4294967169, %v2484_v4  ;;  %2319 = vst.msk [vmem:[#allocation2 + $0x38] sm:$0xff] %vm2311_vm12, %v2230_v57  ;;  %2318 = vst.msk [vmem:[#allocation2 + $0x30] sm:$0xff] %vm2311_vm12, %v2228_v30  ;;  %v7971_v46 = vadd.s32 4294967169, %v2380_v54  ;;  %v2691_v47 = vand.u32 2139095040, %v10774_v56  ;;  %v2488_v28 = vor.u32 8388608, %v2487_v51 }
 0x342   :  { %v2384_v6 = vor.u32 8388608, %v2383_v55  ;;  %v2688_v8 = vand.u32 2147483647, %v10774_v56 }
 0x343   :  { %v2490_v50 = vadd.s32 1, %v7975_v39  ;;  %v2386_v7 = vadd.s32 1, %v7971_v46  ;;  %v2692_v9 = vshrl.u32 %v2691_v47, 23  ;;  %v10780_v19 = vshll.u32 %v2488_v28, 8 }
 0x344   :  { %v10784_v13 = vshll.u32 %v2384_v6, 8  ;;  %v10788_v29 = vand.u32 8388607, %v2688_v8 }
 0x345   :  { %vm2491_vm13 = vcmp.gt.s32.totalorder %v2490_v50, 0  ;;  %vm2387_vm14 = vcmp.gt.s32.totalorder %v2386_v7, 0  ;;  %v7983_v11 = vadd.s32 4294967169, %v2692_v9 }
 0x346   :  { %v2492_v10 = vsel %vm2491_vm13, %v2490_v50, 0  ;;  %v2388_v18 = vsel %vm2387_vm14, %v2386_v7, 0  ;;  %vm2378_vm13 = vcmp.lt.s32.totalorder %v10762_v27, 0 }
 0x347   :  { %v2493_v16 = vshrl.u32 %v2492_v10, 5  ;;  %v2494_v17 = vand.u32 31, %v2492_v10  ;;  %v10782_v49 = vshrl.u32 %v2388_v18, 5  ;;  %v2390_v20 = vand.u32 31, %v2388_v18 }
 0x348   :  { %v10791_v21 = vadd.s32 1, %v7983_v11 }
 0x349   :  { %v2495_v59 = vsub.s32 32, %v2494_v17  ;;  %v2497_v61 = vshll.u32 %v9108_v31, %v2494_v17  ;;  %v2500_v23 = vshll.u32 %v9109_v22, %v2494_v17  ;;  %v2503_v15 = vshll.u32 %v9110_v14, %v2494_v17 }
 0x34a   :  { %v2506_v38 = vshll.u32 %v9111_v0, %v2494_v17  ;;  %v2509_v48 = vshll.u32 %v9112_v24, %v2494_v17  ;;  %vm2512_vm15 = vcmp.lt.s32.totalorder %v2493_v16, 1  ;;  %vm2513_vm0 = vcmp.lt.s32.totalorder %v2493_v16, 2 }
 0x34b   :  { %v2498_v32 = vshrl.u32 %v9109_v22, %v2495_v59  ;;  %v2501_v33 = vshrl.u32 %v9110_v14, %v2495_v59  ;;  %v2504_v34 = vshrl.u32 %v9111_v0, %v2495_v59  ;;  %v2496_v35 = vshrl.u32 %v9108_v31, %v2495_v59 }
 0x34c   :  { %v2507_v36 = vshrl.u32 %v9112_v24, %v2495_v59  ;;  %v2510_v40 = vshrl.u32 %v9113_v37, %v2495_v59  ;;  %v2391_v52 = vsub.s32 32, %v2390_v20  ;;  %vm2514_vm1 = vcmp.lt.s32.totalorder %v2493_v16, 3 }
 0x34d   :  { %v2499_v41 = vor.u32 %v2498_v32, %v2497_v61  ;;  %v2502_v44 = vor.u32 %v2501_v33, %v2500_v23  ;;  %v2505_v45 = vor.u32 %v2504_v34, %v2503_v15  ;;  %vm2515_vm2 = vcmp.lt.s32.totalorder %v2493_v16, 4  ;;  %v2234_v15 = vpop.permute.xlu1 %2233 }
 0x34e   :  { %v2508_v53 = vor.u32 %v2507_v36, %v2506_v38  ;;  %v2511_v42 = vor.u32 %v2510_v40, %v2509_v48  ;;  %v2393_v43 = vshll.u32 %v9108_v31, %v2390_v20  ;;  %v2394_v51 = vshrl.u32 %v9109_v22, %v2391_v52  ;;  %2321 = vst.msk [vmem:[#allocation2 + $0x48] sm:$0xff] %vm2311_vm12, %v2234_v15 }
 0x34f   :  { %v2516_v60 = vsel %vm2512_vm15, %v2496_v35, %v2499_v41  ;;  %v2517_v58 = vsel %vm2515_vm2, %v2505_v45, 2102212464  ;;  %v2520_v26 = vsel %vm2512_vm15, %v2499_v41, %v2502_v44  ;;  %v2524_v2 = vsel %vm2512_vm15, %v2502_v44, %v2505_v45 }
 0x350   :  { %v2518_v12 = vsel %vm2514_vm1, %v2502_v44, %v2517_v58  ;;  %v2521_v62 = vsel %vm2515_vm2, %v2508_v53, 920167782  ;;  %v2525_v63 = vsel %vm2515_vm2, %v2511_v42, 1326507024  ;;  %v2396_v54 = vshll.u32 %v9109_v22, %v2390_v20  ;;  %v10846_v42 = vld [vmem:[#allocation2 + $0x10] sm:$0xff] }
 0x351   :  { %v2522_v25 = vsel %vm2514_vm1, %v2505_v45, %v2521_v62  ;;  %v2526_v4 = vsel %vm2514_vm1, %v2508_v53, %v2525_v63  ;;  %v2519_v55 = vsel %vm2513_vm0, %v2516_v60, %v2518_v12  ;;  %v2397_v39 = vshrl.u32 %v9110_v14, %v2391_v52 }
 0x352   :  { %v2523_v57 = vsel %vm2513_vm0, %v2520_v26, %v2522_v25  ;;  %v2527_v30 = vsel %vm2513_vm0, %v2524_v2, %v2526_v4  ;;  %v2395_v6 = vor.u32 %v2394_v51, %v2393_v43  ;;  %v2399_v9 = vshll.u32 %v9110_v14, %v2390_v20 }
 0x353   :  { %v10814_v46 = vmul.u32.u64.low %v10780_v19, %v2527_v30  ;;  %v10815_v47 = vmul.u32.u64.high %v10780_v19, %v2527_v30, %v10814_v46  ;;  %v10818_v28 = vmul.u32.u64.low %v10780_v19, %v2523_v57  ;;  %v10819_v50 = vmul.u32.u64.high %v10780_v19, %v2523_v57, %v10818_v28 }
 0x354   :  { %v2398_v7 = vor.u32 %v2397_v39, %v2396_v54  ;;  %v2400_v10 = vshrl.u32 %v9111_v0, %v2391_v52  ;;  %v2392_v11 = vshrl.u32 %v9108_v31, %v2391_v52  ;;  %v2402_v16 = vshll.u32 %v9111_v0, %v2390_v20 }
 0x355   :  { %v2403_v17 = vshrl.u32 %v9112_v24, %v2391_v52  ;;  %v2406_v18 = vshrl.u32 %v9113_v37, %v2391_v52  ;;  %v2535_v59 = vmul.u32 %v10780_v19, %v2519_v55  ;;  %v2405_v23 = vshll.u32 %v9112_v24, %v2390_v20 }
 0x356   :  { %v2401_v61 = vor.u32 %v2400_v10, %v2399_v9  ;;  %vm2408_vm3 = vcmp.lt.s32.totalorder %v10782_v49, 1  ;;  %vm2537_vm4 = vc.u32 %v10815_v47, %v10818_v28  ;;  %v2538_v38 = vadd.s32 1, %v10819_v50 }
 0x357   :  { %v2404_v48 = vor.u32 %v2403_v17, %v2402_v16  ;;  %vm2409_vm5 = vcmp.lt.s32.totalorder %v10782_v49, 2  ;;  %v2407_v32 = vor.u32 %v2406_v18, %v2405_v23  ;;  %vm2410_vm6 = vcmp.lt.s32.totalorder %v10782_v49, 3 }
 0x358   :  { %vm2411_vm7 = vcmp.lt.s32.totalorder %v10782_v49, 4  ;;  %v2416_v19 = vsel %vm2408_vm3, %v2395_v6, %v2398_v7  ;;  %v2539_v20 = vsel %vm2537_vm4, %v2538_v38, %v10819_v50  ;;  %v2420_v35 = vsel %vm2408_vm3, %v2398_v7, %v2401_v61 }
 0x359   :  { %v2413_v33 = vsel %vm2411_vm7, %v2401_v61, 2102212464  ;;  %v2417_v34 = vsel %vm2411_vm7, %v2404_v48, 920167782  ;;  %v2540_v36 = vadd.s32 %v2539_v20, %v2535_v59  ;;  %v2412_v40 = vsel %vm2408_vm3, %v2392_v11, %v2395_v6 }
 0x35a   :  { %v2418_v41 = vsel %vm2410_vm6, %v2401_v61, %v2417_v34  ;;  %v2421_v44 = vsel %vm2411_vm7, %v2407_v32, 1326507024  ;;  %v2414_v45 = vsel %vm2410_vm6, %v2398_v7, %v2413_v33  ;;  %vm2699_vm8 = vcmp.gt.s32.totalorder %v10791_v21, 0 }
 0x35b   :  { %v2419_v52 = vsel %vm2409_vm5, %v2416_v19, %v2418_v41  ;;  %v2422_v53 = vsel %vm2410_vm6, %v2404_v48, %v2421_v44  ;;  %v2541_v60 = vadd.s32 536870912, %v2540_v36  ;;  %v2700_v63 = vsel %vm2699_vm8, %v10791_v21, 0 }
 0x35c   :  { %v2423_v58 = vsel %vm2409_vm5, %v2420_v35, %v2422_v53  ;;  %v10851_v26 = vmul.u32.u64.low %v10784_v13, %v2419_v52  ;;  %v10852_v2 = vmul.u32.u64.high %v10784_v13, %v2419_v52, %v10851_v26  ;;  %v2415_v25 = vsel %vm2409_vm5, %v2412_v40, %v2414_v45 }
 0x35d   :  { %v10856_v12 = vmul.u32.u64.low %v10784_v13, %v2423_v58  ;;  %v10857_v62 = vmul.u32.u64.high %v10784_v13, %v2423_v58, %v10856_v12  ;;  %v2542_v43 = vshrl.u32 %v2541_v60, 30  ;;  %v2702_v4 = vand.u32 31, %v2700_v63 }
 0x35e   :  { %v2587_v51 = vand.u32 2139095040, %v10846_v42  ;;  %v2434_v55 = vadd.s32 1, %v10852_v2  ;;  %v2696_v57 = vor.u32 8388608, %v10788_v29  ;;  %v2431_v30 = vmul.u32 %v10784_v13, %v2415_v25 }
 0x35f   :  { %v2543_v54 = vshll.u32 %v2542_v43, 30  ;;  %vm2433_vm9 = vc.u32 %v10857_v62, %v10851_v26  ;;  %v2703_v39 = vsub.s32 32, %v2702_v4  ;;  %v2584_v6 = vand.u32 2147483647, %v10846_v42 }
 0x360   :  { %v2435_v21 = vsel %vm2433_vm9, %v2434_v55, %v10852_v2  ;;  %v2588_v49 = vshrl.u32 %v2587_v51, 23  ;;  %v2536_v7 = vadd.s32 %v10818_v28, %v10815_v47  ;;  %v10875_v9 = vshrl.u32 %v2700_v63, 5  ;;  %v2232_v55 = vpop.permute.xlu0 %2231 }
 0x361   :  { %v10868_v46 = vsub.s32 %v2540_v36, %v2543_v54  ;;  %v2436_v50 = vadd.s32 %v2435_v21, %v2431_v30  ;;  %v10877_v13 = vshll.u32 %v2696_v57, 8  ;;  %v2566_v10 = vsub.s32 4, %v2542_v43  ;;  %2320 = vst.msk [vmem:[#allocation2 + $0x40] sm:$0xff] %vm2311_vm12, %v2232_v55 }
 0x362   :  { %v2706_v16 = vshrl.u32 %v9109_v22, %v2703_v39  ;;  %v2709_v17 = vshrl.u32 %v9110_v14, %v2703_v39  ;;  %v2712_v59 = vshrl.u32 %v9111_v0, %v2703_v39  ;;  %v2715_v61 = vshrl.u32 %v9112_v24, %v2703_v39 }
 0x363   :  { %v2546_v29 = vsub.s32 0, %v10868_v46  ;;  %v2437_v11 = vadd.s32 536870912, %v2436_v50  ;;  %v10884_v23 = vadd.s32 4294967169, %v2588_v49  ;;  %v2705_v28 = vshll.u32 %v9108_v31, %v2702_v4 }
 0x364   :  { %v2708_v15 = vshll.u32 %v9109_v22, %v2702_v4  ;;  %v10890_v38 = vand.u32 8388607, %v2584_v6  ;;  %v2711_v19 = vshll.u32 %v9110_v14, %v2702_v4  ;;  %v2714_v20 = vshll.u32 %v9111_v0, %v2702_v4 }
 0x365   :  { %v7976_v18 = vmin.u32 %v2546_v29, %v10868_v46  ;;  %v2438_v47 = vshrl.u32 %v2437_v11, 30  ;;  %v2718_v33 = vshrl.u32 %v9113_v37, %v2703_v39  ;;  %v2567_v34 = vsel %vm2482_vm10, %v2566_v10, %v2542_v43 }
 0x366   :  { %v2707_v36 = vor.u32 %v2706_v16, %v2705_v28  ;;  %v2710_v40 = vor.u32 %v2709_v17, %v2708_v15  ;;  %v2713_v1 = vor.u32 %v2712_v59, %v2711_v19  ;;  %v2716_v44 = vor.u32 %v2715_v61, %v2714_v20 }
 0x367   :  { %v2548_v32 = vclz %v7976_v18  ;;  %v2439_v35 = vshll.u32 %v2438_v47, 30  ;;  %v2717_v45 = vshll.u32 %v9112_v24, %v2702_v4  ;;  %v2462_v53 = vsub.s32 4, %v2438_v47 }
 0x368   :  { %v2704_v60 = vshrl.u32 %v9108_v31, %v2703_v39  ;;  %vm2720_vm14 = vcmp.lt.s32.totalorder %v10875_v9, 1  ;;  %vm2721_vm0 = vcmp.lt.s32.totalorder %v10875_v9, 2  ;;  %vm2722_vm1 = vcmp.lt.s32.totalorder %v10875_v9, 3 }
 0x369   :  { %v7977_v41 = vadd.s32 4294967294, %v2548_v32  ;;  %v10905_v52 = vsub.s32 %v2436_v50, %v2439_v35  ;;  %v2719_v58 = vor.u32 %v2718_v33, %v2717_v45  ;;  %vm10913_vm2 = vcmp.le.f32.partialorder %v2376_v3, 0.7853982 }
 0x36a   :  { %vm2723_vm3 = vcmp.lt.s32.totalorder %v10875_v9, 4  ;;  %v2728_v43 = vsel %vm2720_vm14, %v2707_v36, %v2710_v40  ;;  %v2732_v39 = vsel %vm2720_vm14, %v2710_v40, %v2713_v1  ;;  %v2569_v10 = vsel %vm10894_vm11, 0, %v2567_v34 }
 0x36b   :  { %vm7978_vm15 = vcmp.lt.s32.totalorder %v7977_v41, 0  ;;  %v2442_v63 = vsub.s32 0, %v10905_v52  ;;  %v2725_v51 = vsel %vm2723_vm3, %v2713_v1, 2102212464  ;;  %v2729_v54 = vsel %vm2723_vm3, %v2716_v44, 920167782 }
 0x36c   :  { %v2551_v2 = vsel %vm7978_vm15, 0, %v7977_v41  ;;  %v2730_v3 = vsel %vm2722_vm1, %v2713_v1, %v2729_v54  ;;  %v2733_v29 = vsel %vm2723_vm3, %v2719_v58, 1326507024  ;;  %v2724_v11 = vsel %vm2720_vm14, %v2704_v60, %v2707_v36 }
 0x36d   :  { %v2552_v25 = vsub.s32 32, %v2551_v2  ;;  %v2556_v4 = vsub.s32 4294967266, %v2551_v2  ;;  %v2553_v57 = vshll.u32 %v10868_v46, %v2551_v2  ;;  %v7972_v30 = vmin.u32 %v2442_v63, %v10905_v52 }
 0x36e   :  { %v2731_v50 = vsel %vm2721_vm0, %v2728_v43, %v2730_v3  ;;  %v2726_v16 = vsel %vm2722_vm1, %v2710_v40, %v2725_v51  ;;  %v2734_v59 = vsel %vm2722_vm1, %v2716_v44, %v2733_v29  ;;  %v2432_v35 = vadd.s32 %v10851_v26, %v10857_v62 }
 0x36f   :  { %v2554_v21 = vshrl.u32 %v2536_v7, %v2552_v25  ;;  %v2557_v49 = vadd.s32 127, %v2556_v4  ;;  %v2444_v46 = vclz %v7972_v30  ;;  %v2463_v7 = vsel %vm2378_vm13, %v2462_v53, %v2438_v47 }
 0x370   :  { %v2735_v28 = vsel %vm2721_vm0, %v2732_v39, %v2734_v59  ;;  %v10943_v15 = vmul.u32.u64.low %v10877_v13, %v2731_v50  ;;  %v10944_v32 = vmul.u32.u64.high %v10877_v13, %v2731_v50, %v10943_v15  ;;  %v2727_v20 = vsel %vm2721_vm0, %v2724_v11, %v2726_v16 }
 0x371   :  { %v2555_v17 = vor.u32 %v2554_v21, %v2553_v57  ;;  %v2558_v18 = vshll.u32 %v2557_v49, 23  ;;  %v7973_v61 = vadd.s32 4294967294, %v2444_v46  ;;  %v2573_v47 = vadd.s32 3, %v2569_v10 }
 0x372   :  { %v10949_v33 = vmul.u32.u64.low %v10877_v13, %v2735_v28  ;;  %v10950_v34 = vmul.u32.u64.high %v10877_v13, %v2735_v28, %v10949_v33  ;;  %v2594_v36 = vadd.s32 1, %v10884_v23  ;;  %v2465_v44 = vsel %vm10913_vm2, 0, %v2463_v7 }
 0x373   :  { %v2559_v19 = vor.u32 4788187, %v2558_v18  ;;  %vm7974_vm4 = vcmp.lt.s32.totalorder %v7973_v61, 0  ;;  %v2562_v41 = vcvt.s32.f32 %v2555_v17  ;;  %v2743_v53 = vmul.u32 %v10877_v13, %v2727_v20 }
 0x374   :  { %v2447_v1 = vsel %vm7974_vm4, 0, %v7973_v61  ;;  %v2746_v60 = vadd.s32 1, %v10944_v32  ;;  %vm2745_vm5 = vc.u32 %v10950_v34, %v10943_v15  ;;  %vm2595_vm6 = vcmp.gt.s32.totalorder %v2594_v36, 0 }
 0x375   :  { %v2560_v40 = vand.u32 2147483647, %v2559_v19  ;;  %v2448_v45 = vsub.s32 32, %v2447_v1  ;;  %v2452_v9 = vsub.s32 4294967266, %v2447_v1  ;;  %v2449_v2 = vshll.u32 %v10905_v52, %v2447_v1  ;;  %v10966_v52 = vld [vmem:[#allocation2 + $0x28] sm:$0xff] }
 0x376   :  { %v2747_v23 = vsel %vm2745_vm5, %v2746_v60, %v10944_v32  ;;  %v2596_v63 = vsel %vm2595_vm6, %v2594_v36, 0  ;;  %v2469_v25 = vadd.s32 3, %v2465_v44  ;;  %v10971_v39 = vand.u32 3, %v2573_v47 }
 0x377   :  { %v2563_v58 = vmul.f32 %v2562_v41, %v2560_v40  ;;  %v2450_v26 = vshrl.u32 %v2432_v35, %v2448_v45  ;;  %v2453_v62 = vadd.s32 127, %v2452_v9  ;;  %v2748_v4 = vadd.s32 %v2747_v23, %v2743_v53 }
 0x378   :  { %v2598_v51 = vand.u32 31, %v2596_v63  ;;  %v10973_v49 = vand.u32 3, %v2469_v25  ;;  %v2592_v29 = vor.u32 8388608, %v10890_v38  ;;  %v2899_v11 = vand.u32 2139095040, %v10966_v52 }
 0x379   :  { %v2564_v43 = vxor.u32 2147483648, %v2563_v58  ;;  %v2451_v54 = vor.u32 %v2450_v26, %v2449_v2  ;;  %v2454_v55 = vshll.u32 %v2453_v62, 23  ;;  %v2749_v57 = vadd.s32 536870912, %v2748_v4  ;;  %v2238_v62 = vpop.permute.xlu1 %2237 }
 0x37a   :  { %v10964_v30 = vsub.s32 32, %v2598_v51  ;;  %vm2690_vm7 = vcmp.lt.s32.totalorder %v10774_v56, 0  ;;  %v10979_v16 = vadd.s32 %v10943_v15, %v10950_v34  ;;  %v2610_v59 = vshll.u32 %v9111_v0, %v2598_v51  ;;  %2323 = vst.msk [vmem:[#allocation2 + $0x58] sm:$0xff] %vm2311_vm12, %v2238_v62 }
 0x37b   :  { %v2565_v13 = vsel %vm2482_vm10, %v2564_v43, %v2563_v58  ;;  %v2455_v21 = vor.u32 4788187, %v2454_v55  ;;  %v2750_v50 = vshrl.u32 %v2749_v57, 30  ;;  %v2458_v46 = vcvt.s32.f32 %v2451_v54 }
 0x37c   :  { %v2568_v3 = vsel %vm10894_vm11, %v10760_v5, %v2565_v13  ;;  %v2602_v17 = vshrl.u32 %v9109_v22, %v10964_v30  ;;  %v2605_v18 = vshrl.u32 %v9110_v14, %v10964_v30  ;;  %v2608_v38 = vshrl.u32 %v9111_v0, %v10964_v30 }
 0x37d   :  { %8840 = vcosq.f32 %v2568_v3  ;;  %v2456_v10 = vand.u32 2147483647, %v2455_v21  ;;  %v2751_v48 = vshll.u32 %v2750_v50, 30  ;;  %v2611_v61 = vshrl.u32 %v9112_v24, %v10964_v30 }
 0x37e   :  { %8842 = vsinq.f32 %v2568_v3  ;;  %vm2579_vm8 = vcmp.eq.s32.totalorder %v10971_v39, 2  ;;  %v10993_v15 = vshrl.u32 %v2596_v63, 5  ;;  %v2601_v32 = vshll.u32 %v9108_v31, %v2598_v51 }
 0x37f   :  { %v2459_v7 = vmul.f32 %v2458_v46, %v2456_v10  ;;  %v10991_v28 = vsub.s32 %v2748_v4, %v2751_v48  ;;  %v2604_v19 = vshll.u32 %v9109_v22, %v2598_v51  ;;  %vm2576_vm9 = vcmp.eq.s32.totalorder %v10971_v39, 0 }
 0x380   :  { %v2607_v33 = vshll.u32 %v9110_v14, %v2598_v51  ;;  %v2612_v34 = vor.u32 %v2611_v61, %v2610_v59  ;;  %v2614_v47 = vshrl.u32 %v9113_v37, %v10964_v30  ;;  %vm5704_vm10 = vcmask 662856  }
 0x381   :  { %v2460_v20 = vxor.u32 2147483648, %v2459_v7  ;;  %vm2575_vm11 = vcmp.lt.s32.totalorder %v10971_v39, 2  ;;  %v2754_v35 = vsub.s32 0, %v10991_v28  ;;  %v2603_v36 = vor.u32 %v2602_v17, %v2601_v32 }
 0x382   :  { %v2606_v40 = vor.u32 %v2605_v18, %v2604_v19  ;;  %v11003_v41 = vshll.u32 %v2592_v29, 8  ;;  %vm5737_vm14 = vcmask 786056   ;;  %vm2572_vm15 = vweird.f32 %v10760_v5 }
 0x383   :  { %v2461_v1 = vsel %vm2378_vm13, %v2460_v20, %v2459_v7  ;;  %v2774_v44 = vsub.s32 4, %v2750_v50  ;;  %v2609_v45 = vor.u32 %v2608_v38, %v2607_v33  ;;  %v2613_v9 = vshll.u32 %v9112_v24, %v2598_v51 }
 0x384   :  { %v2464_v53 = vsel %vm10913_vm2, %v10762_v27, %v2461_v1  ;;  %v7984_v60 = vmin.u32 %v2754_v35, %v10991_v28  ;;  %vm2619_vm0 = vcmp.lt.s32.totalorder %v10993_v15, 4  ;;  %v2900_v58 = vshrl.u32 %v2899_v11, 23 }
 0x385   :  { %8844 = vcosq.f32 %v2464_v53  ;;  %v2615_v2 = vor.u32 %v2614_v47, %v2613_v9  ;;  %vm2616_vm1 = vcmp.lt.s32.totalorder %v10993_v15, 1  ;;  %v2625_v26 = vsel %vm2619_vm0, %v2612_v34, 920167782 }
 0x386   :  { %8846 = vsinq.f32 %v2464_v53  ;;  %v2756_v63 = vclz %v7984_v60  ;;  %vm2618_vm13 = vcmp.lt.s32.totalorder %v10993_v15, 3  ;;  %v2624_v12 = vsel %vm2616_vm1, %v2603_v36, %v2606_v40 }
 0x387   :  { %v8841_v23 = vpop.eup %8840  ;;  %v11023_v4 = vsel %vm2690_vm7, %v2774_v44, %v2750_v50  ;;  %v2600_v51 = vshrl.u32 %v9108_v31, %v10964_v30  ;;  %v2626_v54 = vsel %vm2618_vm13, %v2609_v45, %v2625_v26  ;;  %vm11031_vm2 = vcmp.le.f32.partialorder %v2688_v8, 0.7853982 }
 0x388   :  { %v8843_v43 = vpop.eup %8842  ;;  %v2580_v25 = vxor.u32 2147483648, %v8841_v23  ;;  %v7985_v57 = vadd.s32 4294967294, %v2756_v63  ;;  %vm2617_vm3 = vcmp.lt.s32.totalorder %v10993_v15, 2  ;;  %v2621_v3 = vsel %vm2619_vm0, %v2609_v45, 2102212464 }
 0x389   :  { %v2577_v55 = vxor.u32 2147483648, %v8843_v43  ;;  %v2627_v30 = vsel %vm2617_vm3, %v2624_v12, %v2626_v54  ;;  %v2628_v50 = vsel %vm2616_vm1, %v2606_v40, %v2609_v45  ;;  %v2629_v8 = vsel %vm2619_vm0, %v2615_v2, 1326507024 }
 0x38a   :  { %v2581_v21 = vsel %vm2579_vm8, %v2580_v25, %v8843_v43  ;;  %vm7986_vm4 = vcmp.lt.s32.totalorder %v7985_v57, 0  ;;  %v2630_v10 = vsel %vm2618_vm13, %v2612_v34, %v2629_v8  ;;  %v7991_v46 = vadd.s32 4294967169, %v2900_v58 }
 0x38b   :  { %v2578_v29 = vsel %vm2576_vm9, %v8841_v23, %v2577_v55  ;;  %v2759_v48 = vsel %vm7986_vm4, 0, %v7985_v57  ;;  %v2620_v17 = vsel %vm2616_vm1, %v2600_v51, %v2603_v36  ;;  %v2631_v18 = vsel %vm2617_vm3, %v2628_v50, %v2630_v10 }
 0x38c   :  { %v2582_v11 = vsel %vm2575_vm11, %v2578_v29, %v2581_v21  ;;  %vm2468_vm5 = vweird.f32 %v10762_v27  ;;  %v2760_v38 = vsub.s32 32, %v2759_v48  ;;  %v2764_v59 = vsub.s32 4294967266, %v2759_v48 }
 0x38d   :  { %v2583_v7 = vsel %vm2572_vm15, nan, %v2582_v11  ;;  %v2622_v61 = vsel %vm2618_vm13, %v2606_v40, %v2621_v3  ;;  %v11063_v39 = vmul.u32.u64.low %v11003_v41, %v2631_v18  ;;  %v11064_v32 = vmul.u32.u64.high %v11003_v41, %v2631_v18, %v11063_v39 }
 0x38e   :  { %5706 = vst.msk [vmem:[#allocation2 + $0x8] sm:$0xff] %vm5704_vm10, %v2583_v7  ;;  %v11067_v19 = vmul.u32.u64.low %v11003_v41, %v2627_v30  ;;  %v11068_v20 = vmul.u32.u64.high %v11003_v41, %v2627_v30, %v11067_v19  ;;  %v9114_v5 = vmov 0.0   ;;  %v2761_v33 = vshll.u32 %v10991_v28, %v2759_v48 }
 0x38f   :  { %5739 = vst.msk [vmem:[#allocation2 + $0x8] sm:$0xff] %vm5737_vm14, %v9114_v5  ;;  %v2762_v34 = vshrl.u32 %v10979_v16, %v2760_v38  ;;  %v2765_v47 = vadd.s32 127, %v2764_v59  ;;  %v2906_v35 = vadd.s32 1, %v7991_v46  ;;  %v8845_v36 = vpop.eup %8844  ;;  %vm2472_vm6 = vcmp.eq.s32.totalorder %v10973_v49, 0  ;;  %v11110_v38 = vld [vmem:[#allocation2 + $0x20] sm:$0xff] }
 0x390   :  { %vm2475_vm8 = vcmp.eq.s32.totalorder %v10973_v49, 2  ;;  %v2623_v40 = vsel %vm2617_vm3, %v2620_v17, %v2622_v61  ;;  %v2896_v1 = vand.u32 2147483647, %v10966_v52  ;;  %v8847_v44 = vpop.eup %8846  ;;  %v2476_v45 = vxor.u32 2147483648, %v8845_v36 }
 0x391   :  { %v2763_v9 = vor.u32 %v2762_v34, %v2761_v33  ;;  %v2766_v53 = vshll.u32 %v2765_v47, 23  ;;  %vm2907_vm9 = vcmp.gt.s32.totalorder %v2906_v35, 0  ;;  %v2473_v28 = vxor.u32 2147483648, %v8847_v44 }
 0x392   :  { %v2777_v16 = vsel %vm11031_vm2, 0, %v11023_v4  ;;  %vm2641_vm11 = vc.u32 %v11064_v32, %v11067_v19  ;;  %v2642_v60 = vadd.s32 1, %v11068_v20  ;;  %v2477_v58 = vsel %vm2475_vm8, %v2476_v45, %v8847_v44 }
 0x393   :  { %v2767_v15 = vor.u32 4788187, %v2766_v53  ;;  %v2639_v2 = vmul.u32 %v11003_v41, %v2623_v40  ;;  %v2908_v26 = vsel %vm2907_vm9, %v2906_v35, 0  ;;  %vm2471_vm15 = vcmp.lt.s32.totalorder %v10973_v49, 2 }
 0x394   :  { %v2474_v62 = vsel %vm2472_vm6, %v8845_v36, %v2473_v28  ;;  %v2643_v23 = vsel %vm2641_vm11, %v2642_v60, %v11068_v20  ;;  %v2910_v63 = vand.u32 31, %v2908_v26  ;;  %v2770_v25 = vcvt.s32.f32 %v2763_v9  ;;  %v2236_v9 = vpop.permute.xlu0 %2235 }
 0x395   :  { %v2478_v12 = vsel %vm2471_vm15, %v2474_v62, %v2477_v58  ;;  %v2768_v43 = vand.u32 2147483647, %v2767_v15  ;;  %v2644_v4 = vadd.s32 %v2643_v23, %v2639_v2  ;;  %v2781_v54 = vadd.s32 3, %v2777_v16  ;;  %2322 = vst.msk [vmem:[#allocation2 + $0x50] sm:$0xff] %vm2311_vm12, %v2236_v9 }
 0x396   :  { %v2479_v51 = vsel %vm2468_vm5, nan, %v2478_v12  ;;  %v2903_v41 = vand.u32 8388607, %v2896_v1  ;;  %v2911_v55 = vsub.s32 32, %v2910_v63  ;;  %v2909_v3 = vshrl.u32 %v2908_v26, 5 }
 0x397   :  { %5705 = vst.msk [vmem:[#allocation2] sm:$0xff] %vm5704_vm10, %v2479_v51  ;;  %v2771_v57 = vmul.f32 %v2770_v25, %v2768_v43  ;;  %v2645_v49 = vadd.s32 536870912, %v2644_v4  ;;  %v2913_v21 = vshll.u32 %v9108_v31, %v2910_v63  ;;  %v2916_v27 = vshll.u32 %v9109_v22, %v2910_v63 }
 0x398   :  { %5738 = vst.msk [vmem:[#allocation2] sm:$0xff] %vm5737_vm14, %v9114_v5  ;;  %v2914_v30 = vshrl.u32 %v9109_v22, %v2911_v55  ;;  %v2917_v50 = vshrl.u32 %v9110_v14, %v2911_v55  ;;  %v2920_v8 = vshrl.u32 %v9111_v0, %v2911_v55  ;;  %v2919_v46 = vshll.u32 %v9110_v14, %v2910_v63 }
 0x399   :  { %v2772_v29 = vxor.u32 2147483648, %v2771_v57  ;;  %v11103_v10 = vshrl.u32 %v2645_v49, 30  ;;  %v2923_v11 = vshrl.u32 %v9112_v24, %v2911_v55  ;;  %v2922_v17 = vshll.u32 %v9111_v0, %v2910_v63 }
 0x39a   :  { %v2915_v48 = vor.u32 %v2914_v30, %v2913_v21  ;;  %v2925_v18 = vshll.u32 %v9112_v24, %v2910_v63  ;;  %v2926_v7 = vshrl.u32 %v9113_v37, %v2911_v55  ;;  %v2918_v39 = vor.u32 %v2917_v50, %v2916_v27 }
 0x39b   :  { %v2773_v59 = vsel %vm2690_vm7, %v2772_v29, %v2771_v57  ;;  %v2647_v61 = vshll.u32 %v11103_v10, 30  ;;  %v2921_v20 = vor.u32 %v2920_v8, %v2919_v46  ;;  %v11118_v34 = vand.u32 3, %v2781_v54 }
 0x39c   :  { %v2776_v33 = vsel %vm11031_vm2, %v10774_v56, %v2773_v59  ;;  %v2924_v47 = vor.u32 %v2923_v11, %v2922_v17  ;;  %v2927_v35 = vor.u32 %v2926_v7, %v2925_v18  ;;  %v2904_v40 = vor.u32 8388608, %v2903_v41 }
 0x39d   :  { %8848 = vcosq.f32 %v2776_v33  ;;  %v11120_v36 = vsub.s32 %v2644_v4, %v2647_v61  ;;  %v2795_v44 = vand.u32 2139095040, %v11110_v38  ;;  %v2912_v45 = vshrl.u32 %v9108_v31, %v2911_v55 }
 0x39e   :  { %8850 = vsinq.f32 %v2776_v33  ;;  %vm2928_vm7 = vcmp.lt.s32.totalorder %v2909_v3, 1  ;;  %vm2931_vm0 = vcmp.lt.s32.totalorder %v2909_v3, 4  ;;  %vm2930_vm1 = vcmp.lt.s32.totalorder %v2909_v3, 3 }
 0x39f   :  { %v2650_v53 = vsub.s32 0, %v11120_v36  ;;  %v2933_v13 = vsel %vm2931_vm0, %v2921_v20, 2102212464  ;;  %v2936_v28 = vsel %vm2928_vm7, %v2915_v48, %v2918_v39  ;;  %v2932_v16 = vsel %vm2928_vm7, %v2912_v45, %v2915_v48 }
 0x3a0   :  { %v2934_v60 = vsel %vm2930_vm1, %v2918_v39, %v2933_v13  ;;  %v2937_v58 = vsel %vm2931_vm0, %v2924_v47, 920167782  ;;  %v2941_v15 = vsel %vm2931_vm0, %v2927_v35, 1326507024  ;;  %vm2929_vm13 = vcmp.lt.s32.totalorder %v2909_v3, 2 }
 0x3a1   :  { %v7980_v2 = vmin.u32 %v2650_v53, %v11120_v36  ;;  %v2938_v26 = vsel %vm2930_vm1, %v2921_v20, %v2937_v58  ;;  %v2940_v62 = vsel %vm2928_vm7, %v2918_v39, %v2921_v20  ;;  %v2942_v63 = vsel %vm2930_vm1, %v2924_v47, %v2941_v15 }
 0x3a2   :  { %v2939_v23 = vsel %vm2929_vm13, %v2936_v28, %v2938_v26  ;;  %v2944_v12 = vshll.u32 %v2904_v40, 8  ;;  %v2796_v43 = vshrl.u32 %v2795_v44, 23  ;;  %vm2586_vm2 = vcmp.lt.s32.totalorder %v10846_v42, 0 }
 0x3a3   :  { %v2652_v25 = vclz %v7980_v2  ;;  %v2935_v4 = vsel %vm2929_vm13, %v2932_v16, %v2934_v60  ;;  %vm2780_vm3 = vweird.f32 %v10774_v56  ;;  %v2943_v51 = vsel %vm2929_vm13, %v2940_v62, %v2942_v63 }
 0x3a4   :  { %v11129_v54 = vmul.u32.u64.low %v2944_v12, %v2939_v23  ;;  %v11130_v41 = vmul.u32.u64.high %v2944_v12, %v2939_v23, %v11129_v54  ;;  %v7987_v55 = vadd.s32 4294967169, %v2796_v43  ;;  %v2792_v21 = vand.u32 2147483647, %v11110_v38 }
 0x3a5   :  { %v7981_v57 = vadd.s32 4294967294, %v2652_v25  ;;  %v11133_v49 = vmul.u32.u64.low %v2944_v12, %v2943_v51  ;;  %v11134_v3 = vmul.u32.u64.high %v2944_v12, %v2943_v51, %v11133_v49  ;;  %vm2783_vm4 = vcmp.lt.s32.totalorder %v11118_v34, 2 }
 0x3a6   :  { %vm2784_vm5 = vcmp.eq.s32.totalorder %v11118_v34, 0  ;;  %vm2787_vm6 = vcmp.eq.s32.totalorder %v11118_v34, 2  ;;  %v2802_v30 = vadd.s32 1, %v7987_v55  ;;  %v2640_v50 = vadd.s32 %v11067_v19, %v11064_v32 }
 0x3a7   :  { %v8849_v27 = vpop.eup %8848  ;;  %vm7982_vm8 = vcmp.lt.s32.totalorder %v7981_v57, 0  ;;  %v2670_v8 = vsub.s32 4, %v11103_v10  ;;  %v2951_v29 = vmul.u32 %v2944_v12, %v2935_v4  ;;  %v2954_v17 = vadd.s32 1, %v11130_v41 }
 0x3a8   :  { %v8851_v46 = vpop.eup %8850  ;;  %v2788_v11 = vxor.u32 2147483648, %v8849_v27  ;;  %v2655_v48 = vsel %vm7982_vm8, 0, %v7981_v57  ;;  %vm2803_vm9 = vcmp.gt.s32.totalorder %v2802_v30, 0  ;;  %v2799_v61 = vand.u32 8388607, %v2792_v21 }
 0x3a9   :  { %v2785_v18 = vxor.u32 2147483648, %v8851_v46  ;;  %v2656_v7 = vsub.s32 32, %v2655_v48  ;;  %v2660_v59 = vsub.s32 4294967266, %v2655_v48  ;;  %v2657_v32 = vshll.u32 %v11120_v36, %v2655_v48 }
 0x3aa   :  { %v2789_v39 = vsel %vm2787_vm6, %v2788_v11, %v8851_v46  ;;  %vm2953_vm11 = vc.u32 %v11134_v3, %v11129_v54  ;;  %v2804_v19 = vsel %vm2803_vm9, %v2802_v30, 0  ;;  %v2671_v44 = vsel %vm2586_vm2, %v2670_v8, %v11103_v10 }
 0x3ab   :  { %v2786_v20 = vsel %vm2784_vm5, %v8849_v27, %v2785_v18  ;;  %v2658_v33 = vshrl.u32 %v2640_v50, %v2656_v7  ;;  %v2661_v47 = vadd.s32 127, %v2660_v59  ;;  %v2955_v35 = vsel %vm2953_vm11, %v2954_v17, %v11130_v41  ;;  %v11180_v41 = vld [vmem:[#allocation2 + $0x38] sm:$0xff] }
 0x3ac   :  { %v2790_v40 = vsel %vm2783_vm4, %v2786_v20, %v2789_v39  ;;  %v2956_v45 = vadd.s32 %v2955_v35, %v2951_v29  ;;  %v2806_v36 = vand.u32 31, %v2804_v19  ;;  %vm11164_vm15 = vcmp.le.f32.partialorder %v2584_v6, 0.7853982  ;;  %v2242_v39 = vpop.permute.xlu1 %2241 }
 0x3ad   :  { %v2791_v9 = vsel %vm2780_vm3, nan, %v2790_v40  ;;  %v2659_v53 = vor.u32 %v2658_v33, %v2657_v32  ;;  %v2662_v13 = vshll.u32 %v2661_v47, 23  ;;  %v2673_v56 = vsel %vm11164_vm15, 0, %v2671_v44  ;;  %2325 = vst.msk [vmem:[#allocation2 + $0x68] sm:$0xff] %vm2311_vm12, %v2242_v39 }
 0x3ae   :  { %5708 = vst.msk [vmem:[#allocation2 + $0x18] sm:$0xff] %vm5704_vm10, %v2791_v9  ;;  %v2957_v34 = vadd.s32 536870912, %v2956_v45  ;;  %v2807_v16 = vsub.s32 32, %v2806_v36  ;;  %v2800_v60 = vor.u32 8388608, %v2799_v61  ;;  %v2805_v58 = vshrl.u32 %v2804_v19, 5 }
 0x3af   :  { %5741 = vst.msk [vmem:[#allocation2 + $0x18] sm:$0xff] %vm5737_vm14, %v9114_v5  ;;  %v2663_v10 = vor.u32 4788187, %v2662_v13  ;;  %v2666_v15 = vcvt.s32.f32 %v2659_v53  ;;  %v2818_v63 = vshll.u32 %v9111_v0, %v2806_v36  ;;  %v2809_v25 = vshll.u32 %v9108_v31, %v2806_v36 }
 0x3b0   :  { %v2958_v2 = vshrl.u32 %v2957_v34, 30  ;;  %v2810_v26 = vshrl.u32 %v9109_v22, %v2807_v16  ;;  %v2813_v6 = vshrl.u32 %v9110_v14, %v2807_v16  ;;  %v2816_v23 = vshrl.u32 %v9111_v0, %v2807_v16 }
 0x3b1   :  { %v2664_v62 = vand.u32 2147483647, %v2663_v10  ;;  %v2819_v12 = vshrl.u32 %v9112_v24, %v2807_v16  ;;  %v2812_v4 = vshll.u32 %v9109_v22, %v2806_v36  ;;  %v2815_v51 = vshll.u32 %v9110_v14, %v2806_v36 }
 0x3b2   :  { %v2959_v43 = vshll.u32 %v2958_v2, 30  ;;  %v2822_v49 = vshrl.u32 %v9113_v37, %v2807_v16  ;;  %vm2898_vm7 = vcmp.lt.s32.totalorder %v10966_v52, 0  ;;  %v2811_v27 = vor.u32 %v2810_v26, %v2809_v25 }
 0x3b3   :  { %v2667_v55 = vmul.f32 %v2666_v15, %v2664_v62  ;;  %v2820_v57 = vor.u32 %v2819_v12, %v2818_v63  ;;  %v2814_v50 = vor.u32 %v2813_v6, %v2812_v4  ;;  %v2817_v8 = vor.u32 %v2816_v23, %v2815_v51  ;;  %v11225_v51 = vld [vmem:[#allocation2 + $0x30] sm:$0xff] }
 0x3b4   :  { %v11184_v30 = vsub.s32 %v2956_v45, %v2959_v43  ;;  %v2677_v46 = vadd.s32 3, %v2673_v56  ;;  %v2821_v11 = vshll.u32 %v9112_v24, %v2806_v36  ;;  %v3107_v48 = vand.u32 2139095040, %v11180_v41 }
 0x3b5   :  { %v2668_v29 = vxor.u32 2147483648, %v2667_v55  ;;  %vm2824_vm0 = vcmp.lt.s32.totalorder %v2805_v58, 1  ;;  %vm2827_vm1 = vcmp.lt.s32.totalorder %v2805_v58, 4  ;;  %v2840_v18 = vshll.u32 %v2800_v60, 8 }
 0x3b6   :  { %v2962_v17 = vsub.s32 0, %v11184_v30  ;;  %v2823_v59 = vor.u32 %v2822_v49, %v2821_v11  ;;  %vm2826_vm13 = vcmp.lt.s32.totalorder %v2805_v58, 3  ;;  %v2833_v61 = vsel %vm2827_vm1, %v2820_v57, 920167782 }
 0x3b7   :  { %v2669_v7 = vsel %vm2586_vm2, %v2668_v29, %v2667_v55  ;;  %v2829_v20 = vsel %vm2827_vm1, %v2817_v8, 2102212464  ;;  %v2832_v33 = vsel %vm2824_vm0, %v2811_v27, %v2814_v50  ;;  %v2982_v47 = vsub.s32 4, %v2958_v2 }
 0x3b8   :  { %v2672_v32 = vsel %vm11164_vm15, %v10846_v42, %v2669_v7  ;;  %v7992_v19 = vmin.u32 %v2962_v17, %v11184_v30  ;;  %v2808_v35 = vshrl.u32 %v9108_v31, %v2807_v16  ;;  %v2834_v40 = vsel %vm2826_vm13, %v2817_v8, %v2833_v61 }
 0x3b9   :  { %8852 = vcosq.f32 %v2672_v32  ;;  %vm2825_vm2 = vcmp.lt.s32.totalorder %v2805_v58, 2  ;;  %v2836_v45 = vsel %vm2824_vm0, %v2814_v50, %v2817_v8  ;;  %v2830_v9 = vsel %vm2826_vm13, %v2814_v50, %v2829_v20 }
 0x3ba   :  { %8854 = vsinq.f32 %v2672_v32  ;;  %v2964_v44 = vclz %v7992_v19  ;;  %v2828_v36 = vsel %vm2824_vm0, %v2808_v35, %v2811_v27  ;;  %v2835_v53 = vsel %vm2825_vm2, %v2832_v33, %v2834_v40 }
 0x3bb   :  { %v2837_v13 = vsel %vm2827_vm1, %v2823_v59, 1326507024  ;;  %v11206_v10 = vmul.u32.u64.low %v2840_v18, %v2835_v53  ;;  %v11207_v56 = vmul.u32.u64.high %v2840_v18, %v2835_v53, %v11206_v10  ;;  %v2983_v16 = vsel %vm2898_vm7, %v2982_v47, %v2958_v2 }
 0x3bc   :  { %v7993_v28 = vadd.s32 4294967294, %v2964_v44  ;;  %v2838_v34 = vsel %vm2826_vm13, %v2820_v57, %v2837_v13  ;;  %v3108_v15 = vshrl.u32 %v3107_v48, 23  ;;  %v2831_v26 = vsel %vm2825_vm2, %v2828_v36, %v2830_v9 }
 0x3bd   :  { %v2839_v60 = vsel %vm2825_vm2, %v2836_v45, %v2838_v34  ;;  %v2678_v23 = vand.u32 3, %v2677_v46  ;;  %vm11217_vm4 = vcmp.le.f32.partialorder %v2896_v1, 0.7853982  ;;  %vm2676_vm5 = vweird.f32 %v10846_v42 }
 0x3be   :  { %vm7994_vm3 = vcmp.lt.s32.totalorder %v7993_v28, 0  ;;  %v11212_v6 = vmul.u32.u64.low %v2840_v18, %v2839_v60  ;;  %v11213_v62 = vmul.u32.u64.high %v2840_v18, %v2839_v60, %v11212_v6  ;;  %v7999_v12 = vadd.s32 4294967169, %v3108_v15 }
 0x3bf   :  { %v2967_v63 = vsel %vm7994_vm3, 0, %v7993_v28  ;;  %v2952_v2 = vadd.s32 %v11129_v54, %v11134_v3  ;;  %v2850_v4 = vadd.s32 1, %v11207_v56  ;;  %v2985_v55 = vsel %vm11217_vm4, 0, %v2983_v16 }
 0x3c0   :  { %v2968_v43 = vsub.s32 32, %v2967_v63  ;;  %v2972_v25 = vsub.s32 4294967266, %v2967_v63  ;;  %v2847_v1 = vmul.u32 %v2840_v18, %v2831_v26  ;;  %v3104_v57 = vand.u32 2147483647, %v11180_v41 }
 0x3c1   :  { %v3114_v49 = vadd.s32 1, %v7999_v12  ;;  %v2969_v27 = vshll.u32 %v11184_v30, %v2967_v63  ;;  %vm2849_vm6 = vc.u32 %v11213_v62, %v11206_v10  ;;  %vm2680_vm8 = vcmp.eq.s32.totalorder %v2678_v23, 0 }
 0x3c2   :  { %v2970_v50 = vshrl.u32 %v2952_v2, %v2968_v43  ;;  %v2973_v8 = vadd.s32 127, %v2972_v25  ;;  %v2851_v3 = vsel %vm2849_vm6, %v2850_v4, %v11207_v56  ;;  %v3003_v29 = vand.u32 2139095040, %v11225_v51 }
 0x3c3   :  { %v8853_v54 = vpop.eup %8852  ;;  %vm3115_vm9 = vcmp.gt.s32.totalorder %v3114_v49, 0  ;;  %v2852_v18 = vadd.s32 %v2851_v3, %v2847_v1  ;;  %vm2683_vm11 = vcmp.eq.s32.totalorder %v2678_v23, 2  ;;  %v2989_v30 = vadd.s32 3, %v2985_v55  ;;  %v2240_v3 = vpop.permute.xlu0 %2239 }
 0x3c4   :  { %v8855_v46 = vpop.eup %8854  ;;  %v2684_v11 = vxor.u32 2147483648, %v8853_v54  ;;  %v2971_v48 = vor.u32 %v2970_v50, %v2969_v27  ;;  %v2974_v17 = vshll.u32 %v2973_v8, 23  ;;  %v3116_v59 = vsel %vm3115_vm9, %v3114_v49, 0  ;;  %2324 = vst.msk [vmem:[#allocation2 + $0x60] sm:$0xff] %vm2311_vm12, %v2240_v3 }
 0x3c5   :  { %v2681_v7 = vxor.u32 2147483648, %v8855_v46  ;;  %v2853_v32 = vadd.s32 536870912, %v2852_v18  ;;  %v3111_v19 = vand.u32 8388607, %v3104_v57  ;;  %vm2679_vm15 = vcmp.lt.s32.totalorder %v2678_v23, 2 }
 0x3c6   :  { %v2685_v61 = vsel %vm2683_vm11, %v2684_v11, %v8855_v46  ;;  %v2975_v39 = vor.u32 4788187, %v2974_v17  ;;  %v3118_v33 = vand.u32 31, %v3116_v59  ;;  %v3004_v47 = vshrl.u32 %v3003_v29, 23 }
 0x3c7   :  { %v2682_v20 = vsel %vm2680_vm8, %v8853_v54, %v2681_v7  ;;  %v2978_v44 = vcvt.s32.f32 %v2971_v48  ;;  %v11238_v45 = vshrl.u32 %v2853_v32, 30  ;;  %v11242_v9 = vand.u32 3, %v2989_v30 }
 0x3c8   :  { %v2686_v35 = vsel %vm2679_vm15, %v2682_v20, %v2685_v61  ;;  %v2976_v40 = vand.u32 2147483647, %v2975_v39  ;;  %v3119_v53 = vsub.s32 32, %v3118_v33  ;;  %v3112_v34 = vor.u32 8388608, %v3111_v19 }
 0x3c9   :  { %v2687_v36 = vsel %vm2676_vm5, nan, %v2686_v35  ;;  %v2855_v28 = vshll.u32 %v11238_v45, 30  ;;  %v3000_v56 = vand.u32 2147483647, %v11225_v51  ;;  %v3121_v16 = vshll.u32 %v9108_v31, %v3118_v33 }
 0x3ca   :  { %5707 = vst.msk [vmem:[#allocation2 + $0x10] sm:$0xff] %vm5704_vm10, %v2687_v36  ;;  %v2979_v13 = vmul.f32 %v2978_v44, %v2976_v40  ;;  %v3122_v60 = vshrl.u32 %v9109_v22, %v3119_v53  ;;  %v3125_v42 = vshrl.u32 %v9110_v14, %v3119_v53  ;;  %v3128_v15 = vshrl.u32 %v9111_v0, %v3119_v53 }
 0x3cb   :  { %5740 = vst.msk [vmem:[#allocation2 + $0x10] sm:$0xff] %vm5737_vm14, %v9114_v5  ;;  %v11253_v6 = vsub.s32 %v2852_v18, %v2855_v28  ;;  %v3124_v23 = vshll.u32 %v9109_v22, %v3118_v33  ;;  %v7995_v63 = vadd.s32 4294967169, %v3004_v47  ;;  %v11256_v12 = vshrl.u32 %v3116_v59, 5 }
 0x3cc   :  { %v2980_v26 = vxor.u32 2147483648, %v2979_v13  ;;  %v3123_v2 = vor.u32 %v3122_v60, %v3121_v16  ;;  %v3127_v43 = vshll.u32 %v9110_v14, %v3118_v33  ;;  %v3130_v25 = vshll.u32 %v9111_v0, %v3118_v33 }
 0x3cd   :  { %v2858_v55 = vsub.s32 0, %v11253_v6  ;;  %v3126_v1 = vor.u32 %v3125_v42, %v3124_v23  ;;  %v3131_v49 = vshrl.u32 %v9112_v24, %v3119_v53  ;;  %v3133_v8 = vshll.u32 %v9112_v24, %v3118_v33 }
 0x3ce   :  { %v2981_v4 = vsel %vm2898_vm7, %v2980_v26, %v2979_v13  ;;  %v3129_v50 = vor.u32 %v3128_v15, %v3127_v43  ;;  %v3134_v54 = vshrl.u32 %v9113_v37, %v3119_v53  ;;  %v3010_v11 = vadd.s32 1, %v7995_v63 }
 0x3cf   :  { %v2984_v27 = vsel %vm11217_vm4, %v10966_v52, %v2981_v4  ;;  %v7988_v29 = vmin.u32 %v2858_v55, %v11253_v6  ;;  %v3132_v46 = vor.u32 %v3131_v49, %v3130_v25  ;;  %v11271_v17 = vshll.u32 %v3112_v34, 8 }
 0x3d0   :  { %8856 = vcosq.f32 %v2984_v27  ;;  %v3135_v48 = vor.u32 %v3134_v54, %v3133_v8  ;;  %v11275_v58 = vand.u32 8388607, %v3000_v56  ;;  %v3120_v7 = vshrl.u32 %v9108_v31, %v3119_v53 }
 0x3d1   :  { %8858 = vsinq.f32 %v2984_v27  ;;  %v2860_v18 = vclz %v7988_v29  ;;  %vm3136_vm7 = vcmp.lt.s32.totalorder %v11256_v12, 1  ;;  %vm3137_vm0 = vcmp.lt.s32.totalorder %v11256_v12, 2 }
 0x3d2   :  { %vm2794_vm1 = vcmp.lt.s32.totalorder %v11110_v38, 0  ;;  %vm3138_vm13 = vcmp.lt.s32.totalorder %v11256_v12, 3  ;;  %vm3139_vm2 = vcmp.lt.s32.totalorder %v11256_v12, 4  ;;  %v3144_v30 = vsel %vm3136_vm7, %v3123_v2, %v3126_v1 }
 0x3d3   :  { %v3148_v59 = vsel %vm3136_vm7, %v3126_v1, %v3129_v50  ;;  %v7989_v61 = vadd.s32 4294967294, %v2860_v18  ;;  %v3141_v39 = vsel %vm3139_vm2, %v3129_v50, 2102212464  ;;  %v3145_v32 = vsel %vm3139_vm2, %v3132_v46, 920167782 }
 0x3d4   :  { %vm3011_vm3 = vcmp.gt.s32.totalorder %v3010_v11, 0  ;;  %vm2992_vm4 = vcmp.eq.s32.totalorder %v11242_v9, 0  ;;  %v3140_v19 = vsel %vm3136_vm7, %v3120_v7, %v3123_v2  ;;  %v3142_v20 = vsel %vm3138_vm13, %v3126_v1, %v3141_v39 }
 0x3d5   :  { %v3146_v33 = vsel %vm3138_vm13, %v3129_v50, %v3145_v32  ;;  %v3149_v47 = vsel %vm3139_vm2, %v3135_v48, 1326507024  ;;  %vm2991_vm5 = vcmp.lt.s32.totalorder %v11242_v9, 2  ;;  %vm7990_vm6 = vcmp.lt.s32.totalorder %v7989_v61, 0 }
 0x3d6   :  { %v3147_v35 = vsel %vm3137_vm0, %v3144_v30, %v3146_v33  ;;  %v3150_v40 = vsel %vm3138_vm13, %v3132_v46, %v3149_v47  ;;  %v3012_v44 = vsel %vm3011_vm3, %v3010_v11, 0  ;;  %vm2988_vm8 = vweird.f32 %v10966_v52 }
 0x3d7   :  { %v2863_v36 = vsel %vm7990_vm6, 0, %v7989_v61  ;;  %v3151_v53 = vsel %vm3137_vm0, %v3148_v59, %v3150_v40  ;;  %v11297_v13 = vmul.u32.u64.low %v11271_v17, %v3147_v35  ;;  %v11298_v28 = vmul.u32.u64.high %v11271_v17, %v3147_v35, %v11297_v13 }
 0x3d8   :  { %v2848_v34 = vadd.s32 %v11206_v10, %v11213_v62  ;;  %v2864_v16 = vsub.s32 32, %v2863_v36  ;;  %v2868_v60 = vsub.s32 4294967266, %v2863_v36  ;;  %v2878_v42 = vsub.s32 4, %v11238_v45 }
 0x3d9   :  { %vm2995_vm9 = vcmp.eq.s32.totalorder %v11242_v9, 2  ;;  %v11306_v15 = vmul.u32.u64.low %v11271_v17, %v3151_v53  ;;  %v11307_v26 = vmul.u32.u64.high %v11271_v17, %v3151_v53, %v11306_v15  ;;  %v3014_v23 = vand.u32 31, %v3012_v44 }
 0x3da   :  { %v8857_v63 = vpop.eup %8856  ;;  %vm11311_vm11 = vcmp.le.f32.partialorder %v2792_v21, 0.7853982  ;;  %v2865_v10 = vshll.u32 %v11253_v6, %v2863_v36  ;;  %v2866_v62 = vshrl.u32 %v2848_v34, %v2864_v16  ;;  %v2869_v43 = vadd.s32 127, %v2868_v60 }
 0x3db   :  { %v3143_v25 = vsel %vm3137_vm0, %v3140_v19, %v3142_v20  ;;  %v8859_v4 = vpop.eup %8858  ;;  %v2996_v55 = vxor.u32 2147483648, %v8857_v63  ;;  %v3162_v1 = vadd.s32 1, %v11298_v28  ;;  %v3008_v49 = vor.u32 8388608, %v11275_v58 }
 0x3dc   :  { %v11320_v27 = vsub.s32 32, %v3014_v23  ;;  %v2993_v50 = vxor.u32 2147483648, %v8859_v4  ;;  %v2867_v21 = vor.u32 %v2866_v62, %v2865_v10  ;;  %v2870_v8 = vshll.u32 %v2869_v43, 23 }
 0x3dd   :  { %v2879_v6 = vsel %vm2794_vm1, %v2878_v42, %v11238_v45  ;;  %v2997_v54 = vsel %vm2995_vm9, %v2996_v55, %v8859_v4  ;;  %v3159_v12 = vmul.u32 %v11271_v17, %v3143_v25  ;;  %vm3161_vm15 = vc.u32 %v11307_v26, %v11297_v13  ;;  %v2246_v55 = vpop.permute.xlu1 %2245 }
 0x3de   :  { %v3017_v3 = vshll.u32 %v9108_v31, %v3014_v23  ;;  %v2994_v29 = vsel %vm2992_vm4, %v8857_v63, %v2993_v50  ;;  %v2871_v46 = vor.u32 4788187, %v2870_v8  ;;  %v3163_v11 = vsel %vm3161_vm15, %v3162_v1, %v11298_v28  ;;  %v11384_v50 = vld [vmem:[#allocation2 + $0x48] sm:$0xff]  ;;  %2327 = vst.msk [vmem:[#allocation2 + $0x78] sm:$0xff] %vm2311_vm12, %v2246_v55 }
 0x3df   :  { %v3020_v48 = vshll.u32 %v9109_v22, %v3014_v23  ;;  %v2998_v45 = vsel %vm2991_vm5, %v2994_v29, %v2997_v54  ;;  %v3164_v58 = vadd.s32 %v3163_v11, %v3159_v12  ;;  %v3018_v17 = vshrl.u32 %v9109_v22, %v11320_v27 }
 0x3e0   :  { %v3021_v18 = vshrl.u32 %v9110_v14, %v11320_v27  ;;  %v2999_v7 = vsel %vm2988_vm8, nan, %v2998_v45  ;;  %v2872_v30 = vand.u32 2147483647, %v2871_v46  ;;  %v2874_v59 = vcvt.s32.f32 %v2867_v21 }
 0x3e1   :  { %v3024_v61 = vshrl.u32 %v9111_v0, %v11320_v27  ;;  %5710 = vst.msk [vmem:[#allocation2 + $0x28] sm:$0xff] %vm5704_vm10, %v2999_v7  ;;  %v3165_v39 = vadd.s32 536870912, %v3164_v58  ;;  %v11346_v9 = vshrl.u32 %v3012_v44, 5  ;;  %v3019_v32 = vor.u32 %v3018_v17, %v3017_v3 }
 0x3e2   :  { %v3023_v19 = vshll.u32 %v9110_v14, %v3014_v23  ;;  %5743 = vst.msk [vmem:[#allocation2 + $0x28] sm:$0xff] %vm5737_vm14, %v9114_v5  ;;  %v2875_v20 = vmul.f32 %v2874_v59, %v2872_v30  ;;  %v3022_v33 = vor.u32 %v3021_v18, %v3020_v48  ;;  %v3026_v52 = vshll.u32 %v9111_v0, %v3014_v23 }
 0x3e3   :  { %v3027_v47 = vshrl.u32 %v9112_v24, %v11320_v27  ;;  %v2881_v35 = vsel %vm11311_vm11, 0, %v2879_v6  ;;  %vm3106_vm7 = vcmp.lt.s32.totalorder %v11180_v41, 0  ;;  %v3166_v40 = vshrl.u32 %v3165_v39, 30 }
 0x3e4   :  { %v3030_v44 = vshrl.u32 %v9113_v37, %v11320_v27  ;;  %v2876_v36 = vxor.u32 2147483648, %v2875_v20  ;;  %v3025_v53 = vor.u32 %v3024_v61, %v3023_v19  ;;  %v3029_v34 = vshll.u32 %v9112_v24, %v3014_v23 }
 0x3e5   :  { %v3028_v28 = vor.u32 %v3027_v47, %v3026_v52  ;;  %v3167_v16 = vshll.u32 %v3166_v40, 30  ;;  %vm3032_vm0 = vcmp.lt.s32.totalorder %v11346_v9, 1  ;;  %vm3035_vm13 = vcmp.lt.s32.totalorder %v11346_v9, 4 }
 0x3e6   :  { %v11362_v60 = vshll.u32 %v3008_v49, 8  ;;  %v2877_v42 = vsel %vm2794_vm1, %v2876_v36, %v2875_v20  ;;  %v3031_v15 = vor.u32 %v3030_v44, %v3029_v34  ;;  %v3040_v63 = vsel %vm3032_vm0, %v3019_v32, %v3022_v33  ;;  %v11432_v34 = vld [vmem:[#allocation2 + $0x40] sm:$0xff] }
 0x3e7   :  { %v3041_v10 = vsel %vm3035_vm13, %v3028_v28, 920167782  ;;  %v2880_v23 = vsel %vm11311_vm11, %v11110_v38, %v2877_v42  ;;  %v2885_v62 = vadd.s32 3, %v2881_v35  ;;  %v11373_v43 = vsub.s32 %v3164_v58, %v3167_v16 }
 0x3e8   :  { %vm3034_vm2 = vcmp.lt.s32.totalorder %v11346_v9, 3  ;;  %8860 = vcosq.f32 %v2880_v23  ;;  %v3190_v25 = vsub.s32 4, %v3166_v40  ;;  %vm3033_vm1 = vcmp.lt.s32.totalorder %v11346_v9, 2 }
 0x3e9   :  { %v3042_v4 = vsel %vm3034_vm2, %v3025_v53, %v3041_v10  ;;  %8862 = vsinq.f32 %v2880_v23  ;;  %v3170_v1 = vsub.s32 0, %v11373_v43  ;;  %v3037_v2 = vsel %vm3035_vm13, %v3025_v53, 2102212464 }
 0x3ea   :  { %v3043_v49 = vsel %vm3033_vm1, %v3040_v63, %v3042_v4  ;;  %v3044_v21 = vsel %vm3032_vm0, %v3022_v33, %v3025_v53  ;;  %v3045_v8 = vsel %vm3035_vm13, %v3031_v15, 1326507024  ;;  %v2886_v12 = vand.u32 3, %v2885_v62 }
 0x3eb   :  { %v11392_v6 = vmul.u32.u64.low %v11362_v60, %v3043_v49  ;;  %v11393_v54 = vmul.u32.u64.high %v11362_v60, %v3043_v49, %v11392_v6  ;;  %v8000_v3 = vmin.u32 %v3170_v1, %v11373_v43  ;;  %v3016_v29 = vshrl.u32 %v9108_v31, %v11320_v27 }
 0x3ec   :  { %v3046_v46 = vsel %vm3034_vm2, %v3028_v28, %v3045_v8  ;;  %v3191_v11 = vsel %vm3106_vm7, %v3190_v25, %v3166_v40  ;;  %v3315_v45 = vand.u32 2139095040, %v11384_v50  ;;  %v3038_v18 = vsel %vm3034_vm2, %v3022_v33, %v3037_v2 }
 0x3ed   :  { %v3047_v48 = vsel %vm3033_vm1, %v3044_v21, %v3046_v46  ;;  %v3172_v58 = vclz %v8000_v3  ;;  %v3036_v17 = vsel %vm3032_vm0, %v3016_v29, %v3019_v32  ;;  %vm11412_vm3 = vcmp.le.f32.partialorder %v3104_v57, 0.7853982 }
 0x3ee   :  { %v11417_v7 = vmul.u32.u64.low %v11362_v60, %v3047_v48  ;;  %v11418_v30 = vmul.u32.u64.high %v11362_v60, %v3047_v48, %v11417_v7  ;;  %v3316_v59 = vshrl.u32 %v3315_v45, 23  ;;  %vm2884_vm4 = vweird.f32 %v11110_v38 }
 0x3ef   :  { %vm2887_vm5 = vcmp.lt.s32.totalorder %v2886_v12, 2  ;;  %v8001_v61 = vadd.s32 4294967294, %v3172_v58  ;;  %v3193_v39 = vsel %vm11412_vm3, 0, %v3191_v11  ;;  %vm2888_vm6 = vcmp.eq.s32.totalorder %v2886_v12, 0 }
 0x3f0   :  { %v3039_v32 = vsel %vm3033_vm1, %v3036_v17, %v3038_v18  ;;  %v3058_v57 = vadd.s32 1, %v11393_v54  ;;  %v8007_v19 = vadd.s32 4294967169, %v3316_v59  ;;  %vm2891_vm8 = vcmp.eq.s32.totalorder %v2886_v12, 2 }
 0x3f1   :  { %v3160_v20 = vadd.s32 %v11297_v13, %v11307_v26  ;;  %vm8002_vm9 = vcmp.lt.s32.totalorder %v8001_v61, 0  ;;  %v3312_v33 = vand.u32 2147483647, %v11384_v50  ;;  %v3197_v35 = vadd.s32 3, %v3193_v39 }
 0x3f2   :  { %v8861_v52 = vpop.eup %8860  ;;  %v3175_v47 = vsel %vm8002_vm9, 0, %v8001_v61  ;;  %vm3057_vm11 = vc.u32 %v11418_v30, %v11392_v6  ;;  %v3322_v40 = vadd.s32 1, %v8007_v19  ;;  %v3055_v28 = vmul.u32 %v11362_v60, %v3039_v32 }
 0x3f3   :  { %v8863_v44 = vpop.eup %8862  ;;  %v2892_v9 = vxor.u32 2147483648, %v8861_v52  ;;  %v3176_v36 = vsub.s32 32, %v3175_v47  ;;  %v3180_v53 = vsub.s32 4294967266, %v3175_v47  ;;  %v3177_v13 = vshll.u32 %v11373_v43, %v3175_v47 }
 0x3f4   :  { %v2889_v16 = vxor.u32 2147483648, %v8863_v44  ;;  %v3059_v26 = vsel %vm3057_vm11, %v3058_v57, %v11393_v54  ;;  %vm3323_vm15 = vcmp.gt.s32.totalorder %v3322_v40, 0  ;;  %v3319_v62 = vand.u32 8388607, %v3312_v33 }
 0x3f5   :  { %v2893_v42 = vsel %vm2891_vm8, %v2892_v9, %v8863_v44  ;;  %v3178_v15 = vshrl.u32 %v3160_v20, %v3176_v36  ;;  %v3181_v63 = vadd.s32 127, %v3180_v53  ;;  %v3060_v10 = vadd.s32 %v3059_v26, %v3055_v28  ;;  %v2244_v53 = vpop.permute.xlu0 %2243 }
 0x3f6   :  { %v2890_v23 = vsel %vm2888_vm6, %v8861_v52, %v2889_v16  ;;  %v3324_v25 = vsel %vm3323_vm15, %v3322_v40, 0  ;;  %v3208_v60 = vand.u32 2147483647, %v11432_v34  ;;  %v3211_v21 = vand.u32 2139095040, %v11432_v34  ;;  %2326 = vst.msk [vmem:[#allocation2 + $0x70] sm:$0xff] %vm2311_vm12, %v2244_v53 }
 0x3f7   :  { %v2894_v4 = vsel %vm2887_vm5, %v2890_v23, %v2893_v42  ;;  %v3179_v55 = vor.u32 %v3178_v15, %v3177_v13  ;;  %v3182_v43 = vshll.u32 %v3181_v63, 23  ;;  %v3061_v1 = vadd.s32 536870912, %v3060_v10 }
 0x3f8   :  { %v2895_v2 = vsel %vm2884_vm4, nan, %v2894_v4  ;;  %v3326_v49 = vand.u32 31, %v3324_v25  ;;  %v11450_v3 = vand.u32 3, %v3197_v35  ;;  %v3320_v12 = vor.u32 8388608, %v3319_v62 }
 0x3f9   :  { %5709 = vst.msk [vmem:[#allocation2 + $0x20] sm:$0xff] %vm5704_vm10, %v2895_v2  ;;  %v3183_v8 = vor.u32 4788187, %v3182_v43  ;;  %v11446_v54 = vshrl.u32 %v3061_v1, 30  ;;  %v11454_v46 = vand.u32 8388607, %v3208_v60  ;;  %v3186_v11 = vcvt.s32.f32 %v3179_v55 }
 0x3fa   :  { %5742 = vst.msk [vmem:[#allocation2 + $0x20] sm:$0xff] %vm5737_vm14, %v9114_v5  ;;  %v3327_v29 = vsub.s32 32, %v3326_v49  ;;  %v11458_v48 = vadd.s32 %v11392_v6, %v11418_v30  ;;  %v3212_v7 = vshrl.u32 %v3211_v21, 23  ;;  %v3329_v39 = vshll.u32 %v9108_v31, %v3326_v49 }
 0x3fb   :  { %v3184_v38 = vand.u32 2147483647, %v3183_v8  ;;  %v3063_v45 = vshll.u32 %v11446_v54, 30  ;;  %v3325_v57 = vshrl.u32 %v3324_v25, 5  ;;  %v3332_v6 = vshll.u32 %v9109_v22, %v3326_v49 }
 0x3fc   :  { %v3330_v58 = vshrl.u32 %v9109_v22, %v3327_v29  ;;  %v3333_v17 = vshrl.u32 %v9110_v14, %v3327_v29  ;;  %v3336_v18 = vshrl.u32 %v9111_v0, %v3327_v29  ;;  %v3339_v32 = vshrl.u32 %v9112_v24, %v3327_v29 }
 0x3fd   :  { %v3187_v59 = vmul.f32 %v3186_v11, %v3184_v38  ;;  %v11464_v61 = vsub.s32 %v3060_v10, %v3063_v45  ;;  %v3335_v30 = vshll.u32 %v9110_v14, %v3326_v49  ;;  %v11470_v19 = vshll.u32 %v3320_v12, 8 }
 0x3fe   :  { %v3331_v47 = vor.u32 %v3330_v58, %v3329_v39  ;;  %v3338_v35 = vshll.u32 %v9111_v0, %v3326_v49  ;;  %vm3002_vm0 = vcmp.lt.s32.totalorder %v11225_v51, 0  ;;  %v3334_v40 = vor.u32 %v3333_v17, %v3332_v6 }
 0x3ff   :  { %v3188_v20 = vxor.u32 2147483648, %v3187_v59  ;;  %v3066_v52 = vsub.s32 0, %v11464_v61  ;;  %v3337_v44 = vor.u32 %v3336_v18, %v3335_v30  ;;  %v3341_v9 = vshll.u32 %v9112_v24, %v3326_v49 }
 0x400   :  { %v3342_v36 = vshrl.u32 %v9113_v37, %v3327_v29  ;;  %v3340_v13 = vor.u32 %v3339_v32, %v3338_v35  ;;  %v8003_v26 = vadd.s32 4294967169, %v3212_v7  ;;  %v3086_v15 = vsub.s32 4, %v11446_v54 }
 0x401   :  { %v3189_v28 = vsel %vm3106_vm7, %v3188_v20, %v3187_v59  ;;  %v7996_v16 = vmin.u32 %v3066_v52, %v11464_v61  ;;  %v3328_v63 = vshrl.u32 %v9108_v31, %v3327_v29  ;;  %vm3344_vm13 = vcmp.lt.s32.totalorder %v3325_v57, 1 }
 0x402   :  { %v3192_v42 = vsel %vm11412_vm3, %v11180_v41, %v3189_v28  ;;  %v3343_v10 = vor.u32 %v3342_v36, %v3341_v9  ;;  %vm3347_vm2 = vcmp.lt.s32.totalorder %v3325_v57, 4  ;;  %vm3345_vm7 = vcmp.lt.s32.totalorder %v3325_v57, 2 }
 0x403   :  { %8864 = vcosq.f32 %v3192_v42  ;;  %v3068_v23 = vclz %v7996_v16  ;;  %v3349_v62 = vsel %vm3347_vm2, %v3337_v44, 2102212464  ;;  %v3352_v25 = vsel %vm3344_vm13, %v3331_v47, %v3334_v40 }
 0x404   :  { %8866 = vsinq.f32 %v3192_v42  ;;  %vm3346_vm1 = vcmp.lt.s32.totalorder %v3325_v57, 3  ;;  %v3353_v55 = vsel %vm3347_vm2, %v3340_v13, 920167782  ;;  %v3356_v43 = vsel %vm3344_vm13, %v3334_v40, %v3337_v44 }
 0x405   :  { %v7997_v4 = vadd.s32 4294967294, %v3068_v23  ;;  %v3348_v1 = vsel %vm3344_vm13, %v3328_v63, %v3331_v47  ;;  %v3354_v27 = vsel %vm3346_vm1, %v3337_v44, %v3353_v55  ;;  %v3357_v2 = vsel %vm3347_vm2, %v3343_v10, 1326507024 }
 0x406   :  { %v3218_v49 = vadd.s32 1, %v8003_v26  ;;  %v3350_v21 = vsel %vm3346_vm1, %v3334_v40, %v3349_v62  ;;  %v3355_v8 = vsel %vm3345_vm7, %v3352_v25, %v3354_v27  ;;  %v3358_v12 = vsel %vm3346_vm1, %v3340_v13, %v3357_v2 }
 0x407   :  { %vm7998_vm3 = vcmp.lt.s32.totalorder %v7997_v4, 0  ;;  %v3359_v38 = vsel %vm3345_vm7, %v3356_v43, %v3358_v12  ;;  %v11489_v11 = vmul.u32.u64.low %v11470_v19, %v3355_v8  ;;  %v11490_v45 = vmul.u32.u64.high %v11470_v19, %v3355_v8, %v11489_v11 }
 0x408   :  { %v3071_v29 = vsel %vm7998_vm3, 0, %v7997_v4  ;;  %v3087_v18 = vsel %vm3002_vm0, %v3086_v15, %v11446_v54  ;;  %vm3219_vm4 = vcmp.gt.s32.totalorder %v3218_v49, 0  ;;  %vm3196_vm5 = vweird.f32 %v11180_v41 }
 0x409   :  { %v3072_v58 = vsub.s32 32, %v3071_v29  ;;  %v3076_v17 = vsub.s32 4294967266, %v3071_v29  ;;  %v3351_v7 = vsel %vm3345_vm7, %v3348_v1, %v3350_v21  ;;  %v3220_v32 = vsel %vm3219_vm4, %v3218_v49, 0 }
 0x40a   :  { %v11499_v59 = vmul.u32.u64.low %v11470_v19, %v3359_v38  ;;  %v11500_v39 = vmul.u32.u64.high %v11470_v19, %v3359_v38, %v11499_v59  ;;  %v3073_v6 = vshll.u32 %v11464_v61, %v3071_v29  ;;  %v3222_v52 = vand.u32 31, %v3220_v32  ;;  %v11545_v38 = vld [vmem:[#allocation2 + $0x58] sm:$0xff] }
 0x40b   :  { %v3074_v30 = vshrl.u32 %v11458_v48, %v3072_v58  ;;  %v3077_v20 = vadd.s32 127, %v3076_v17  ;;  %vm3199_vm6 = vcmp.lt.s32.totalorder %v11450_v3, 2  ;;  %vm11507_vm8 = vcmp.le.f32.partialorder %v3000_v56, 0.7853982 }
 0x40c   :  { %v3370_v57 = vadd.s32 1, %v11490_v45  ;;  %v3216_v47 = vor.u32 8388608, %v11454_v46  ;;  %vm3200_vm9 = vcmp.eq.s32.totalorder %v11450_v3, 0  ;;  %v3089_v48 = vsel %vm11507_vm8, 0, %v3087_v18 }
 0x40d   :  { %v8865_v35 = vpop.eup %8864  ;;  %v3075_v61 = vor.u32 %v3074_v30, %v3073_v6  ;;  %v3078_v40 = vshll.u32 %v3077_v20, 23  ;;  %v3367_v36 = vmul.u32 %v11470_v19, %v3351_v7  ;;  %vm3369_vm11 = vc.u32 %v11500_v39, %v11489_v11 }
 0x40e   :  { %v8867_v44 = vpop.eup %8866  ;;  %v3204_v9 = vxor.u32 2147483648, %v8865_v35  ;;  %v3223_v56 = vsub.s32 32, %v3222_v52  ;;  %vm3203_vm15 = vcmp.eq.s32.totalorder %v11450_v3, 2  ;;  %v3371_v28 = vsel %vm3369_vm11, %v3370_v57, %v11490_v45 }
 0x40f   :  { %v3201_v53 = vxor.u32 2147483648, %v8867_v44  ;;  %v3079_v46 = vor.u32 4788187, %v3078_v40  ;;  %v3093_v13 = vadd.s32 3, %v3089_v48  ;;  %v3372_v26 = vadd.s32 %v3371_v28, %v3367_v36 }
 0x410   :  { %v3205_v16 = vsel %vm3203_vm15, %v3204_v9, %v8867_v44  ;;  %v11521_v42 = vshll.u32 %v3216_v47, 8  ;;  %v3082_v19 = vcvt.s32.f32 %v3075_v61  ;;  %v11525_v10 = vshrl.u32 %v3220_v32, 5 }
 0x411   :  { %v3202_v15 = vsel %vm3200_vm9, %v8865_v35, %v3201_v53  ;;  %v3080_v63 = vand.u32 2147483647, %v3079_v46  ;;  %v3373_v62 = vadd.s32 536870912, %v3372_v26  ;;  %v3226_v25 = vshrl.u32 %v9109_v22, %v3223_v56  ;;  %v2250_v35 = vpop.permute.xlu1 %2249 }
 0x412   :  { %v3206_v23 = vsel %vm3199_vm6, %v3202_v15, %v3205_v16  ;;  %v3229_v4 = vshrl.u32 %v9110_v14, %v3223_v56  ;;  %v3225_v1 = vshll.u32 %v9108_v31, %v3222_v52  ;;  %v3232_v27 = vshrl.u32 %v9111_v0, %v3223_v56  ;;  %2329 = vst.msk [vmem:[#allocation2 + $0x88] sm:$0xff] %vm2311_vm12, %v2250_v35 }
 0x413   :  { %v3207_v55 = vsel %vm3196_vm5, nan, %v3206_v23  ;;  %v3083_v43 = vmul.f32 %v3082_v19, %v3080_v63  ;;  %v3374_v2 = vshrl.u32 %v3373_v62, 30  ;;  %v3228_v49 = vshll.u32 %v9109_v22, %v3222_v52 }
 0x414   :  { %5712 = vst.msk [vmem:[#allocation2 + $0x38] sm:$0xff] %vm5704_vm10, %v3207_v55  ;;  %v3231_v3 = vshll.u32 %v9110_v14, %v3222_v52  ;;  %v3235_v21 = vshrl.u32 %v9112_v24, %v3223_v56  ;;  %vm3314_vm13 = vcmp.lt.s32.totalorder %v11384_v50, 0  ;;  %v3234_v41 = vshll.u32 %v9111_v0, %v3222_v52 }
 0x415   :  { %5745 = vst.msk [vmem:[#allocation2 + $0x38] sm:$0xff] %vm5737_vm14, %v9114_v5  ;;  %v3084_v8 = vxor.u32 2147483648, %v3083_v43  ;;  %v3237_v12 = vshll.u32 %v9112_v24, %v3222_v52  ;;  %v3238_v29 = vshrl.u32 %v9113_v37, %v3223_v56  ;;  %v11547_v45 = vand.u32 3, %v3093_v13 }
 0x416   :  { %v3375_v58 = vshll.u32 %v3374_v2, 30  ;;  %v3227_v17 = vor.u32 %v3226_v25, %v3225_v1  ;;  %v3230_v18 = vor.u32 %v3229_v4, %v3228_v49  ;;  %v3233_v59 = vor.u32 %v3232_v27, %v3231_v3 }
 0x417   :  { %v3085_v7 = vsel %vm3002_vm0, %v3084_v8, %v3083_v43  ;;  %v3236_v32 = vor.u32 %v3235_v21, %v3234_v41  ;;  %v3239_v6 = vor.u32 %v3238_v29, %v3237_v12  ;;  %v3224_v52 = vshrl.u32 %v9108_v31, %v3223_v56 }
 0x418   :  { %v3088_v30 = vsel %vm11507_vm8, %v11225_v51, %v3085_v7  ;;  %v11554_v20 = vsub.s32 %v3372_v26, %v3375_v58  ;;  %v3523_v57 = vand.u32 2139095040, %v11545_v38  ;;  %v3398_v47 = vsub.s32 4, %v3374_v2 }
 0x419   :  { %8868 = vcosq.f32 %v3088_v30  ;;  %vm3240_vm2 = vcmp.lt.s32.totalorder %v11525_v10, 1  ;;  %vm3242_vm7 = vcmp.lt.s32.totalorder %v11525_v10, 3  ;;  %vm3243_vm0 = vcmp.lt.s32.totalorder %v11525_v10, 4 }
 0x41a   :  { %8870 = vsinq.f32 %v3088_v30  ;;  %v3378_v61 = vsub.s32 0, %v11554_v20  ;;  %v3248_v54 = vsel %vm3240_vm2, %v3227_v17, %v3230_v18  ;;  %v3245_v40 = vsel %vm3243_vm0, %v3233_v59, 2102212464  ;;  %v11619_v30 = vld [vmem:[#allocation2 + $0x50] sm:$0xff] }
 0x41b   :  { %v3249_v48 = vsel %vm3243_vm0, %v3236_v32, 920167782  ;;  %v3252_v44 = vsel %vm3240_vm2, %v3230_v18, %v3233_v59  ;;  %v3253_v9 = vsel %vm3243_vm0, %v3239_v6, 1326507024  ;;  %vm3241_vm1 = vcmp.lt.s32.totalorder %v11525_v10, 2 }
 0x41c   :  { %v8008_v36 = vmin.u32 %v3378_v61, %v11554_v20  ;;  %v3250_v56 = vsel %vm3242_vm7, %v3233_v59, %v3249_v48  ;;  %v3254_v53 = vsel %vm3242_vm7, %v3236_v32, %v3253_v9  ;;  %v3520_v16 = vand.u32 2147483647, %v11545_v38 }
 0x41d   :  { %v3251_v46 = vsel %vm3241_vm1, %v3248_v54, %v3250_v56  ;;  %v3255_v28 = vsel %vm3241_vm1, %v3252_v44, %v3254_v53  ;;  %v3524_v13 = vshrl.u32 %v3523_v57, 23  ;;  %v3399_v15 = vsel %vm3314_vm13, %v3398_v47, %v3374_v2 }
 0x41e   :  { %v3380_v26 = vclz %v8008_v36  ;;  %v3244_v63 = vsel %vm3240_vm2, %v3224_v52, %v3227_v17  ;;  %v3246_v19 = vsel %vm3242_vm7, %v3230_v18, %v3245_v40  ;;  %vm3092_vm3 = vweird.f32 %v11225_v51 }
 0x41f   :  { %v11585_v23 = vmul.u32.u64.low %v11521_v42, %v3255_v28  ;;  %v11586_v62 = vmul.u32.u64.high %v11521_v42, %v3255_v28, %v11585_v23  ;;  %v11589_v25 = vmul.u32.u64.low %v11521_v42, %v3251_v46  ;;  %v11590_v4 = vmul.u32.u64.high %v11521_v42, %v3251_v46, %v11589_v25 }
 0x420   :  { %vm11596_vm4 = vcmp.le.f32.partialorder %v3312_v33, 0.7853982  ;;  %v8009_v43 = vadd.s32 4294967294, %v3380_v26  ;;  %v8015_v1 = vadd.s32 4294967169, %v3524_v13  ;;  %vm3095_vm5 = vcmp.lt.s32.totalorder %v11547_v45, 2 }
 0x421   :  { %vm3096_vm6 = vcmp.eq.s32.totalorder %v11547_v45, 0  ;;  %vm3099_vm8 = vcmp.eq.s32.totalorder %v11547_v45, 2  ;;  %v3247_v27 = vsel %vm3241_vm1, %v3244_v63, %v3246_v19  ;;  %v3368_v2 = vadd.s32 %v11489_v11, %v11500_v39 }
 0x422   :  { %vm8010_vm9 = vcmp.lt.s32.totalorder %v8009_v43, 0  ;;  %v3401_v33 = vsel %vm11596_vm4, 0, %v3399_v15  ;;  %v3530_v49 = vadd.s32 1, %v8015_v1  ;;  %vm3265_vm11 = vc.u32 %v11586_v62, %v11589_v25 }
 0x423   :  { %v8869_v3 = vpop.eup %8868  ;;  %v3383_v21 = vsel %vm8010_vm9, 0, %v8009_v43  ;;  %v3266_v8 = vadd.s32 1, %v11590_v4  ;;  %v3527_v41 = vand.u32 8388607, %v3520_v16  ;;  %v3263_v11 = vmul.u32 %v11521_v42, %v3247_v27 }
 0x424   :  { %v8871_v10 = vpop.eup %8870  ;;  %v3100_v12 = vxor.u32 2147483648, %v8869_v3  ;;  %v3384_v29 = vsub.s32 32, %v3383_v21  ;;  %v3388_v58 = vsub.s32 4294967266, %v3383_v21  ;;  %v3385_v17 = vshll.u32 %v11554_v20, %v3383_v21 }
 0x425   :  { %v3097_v39 = vxor.u32 2147483648, %v8871_v10  ;;  %v3267_v18 = vsel %vm3265_vm11, %v3266_v8, %v11590_v4  ;;  %vm3531_vm15 = vcmp.gt.s32.totalorder %v3530_v49, 0  ;;  %v3405_v57 = vadd.s32 3, %v3401_v33 }
 0x426   :  { %v3101_v7 = vsel %vm3099_vm8, %v3100_v12, %v8871_v10  ;;  %v3386_v59 = vshrl.u32 %v3368_v2, %v3384_v29  ;;  %v3389_v32 = vadd.s32 127, %v3388_v58  ;;  %v3268_v6 = vadd.s32 %v3267_v18, %v3263_v11 }
 0x427   :  { %v3098_v52 = vsel %vm3096_vm6, %v8869_v3, %v3097_v39  ;;  %v3528_v47 = vor.u32 8388608, %v3527_v41  ;;  %v3532_v42 = vsel %vm3531_vm15, %v3530_v49, 0  ;;  %v3419_v44 = vand.u32 2139095040, %v11619_v30 }
 0x428   :  { %v3102_v20 = vsel %vm3095_vm5, %v3098_v52, %v3101_v7  ;;  %v3387_v35 = vor.u32 %v3386_v59, %v3385_v17  ;;  %v3390_v61 = vshll.u32 %v3389_v32, 23  ;;  %v3269_v54 = vadd.s32 536870912, %v3268_v6 }
 0x429   :  { %v3103_v40 = vsel %vm3092_vm3, nan, %v3102_v20  ;;  %v3534_v48 = vand.u32 31, %v3532_v42  ;;  %v11633_v56 = vand.u32 3, %v3405_v57  ;;  %v3416_v53 = vand.u32 2147483647, %v11619_v30 }
 0x42a   :  { %5711 = vst.msk [vmem:[#allocation2 + $0x30] sm:$0xff] %vm5704_vm10, %v3103_v40  ;;  %v3391_v9 = vor.u32 4788187, %v3390_v61  ;;  %v11629_v36 = vshrl.u32 %v3269_v54, 30  ;;  %v3394_v28 = vcvt.s32.f32 %v3387_v35  ;;  %v11637_v13 = vshll.u32 %v3528_v47, 8 }
 0x42b   :  { %5744 = vst.msk [vmem:[#allocation2 + $0x30] sm:$0xff] %vm5737_vm14, %v9114_v5  ;;  %v3535_v45 = vsub.s32 32, %v3534_v48  ;;  %v3420_v19 = vshrl.u32 %v3419_v44, 23  ;;  %v3537_v43 = vshll.u32 %v9108_v31, %v3534_v48  ;;  %v3264_v27 = vadd.s32 %v11589_v25, %v11586_v62  ;;  %v2248_v62 = vpop.permute.xlu0 %2247 }
 0x42c   :  { %v3392_v46 = vand.u32 2147483647, %v3391_v9  ;;  %v3271_v51 = vshll.u32 %v11629_v36, 30  ;;  %v3533_v2 = vshrl.u32 %v3532_v42, 5  ;;  %v3540_v33 = vshll.u32 %v9109_v22, %v3534_v48  ;;  %2328 = vst.msk [vmem:[#allocation2 + $0x80] sm:$0xff] %vm2311_vm12, %v2248_v62 }
 0x42d   :  { %v3538_v26 = vshrl.u32 %v9109_v22, %v3535_v45  ;;  %v3541_v15 = vshrl.u32 %v9110_v14, %v3535_v45  ;;  %v3544_v63 = vshrl.u32 %v9111_v0, %v3535_v45  ;;  %v3547_v1 = vshrl.u32 %v9112_v24, %v3535_v45 }
 0x42e   :  { %v3395_v23 = vmul.f32 %v3394_v28, %v3392_v46  ;;  %v11642_v4 = vsub.s32 %v3268_v6, %v3271_v51  ;;  %v3543_v49 = vshll.u32 %v9110_v14, %v3534_v48  ;;  %v3546_v41 = vshll.u32 %v9111_v0, %v3534_v48 }
 0x42f   :  { %v3539_v8 = vor.u32 %v3538_v26, %v3537_v43  ;;  %vm3210_vm2 = vcmp.lt.s32.totalorder %v11432_v34, 0  ;;  %v3542_v10 = vor.u32 %v3541_v15, %v3540_v33  ;;  %v3549_v29 = vshll.u32 %v9112_v24, %v3534_v48 }
 0x430   :  { %v3396_v3 = vxor.u32 2147483648, %v3395_v23  ;;  %v3274_v21 = vsub.s32 0, %v11642_v4  ;;  %v3545_v12 = vor.u32 %v3544_v63, %v3543_v49  ;;  %v3550_v58 = vshrl.u32 %v9113_v37, %v3535_v45 }
 0x431   :  { %v3548_v39 = vor.u32 %v3547_v1, %v3546_v41  ;;  %v8011_v17 = vadd.s32 4294967169, %v3420_v19  ;;  %v3294_v7 = vsub.s32 4, %v11629_v36  ;;  %v3536_v59 = vshrl.u32 %v9108_v31, %v3535_v45 }
 0x432   :  { %v3397_v25 = vsel %vm3314_vm13, %v3396_v3, %v3395_v23  ;;  %v8004_v11 = vmin.u32 %v3274_v21, %v11642_v4  ;;  %v3551_v32 = vor.u32 %v3550_v58, %v3549_v29  ;;  %vm3552_vm7 = vcmp.lt.s32.totalorder %v3533_v2, 1  ;;  %v11694_v21 = vld [vmem:[#allocation2 + $0x68] sm:$0xff] }
 0x433   :  { %v3400_v18 = vsel %vm11596_vm4, %v11384_v50, %v3397_v25  ;;  %vm3555_vm0 = vcmp.lt.s32.totalorder %v3533_v2, 4  ;;  %vm11666_vm13 = vcmp.le.f32.partialorder %v3208_v60, 0.7853982  ;;  %vm3553_vm1 = vcmp.lt.s32.totalorder %v3533_v2, 2 }
 0x434   :  { %8872 = vcosq.f32 %v3400_v18  ;;  %v3276_v6 = vclz %v8004_v11  ;;  %v3557_v57 = vsel %vm3555_vm0, %v3545_v12, 2102212464  ;;  %v3560_v55 = vsel %vm3552_vm7, %v3539_v8, %v3542_v10 }
 0x435   :  { %8874 = vsinq.f32 %v3400_v18  ;;  %vm3554_vm3 = vcmp.lt.s32.totalorder %v3533_v2, 3  ;;  %v3561_v42 = vsel %vm3555_vm0, %v3548_v39, 920167782  ;;  %v3564_v20 = vsel %vm3552_vm7, %v3542_v10, %v3545_v12 }
 0x436   :  { %v8005_v47 = vadd.s32 4294967294, %v3276_v6  ;;  %v3556_v35 = vsel %vm3552_vm7, %v3536_v59, %v3539_v8  ;;  %v3562_v61 = vsel %vm3554_vm3, %v3545_v12, %v3561_v42  ;;  %v3565_v54 = vsel %vm3555_vm0, %v3551_v32, 1326507024 }
 0x437   :  { %v3426_v40 = vadd.s32 1, %v8011_v17  ;;  %v3558_v48 = vsel %vm3554_vm3, %v3542_v10, %v3557_v57  ;;  %v3563_v44 = vsel %vm3553_vm1, %v3560_v55, %v3562_v61  ;;  %v3566_v9 = vsel %vm3554_vm3, %v3548_v39, %v3565_v54 }
 0x438   :  { %vm8006_vm4 = vcmp.lt.s32.totalorder %v8005_v47, 0  ;;  %v3567_v45 = vsel %vm3553_vm1, %v3564_v20, %v3566_v9  ;;  %v11673_v46 = vmul.u32.u64.low %v11637_v13, %v3563_v44  ;;  %v11674_v28 = vmul.u32.u64.high %v11637_v13, %v3563_v44, %v11673_v46 }
 0x439   :  { %v3279_v60 = vsel %vm8006_vm4, 0, %v8005_v47  ;;  %v3295_v15 = vsel %vm3210_vm2, %v3294_v7, %v11629_v36  ;;  %vm3427_vm5 = vcmp.gt.s32.totalorder %v3426_v40, 0  ;;  %vm3404_vm6 = vweird.f32 %v11384_v50 }
 0x43a   :  { %v3280_v51 = vsub.s32 32, %v3279_v60  ;;  %v3284_v26 = vsub.s32 4294967266, %v3279_v60  ;;  %v3559_v63 = vsel %vm3553_vm1, %v3556_v35, %v3558_v48  ;;  %v3428_v43 = vsel %vm3427_vm5, %v3426_v40, 0 }
 0x43b   :  { %v11683_v19 = vmul.u32.u64.low %v11637_v13, %v3567_v45  ;;  %v11684_v23 = vmul.u32.u64.high %v11637_v13, %v3567_v45, %v11683_v19  ;;  %v3281_v1 = vshll.u32 %v11642_v4, %v3279_v60  ;;  %v3430_v3 = vand.u32 31, %v3428_v43 }
 0x43c   :  { %v3282_v33 = vshrl.u32 %v3264_v27, %v3280_v51  ;;  %v3285_v49 = vadd.s32 127, %v3284_v26  ;;  %vm3407_vm8 = vcmp.lt.s32.totalorder %v11633_v56, 2  ;;  %vm3408_vm9 = vcmp.eq.s32.totalorder %v11633_v56, 0 }
 0x43d   :  { %v3578_v36 = vadd.s32 1, %v11674_v28  ;;  %v11692_v2 = vand.u32 8388607, %v3416_v53  ;;  %vm3411_vm11 = vcmp.eq.s32.totalorder %v11633_v56, 2  ;;  %v3297_v27 = vsel %vm11666_vm13, 0, %v3295_v15 }
 0x43e   :  { %v8873_v8 = vpop.eup %8872  ;;  %v3283_v41 = vor.u32 %v3282_v33, %v3281_v1  ;;  %v3286_v4 = vshll.u32 %v3285_v49, 23  ;;  %v3575_v29 = vmul.u32 %v11637_v13, %v3559_v63  ;;  %vm3577_vm15 = vc.u32 %v11684_v23, %v11673_v46 }
 0x43f   :  { %v8875_v10 = vpop.eup %8874  ;;  %v3412_v12 = vxor.u32 2147483648, %v8873_v8  ;;  %v3431_v58 = vsub.s32 32, %v3430_v3  ;;  %v3579_v11 = vsel %vm3577_vm15, %v3578_v36, %v11674_v28  ;;  %v3728_v39 = vand.u32 2147483647, %v11694_v21 }
 0x440   :  { %v3409_v62 = vxor.u32 2147483648, %v8875_v10  ;;  %v3287_v25 = vor.u32 4788187, %v3286_v4  ;;  %v3301_v18 = vadd.s32 3, %v3297_v27  ;;  %v3580_v7 = vadd.s32 %v3579_v11, %v3575_v29 }
 0x441   :  { %v3413_v17 = vsel %vm3411_vm11, %v3412_v12, %v8875_v10  ;;  %v3424_v59 = vor.u32 8388608, %v11692_v2  ;;  %v3290_v13 = vcvt.s32.f32 %v3283_v41  ;;  %v11707_v57 = vshrl.u32 %v3428_v43, 5  ;;  %v2254_v41 = vpop.permute.xlu1 %2253 }
 0x442   :  { %v3410_v32 = vsel %vm3408_vm9, %v8873_v8, %v3409_v62  ;;  %v3288_v6 = vand.u32 2147483647, %v3287_v25  ;;  %v3581_v47 = vadd.s32 536870912, %v3580_v7  ;;  %v3434_v42 = vshrl.u32 %v9109_v22, %v3431_v58  ;;  %2331 = vst.msk [vmem:[#allocation2 + $0x98] sm:$0xff] %vm2311_vm12, %v2254_v41 }
 0x443   :  { %v3414_v55 = vsel %vm3407_vm8, %v3410_v32, %v3413_v17  ;;  %v3437_v20 = vshrl.u32 %v9110_v14, %v3431_v58  ;;  %v3433_v54 = vshll.u32 %v9108_v31, %v3430_v3  ;;  %v3440_v40 = vshrl.u32 %v9111_v0, %v3431_v58 }
 0x444   :  { %v3415_v35 = vsel %vm3404_vm6, nan, %v3414_v55  ;;  %v3291_v61 = vmul.f32 %v3290_v13, %v3288_v6  ;;  %v3582_v48 = vshrl.u32 %v3581_v47, 30  ;;  %v3436_v44 = vshll.u32 %v9109_v22, %v3430_v3 }
 0x445   :  { %5714 = vst.msk [vmem:[#allocation2 + $0x48] sm:$0xff] %vm5704_vm10, %v3415_v35  ;;  %v3439_v56 = vshll.u32 %v9110_v14, %v3430_v3  ;;  %v3443_v9 = vshrl.u32 %v9112_v24, %v3431_v58  ;;  %vm3522_vm7 = vcmp.lt.s32.totalorder %v11545_v38, 0  ;;  %v3442_v50 = vshll.u32 %v9111_v0, %v3430_v3 }
 0x446   :  { %5747 = vst.msk [vmem:[#allocation2 + $0x48] sm:$0xff] %vm5737_vm14, %v9114_v5  ;;  %v3292_v60 = vxor.u32 2147483648, %v3291_v61  ;;  %v3445_v45 = vshll.u32 %v9112_v24, %v3430_v3  ;;  %v3446_v28 = vshrl.u32 %v9113_v37, %v3431_v58  ;;  %v11727_v51 = vand.u32 3, %v3301_v18 }
 0x447   :  { %v3583_v26 = vshll.u32 %v3582_v48, 30  ;;  %v3435_v15 = vor.u32 %v3434_v42, %v3433_v54  ;;  %v3438_v63 = vor.u32 %v3437_v20, %v3436_v44  ;;  %v3441_v43 = vor.u32 %v3440_v40, %v3439_v56 }
 0x448   :  { %v3293_v19 = vsel %vm3210_vm2, %v3292_v60, %v3291_v61  ;;  %v3444_v1 = vor.u32 %v3443_v9, %v3442_v50  ;;  %v3447_v33 = vor.u32 %v3446_v28, %v3445_v45  ;;  %v3432_v3 = vshrl.u32 %v9108_v31, %v3431_v58 }
 0x449   :  { %v3296_v49 = vsel %vm11666_vm13, %v11432_v34, %v3293_v19  ;;  %v11734_v36 = vsub.s32 %v3580_v7, %v3583_v26  ;;  %v3731_v2 = vand.u32 2139095040, %v11694_v21  ;;  %v3606_v8 = vsub.s32 4, %v3582_v48 }
 0x44a   :  { %8876 = vcosq.f32 %v3296_v49  ;;  %vm3448_vm0 = vcmp.lt.s32.totalorder %v11707_v57, 1  ;;  %vm3450_vm1 = vcmp.lt.s32.totalorder %v11707_v57, 3  ;;  %vm3451_vm2 = vcmp.lt.s32.totalorder %v11707_v57, 4 }
 0x44b   :  { %8878 = vsinq.f32 %v3296_v49  ;;  %v3586_v4 = vsub.s32 0, %v11734_v36  ;;  %v3456_v52 = vsel %vm3448_vm0, %v3435_v15, %v3438_v63  ;;  %v3453_v27 = vsel %vm3451_vm2, %v3441_v43, 2102212464  ;;  %v11795_v49 = vld [vmem:[#allocation2 + $0x60] sm:$0xff] }
 0x44c   :  { %v3457_v10 = vsel %vm3451_vm2, %v3444_v1, 920167782  ;;  %v3460_v12 = vsel %vm3448_vm0, %v3438_v63, %v3441_v43  ;;  %v3461_v29 = vsel %vm3451_vm2, %v3447_v33, 1326507024  ;;  %vm3449_vm13 = vcmp.lt.s32.totalorder %v11707_v57, 2 }
 0x44d   :  { %v8016_v58 = vmin.u32 %v3586_v4, %v11734_v36  ;;  %v3458_v62 = vsel %vm3450_vm1, %v3441_v43, %v3457_v10  ;;  %v3462_v25 = vsel %vm3450_vm1, %v3444_v1, %v3461_v29  ;;  %v3464_v18 = vshll.u32 %v3424_v59, 8 }
 0x44e   :  { %v3459_v11 = vsel %vm3449_vm13, %v3456_v52, %v3458_v62  ;;  %v3463_v17 = vsel %vm3449_vm13, %v3460_v12, %v3462_v25  ;;  %v3732_v7 = vshrl.u32 %v3731_v2, 23  ;;  %v3607_v6 = vsel %vm3522_vm7, %v3606_v8, %v3582_v48 }
 0x44f   :  { %v3588_v32 = vclz %v8016_v58  ;;  %v3452_v13 = vsel %vm3448_vm0, %v3432_v3, %v3435_v15  ;;  %v3454_v55 = vsel %vm3450_vm1, %v3438_v63, %v3453_v27  ;;  %vm3300_vm3 = vweird.f32 %v11432_v34 }
 0x450   :  { %v11763_v47 = vmul.u32.u64.low %v3464_v18, %v3463_v17  ;;  %v11764_v42 = vmul.u32.u64.high %v3464_v18, %v3463_v17, %v11763_v47  ;;  %v11766_v20 = vmul.u32.u64.low %v3464_v18, %v3459_v11  ;;  %v11767_v35 = vmul.u32.u64.high %v3464_v18, %v3459_v11, %v11766_v20 }
 0x451   :  { %vm11773_vm4 = vcmp.le.f32.partialorder %v3520_v16, 0.7853982  ;;  %v8017_v61 = vadd.s32 4294967294, %v3588_v32  ;;  %v8023_v54 = vadd.s32 4294967169, %v3732_v7  ;;  %vm3303_vm5 = vcmp.lt.s32.totalorder %v11727_v51, 2 }
 0x452   :  { %vm3304_vm6 = vcmp.eq.s32.totalorder %v11727_v51, 0  ;;  %vm3307_vm8 = vcmp.eq.s32.totalorder %v11727_v51, 2  ;;  %v3455_v40 = vsel %vm3449_vm13, %v3452_v13, %v3454_v55  ;;  %v3576_v48 = vadd.s32 %v11673_v46, %v11684_v23 }
 0x453   :  { %vm8018_vm9 = vcmp.lt.s32.totalorder %v8017_v61, 0  ;;  %v3609_v16 = vsel %vm11773_vm4, 0, %v3607_v6  ;;  %v3738_v44 = vadd.s32 1, %v8023_v54  ;;  %vm3473_vm11 = vc.u32 %v11764_v42, %v11766_v20 }
 0x454   :  { %v8877_v56 = vpop.eup %8876  ;;  %v3591_v9 = vsel %vm8018_vm9, 0, %v8017_v61  ;;  %v3474_v60 = vadd.s32 1, %v11767_v35  ;;  %v3735_v50 = vand.u32 8388607, %v3728_v39  ;;  %v3471_v46 = vmul.u32 %v3464_v18, %v3455_v40 }
 0x455   :  { %v8879_v57 = vpop.eup %8878  ;;  %v3308_v45 = vxor.u32 2147483648, %v8877_v56  ;;  %v3592_v28 = vsub.s32 32, %v3591_v9  ;;  %v3596_v26 = vsub.s32 4294967266, %v3591_v9  ;;  %v3593_v15 = vshll.u32 %v11734_v36, %v3591_v9 }
 0x456   :  { %v3305_v23 = vxor.u32 2147483648, %v8879_v57  ;;  %v3475_v63 = vsel %vm3473_vm11, %v3474_v60, %v11767_v35  ;;  %vm3739_vm15 = vcmp.gt.s32.totalorder %v3738_v44, 0  ;;  %v3613_v2 = vadd.s32 3, %v3609_v16 }
 0x457   :  { %v3309_v19 = vsel %vm3307_vm8, %v3308_v45, %v8879_v57  ;;  %v3594_v43 = vshrl.u32 %v3576_v48, %v3592_v28  ;;  %v3597_v1 = vadd.s32 127, %v3596_v26  ;;  %v3476_v33 = vadd.s32 %v3475_v63, %v3471_v46 }
 0x458   :  { %v3306_v3 = vsel %vm3304_vm6, %v8877_v56, %v3305_v23  ;;  %v3736_v8 = vor.u32 8388608, %v3735_v50  ;;  %v3740_v41 = vsel %vm3739_vm15, %v3738_v44, 0  ;;  %v3627_v29 = vand.u32 2139095040, %v11795_v49 }
 0x459   :  { %v3310_v36 = vsel %vm3303_vm5, %v3306_v3, %v3309_v19  ;;  %v3595_v4 = vor.u32 %v3594_v43, %v3593_v15  ;;  %v3598_v52 = vshll.u32 %v3597_v1, 23  ;;  %v3477_v27 = vadd.s32 536870912, %v3476_v33 }
 0x45a   :  { %v3311_v10 = vsel %vm3300_vm3, nan, %v3310_v36  ;;  %v3742_v12 = vand.u32 31, %v3740_v41  ;;  %v11809_v25 = vand.u32 3, %v3613_v2  ;;  %v3624_v11 = vand.u32 2147483647, %v11795_v49 }
 0x45b   :  { %5713 = vst.msk [vmem:[#allocation2 + $0x40] sm:$0xff] %vm5704_vm10, %v3311_v10  ;;  %v3599_v58 = vor.u32 4788187, %v3598_v52  ;;  %v11805_v62 = vshrl.u32 %v3477_v27, 30  ;;  %v3602_v18 = vcvt.s32.f32 %v3595_v4  ;;  %v11813_v7 = vshll.u32 %v3736_v8, 8 }
 0x45c   :  { %5746 = vst.msk [vmem:[#allocation2 + $0x40] sm:$0xff] %vm5737_vm14, %v9114_v5  ;;  %v3743_v51 = vsub.s32 32, %v3742_v12  ;;  %v3628_v55 = vshrl.u32 %v3627_v29, 23  ;;  %v3745_v61 = vshll.u32 %v9108_v31, %v3742_v12  ;;  %v3472_v40 = vadd.s32 %v11766_v20, %v11764_v42  ;;  %v2252_v42 = vpop.permute.xlu0 %2251 }
 0x45d   :  { %v3600_v17 = vand.u32 2147483647, %v3599_v58  ;;  %v3479_v34 = vshll.u32 %v11805_v62, 30  ;;  %v3741_v48 = vshrl.u32 %v3740_v41, 5  ;;  %v3748_v16 = vshll.u32 %v9109_v22, %v3742_v12  ;;  %2330 = vst.msk [vmem:[#allocation2 + $0x90] sm:$0xff] %vm2311_vm12, %v2252_v42 }
 0x45e   :  { %v3746_v32 = vshrl.u32 %v9109_v22, %v3743_v51  ;;  %v3749_v6 = vshrl.u32 %v9110_v14, %v3743_v51  ;;  %v3752_v13 = vshrl.u32 %v9111_v0, %v3743_v51  ;;  %v3755_v54 = vshrl.u32 %v9112_v24, %v3743_v51 }
 0x45f   :  { %v3603_v47 = vmul.f32 %v3602_v18, %v3600_v17  ;;  %v11818_v35 = vsub.s32 %v3476_v33, %v3479_v34  ;;  %v3751_v44 = vshll.u32 %v9110_v14, %v3742_v12  ;;  %v3754_v50 = vshll.u32 %v9111_v0, %v3742_v12 }
 0x460   :  { %v3747_v60 = vor.u32 %v3746_v32, %v3745_v61  ;;  %vm3418_vm0 = vcmp.lt.s32.totalorder %v11619_v30, 0  ;;  %v3750_v57 = vor.u32 %v3749_v6, %v3748_v16  ;;  %v3757_v28 = vshll.u32 %v9112_v24, %v3742_v12 }
 0x461   :  { %v3604_v56 = vxor.u32 2147483648, %v3603_v47  ;;  %v3482_v9 = vsub.s32 0, %v11818_v35  ;;  %v3753_v45 = vor.u32 %v3752_v13, %v3751_v44  ;;  %v3758_v26 = vshrl.u32 %v9113_v37, %v3743_v51 }
 0x462   :  { %v3756_v23 = vor.u32 %v3755_v54, %v3754_v50  ;;  %v8019_v15 = vadd.s32 4294967169, %v3628_v55  ;;  %v3502_v19 = vsub.s32 4, %v11805_v62  ;;  %v3744_v43 = vshrl.u32 %v9108_v31, %v3743_v51 }
 0x463   :  { %v3605_v20 = vsel %vm3522_vm7, %v3604_v56, %v3603_v47  ;;  %v8012_v46 = vmin.u32 %v3482_v9, %v11818_v35  ;;  %v3759_v1 = vor.u32 %v3758_v26, %v3757_v28  ;;  %vm3760_vm1 = vcmp.lt.s32.totalorder %v3741_v48, 1  ;;  %v11870_v9 = vld [vmem:[#allocation2 + $0x78] sm:$0xff] }
 0x464   :  { %v3608_v63 = vsel %vm11773_vm4, %v11545_v38, %v3605_v20  ;;  %vm3763_vm2 = vcmp.lt.s32.totalorder %v3741_v48, 4  ;;  %vm11842_vm7 = vcmp.le.f32.partialorder %v3416_v53, 0.7853982  ;;  %vm3761_vm13 = vcmp.lt.s32.totalorder %v3741_v48, 2 }
 0x465   :  { %8880 = vcosq.f32 %v3608_v63  ;;  %v3484_v33 = vclz %v8012_v46  ;;  %v3765_v2 = vsel %vm3763_vm2, %v3753_v45, 2102212464  ;;  %v3768_v59 = vsel %vm3760_vm1, %v3747_v60, %v3750_v57 }
 0x466   :  { %8882 = vsinq.f32 %v3608_v63  ;;  %vm3762_vm3 = vcmp.lt.s32.totalorder %v3741_v48, 3  ;;  %v3769_v41 = vsel %vm3763_vm2, %v3756_v23, 920167782  ;;  %v3772_v36 = vsel %vm3760_vm1, %v3750_v57, %v3753_v45 }
 0x467   :  { %v8013_v8 = vadd.s32 4294967294, %v3484_v33  ;;  %v3764_v4 = vsel %vm3760_vm1, %v3744_v43, %v3747_v60  ;;  %v3770_v52 = vsel %vm3762_vm3, %v3753_v45, %v3769_v41  ;;  %v3773_v27 = vsel %vm3763_vm2, %v3759_v1, 1326507024 }
 0x468   :  { %v3634_v10 = vadd.s32 1, %v8019_v15  ;;  %v3766_v12 = vsel %vm3762_vm3, %v3750_v57, %v3765_v2  ;;  %v3771_v29 = vsel %vm3761_vm13, %v3768_v59, %v3770_v52  ;;  %v3774_v58 = vsel %vm3762_vm3, %v3756_v23, %v3773_v27 }
 0x469   :  { %vm8014_vm4 = vcmp.lt.s32.totalorder %v8013_v8, 0  ;;  %v3775_v51 = vsel %vm3761_vm13, %v3772_v36, %v3774_v58  ;;  %v11849_v17 = vmul.u32.u64.low %v11813_v7, %v3771_v29  ;;  %v11850_v18 = vmul.u32.u64.high %v11813_v7, %v3771_v29, %v11849_v17 }
 0x46a   :  { %v3487_v53 = vsel %vm8014_vm4, 0, %v8013_v8  ;;  %v3503_v6 = vsel %vm3418_vm0, %v3502_v19, %v11805_v62  ;;  %vm3635_vm5 = vcmp.gt.s32.totalorder %v3634_v10, 0  ;;  %vm3612_vm6 = vweird.f32 %v11545_v38 }
 0x46b   :  { %v3488_v34 = vsub.s32 32, %v3487_v53  ;;  %v3492_v32 = vsub.s32 4294967266, %v3487_v53  ;;  %v3767_v13 = vsel %vm3761_vm13, %v3764_v4, %v3766_v12  ;;  %v3636_v61 = vsel %vm3635_vm5, %v3634_v10, 0 }
 0x46c   :  { %v11859_v55 = vmul.u32.u64.low %v11813_v7, %v3775_v51  ;;  %v11860_v47 = vmul.u32.u64.high %v11813_v7, %v3775_v51, %v11859_v55  ;;  %v3489_v54 = vshll.u32 %v11818_v35, %v3487_v53  ;;  %v3638_v56 = vand.u32 31, %v3636_v61 }
 0x46d   :  { %v3490_v16 = vshrl.u32 %v3472_v40, %v3488_v34  ;;  %v3493_v44 = vadd.s32 127, %v3492_v32  ;;  %vm3615_vm8 = vcmp.lt.s32.totalorder %v11809_v25, 2  ;;  %vm3616_vm9 = vcmp.eq.s32.totalorder %v11809_v25, 0 }
 0x46e   :  { %v3786_v62 = vadd.s32 1, %v11850_v18  ;;  %v11868_v48 = vand.u32 8388607, %v3624_v11  ;;  %vm3619_vm11 = vcmp.eq.s32.totalorder %v11809_v25, 2  ;;  %v3505_v40 = vsel %vm11842_vm7, 0, %v3503_v6 }
 0x46f   :  { %v8881_v60 = vpop.eup %8880  ;;  %v3491_v50 = vor.u32 %v3490_v16, %v3489_v54  ;;  %v3494_v35 = vshll.u32 %v3493_v44, 23  ;;  %v3783_v28 = vmul.u32 %v11813_v7, %v3767_v13  ;;  %vm3785_vm15 = vc.u32 %v11860_v47, %v11849_v17 }
 0x470   :  { %v8883_v57 = vpop.eup %8882  ;;  %v3620_v45 = vxor.u32 2147483648, %v8881_v60  ;;  %v3639_v26 = vsub.s32 32, %v3638_v56  ;;  %v3787_v46 = vsel %vm3785_vm15, %v3786_v62, %v11850_v18  ;;  %v3936_v23 = vand.u32 2147483647, %v11870_v9 }
 0x471   :  { %v3617_v42 = vxor.u32 2147483648, %v8883_v57  ;;  %v3495_v20 = vor.u32 4788187, %v3494_v35  ;;  %v3509_v63 = vadd.s32 3, %v3505_v40  ;;  %v3788_v19 = vadd.s32 %v3787_v46, %v3783_v28 }
 0x472   :  { %v3621_v15 = vsel %vm3619_vm11, %v3620_v45, %v8883_v57  ;;  %v3632_v43 = vor.u32 8388608, %v11868_v48  ;;  %v3498_v7 = vcvt.s32.f32 %v3491_v50  ;;  %v11883_v2 = vshrl.u32 %v3636_v61, 5  ;;  %v2258_v50 = vpop.permute.xlu1 %2257 }
 0x473   :  { %v3618_v1 = vsel %vm3616_vm9, %v8881_v60, %v3617_v42  ;;  %v3496_v33 = vand.u32 2147483647, %v3495_v20  ;;  %v3789_v8 = vadd.s32 536870912, %v3788_v19  ;;  %v3642_v41 = vshrl.u32 %v9109_v22, %v3639_v26  ;;  %2333 = vst.msk [vmem:[#allocation2 + $0xa8] sm:$0xff] %vm2311_vm12, %v2258_v50 }
 0x474   :  { %v3622_v59 = vsel %vm3615_vm8, %v3618_v1, %v3621_v15  ;;  %v3645_v36 = vshrl.u32 %v9110_v14, %v3639_v26  ;;  %v3641_v27 = vshll.u32 %v9108_v31, %v3638_v56  ;;  %v3648_v10 = vshrl.u32 %v9111_v0, %v3639_v26 }
 0x475   :  { %v3623_v4 = vsel %vm3612_vm6, nan, %v3622_v59  ;;  %v3499_v52 = vmul.f32 %v3498_v7, %v3496_v33  ;;  %v3790_v12 = vshrl.u32 %v3789_v8, 30  ;;  %v3644_v29 = vshll.u32 %v9109_v22, %v3638_v56 }
 0x476   :  { %5716 = vst.msk [vmem:[#allocation2 + $0x58] sm:$0xff] %vm5704_vm10, %v3623_v4  ;;  %v3647_v25 = vshll.u32 %v9110_v14, %v3638_v56  ;;  %v3651_v58 = vshrl.u32 %v9112_v24, %v3639_v26  ;;  %vm3730_vm1 = vcmp.lt.s32.totalorder %v11694_v21, 0  ;;  %v3650_v38 = vshll.u32 %v9111_v0, %v3638_v56 }
 0x477   :  { %5749 = vst.msk [vmem:[#allocation2 + $0x58] sm:$0xff] %vm5737_vm14, %v9114_v5  ;;  %v3500_v53 = vxor.u32 2147483648, %v3499_v52  ;;  %v3653_v51 = vshll.u32 %v9112_v24, %v3638_v56  ;;  %v3654_v18 = vshrl.u32 %v9113_v37, %v3639_v26  ;;  %v11903_v34 = vand.u32 3, %v3509_v63 }
 0x478   :  { %v3791_v32 = vshll.u32 %v3790_v12, 30  ;;  %v3643_v6 = vor.u32 %v3642_v41, %v3641_v27  ;;  %v3646_v13 = vor.u32 %v3645_v36, %v3644_v29  ;;  %v3649_v61 = vor.u32 %v3648_v10, %v3647_v25 }
 0x479   :  { %v3501_v55 = vsel %vm3418_vm0, %v3500_v53, %v3499_v52  ;;  %v3652_v54 = vor.u32 %v3651_v58, %v3650_v38  ;;  %v3655_v16 = vor.u32 %v3654_v18, %v3653_v51  ;;  %v3640_v56 = vshrl.u32 %v9108_v31, %v3639_v26 }
 0x47a   :  { %v3504_v44 = vsel %vm11842_vm7, %v11619_v30, %v3501_v55  ;;  %v11910_v62 = vsub.s32 %v3788_v19, %v3791_v32  ;;  %v3939_v48 = vand.u32 2139095040, %v11870_v9  ;;  %v3814_v60 = vsub.s32 4, %v3790_v12 }
 0x47b   :  { %8884 = vcosq.f32 %v3504_v44  ;;  %vm3656_vm2 = vcmp.lt.s32.totalorder %v11883_v2, 1  ;;  %vm3658_vm13 = vcmp.lt.s32.totalorder %v11883_v2, 3  ;;  %vm3659_vm0 = vcmp.lt.s32.totalorder %v11883_v2, 4 }
 0x47c   :  { %8886 = vsinq.f32 %v3504_v44  ;;  %v3794_v35 = vsub.s32 0, %v11910_v62  ;;  %v3664_v3 = vsel %vm3656_vm2, %v3643_v6, %v3646_v13  ;;  %v3661_v40 = vsel %vm3659_vm0, %v3649_v61, 2102212464  ;;  %v11971_v44 = vld [vmem:[#allocation2 + $0x70] sm:$0xff] }
 0x47d   :  { %v3665_v57 = vsel %vm3659_vm0, %v3652_v54, 920167782  ;;  %v3668_v45 = vsel %vm3656_vm2, %v3646_v13, %v3649_v61  ;;  %v3669_v28 = vsel %vm3659_vm0, %v3655_v16, 1326507024  ;;  %vm3657_vm7 = vcmp.lt.s32.totalorder %v11883_v2, 2 }
 0x47e   :  { %v8024_v26 = vmin.u32 %v3794_v35, %v11910_v62  ;;  %v3666_v42 = vsel %vm3658_vm13, %v3649_v61, %v3665_v57  ;;  %v3670_v20 = vsel %vm3658_vm13, %v3652_v54, %v3669_v28  ;;  %v3672_v63 = vshll.u32 %v3632_v43, 8 }
 0x47f   :  { %v3667_v46 = vsel %vm3657_vm7, %v3664_v3, %v3666_v42  ;;  %v3671_v15 = vsel %vm3657_vm7, %v3668_v45, %v3670_v20  ;;  %v3940_v19 = vshrl.u32 %v3939_v48, 23  ;;  %v3815_v33 = vsel %vm3730_vm1, %v3814_v60, %v3790_v12 }
 0x480   :  { %v3796_v1 = vclz %v8024_v26  ;;  %v3660_v7 = vsel %vm3656_vm2, %v3640_v56, %v3643_v6  ;;  %v3662_v59 = vsel %vm3658_vm13, %v3646_v13, %v3661_v40  ;;  %vm3508_vm3 = vweird.f32 %v11619_v30 }
 0x481   :  { %v11939_v8 = vmul.u32.u64.low %v3672_v63, %v3671_v15  ;;  %v11940_v41 = vmul.u32.u64.high %v3672_v63, %v3671_v15, %v11939_v8  ;;  %v11942_v36 = vmul.u32.u64.low %v3672_v63, %v3667_v46  ;;  %v11943_v4 = vmul.u32.u64.high %v3672_v63, %v3667_v46, %v11942_v36 }
 0x482   :  { %vm11949_vm4 = vcmp.le.f32.partialorder %v3728_v39, 0.7853982  ;;  %v8025_v52 = vadd.s32 4294967294, %v3796_v1  ;;  %v8031_v27 = vadd.s32 4294967169, %v3940_v19  ;;  %vm3511_vm5 = vcmp.lt.s32.totalorder %v11903_v34, 2 }
 0x483   :  { %vm3512_vm6 = vcmp.eq.s32.totalorder %v11903_v34, 0  ;;  %vm3515_vm8 = vcmp.eq.s32.totalorder %v11903_v34, 2  ;;  %v3663_v10 = vsel %vm3657_vm7, %v3660_v7, %v3662_v59  ;;  %v3784_v12 = vadd.s32 %v11849_v17, %v11860_v47 }
 0x484   :  { %vm8026_vm9 = vcmp.lt.s32.totalorder %v8025_v52, 0  ;;  %v3817_v39 = vsel %vm11949_vm4, 0, %v3815_v33  ;;  %v3946_v29 = vadd.s32 1, %v8031_v27  ;;  %vm3681_vm11 = vc.u32 %v11940_v41, %v11942_v36 }
 0x485   :  { %v8885_v25 = vpop.eup %8884  ;;  %v3799_v58 = vsel %vm8026_vm9, 0, %v8025_v52  ;;  %v3682_v53 = vadd.s32 1, %v11943_v4  ;;  %v3943_v38 = vand.u32 8388607, %v3936_v23  ;;  %v3679_v17 = vmul.u32 %v3672_v63, %v3663_v10 }
 0x486   :  { %v8887_v2 = vpop.eup %8886  ;;  %v3516_v51 = vxor.u32 2147483648, %v8885_v25  ;;  %v3800_v18 = vsub.s32 32, %v3799_v58  ;;  %v3804_v32 = vsub.s32 4294967266, %v3799_v58  ;;  %v3801_v6 = vshll.u32 %v11910_v62, %v3799_v58 }
 0x487   :  { %v3513_v47 = vxor.u32 2147483648, %v8887_v2  ;;  %v3683_v13 = vsel %vm3681_vm11, %v3682_v53, %v11943_v4  ;;  %vm3947_vm15 = vcmp.gt.s32.totalorder %v3946_v29, 0  ;;  %v3821_v48 = vadd.s32 3, %v3817_v39 }
 0x488   :  { %v3517_v55 = vsel %vm3515_vm8, %v3516_v51, %v8887_v2  ;;  %v3802_v61 = vshrl.u32 %v3784_v12, %v3800_v18  ;;  %v3805_v54 = vadd.s32 127, %v3804_v32  ;;  %v3684_v16 = vadd.s32 %v3683_v13, %v3679_v17 }
 0x489   :  { %v3514_v56 = vsel %vm3512_vm6, %v8885_v25, %v3513_v47  ;;  %v3944_v60 = vor.u32 8388608, %v3943_v38  ;;  %v3948_v50 = vsel %vm3947_vm15, %v3946_v29, 0  ;;  %v3835_v28 = vand.u32 2139095040, %v11971_v44 }
 0x48a   :  { %v3518_v62 = vsel %vm3511_vm5, %v3514_v56, %v3517_v55  ;;  %v3803_v35 = vor.u32 %v3802_v61, %v3801_v6  ;;  %v3806_v3 = vshll.u32 %v3805_v54, 23  ;;  %v3685_v40 = vadd.s32 536870912, %v3684_v16 }
 0x48b   :  { %v3519_v57 = vsel %vm3508_vm3, nan, %v3518_v62  ;;  %v3950_v45 = vand.u32 31, %v3948_v50  ;;  %v11985_v20 = vand.u32 3, %v3821_v48  ;;  %v3832_v46 = vand.u32 2147483647, %v11971_v44 }
 0x48c   :  { %5715 = vst.msk [vmem:[#allocation2 + $0x50] sm:$0xff] %vm5704_vm10, %v3519_v57  ;;  %v3807_v26 = vor.u32 4788187, %v3806_v3  ;;  %v11981_v42 = vshrl.u32 %v3685_v40, 30  ;;  %v3810_v63 = vcvt.s32.f32 %v3803_v35  ;;  %v11989_v19 = vshll.u32 %v3944_v60, 8 }
 0x48d   :  { %5748 = vst.msk [vmem:[#allocation2 + $0x50] sm:$0xff] %vm5737_vm14, %v9114_v5  ;;  %v3951_v34 = vsub.s32 32, %v3950_v45  ;;  %v3836_v59 = vshrl.u32 %v3835_v28, 23  ;;  %v3953_v52 = vshll.u32 %v9108_v31, %v3950_v45  ;;  %v3680_v10 = vadd.s32 %v11942_v36, %v11940_v41  ;;  %v2256_v41 = vpop.permute.xlu0 %2255 }
 0x48e   :  { %v3808_v15 = vand.u32 2147483647, %v3807_v26  ;;  %v3687_v30 = vshll.u32 %v11981_v42, 30  ;;  %v3949_v12 = vshrl.u32 %v3948_v50, 5  ;;  %v3956_v39 = vshll.u32 %v9109_v22, %v3950_v45  ;;  %2332 = vst.msk [vmem:[#allocation2 + $0xa0] sm:$0xff] %vm2311_vm12, %v2256_v41 }
 0x48f   :  { %v3954_v1 = vshrl.u32 %v9109_v22, %v3951_v34  ;;  %v3957_v33 = vshrl.u32 %v9110_v14, %v3951_v34  ;;  %v3960_v7 = vshrl.u32 %v9111_v0, %v3951_v34  ;;  %v3963_v27 = vshrl.u32 %v9112_v24, %v3951_v34 }
 0x490   :  { %v3811_v8 = vmul.f32 %v3810_v63, %v3808_v15  ;;  %v11994_v4 = vsub.s32 %v3684_v16, %v3687_v30  ;;  %v3959_v29 = vshll.u32 %v9110_v14, %v3950_v45  ;;  %v3962_v38 = vshll.u32 %v9111_v0, %v3950_v45 }
 0x491   :  { %v3955_v53 = vor.u32 %v3954_v1, %v3953_v52  ;;  %vm3626_vm2 = vcmp.lt.s32.totalorder %v11795_v49, 0  ;;  %v3958_v2 = vor.u32 %v3957_v33, %v3956_v39  ;;  %v3965_v18 = vshll.u32 %v9112_v24, %v3950_v45 }
 0x492   :  { %v3812_v25 = vxor.u32 2147483648, %v3811_v8  ;;  %v3690_v58 = vsub.s32 0, %v11994_v4  ;;  %v3961_v51 = vor.u32 %v3960_v7, %v3959_v29  ;;  %v3966_v32 = vshrl.u32 %v9113_v37, %v3951_v34 }
 0x493   :  { %v3964_v47 = vor.u32 %v3963_v27, %v3962_v38  ;;  %v8027_v6 = vadd.s32 4294967169, %v3836_v59  ;;  %v3710_v55 = vsub.s32 4, %v11981_v42  ;;  %v3952_v61 = vshrl.u32 %v9108_v31, %v3951_v34 }
 0x494   :  { %v3813_v36 = vsel %vm3730_vm1, %v3812_v25, %v3811_v8  ;;  %v8020_v17 = vmin.u32 %v3690_v58, %v11994_v4  ;;  %v3967_v54 = vor.u32 %v3966_v32, %v3965_v18  ;;  %vm3968_vm13 = vcmp.lt.s32.totalorder %v3949_v12, 1  ;;  %v12046_v58 = vld [vmem:[#allocation2 + $0x88] sm:$0xff] }
 0x495   :  { %v3816_v13 = vsel %vm11949_vm4, %v11694_v21, %v3813_v36  ;;  %vm3971_vm0 = vcmp.lt.s32.totalorder %v3949_v12, 4  ;;  %vm12018_vm1 = vcmp.le.f32.partialorder %v3624_v11, 0.7853982  ;;  %vm3969_vm7 = vcmp.lt.s32.totalorder %v3949_v12, 2 }
 0x496   :  { %8888 = vcosq.f32 %v3816_v13  ;;  %v3692_v16 = vclz %v8020_v17  ;;  %v3973_v48 = vsel %vm3971_vm0, %v3961_v51, 2102212464  ;;  %v3976_v43 = vsel %vm3968_vm13, %v3955_v53, %v3958_v2 }
 0x497   :  { %8890 = vsinq.f32 %v3816_v13  ;;  %vm3970_vm3 = vcmp.lt.s32.totalorder %v3949_v12, 3  ;;  %v3977_v50 = vsel %vm3971_vm0, %v3964_v47, 920167782  ;;  %v3980_v62 = vsel %vm3968_vm13, %v3958_v2, %v3961_v51 }
 0x498   :  { %v8021_v60 = vadd.s32 4294967294, %v3692_v16  ;;  %v3972_v35 = vsel %vm3968_vm13, %v3952_v61, %v3955_v53  ;;  %v3978_v3 = vsel %vm3970_vm3, %v3961_v51, %v3977_v50  ;;  %v3981_v40 = vsel %vm3971_vm0, %v3967_v54, 1326507024 }
 0x499   :  { %v3842_v57 = vadd.s32 1, %v8027_v6  ;;  %v3974_v45 = vsel %vm3970_vm3, %v3958_v2, %v3973_v48  ;;  %v3979_v28 = vsel %vm3969_vm7, %v3976_v43, %v3978_v3  ;;  %v3982_v26 = vsel %vm3970_vm3, %v3964_v47, %v3981_v40 }
 0x49a   :  { %vm8022_vm4 = vcmp.lt.s32.totalorder %v8021_v60, 0  ;;  %v3983_v34 = vsel %vm3969_vm7, %v3980_v62, %v3982_v26  ;;  %v12025_v15 = vmul.u32.u64.low %v11989_v19, %v3979_v28  ;;  %v12026_v63 = vmul.u32.u64.high %v11989_v19, %v3979_v28, %v12025_v15 }
 0x49b   :  { %v3695_v11 = vsel %vm8022_vm4, 0, %v8021_v60  ;;  %v3711_v33 = vsel %vm3626_vm2, %v3710_v55, %v11981_v42  ;;  %vm3843_vm5 = vcmp.gt.s32.totalorder %v3842_v57, 0  ;;  %vm3820_vm6 = vweird.f32 %v11694_v21 }
 0x49c   :  { %v3696_v30 = vsub.s32 32, %v3695_v11  ;;  %v3700_v1 = vsub.s32 4294967266, %v3695_v11  ;;  %v3975_v7 = vsel %vm3969_vm7, %v3972_v35, %v3974_v45  ;;  %v3844_v52 = vsel %vm3843_vm5, %v3842_v57, 0 }
 0x49d   :  { %v12035_v59 = vmul.u32.u64.low %v11989_v19, %v3983_v34  ;;  %v12036_v8 = vmul.u32.u64.high %v11989_v19, %v3983_v34, %v12035_v59  ;;  %v3697_v27 = vshll.u32 %v11994_v4, %v3695_v11  ;;  %v3846_v25 = vand.u32 31, %v3844_v52 }
 0x49e   :  { %v3698_v39 = vshrl.u32 %v3680_v10, %v3696_v30  ;;  %v3701_v29 = vadd.s32 127, %v3700_v1  ;;  %vm3823_vm8 = vcmp.lt.s32.totalorder %v11985_v20, 2  ;;  %vm3824_vm9 = vcmp.eq.s32.totalorder %v11985_v20, 0 }
 0x49f   :  { %v3994_v42 = vadd.s32 1, %v12026_v63  ;;  %v12044_v12 = vand.u32 8388607, %v3832_v46  ;;  %vm3827_vm11 = vcmp.eq.s32.totalorder %v11985_v20, 2  ;;  %v3713_v10 = vsel %vm12018_vm1, 0, %v3711_v33 }
 0x4a0   :  { %v8889_v53 = vpop.eup %8888  ;;  %v3699_v38 = vor.u32 %v3698_v39, %v3697_v27  ;;  %v3702_v4 = vshll.u32 %v3701_v29, 23  ;;  %v3991_v18 = vmul.u32 %v11989_v19, %v3975_v7  ;;  %vm3993_vm15 = vc.u32 %v12036_v8, %v12025_v15 }
 0x4a1   :  { %v8891_v2 = vpop.eup %8890  ;;  %v3828_v51 = vxor.u32 2147483648, %v8889_v53  ;;  %v3847_v32 = vsub.s32 32, %v3846_v25  ;;  %v3995_v17 = vsel %vm3993_vm15, %v3994_v42, %v12026_v63  ;;  %v4144_v47 = vand.u32 2147483647, %v12046_v58 }
 0x4a2   :  { %v3825_v41 = vxor.u32 2147483648, %v8891_v2  ;;  %v3703_v36 = vor.u32 4788187, %v3702_v4  ;;  %v3717_v13 = vadd.s32 3, %v3713_v10  ;;  %v3996_v55 = vadd.s32 %v3995_v17, %v3991_v18 }
 0x4a3   :  { %v3829_v6 = vsel %vm3827_vm11, %v3828_v51, %v8891_v2  ;;  %v3840_v61 = vor.u32 8388608, %v12044_v12  ;;  %v3706_v19 = vcvt.s32.f32 %v3699_v38  ;;  %v12059_v48 = vshrl.u32 %v3844_v52, 5  ;;  %v2262_v38 = vpop.permute.xlu1 %2261 }
 0x4a4   :  { %v3826_v54 = vsel %vm3824_vm9, %v8889_v53, %v3825_v41  ;;  %v3704_v16 = vand.u32 2147483647, %v3703_v36  ;;  %v3997_v60 = vadd.s32 536870912, %v3996_v55  ;;  %v3850_v50 = vshrl.u32 %v9109_v22, %v3847_v32  ;;  %2335 = vst.msk [vmem:[#allocation2 + $0xb8] sm:$0xff] %vm2311_vm12, %v2262_v38 }
 0x4a5   :  { %v3830_v43 = vsel %vm3823_vm8, %v3826_v54, %v3829_v6  ;;  %v3853_v62 = vshrl.u32 %v9110_v14, %v3847_v32  ;;  %v3849_v40 = vshll.u32 %v9108_v31, %v3846_v25  ;;  %v3856_v57 = vshrl.u32 %v9111_v0, %v3847_v32 }
 0x4a6   :  { %v3831_v35 = vsel %vm3820_vm6, nan, %v3830_v43  ;;  %v3707_v3 = vmul.f32 %v3706_v19, %v3704_v16  ;;  %v3998_v45 = vshrl.u32 %v3997_v60, 30  ;;  %v3852_v28 = vshll.u32 %v9109_v22, %v3846_v25 }
 0x4a7   :  { %5718 = vst.msk [vmem:[#allocation2 + $0x68] sm:$0xff] %vm5704_vm10, %v3831_v35  ;;  %v3855_v20 = vshll.u32 %v9110_v14, %v3846_v25  ;;  %v3859_v26 = vshrl.u32 %v9112_v24, %v3847_v32  ;;  %vm3938_vm13 = vcmp.lt.s32.totalorder %v11870_v9, 0  ;;  %v3858_v21 = vshll.u32 %v9111_v0, %v3846_v25 }
 0x4a8   :  { %5751 = vst.msk [vmem:[#allocation2 + $0x68] sm:$0xff] %vm5737_vm14, %v9114_v5  ;;  %v3708_v11 = vxor.u32 2147483648, %v3707_v3  ;;  %v3861_v34 = vshll.u32 %v9112_v24, %v3846_v25  ;;  %v3862_v63 = vshrl.u32 %v9113_v37, %v3847_v32  ;;  %v12079_v30 = vand.u32 3, %v3717_v13 }
 0x4a9   :  { %v3999_v1 = vshll.u32 %v3998_v45, 30  ;;  %v3851_v33 = vor.u32 %v3850_v50, %v3849_v40  ;;  %v3854_v7 = vor.u32 %v3853_v62, %v3852_v28  ;;  %v3857_v52 = vor.u32 %v3856_v57, %v3855_v20 }
 0x4aa   :  { %v3709_v59 = vsel %vm3626_vm2, %v3708_v11, %v3707_v3  ;;  %v3860_v27 = vor.u32 %v3859_v26, %v3858_v21  ;;  %v3863_v39 = vor.u32 %v3862_v63, %v3861_v34  ;;  %v3848_v25 = vshrl.u32 %v9108_v31, %v3847_v32 }
 0x4ab   :  { %v3712_v29 = vsel %vm12018_vm1, %v11795_v49, %v3709_v59  ;;  %v12086_v42 = vsub.s32 %v3996_v55, %v3999_v1  ;;  %v4147_v12 = vand.u32 2139095040, %v12046_v58  ;;  %v4022_v53 = vsub.s32 4, %v3998_v45 }
 0x4ac   :  { %8892 = vcosq.f32 %v3712_v29  ;;  %vm3864_vm0 = vcmp.lt.s32.totalorder %v12059_v48, 1  ;;  %vm3866_vm7 = vcmp.lt.s32.totalorder %v12059_v48, 3  ;;  %vm3867_vm2 = vcmp.lt.s32.totalorder %v12059_v48, 4 }
 0x4ad   :  { %8894 = vsinq.f32 %v3712_v29  ;;  %v4002_v4 = vsub.s32 0, %v12086_v42  ;;  %v3872_v56 = vsel %vm3864_vm0, %v3851_v33, %v3854_v7  ;;  %v3869_v10 = vsel %vm3867_vm2, %v3857_v52, 2102212464  ;;  %v12147_v29 = vld [vmem:[#allocation2 + $0x80] sm:$0xff] }
 0x4ae   :  { %v3873_v2 = vsel %vm3867_vm2, %v3860_v27, 920167782  ;;  %v3876_v51 = vsel %vm3864_vm0, %v3854_v7, %v3857_v52  ;;  %v3877_v18 = vsel %vm3867_vm2, %v3863_v39, 1326507024  ;;  %vm3865_vm1 = vcmp.lt.s32.totalorder %v12059_v48, 2 }
 0x4af   :  { %v8032_v32 = vmin.u32 %v4002_v4, %v12086_v42  ;;  %v3874_v41 = vsel %vm3866_vm7, %v3857_v52, %v3873_v2  ;;  %v3878_v36 = vsel %vm3866_vm7, %v3860_v27, %v3877_v18  ;;  %v3880_v13 = vshll.u32 %v3840_v61, 8 }
 0x4b0   :  { %v3875_v17 = vsel %vm3865_vm1, %v3872_v56, %v3874_v41  ;;  %v3879_v6 = vsel %vm3865_vm1, %v3876_v51, %v3878_v36  ;;  %v4148_v55 = vshrl.u32 %v4147_v12, 23  ;;  %v4023_v16 = vsel %vm3938_vm13, %v4022_v53, %v3998_v45 }
 0x4b1   :  { %v4004_v54 = vclz %v8032_v32  ;;  %v3868_v19 = vsel %vm3864_vm0, %v3848_v25, %v3851_v33  ;;  %v3870_v43 = vsel %vm3866_vm7, %v3854_v7, %v3869_v10  ;;  %vm3716_vm3 = vweird.f32 %v11795_v49 }
 0x4b2   :  { %v12115_v60 = vmul.u32.u64.low %v3880_v13, %v3879_v6  ;;  %v12116_v50 = vmul.u32.u64.high %v3880_v13, %v3879_v6, %v12115_v60  ;;  %v12118_v62 = vmul.u32.u64.low %v3880_v13, %v3875_v17  ;;  %v12119_v35 = vmul.u32.u64.high %v3880_v13, %v3875_v17, %v12118_v62 }
 0x4b3   :  { %vm12125_vm4 = vcmp.le.f32.partialorder %v3936_v23, 0.7853982  ;;  %v8033_v3 = vadd.s32 4294967294, %v4004_v54  ;;  %v8039_v40 = vadd.s32 4294967169, %v4148_v55  ;;  %vm3719_vm5 = vcmp.lt.s32.totalorder %v12079_v30, 2 }
 0x4b4   :  { %vm3720_vm6 = vcmp.eq.s32.totalorder %v12079_v30, 0  ;;  %vm3723_vm8 = vcmp.eq.s32.totalorder %v12079_v30, 2  ;;  %v3871_v57 = vsel %vm3865_vm1, %v3868_v19, %v3870_v43  ;;  %v3992_v45 = vadd.s32 %v12025_v15, %v12036_v8 }
 0x4b5   :  { %vm8034_vm9 = vcmp.lt.s32.totalorder %v8033_v3, 0  ;;  %v4025_v23 = vsel %vm12125_vm4, 0, %v4023_v16  ;;  %v4154_v28 = vadd.s32 1, %v8039_v40  ;;  %vm3889_vm11 = vc.u32 %v12116_v50, %v12118_v62 }
 0x4b6   :  { %v8893_v20 = vpop.eup %8892  ;;  %v4007_v26 = vsel %vm8034_vm9, 0, %v8033_v3  ;;  %v3890_v11 = vadd.s32 1, %v12119_v35  ;;  %v4151_v21 = vand.u32 8388607, %v4144_v47  ;;  %v3887_v15 = vmul.u32 %v3880_v13, %v3871_v57 }
 0x4b7   :  { %v8895_v48 = vpop.eup %8894  ;;  %v3724_v34 = vxor.u32 2147483648, %v8893_v20  ;;  %v4008_v63 = vsub.s32 32, %v4007_v26  ;;  %v4012_v1 = vsub.s32 4294967266, %v4007_v26  ;;  %v4009_v33 = vshll.u32 %v12086_v42, %v4007_v26 }
 0x4b8   :  { %v3721_v8 = vxor.u32 2147483648, %v8895_v48  ;;  %v3891_v7 = vsel %vm3889_vm11, %v3890_v11, %v12119_v35  ;;  %vm4155_vm15 = vcmp.gt.s32.totalorder %v4154_v28, 0  ;;  %v4029_v12 = vadd.s32 3, %v4025_v23 }
 0x4b9   :  { %v3725_v59 = vsel %vm3723_vm8, %v3724_v34, %v8895_v48  ;;  %v4010_v52 = vshrl.u32 %v3992_v45, %v4008_v63  ;;  %v4013_v27 = vadd.s32 127, %v4012_v1  ;;  %v3892_v39 = vadd.s32 %v3891_v7, %v3887_v15 }
 0x4ba   :  { %v3722_v25 = vsel %vm3720_vm6, %v8893_v20, %v3721_v8  ;;  %v4152_v53 = vor.u32 8388608, %v4151_v21  ;;  %v4156_v38 = vsel %vm4155_vm15, %v4154_v28, 0  ;;  %v4043_v18 = vand.u32 2139095040, %v12147_v29 }
 0x4bb   :  { %v3726_v42 = vsel %vm3719_vm5, %v3722_v25, %v3725_v59  ;;  %v4011_v4 = vor.u32 %v4010_v52, %v4009_v33  ;;  %v4014_v56 = vshll.u32 %v4013_v27, 23  ;;  %v3893_v10 = vadd.s32 536870912, %v3892_v39 }
 0x4bc   :  { %v3727_v2 = vsel %vm3716_vm3, nan, %v3726_v42  ;;  %v4158_v51 = vand.u32 31, %v4156_v38  ;;  %v12161_v36 = vand.u32 3, %v4029_v12  ;;  %v4040_v17 = vand.u32 2147483647, %v12147_v29 }
 0x4bd   :  { %5717 = vst.msk [vmem:[#allocation2 + $0x60] sm:$0xff] %vm5704_vm10, %v3727_v2  ;;  %v4015_v32 = vor.u32 4788187, %v4014_v56  ;;  %v12157_v41 = vshrl.u32 %v3893_v10, 30  ;;  %v4018_v13 = vcvt.s32.f32 %v4011_v4  ;;  %v12165_v55 = vshll.u32 %v4152_v53, 8 }
 0x4be   :  { %5750 = vst.msk [vmem:[#allocation2 + $0x60] sm:$0xff] %vm5737_vm14, %v9114_v5  ;;  %v4159_v30 = vsub.s32 32, %v4158_v51  ;;  %v4044_v43 = vshrl.u32 %v4043_v18, 23  ;;  %v4161_v3 = vshll.u32 %v9108_v31, %v4158_v51  ;;  %v3888_v57 = vadd.s32 %v12118_v62, %v12116_v50  ;;  %v2260_v50 = vpop.permute.xlu0 %2259 }
 0x4bf   :  { %v4016_v6 = vand.u32 2147483647, %v4015_v32  ;;  %v3895_v49 = vshll.u32 %v12157_v41, 30  ;;  %v4157_v45 = vshrl.u32 %v4156_v38, 5  ;;  %v4164_v23 = vshll.u32 %v9109_v22, %v4158_v51  ;;  %2334 = vst.msk [vmem:[#allocation2 + $0xb0] sm:$0xff] %vm2311_vm12, %v2260_v50 }
 0x4c0   :  { %v4162_v54 = vshrl.u32 %v9109_v22, %v4159_v30  ;;  %v4165_v16 = vshrl.u32 %v9110_v14, %v4159_v30  ;;  %v4168_v19 = vshrl.u32 %v9111_v0, %v4159_v30  ;;  %v4171_v40 = vshrl.u32 %v9112_v24, %v4159_v30 }
 0x4c1   :  { %v4019_v60 = vmul.f32 %v4018_v13, %v4016_v6  ;;  %v12170_v35 = vsub.s32 %v3892_v39, %v3895_v49  ;;  %v4167_v28 = vshll.u32 %v9110_v14, %v4158_v51  ;;  %v4170_v21 = vshll.u32 %v9111_v0, %v4158_v51 }
 0x4c2   :  { %v4163_v11 = vor.u32 %v4162_v54, %v4161_v3  ;;  %vm3834_vm0 = vcmp.lt.s32.totalorder %v11971_v44, 0  ;;  %v4166_v48 = vor.u32 %v4165_v16, %v4164_v23  ;;  %v4173_v63 = vshll.u32 %v9112_v24, %v4158_v51 }
 0x4c3   :  { %v4020_v20 = vxor.u32 2147483648, %v4019_v60  ;;  %v3898_v26 = vsub.s32 0, %v12170_v35  ;;  %v4169_v34 = vor.u32 %v4168_v19, %v4167_v28  ;;  %v4174_v1 = vshrl.u32 %v9113_v37, %v4159_v30 }
 0x4c4   :  { %v4172_v8 = vor.u32 %v4171_v40, %v4170_v21  ;;  %v8035_v33 = vadd.s32 4294967169, %v4044_v43  ;;  %v3918_v59 = vsub.s32 4, %v12157_v41  ;;  %v4160_v52 = vshrl.u32 %v9108_v31, %v4159_v30 }
 0x4c5   :  { %v4021_v62 = vsel %vm3938_vm13, %v4020_v20, %v4019_v60  ;;  %v8028_v15 = vmin.u32 %v3898_v26, %v12170_v35  ;;  %v4175_v27 = vor.u32 %v4174_v1, %v4173_v63  ;;  %vm4176_vm7 = vcmp.lt.s32.totalorder %v4157_v45, 1  ;;  %v12222_v26 = vld [vmem:[#allocation2 + $0x98] sm:$0xff] }
 0x4c6   :  { %v4024_v7 = vsel %vm12125_vm4, %v11870_v9, %v4021_v62  ;;  %vm4179_vm2 = vcmp.lt.s32.totalorder %v4157_v45, 4  ;;  %vm12194_vm13 = vcmp.le.f32.partialorder %v3832_v46, 0.7853982  ;;  %vm4177_vm1 = vcmp.lt.s32.totalorder %v4157_v45, 2 }
 0x4c7   :  { %8896 = vcosq.f32 %v4024_v7  ;;  %v3900_v39 = vclz %v8028_v15  ;;  %v4181_v12 = vsel %vm4179_vm2, %v4169_v34, 2102212464  ;;  %v4184_v61 = vsel %vm4176_vm7, %v4163_v11, %v4166_v48 }
 0x4c8   :  { %8898 = vsinq.f32 %v4024_v7  ;;  %vm4178_vm3 = vcmp.lt.s32.totalorder %v4157_v45, 3  ;;  %v4185_v38 = vsel %vm4179_vm2, %v4172_v8, 920167782  ;;  %v4188_v42 = vsel %vm4176_vm7, %v4166_v48, %v4169_v34 }
 0x4c9   :  { %v8029_v53 = vadd.s32 4294967294, %v3900_v39  ;;  %v4180_v4 = vsel %vm4176_vm7, %v4160_v52, %v4163_v11  ;;  %v4186_v56 = vsel %vm4178_vm3, %v4169_v34, %v4185_v38  ;;  %v4189_v10 = vsel %vm4179_vm2, %v4175_v27, 1326507024 }
 0x4ca   :  { %v4050_v2 = vadd.s32 1, %v8035_v33  ;;  %v4182_v51 = vsel %vm4178_vm3, %v4166_v48, %v4181_v12  ;;  %v4187_v18 = vsel %vm4177_vm1, %v4184_v61, %v4186_v56  ;;  %v4190_v32 = vsel %vm4178_vm3, %v4172_v8, %v4189_v10 }
 0x4cb   :  { %vm8030_vm4 = vcmp.lt.s32.totalorder %v8029_v53, 0  ;;  %v4191_v30 = vsel %vm4177_vm1, %v4188_v42, %v4190_v32  ;;  %v12201_v6 = vmul.u32.u64.low %v12165_v55, %v4187_v18  ;;  %v12202_v13 = vmul.u32.u64.high %v12165_v55, %v4187_v18, %v12201_v6 }
 0x4cc   :  { %v3903_v46 = vsel %vm8030_vm4, 0, %v8029_v53  ;;  %v3919_v16 = vsel %vm3834_vm0, %v3918_v59, %v12157_v41  ;;  %vm4051_vm5 = vcmp.gt.s32.totalorder %v4050_v2, 0  ;;  %vm4028_vm6 = vweird.f32 %v11870_v9 }
 0x4cd   :  { %v3904_v49 = vsub.s32 32, %v3903_v46  ;;  %v3908_v54 = vsub.s32 4294967266, %v3903_v46  ;;  %v4183_v19 = vsel %vm4177_vm1, %v4180_v4, %v4182_v51  ;;  %v4052_v3 = vsel %vm4051_vm5, %v4050_v2, 0 }
 0x4ce   :  { %v12211_v43 = vmul.u32.u64.low %v12165_v55, %v4191_v30  ;;  %v12212_v60 = vmul.u32.u64.high %v12165_v55, %v4191_v30, %v12211_v43  ;;  %v3905_v40 = vshll.u32 %v12170_v35, %v3903_v46  ;;  %v4054_v20 = vand.u32 31, %v4052_v3 }
 0x4cf   :  { %v3906_v23 = vshrl.u32 %v3888_v57, %v3904_v49  ;;  %v3909_v28 = vadd.s32 127, %v3908_v54  ;;  %vm4031_vm8 = vcmp.lt.s32.totalorder %v12161_v36, 2  ;;  %vm4032_vm9 = vcmp.eq.s32.totalorder %v12161_v36, 0 }
 0x4d0   :  { %v4202_v41 = vadd.s32 1, %v12202_v13  ;;  %v12220_v45 = vand.u32 8388607, %v4040_v17  ;;  %vm4035_vm11 = vcmp.eq.s32.totalorder %v12161_v36, 2  ;;  %v3921_v57 = vsel %vm12194_vm13, 0, %v3919_v16 }
 0x4d1   :  { %v8897_v11 = vpop.eup %8896  ;;  %v3907_v21 = vor.u32 %v3906_v23, %v3905_v40  ;;  %v3910_v35 = vshll.u32 %v3909_v28, 23  ;;  %v4199_v63 = vmul.u32 %v12165_v55, %v4183_v19  ;;  %vm4201_vm15 = vc.u32 %v12212_v60, %v12201_v6 }
 0x4d2   :  { %v8899_v48 = vpop.eup %8898  ;;  %v4036_v34 = vxor.u32 2147483648, %v8897_v11  ;;  %v4055_v1 = vsub.s32 32, %v4054_v20  ;;  %v4203_v15 = vsel %vm4201_vm15, %v4202_v41, %v12202_v13  ;;  %v4352_v8 = vand.u32 2147483647, %v12222_v26 }
 0x4d3   :  { %v4033_v50 = vxor.u32 2147483648, %v8899_v48  ;;  %v3911_v62 = vor.u32 4788187, %v3910_v35  ;;  %v3925_v7 = vadd.s32 3, %v3921_v57  ;;  %v4204_v59 = vadd.s32 %v4203_v15, %v4199_v63  ;;  %v2266_v35 = vpop.permute.xlu1 %2265 }
 0x4d4   :  { %v4037_v33 = vsel %vm4035_vm11, %v4036_v34, %v8899_v48  ;;  %v4048_v52 = vor.u32 8388608, %v12220_v45  ;;  %v3914_v55 = vcvt.s32.f32 %v3907_v21  ;;  %v12235_v12 = vshrl.u32 %v4052_v3, 5  ;;  %2337 = vst.msk [vmem:[#allocation2 + $0xc8] sm:$0xff] %vm2311_vm12, %v2266_v35 }
 0x4d5   :  { %v4034_v27 = vsel %vm4032_vm9, %v8897_v11, %v4033_v50  ;;  %v3912_v39 = vand.u32 2147483647, %v3911_v62  ;;  %v4205_v53 = vadd.s32 536870912, %v4204_v59  ;;  %v4058_v38 = vshrl.u32 %v9109_v22, %v4055_v1 }
 0x4d6   :  { %v4038_v61 = vsel %vm4031_vm8, %v4034_v27, %v4037_v33  ;;  %v4061_v42 = vshrl.u32 %v9110_v14, %v4055_v1  ;;  %v4057_v10 = vshll.u32 %v9108_v31, %v4054_v20  ;;  %v4064_v2 = vshrl.u32 %v9111_v0, %v4055_v1 }
 0x4d7   :  { %v4039_v4 = vsel %vm4028_vm6, nan, %v4038_v61  ;;  %v3915_v56 = vmul.f32 %v3914_v55, %v3912_v39  ;;  %v4206_v51 = vshrl.u32 %v4205_v53, 30  ;;  %v4060_v18 = vshll.u32 %v9109_v22, %v4054_v20 }
 0x4d8   :  { %5720 = vst.msk [vmem:[#allocation2 + $0x78] sm:$0xff] %vm5704_vm10, %v4039_v4  ;;  %v4063_v36 = vshll.u32 %v9110_v14, %v4054_v20  ;;  %v4067_v32 = vshrl.u32 %v9112_v24, %v4055_v1  ;;  %vm4146_vm7 = vcmp.lt.s32.totalorder %v12046_v58, 0  ;;  %v4066_v9 = vshll.u32 %v9111_v0, %v4054_v20 }
 0x4d9   :  { %5753 = vst.msk [vmem:[#allocation2 + $0x78] sm:$0xff] %vm5737_vm14, %v9114_v5  ;;  %v3916_v46 = vxor.u32 2147483648, %v3915_v56  ;;  %v4069_v30 = vshll.u32 %v9112_v24, %v4054_v20  ;;  %v4070_v13 = vshrl.u32 %v9113_v37, %v4055_v1  ;;  %v12255_v49 = vand.u32 3, %v3925_v7 }
 0x4da   :  { %v4207_v54 = vshll.u32 %v4206_v51, 30  ;;  %v4059_v16 = vor.u32 %v4058_v38, %v4057_v10  ;;  %v4062_v19 = vor.u32 %v4061_v42, %v4060_v18  ;;  %v4065_v3 = vor.u32 %v4064_v2, %v4063_v36 }
 0x4db   :  { %v3917_v43 = vsel %vm3834_vm0, %v3916_v46, %v3915_v56  ;;  %v4068_v40 = vor.u32 %v4067_v32, %v4066_v9  ;;  %v4071_v23 = vor.u32 %v4070_v13, %v4069_v30  ;;  %v4056_v20 = vshrl.u32 %v9108_v31, %v4055_v1 }
 0x4dc   :  { %v3920_v28 = vsel %vm12194_vm13, %v11971_v44, %v3917_v43  ;;  %v12262_v41 = vsub.s32 %v4204_v59, %v4207_v54  ;;  %v4355_v45 = vand.u32 2139095040, %v12222_v26  ;;  %v4230_v11 = vsub.s32 4, %v4206_v51 }
 0x4dd   :  { %8900 = vcosq.f32 %v3920_v28  ;;  %vm4072_vm2 = vcmp.lt.s32.totalorder %v12235_v12, 1  ;;  %vm4074_vm1 = vcmp.lt.s32.totalorder %v12235_v12, 3  ;;  %vm4075_vm0 = vcmp.lt.s32.totalorder %v12235_v12, 4 }
 0x4de   :  { %8902 = vsinq.f32 %v3920_v28  ;;  %v4210_v21 = vsub.s32 0, %v12262_v41  ;;  %v4080_v25 = vsel %vm4072_vm2, %v4059_v16, %v4062_v19  ;;  %v4077_v57 = vsel %vm4075_vm0, %v4065_v3, 2102212464  ;;  %v12321_v28 = vld [vmem:[#allocation2 + $0x90] sm:$0xff] }
 0x4df   :  { %v4081_v48 = vsel %vm4075_vm0, %v4068_v40, 920167782  ;;  %v4084_v34 = vsel %vm4072_vm2, %v4062_v19, %v4065_v3  ;;  %v4085_v63 = vsel %vm4075_vm0, %v4071_v23, 1326507024  ;;  %vm4073_vm13 = vcmp.lt.s32.totalorder %v12235_v12, 2 }
 0x4e0   :  { %v8040_v1 = vmin.u32 %v4210_v21, %v12262_v41  ;;  %v4082_v50 = vsel %vm4074_vm1, %v4065_v3, %v4081_v48  ;;  %v4086_v62 = vsel %vm4074_vm1, %v4068_v40, %v4085_v63  ;;  %v4088_v7 = vshll.u32 %v4048_v52, 8 }
 0x4e1   :  { %v4083_v15 = vsel %vm4073_vm13, %v4080_v25, %v4082_v50  ;;  %v4087_v33 = vsel %vm4073_vm13, %v4084_v34, %v4086_v62  ;;  %v4356_v59 = vshrl.u32 %v4355_v45, 23  ;;  %v4231_v39 = vsel %vm4146_vm7, %v4230_v11, %v4206_v51 }
 0x4e2   :  { %v4212_v27 = vclz %v8040_v1  ;;  %v4076_v55 = vsel %vm4072_vm2, %v4056_v20, %v4059_v16  ;;  %v4078_v61 = vsel %vm4074_vm1, %v4062_v19, %v4077_v57  ;;  %vm3924_vm3 = vweird.f32 %v11971_v44 }
 0x4e3   :  { %v12291_v53 = vmul.u32.u64.low %v4088_v7, %v4087_v33  ;;  %v12292_v38 = vmul.u32.u64.high %v4088_v7, %v4087_v33, %v12291_v53  ;;  %v12294_v42 = vmul.u32.u64.low %v4088_v7, %v4083_v15  ;;  %v12295_v4 = vmul.u32.u64.high %v4088_v7, %v4083_v15, %v12294_v42 }
 0x4e4   :  { %vm12300_vm4 = vcmp.le.f32.partialorder %v4144_v47, 0.7853982  ;;  %v8041_v56 = vadd.s32 4294967294, %v4212_v27  ;;  %v8047_v10 = vadd.s32 4294967169, %v4356_v59  ;;  %vm3927_vm5 = vcmp.lt.s32.totalorder %v12255_v49, 2 }
 0x4e5   :  { %vm3928_vm6 = vcmp.eq.s32.totalorder %v12255_v49, 0  ;;  %vm3931_vm8 = vcmp.eq.s32.totalorder %v12255_v49, 2  ;;  %v4079_v2 = vsel %vm4073_vm13, %v4076_v55, %v4078_v61  ;;  %v4200_v51 = vadd.s32 %v12201_v6, %v12212_v60 }
 0x4e6   :  { %vm8042_vm9 = vcmp.lt.s32.totalorder %v8041_v56, 0  ;;  %v4233_v47 = vsel %vm12300_vm4, 0, %v4231_v39  ;;  %v4362_v18 = vadd.s32 1, %v8047_v10  ;;  %vm4097_vm11 = vc.u32 %v12292_v38, %v12294_v42 }
 0x4e7   :  { %v8901_v36 = vpop.eup %8900  ;;  %v4215_v32 = vsel %vm8042_vm9, 0, %v8041_v56  ;;  %v4098_v46 = vadd.s32 1, %v12295_v4  ;;  %v4359_v9 = vand.u32 8388607, %v4352_v8  ;;  %v4095_v16 = vmul.u32 %v4088_v7, %v4079_v2 }
 0x4e8   :  { %v8903_v30 = vpop.eup %8902  ;;  %v3932_v12 = vxor.u32 2147483648, %v8901_v36  ;;  %v4216_v13 = vsub.s32 32, %v4215_v32  ;;  %v4220_v54 = vsub.s32 4294967266, %v4215_v32  ;;  %v4217_v60 = vshll.u32 %v12262_v41, %v4215_v32 }
 0x4e9   :  { %v3929_v6 = vxor.u32 2147483648, %v8903_v30  ;;  %v4099_v19 = vsel %vm4097_vm11, %v4098_v46, %v12295_v4  ;;  %vm4363_vm15 = vcmp.gt.s32.totalorder %v4362_v18, 0  ;;  %v4237_v45 = vadd.s32 3, %v4233_v47 }
 0x4ea   :  { %v3933_v43 = vsel %vm3931_vm8, %v3932_v12, %v8903_v30  ;;  %v4218_v3 = vshrl.u32 %v4200_v51, %v4216_v13  ;;  %v4221_v40 = vadd.s32 127, %v4220_v54  ;;  %v4100_v23 = vadd.s32 %v4099_v19, %v4095_v16  ;;  %v2264_v16 = vpop.permute.xlu0 %2263 }
 0x4eb   :  { %v3930_v20 = vsel %vm3928_vm6, %v8901_v36, %v3929_v6  ;;  %v4360_v11 = vor.u32 8388608, %v4359_v9  ;;  %v4364_v21 = vsel %vm4363_vm15, %v4362_v18, 0  ;;  %v4251_v63 = vand.u32 2139095040, %v12321_v28  ;;  %2336 = vst.msk [vmem:[#allocation2 + $0xc0] sm:$0xff] %vm2311_vm12, %v2264_v16 }
 0x4ec   :  { %v3934_v41 = vsel %vm3927_vm5, %v3930_v20, %v3933_v43  ;;  %v4219_v25 = vor.u32 %v4218_v3, %v4217_v60  ;;  %v4222_v35 = vshll.u32 %v4221_v40, 23  ;;  %v4101_v57 = vadd.s32 536870912, %v4100_v23 }
 0x4ed   :  { %v3935_v48 = vsel %vm3924_vm3, nan, %v3934_v41  ;;  %v4366_v34 = vand.u32 31, %v4364_v21  ;;  %vm4042_vm2 = vcmp.lt.s32.totalorder %v12147_v29, 0  ;;  %v12334_v49 = vand.u32 3, %v4237_v45 }
 0x4ee   :  { %5719 = vst.msk [vmem:[#allocation2 + $0x70] sm:$0xff] %vm5704_vm10, %v3935_v48  ;;  %v4223_v1 = vor.u32 4788187, %v4222_v35  ;;  %v4102_v50 = vshrl.u32 %v4101_v57, 30  ;;  %v12336_v15 = vshll.u32 %v4360_v11, 8  ;;  %v4226_v7 = vcvt.s32.f32 %v4219_v25 }
 0x4ef   :  { %5752 = vst.msk [vmem:[#allocation2 + $0x70] sm:$0xff] %vm5737_vm14, %v9114_v5  ;;  %v4367_v62 = vsub.s32 32, %v4366_v34  ;;  %v4248_v44 = vand.u32 2147483647, %v12321_v28  ;;  %v12340_v59 = vadd.s32 %v12294_v42, %v12292_v38  ;;  %v4252_v53 = vshrl.u32 %v4251_v63, 23 }
 0x4f0   :  { %v4224_v33 = vand.u32 2147483647, %v4223_v1  ;;  %v4103_v27 = vshll.u32 %v4102_v50, 30  ;;  %v4369_v10 = vshll.u32 %v9108_v31, %v4366_v34  ;;  %v4126_v51 = vsub.s32 4, %v4102_v50 }
 0x4f1   :  { %v4370_v39 = vshrl.u32 %v9109_v22, %v4367_v62  ;;  %v4373_v55 = vshrl.u32 %v9110_v14, %v4367_v62  ;;  %v4376_v61 = vshrl.u32 %v9111_v0, %v4367_v62  ;;  %v4379_v2 = vshrl.u32 %v9112_v24, %v4367_v62 }
 0x4f2   :  { %v4227_v4 = vmul.f32 %v4226_v7, %v4224_v33  ;;  %v12345_v56 = vsub.s32 %v4100_v23, %v4103_v27  ;;  %v4365_v47 = vshrl.u32 %v4364_v21, 5  ;;  %v4372_v38 = vshll.u32 %v9109_v22, %v4366_v34 }
 0x4f3   :  { %v4375_v42 = vshll.u32 %v9110_v14, %v4366_v34  ;;  %v4371_v32 = vor.u32 %v4370_v39, %v4369_v10  ;;  %v4378_v46 = vshll.u32 %v9111_v0, %v4366_v34  ;;  %vm12355_vm1 = vcmp.le.f32.partialorder %v4040_v17, 0.7853982 }
 0x4f4   :  { %v4228_v18 = vxor.u32 2147483648, %v4227_v4  ;;  %v4106_v36 = vsub.s32 0, %v12345_v56  ;;  %v4374_v30 = vor.u32 %v4373_v55, %v4372_v38  ;;  %v4381_v13 = vshll.u32 %v9112_v24, %v4366_v34 }
 0x4f5   :  { %v4377_v12 = vor.u32 %v4376_v61, %v4375_v42  ;;  %v4382_v54 = vshrl.u32 %v9113_v37, %v4367_v62  ;;  %v4380_v19 = vor.u32 %v4379_v2, %v4378_v46  ;;  %v8043_v43 = vadd.s32 4294967169, %v4252_v53 }
 0x4f6   :  { %v4229_v6 = vsel %vm4146_vm7, %v4228_v18, %v4227_v4  ;;  %v8036_v60 = vmin.u32 %v4106_v36, %v12345_v56  ;;  %v4127_v3 = vsel %vm4042_vm2, %v4126_v51, %v4102_v50  ;;  %v4368_v40 = vshrl.u32 %v9108_v31, %v4367_v62 }
 0x4f7   :  { %v4232_v17 = vsel %vm12300_vm4, %v12046_v58, %v4229_v6  ;;  %v4383_v23 = vor.u32 %v4382_v54, %v4381_v13  ;;  %vm4384_vm0 = vcmp.lt.s32.totalorder %v4365_v47, 1  ;;  %vm4387_vm7 = vcmp.lt.s32.totalorder %v4365_v47, 4 }
 0x4f8   :  { %8904 = vcosq.f32 %v4232_v17  ;;  %v4108_v20 = vclz %v8036_v60  ;;  %vm4385_vm13 = vcmp.lt.s32.totalorder %v4365_v47, 2  ;;  %v4389_v45 = vsel %vm4387_vm7, %v4377_v12, 2102212464 }
 0x4f9   :  { %8906 = vsinq.f32 %v4232_v17  ;;  %v4392_v11 = vsel %vm4384_vm0, %v4371_v32, %v4374_v30  ;;  %vm4386_vm3 = vcmp.lt.s32.totalorder %v4365_v47, 3  ;;  %v4393_v41 = vsel %vm4387_vm7, %v4380_v19, 920167782 }
 0x4fa   :  { %v8037_v21 = vadd.s32 4294967294, %v4108_v20  ;;  %v4396_v25 = vsel %vm4384_vm0, %v4374_v30, %v4377_v12  ;;  %v4388_v52 = vsel %vm4384_vm0, %v4368_v40, %v4371_v32  ;;  %v4394_v35 = vsel %vm4386_vm3, %v4377_v12, %v4393_v41  ;;  %v12394_v32 = vld [vmem:[#allocation2 + $0xa8] sm:$0xff] }
 0x4fb   :  { %v4397_v57 = vsel %vm4387_vm7, %v4383_v23, 1326507024  ;;  %v4258_v48 = vadd.s32 1, %v8043_v43  ;;  %v4390_v34 = vsel %vm4386_vm3, %v4374_v30, %v4389_v45  ;;  %v4395_v63 = vsel %vm4385_vm13, %v4392_v11, %v4394_v35 }
 0x4fc   :  { %vm8038_vm4 = vcmp.lt.s32.totalorder %v8037_v21, 0  ;;  %v4398_v1 = vsel %vm4386_vm3, %v4380_v19, %v4397_v57  ;;  %v12374_v33 = vmul.u32.u64.low %v12336_v15, %v4395_v63  ;;  %v12375_v7 = vmul.u32.u64.high %v12336_v15, %v4395_v63, %v12374_v33 }
 0x4fd   :  { %v4111_v50 = vsel %vm8038_vm4, 0, %v8037_v21  ;;  %v4399_v62 = vsel %vm4385_vm13, %v4396_v25, %v4398_v1  ;;  %v4129_v55 = vsel %vm12355_vm1, 0, %v4127_v3  ;;  %vm4259_vm5 = vcmp.gt.s32.totalorder %v4258_v48, 0 }
 0x4fe   :  { %v4112_v27 = vsub.s32 32, %v4111_v50  ;;  %v4116_v39 = vsub.s32 4294967266, %v4111_v50  ;;  %vm4236_vm6 = vweird.f32 %v12046_v58  ;;  %v4391_v61 = vsel %vm4385_vm13, %v4388_v52, %v4390_v34 }
 0x4ff   :  { %v12383_v53 = vmul.u32.u64.low %v12336_v15, %v4399_v62  ;;  %v12384_v4 = vmul.u32.u64.high %v12336_v15, %v4399_v62, %v12383_v53  ;;  %v4260_v10 = vsel %vm4259_vm5, %v4258_v48, 0  ;;  %v4113_v2 = vshll.u32 %v12345_v56, %v4111_v50 }
 0x500   :  { %v4114_v51 = vshrl.u32 %v12340_v59, %v4112_v27  ;;  %v4117_v38 = vadd.s32 127, %v4116_v39  ;;  %v4262_v42 = vand.u32 31, %v4260_v10  ;;  %vm4239_vm8 = vcmp.lt.s32.totalorder %v12334_v49, 2 }
 0x501   :  { %v4133_v18 = vadd.s32 3, %v4129_v55  ;;  %v4410_v36 = vadd.s32 1, %v12375_v7  ;;  %v12392_v47 = vand.u32 8388607, %v4248_v44  ;;  %vm4240_vm9 = vcmp.eq.s32.totalorder %v12334_v49, 0 }
 0x502   :  { %v8905_v46 = vpop.eup %8904  ;;  %vm4243_vm11 = vcmp.eq.s32.totalorder %v12334_v49, 2  ;;  %v4115_v56 = vor.u32 %v4114_v51, %v4113_v2  ;;  %v4118_v59 = vshll.u32 %v4117_v38, 23  ;;  %v4407_v13 = vmul.u32 %v12336_v15, %v4391_v61 }
 0x503   :  { %v8907_v30 = vpop.eup %8906  ;;  %v4244_v12 = vxor.u32 2147483648, %v8905_v46  ;;  %vm4409_vm15 = vc.u32 %v12384_v4, %v12374_v33  ;;  %v4263_v54 = vsub.s32 32, %v4262_v42  ;;  %v4560_v19 = vand.u32 2147483647, %v12394_v32 }
 0x504   :  { %v4241_v16 = vxor.u32 2147483648, %v8907_v30  ;;  %v4119_v6 = vor.u32 4788187, %v4118_v59  ;;  %v4411_v60 = vsel %vm4409_vm15, %v4410_v36, %v12375_v7  ;;  %v12403_v17 = vand.u32 3, %v4133_v18 }
 0x505   :  { %v4245_v43 = vsel %vm4243_vm11, %v4244_v12, %v8907_v30  ;;  %v4412_v3 = vadd.s32 %v4411_v60, %v4407_v13  ;;  %v4256_v40 = vor.u32 8388608, %v12392_v47  ;;  %v4122_v20 = vcvt.s32.f32 %v4115_v56 }
 0x506   :  { %v4242_v23 = vsel %vm4240_vm9, %v8905_v46, %v4241_v16  ;;  %v4120_v15 = vand.u32 2147483647, %v4119_v6  ;;  %vm4354_vm0 = vcmp.lt.s32.totalorder %v12222_v26, 0  ;;  %v12409_v45 = vshrl.u32 %v4260_v10, 5 }
 0x507   :  { %v4246_v11 = vsel %vm4239_vm8, %v4242_v23, %v4245_v43  ;;  %v4413_v21 = vadd.s32 536870912, %v4412_v3  ;;  %v4266_v41 = vshrl.u32 %v9109_v22, %v4263_v54  ;;  %v4269_v25 = vshrl.u32 %v9110_v14, %v4263_v54 }
 0x508   :  { %v4247_v52 = vsel %vm4236_vm6, nan, %v4246_v11  ;;  %v4123_v35 = vmul.f32 %v4122_v20, %v4120_v15  ;;  %v4265_v57 = vshll.u32 %v9108_v31, %v4262_v42  ;;  %v4272_v48 = vshrl.u32 %v9111_v0, %v4263_v54 }
 0x509   :  { %5722 = vst.msk [vmem:[#allocation2 + $0x88] sm:$0xff] %vm5704_vm10, %v4247_v52  ;;  %v4414_v34 = vshrl.u32 %v4413_v21, 30  ;;  %v4268_v63 = vshll.u32 %v9109_v22, %v4262_v42  ;;  %v4271_v49 = vshll.u32 %v9110_v14, %v4262_v42  ;;  %v4275_v1 = vshrl.u32 %v9112_v24, %v4263_v54 }
 0x50a   :  { %5755 = vst.msk [vmem:[#allocation2 + $0x88] sm:$0xff] %vm5737_vm14, %v9114_v5  ;;  %v4124_v50 = vxor.u32 2147483648, %v4123_v35  ;;  %vm12427_vm7 = vcmp.le.f32.partialorder %v4352_v8, 0.7853982  ;;  %v4274_v62 = vshll.u32 %v9111_v0, %v4262_v42  ;;  %v4277_v7 = vshll.u32 %v9112_v24, %v4262_v42 }
 0x50b   :  { %v4278_v27 = vshrl.u32 %v9113_v37, %v4263_v54  ;;  %v4415_v39 = vshll.u32 %v4414_v34, 30  ;;  %v4438_v55 = vsub.s32 4, %v4414_v34  ;;  %v4267_v61 = vor.u32 %v4266_v41, %v4265_v57 }
 0x50c   :  { %v4270_v53 = vor.u32 %v4269_v25, %v4268_v63  ;;  %v4125_v10 = vsel %vm4042_vm2, %v4124_v50, %v4123_v35  ;;  %v4273_v2 = vor.u32 %v4272_v48, %v4271_v49  ;;  %v4276_v51 = vor.u32 %v4275_v1, %v4274_v62  ;;  %v2270_v48 = vpop.permute.xlu1 %2269 }
 0x50d   :  { %v4279_v38 = vor.u32 %v4278_v27, %v4277_v7  ;;  %v4128_v8 = vsel %vm12355_vm1, %v12147_v29, %v4125_v10  ;;  %v12439_v18 = vsub.s32 %v4412_v3, %v4415_v39  ;;  %v4264_v42 = vshrl.u32 %v9108_v31, %v4263_v54  ;;  %2339 = vst.msk [vmem:[#allocation2 + $0xd8] sm:$0xff] %vm2311_vm12, %v2270_v48 }
 0x50e   :  { %v4563_v36 = vand.u32 2139095040, %v12394_v32  ;;  %8908 = vcosq.f32 %v4128_v8  ;;  %vm4280_vm13 = vcmp.lt.s32.totalorder %v12409_v45, 1  ;;  %vm4282_vm3 = vcmp.lt.s32.totalorder %v12409_v45, 3 }
 0x50f   :  { %vm4283_vm2 = vcmp.lt.s32.totalorder %v12409_v45, 4  ;;  %8910 = vsinq.f32 %v4128_v8  ;;  %v4418_v47 = vsub.s32 0, %v12439_v18  ;;  %v4439_v9 = vsel %vm4354_vm0, %v4438_v55, %v4414_v34 }
 0x510   :  { %v4288_v46 = vsel %vm4280_vm13, %v4267_v61, %v4270_v53  ;;  %v4285_v56 = vsel %vm4283_vm2, %v4273_v2, 2102212464  ;;  %v4289_v59 = vsel %vm4283_vm2, %v4276_v51, 920167782  ;;  %v4292_v30 = vsel %vm4280_vm13, %v4270_v53, %v4273_v2 }
 0x511   :  { %v4293_v12 = vsel %vm4283_vm2, %v4279_v38, 1326507024  ;;  %v8048_v13 = vmin.u32 %v4418_v47, %v12439_v18  ;;  %vm4281_vm1 = vcmp.lt.s32.totalorder %v12409_v45, 2  ;;  %v4290_v54 = vsel %vm4282_vm3, %v4273_v2, %v4289_v59 }
 0x512   :  { %v4294_v16 = vsel %vm4282_vm3, %v4276_v51, %v4293_v12  ;;  %v4291_v6 = vsel %vm4281_vm1, %v4288_v46, %v4290_v54  ;;  %v4296_v43 = vshll.u32 %v4256_v40, 8  ;;  %v4564_v3 = vshrl.u32 %v4563_v36, 23 }
 0x513   :  { %v4295_v60 = vsel %vm4281_vm1, %v4292_v30, %v4294_v16  ;;  %v4420_v23 = vclz %v8048_v13  ;;  %v4441_v15 = vsel %vm12427_vm7, 0, %v4439_v9  ;;  %v4284_v20 = vsel %vm4280_vm13, %v4264_v42, %v4267_v61 }
 0x514   :  { %v4286_v11 = vsel %vm4282_vm3, %v4270_v53, %v4285_v56  ;;  %v12469_v21 = vmul.u32.u64.low %v4296_v43, %v4295_v60  ;;  %v12470_v41 = vmul.u32.u64.high %v4296_v43, %v4295_v60, %v12469_v21  ;;  %vm4132_vm4 = vweird.f32 %v12147_v29 }
 0x515   :  { %v12472_v25 = vmul.u32.u64.low %v4296_v43, %v4291_v6  ;;  %v12473_v52 = vmul.u32.u64.high %v4296_v43, %v4291_v6, %v12472_v25  ;;  %v8049_v40 = vadd.s32 4294967294, %v4420_v23  ;;  %v8055_v35 = vadd.s32 4294967169, %v4564_v3 }
 0x516   :  { %vm4135_vm5 = vcmp.lt.s32.totalorder %v12403_v17, 2  ;;  %vm4136_vm6 = vcmp.eq.s32.totalorder %v12403_v17, 0  ;;  %vm4139_vm8 = vcmp.eq.s32.totalorder %v12403_v17, 2  ;;  %v4287_v57 = vsel %vm4281_vm1, %v4284_v20, %v4286_v11 }
 0x517   :  { %v4408_v34 = vadd.s32 %v12374_v33, %v12384_v4  ;;  %vm8050_vm9 = vcmp.lt.s32.totalorder %v8049_v40, 0  ;;  %v4445_v63 = vadd.s32 3, %v4441_v15  ;;  %v4570_v49 = vadd.s32 1, %v8055_v35  ;;  %v12488_v33 = vld [vmem:[#allocation2 + $0xa0] sm:$0xff] }
 0x518   :  { %v8909_v1 = vpop.eup %8908  ;;  %v4423_v50 = vsel %vm8050_vm9, 0, %v8049_v40  ;;  %vm4305_vm11 = vc.u32 %v12470_v41, %v12472_v25  ;;  %v4306_v62 = vadd.s32 1, %v12473_v52  ;;  %v4567_v7 = vand.u32 8388607, %v4560_v19 }
 0x519   :  { %v8911_v45 = vpop.eup %8910  ;;  %v4140_v27 = vxor.u32 2147483648, %v8909_v1  ;;  %v4424_v39 = vsub.s32 32, %v4423_v50  ;;  %v4428_v55 = vsub.s32 4294967266, %v4423_v50  ;;  %v4303_v61 = vmul.u32 %v4296_v43, %v4287_v57 }
 0x51a   :  { %v4137_v4 = vxor.u32 2147483648, %v8911_v45  ;;  %v4425_v53 = vshll.u32 %v12439_v18, %v4423_v50  ;;  %v4307_v10 = vsel %vm4305_vm11, %v4306_v62, %v12473_v52  ;;  %vm4571_vm15 = vcmp.gt.s32.totalorder %v4570_v49, 0 }
 0x51b   :  { %v4141_v2 = vsel %vm4139_vm8, %v4140_v27, %v8911_v45  ;;  %v4426_v51 = vshrl.u32 %v4408_v34, %v4424_v39  ;;  %v4429_v38 = vadd.s32 127, %v4428_v55  ;;  %v4308_v8 = vadd.s32 %v4307_v10, %v4303_v61  ;;  %v2268_v61 = vpop.permute.xlu0 %2267 }
 0x51c   :  { %v4138_v42 = vsel %vm4136_vm6, %v8909_v1, %v4137_v4  ;;  %v4568_v36 = vor.u32 8388608, %v4567_v7  ;;  %v4572_v47 = vsel %vm4571_vm15, %v4570_v49, 0  ;;  %v4459_v9 = vand.u32 2139095040, %v12488_v33  ;;  %2338 = vst.msk [vmem:[#allocation2 + $0xd0] sm:$0xff] %vm2311_vm12, %v2268_v61 }
 0x51d   :  { %v4142_v46 = vsel %vm4135_vm5, %v4138_v42, %v4141_v2  ;;  %v4427_v18 = vor.u32 %v4426_v51, %v4425_v53  ;;  %v4430_v56 = vshll.u32 %v4429_v38, 23  ;;  %v4309_v59 = vadd.s32 536870912, %v4308_v8 }
 0x51e   :  { %v4143_v30 = vsel %vm4132_vm4, nan, %v4142_v46  ;;  %vm4250_vm13 = vcmp.lt.s32.totalorder %v12321_v28, 0  ;;  %v4574_v12 = vand.u32 31, %v4572_v47  ;;  %v4456_v13 = vand.u32 2147483647, %v12488_v33 }
 0x51f   :  { %5721 = vst.msk [vmem:[#allocation2 + $0x80] sm:$0xff] %vm5704_vm10, %v4143_v30  ;;  %v4431_v54 = vor.u32 4788187, %v4430_v56  ;;  %v12504_v16 = vand.u32 3, %v4445_v63  ;;  %vm12508_vm3 = vcmp.le.f32.partialorder %v4248_v44, 0.7853982  ;;  %v12515_v29 = vadd.s32 %v12472_v25, %v12470_v41 }
 0x520   :  { %v4310_v6 = vshrl.u32 %v4309_v59, 30  ;;  %5754 = vst.msk [vmem:[#allocation2 + $0x80] sm:$0xff] %vm5737_vm14, %v9114_v5  ;;  %v4575_v60 = vsub.s32 32, %v4574_v12  ;;  %v12517_v43 = vshll.u32 %v4568_v36, 8  ;;  %v4460_v3 = vshrl.u32 %v4459_v9, 23 }
 0x521   :  { %v4432_v23 = vand.u32 2147483647, %v4431_v54  ;;  %v4434_v15 = vcvt.s32.f32 %v4427_v18  ;;  %v12524_v40 = vand.u32 8388607, %v4456_v13  ;;  %v4577_v35 = vshll.u32 %v9108_v31, %v4574_v12 }
 0x522   :  { %v4311_v20 = vshll.u32 %v4310_v6, 30  ;;  %v4334_v11 = vsub.s32 4, %v4310_v6  ;;  %v4578_v44 = vshrl.u32 %v9109_v22, %v4575_v60  ;;  %v4581_v21 = vshrl.u32 %v9110_v14, %v4575_v60 }
 0x523   :  { %v4584_v52 = vshrl.u32 %v9111_v0, %v4575_v60  ;;  %v4435_v41 = vmul.f32 %v4434_v15, %v4432_v23  ;;  %v4587_v57 = vshrl.u32 %v9112_v24, %v4575_v60  ;;  %v4573_v48 = vshrl.u32 %v4572_v47, 5 }
 0x524   :  { %v12526_v25 = vsub.s32 %v4308_v8, %v4311_v20  ;;  %v4580_v34 = vshll.u32 %v9109_v22, %v4574_v12  ;;  %v4583_v63 = vshll.u32 %v9110_v14, %v4574_v12  ;;  %v4586_v49 = vshll.u32 %v9111_v0, %v4574_v12 }
 0x525   :  { %v4436_v1 = vxor.u32 2147483648, %v4435_v41  ;;  %v4335_v62 = vsel %vm4250_vm13, %v4334_v11, %v4310_v6  ;;  %v4579_v7 = vor.u32 %v4578_v44, %v4577_v35  ;;  %v4589_v39 = vshll.u32 %v9112_v24, %v4574_v12 }
 0x526   :  { %v4314_v50 = vsub.s32 0, %v12526_v25  ;;  %v4582_v45 = vor.u32 %v4581_v21, %v4580_v34  ;;  %v4585_v27 = vor.u32 %v4584_v52, %v4583_v63  ;;  %v4590_v55 = vshrl.u32 %v9113_v37, %v4575_v60  ;;  %v12561_v34 = vld [vmem:[#allocation2 + $0xb8] sm:$0xff] }
 0x527   :  { %v4437_v4 = vsel %vm4354_vm0, %v4436_v1, %v4435_v41  ;;  %v4588_v10 = vor.u32 %v4587_v57, %v4586_v49  ;;  %v8051_v2 = vadd.s32 4294967169, %v4460_v3  ;;  %v4337_v38 = vsel %vm12508_vm3, 0, %v4335_v62 }
 0x528   :  { %v8044_v53 = vmin.u32 %v4314_v50, %v12526_v25  ;;  %v4440_v51 = vsel %vm12427_vm7, %v12222_v26, %v4437_v4  ;;  %v4576_v8 = vshrl.u32 %v9108_v31, %v4575_v60  ;;  %v4591_v42 = vor.u32 %v4590_v55, %v4589_v39 }
 0x529   :  { %8912 = vcosq.f32 %v4440_v51  ;;  %vm4592_vm2 = vcmp.lt.s32.totalorder %v4573_v48, 1  ;;  %vm4595_vm0 = vcmp.lt.s32.totalorder %v4573_v48, 4  ;;  %vm4593_vm1 = vcmp.lt.s32.totalorder %v4573_v48, 2 }
 0x52a   :  { %v4316_v36 = vclz %v8044_v53  ;;  %8914 = vsinq.f32 %v4440_v51  ;;  %v4597_v47 = vsel %vm4595_vm0, %v4585_v27, 2102212464  ;;  %v4600_v9 = vsel %vm4592_vm2, %v4579_v7, %v4582_v45 }
 0x52b   :  { %vm4594_vm4 = vcmp.lt.s32.totalorder %v4573_v48, 3  ;;  %v4601_v18 = vsel %vm4595_vm0, %v4588_v10, 920167782  ;;  %v4604_v56 = vsel %vm4592_vm2, %v4582_v45, %v4585_v27  ;;  %v4596_v58 = vsel %vm4592_vm2, %v4576_v8, %v4579_v7 }
 0x52c   :  { %v8045_v46 = vadd.s32 4294967294, %v4316_v36  ;;  %v4602_v59 = vsel %vm4594_vm4, %v4585_v27, %v4601_v18  ;;  %v4605_v30 = vsel %vm4595_vm0, %v4591_v42, 1326507024  ;;  %v4466_v12 = vadd.s32 1, %v8051_v2 }
 0x52d   :  { %v4598_v54 = vsel %vm4594_vm4, %v4582_v45, %v4597_v47  ;;  %v4603_v6 = vsel %vm4593_vm1, %v4600_v9, %v4602_v59  ;;  %v4606_v60 = vsel %vm4594_vm4, %v4588_v10, %v4605_v30  ;;  %v4341_v21 = vadd.s32 3, %v4337_v38 }
 0x52e   :  { %vm8046_vm7 = vcmp.lt.s32.totalorder %v8045_v46, 0  ;;  %v4607_v23 = vsel %vm4593_vm1, %v4604_v56, %v4606_v60  ;;  %v12551_v15 = vmul.u32.u64.low %v12517_v43, %v4603_v6  ;;  %v12552_v20 = vmul.u32.u64.high %v12517_v43, %v4603_v6, %v12551_v15 }
 0x52f   :  { %v4319_v3 = vsel %vm8046_vm7, 0, %v8045_v46  ;;  %vm4467_vm5 = vcmp.gt.s32.totalorder %v4466_v12, 0  ;;  %vm4444_vm6 = vweird.f32 %v12222_v26  ;;  %v4599_v52 = vsel %vm4593_vm1, %v4596_v58, %v4598_v54 }
 0x530   :  { %v4320_v11 = vsub.s32 32, %v4319_v3  ;;  %v4324_v44 = vsub.s32 4294967266, %v4319_v3  ;;  %v12558_v41 = vmul.u32.u64.low %v12517_v43, %v4607_v23  ;;  %v12559_v35 = vmul.u32.u64.high %v12517_v43, %v4607_v23, %v12558_v41 }
 0x531   :  { %v4468_v57 = vsel %vm4467_vm5, %v4466_v12, 0  ;;  %v4321_v63 = vshll.u32 %v12526_v25, %v4319_v3  ;;  %vm4447_vm8 = vcmp.lt.s32.totalorder %v12504_v16, 2  ;;  %vm4448_vm9 = vcmp.eq.s32.totalorder %v12504_v16, 0 }
 0x532   :  { %v4322_v49 = vshrl.u32 %v12515_v29, %v4320_v11  ;;  %v4325_v1 = vadd.s32 127, %v4324_v44  ;;  %v4470_v50 = vand.u32 31, %v4468_v57  ;;  %vm4451_vm11 = vcmp.eq.s32.totalorder %v12504_v16, 2 }
 0x533   :  { %v4618_v48 = vadd.s32 1, %v12552_v20  ;;  %v8913_v62 = vpop.eup %8912  ;;  %v4768_v39 = vand.u32 2147483647, %v12561_v34  ;;  %v4615_v29 = vmul.u32 %v12517_v43, %v4599_v52  ;;  %vm4617_vm15 = vc.u32 %v12559_v35, %v12551_v15 }
 0x534   :  { %v4323_v7 = vor.u32 %v4322_v49, %v4321_v63  ;;  %v4326_v45 = vshll.u32 %v4325_v1, 23  ;;  %v4471_v27 = vsub.s32 32, %v4470_v50  ;;  %v8915_v55 = vpop.eup %8914  ;;  %v4452_v25 = vxor.u32 2147483648, %v8913_v62 }
 0x535   :  { %v4464_v61 = vor.u32 8388608, %v12524_v40  ;;  %v4449_v4 = vxor.u32 2147483648, %v8915_v55  ;;  %v12574_v10 = vand.u32 3, %v4341_v21  ;;  %v4619_v2 = vsel %vm4617_vm15, %v4618_v48, %v12552_v20 }
 0x536   :  { %v4327_v53 = vor.u32 4788187, %v4326_v45  ;;  %v4453_v51 = vsel %vm4451_vm11, %v4452_v25, %v8915_v55  ;;  %v4620_v38 = vadd.s32 %v4619_v2, %v4615_v29  ;;  %v4473_v8 = vshll.u32 %v9108_v31, %v4470_v50 }
 0x537   :  { %v4474_v42 = vshrl.u32 %v9109_v22, %v4471_v27  ;;  %v4450_v43 = vsel %vm4448_vm9, %v8913_v62, %v4449_v4  ;;  %v4330_v47 = vcvt.s32.f32 %v4323_v7  ;;  %vm4562_vm2 = vcmp.lt.s32.totalorder %v12394_v32, 0 }
 0x538   :  { %v4328_v36 = vand.u32 2147483647, %v4327_v53  ;;  %v4477_v9 = vshrl.u32 %v9110_v14, %v4471_v27  ;;  %v4454_v46 = vsel %vm4447_vm8, %v4450_v43, %v4453_v51  ;;  %v4621_v18 = vadd.s32 536870912, %v4620_v38 }
 0x539   :  { %v4479_v56 = vshll.u32 %v9110_v14, %v4470_v50  ;;  %v4480_v58 = vshrl.u32 %v9111_v0, %v4471_v27  ;;  %v4455_v59 = vsel %vm4444_vm6, nan, %v4454_v46  ;;  %v4469_v12 = vshrl.u32 %v4468_v57, 5 }
 0x53a   :  { %v4331_v30 = vmul.f32 %v4330_v47, %v4328_v36  ;;  %v4476_v54 = vshll.u32 %v9109_v22, %v4470_v50  ;;  %5724 = vst.msk [vmem:[#allocation2 + $0x98] sm:$0xff] %vm5704_vm10, %v4455_v59  ;;  %v4622_v6 = vshrl.u32 %v4621_v18, 30  ;;  %v4475_v60 = vor.u32 %v4474_v42, %v4473_v8 }
 0x53b   :  { %v4481_v3 = vor.u32 %v4480_v58, %v4479_v56  ;;  %v4483_v16 = vshrl.u32 %v9112_v24, %v4471_v27  ;;  %5757 = vst.msk [vmem:[#allocation2 + $0x98] sm:$0xff] %vm5737_vm14, %v9114_v5  ;;  %vm12598_vm0 = vcmp.le.f32.partialorder %v4560_v19, 0.7853982  ;;  %v4482_v20 = vshll.u32 %v9111_v0, %v4470_v50 }
 0x53c   :  { %v4332_v23 = vxor.u32 2147483648, %v4331_v30  ;;  %v4485_v11 = vshll.u32 %v9112_v24, %v4470_v50  ;;  %v4486_v44 = vshrl.u32 %v9113_v37, %v4471_v27  ;;  %v4623_v21 = vshll.u32 %v4622_v6, 30 }
 0x53d   :  { %v4646_v52 = vsub.s32 4, %v4622_v6  ;;  %v4472_v41 = vshrl.u32 %v9108_v31, %v4471_v27  ;;  %v4478_v57 = vor.u32 %v4477_v9, %v4476_v54  ;;  %v4484_v49 = vor.u32 %v4483_v16, %v4482_v20 }
 0x53e   :  { %v4333_v63 = vsel %vm4250_vm13, %v4332_v23, %v4331_v30  ;;  %v4487_v1 = vor.u32 %v4486_v44, %v4485_v11  ;;  %vm4491_vm1 = vcmp.lt.s32.totalorder %v4469_v12, 4  ;;  %v12611_v48 = vsub.s32 %v4620_v38, %v4623_v21 }
 0x53f   :  { %v4336_v19 = vsel %vm12508_vm3, %v12321_v28, %v4333_v63  ;;  %vm4488_vm4 = vcmp.lt.s32.totalorder %v4469_v12, 1  ;;  %v4493_v50 = vsel %vm4491_vm1, %v4481_v3, 2102212464  ;;  %vm4490_vm7 = vcmp.lt.s32.totalorder %v4469_v12, 3 }
 0x540   :  { %8916 = vcosq.f32 %v4336_v19  ;;  %v4492_v62 = vsel %vm4488_vm4, %v4472_v41, %v4475_v60  ;;  %v4771_v7 = vand.u32 2139095040, %v12561_v34  ;;  %v4626_v45 = vsub.s32 0, %v12611_v48 }
 0x541   :  { %8918 = vsinq.f32 %v4336_v19  ;;  %v4647_v27 = vsel %vm4562_vm2, %v4646_v52, %v4622_v6  ;;  %v4496_v55 = vsel %vm4488_vm4, %v4475_v60, %v4478_v57  ;;  %v4494_v25 = vsel %vm4490_vm7, %v4478_v57, %v4493_v50  ;;  %v8814_v50 = vld [vmem:[%s14008_s4] sm:$0xff]  }
 0x542   :  { %v4497_v17 = vsel %vm4491_vm1, %v4484_v49, 920167782  ;;  %v4500_v29 = vsel %vm4488_vm4, %v4478_v57, %v4481_v3  ;;  %v4501_v4 = vsel %vm4491_vm1, %v4487_v1, 1326507024  ;;  %v8056_v53 = vmin.u32 %v4626_v45, %v12611_v48  ;;  %8380 = vmatprep.subr.bf16.mxu0 %v8814_v50 }
 0x543   :  { %vm4489_vm13 = vcmp.lt.s32.totalorder %v4469_v12, 2  ;;  %v4498_v2 = vsel %vm4490_vm7, %v4481_v3, %v4497_v17  ;;  %v4502_v51 = vsel %vm4490_vm7, %v4484_v49, %v4501_v4  ;;  %v4504_v42 = vshll.u32 %v4464_v61, 8  ;;  %v12639_v61 = vld [vmem:[#allocation2 + $0xb0] sm:$0xff]  ;;  %8381 = vmatpush3.bf16.msra.mxu0 %v8814_v50 }
 0x544   :  { %v4499_v38 = vsel %vm4489_vm13, %v4496_v55, %v4498_v2  ;;  %v4503_v8 = vsel %vm4489_vm13, %v4500_v29, %v4502_v51  ;;  %v4772_v43 = vshrl.u32 %v4771_v7, 23  ;;  %v4628_v36 = vclz %v8056_v53 }
 0x545   :  { %v4649_v47 = vsel %vm12598_vm0, 0, %v4647_v27  ;;  %v4495_v9 = vsel %vm4489_vm13, %v4492_v62, %v4494_v25  ;;  %v4775_v46 = vand.u32 8388607, %v4768_v39  ;;  %vm4340_vm3 = vweird.f32 %v12321_v28  ;;  %v8815_v28 = vld [vmem:[%s14008_s4 + $0x8] sm:$0xff]  }
 0x546   :  { %v12627_v18 = vmul.u32.u64.low %v4504_v42, %v4503_v8  ;;  %v12628_v56 = vmul.u32.u64.high %v4504_v42, %v4503_v8, %v12627_v18  ;;  %v12630_v58 = vmul.u32.u64.low %v4504_v42, %v4499_v38  ;;  %v12631_v59 = vmul.u32.u64.high %v4504_v42, %v4499_v38, %v12630_v58  ;;  %8382 = vmatprep.subr.bf16.mxu0 %v8815_v28 }
 0x547   :  { %v8057_v30 = vadd.s32 4294967294, %v4628_v36  ;;  %v8063_v12 = vadd.s32 4294967169, %v4772_v43  ;;  %vm4344_vm5 = vcmp.eq.s32.totalorder %v12574_v10, 0  ;;  %vm4347_vm6 = vcmp.eq.s32.totalorder %v12574_v10, 2  ;;  %8383 = vmatpush3.bf16.msra.mxu0 %v8815_v28 }
 0x548   :  { %v4616_v40 = vadd.s32 %v12551_v15, %v12559_v35  ;;  %v4653_v54 = vadd.s32 3, %v4649_v47  ;;  %v4511_v6 = vmul.u32 %v4504_v42, %v4495_v9  ;;  %vm4513_vm9 = vc.u32 %v12628_v56, %v12630_v58 }
 0x549   :  { %vm8058_vm8 = vcmp.lt.s32.totalorder %v8057_v30, 0  ;;  %v4778_v60 = vadd.s32 1, %v8063_v12  ;;  %v4514_v23 = vadd.s32 1, %v12631_v59  ;;  %v4776_v20 = vor.u32 8388608, %v4775_v46 }
 0x54a   :  { %v8917_v3 = vpop.eup %8916  ;;  %v4631_v16 = vsel %vm8058_vm8, 0, %v8057_v30  ;;  %v4667_v15 = vand.u32 2139095040, %v12639_v61  ;;  %vm4343_vm15 = vcmp.lt.s32.totalorder %v12574_v10, 2  ;;  %v12655_v7 = vand.u32 3, %v4653_v54  ;;  %v8816_v54 = vld [vmem:[%s14008_s4 + $0x10] sm:$0xff]  }
 0x54b   :  { %v8919_v11 = vpop.eup %8918  ;;  %v4348_v44 = vxor.u32 2147483648, %v8917_v3  ;;  %v4632_v21 = vsub.s32 32, %v4631_v16  ;;  %v4636_v52 = vsub.s32 4294967266, %v4631_v16  ;;  %v4633_v41 = vshll.u32 %v12611_v48, %v4631_v16  ;;  %8384 = vmatprep.subr.bf16.mxu0 %v8816_v54 }
 0x54c   :  { %v4345_v35 = vxor.u32 2147483648, %v8919_v11  ;;  %v4515_v57 = vsel %vm4513_vm9, %v4514_v23, %v12631_v59  ;;  %vm4779_vm11 = vcmp.gt.s32.totalorder %v4778_v60, 0  ;;  %vm4458_vm1 = vcmp.lt.s32.totalorder %v12488_v33, 0  ;;  %8385 = vmatpush3.bf16.msra.mxu0 %v8816_v54 }
 0x54d   :  { %v4349_v63 = vsel %vm4347_vm6, %v4348_v44, %v8919_v11  ;;  %v4634_v49 = vshrl.u32 %v4616_v40, %v4632_v21  ;;  %v4637_v1 = vadd.s32 127, %v4636_v52  ;;  %v4516_v19 = vadd.s32 %v4515_v57, %v4511_v6 }
 0x54e   :  { %v4346_v62 = vsel %vm4344_vm5, %v8917_v3, %v4345_v35  ;;  %v4780_v48 = vsel %vm4779_vm11, %v4778_v60, 0  ;;  %v4664_v4 = vand.u32 2147483647, %v12639_v61  ;;  %vm12664_vm4 = vcmp.le.f32.partialorder %v4456_v13, 0.7853982 }
 0x54f   :  { %v4350_v45 = vsel %vm4343_vm15, %v4346_v62, %v4349_v63  ;;  %v4635_v27 = vor.u32 %v4634_v49, %v4633_v41  ;;  %v4638_v55 = vshll.u32 %v4637_v1, 23  ;;  %v4517_v25 = vadd.s32 536870912, %v4516_v19  ;;  %v8817_v1 = vld [vmem:[%s14008_s4 + $0x18] sm:$0xff]  }
 0x550   :  { %v4351_v17 = vsel %vm4340_vm3, nan, %v4350_v45  ;;  %v4782_v29 = vand.u32 31, %v4780_v48  ;;  %v12668_v51 = vshll.u32 %v4776_v20, 8  ;;  %v4668_v38 = vshrl.u32 %v4667_v15, 23  ;;  %8386 = vmatprep.subr.bf16.mxu0 %v8817_v1 }
 0x551   :  { %5723 = vst.msk [vmem:[#allocation2 + $0x90] sm:$0xff] %vm5704_vm10, %v4351_v17  ;;  %v4639_v10 = vor.u32 4788187, %v4638_v55  ;;  %v4518_v2 = vshrl.u32 %v4517_v25, 30  ;;  %v12675_v8 = vshrl.u32 %v4780_v48, 5  ;;  %v4642_v36 = vcvt.s32.f32 %v4635_v27  ;;  %8387 = vmatpush3.bf16.msra.mxu0 %v8817_v1  ;;  %v8818_v17 = vld [vmem:[%s14008_s4 + $0x20] sm:$0xff]  }
 0x552   :  { %5756 = vst.msk [vmem:[#allocation2 + $0x90] sm:$0xff] %vm5737_vm14, %v9114_v5  ;;  %v4783_v42 = vsub.s32 32, %v4782_v29  ;;  %v4785_v12 = vshll.u32 %v9108_v31, %v4782_v29  ;;  %v4788_v6 = vshll.u32 %v9109_v22, %v4782_v29  ;;  %v4791_v60 = vshll.u32 %v9110_v14, %v4782_v29  ;;  %8388 = vmatprep.subr.bf16.mxu0 %v8818_v17 }
 0x553   :  { %v4640_v43 = vand.u32 2147483647, %v4639_v10  ;;  %v4519_v13 = vshll.u32 %v4518_v2, 30  ;;  %v4542_v47 = vsub.s32 4, %v4518_v2  ;;  %v4794_v3 = vshll.u32 %v9111_v0, %v4782_v29 }
 0x554   :  { %v4786_v9 = vshrl.u32 %v9109_v22, %v4783_v42  ;;  %v4789_v46 = vshrl.u32 %v9110_v14, %v4783_v42  ;;  %v4792_v18 = vshrl.u32 %v9111_v0, %v4783_v42  ;;  %v4795_v40 = vshrl.u32 %v9112_v24, %v4783_v42 }
 0x555   :  { %v4643_v59 = vmul.f32 %v4642_v36, %v4640_v43  ;;  %v12680_v30 = vsub.s32 %v4516_v19, %v4519_v13  ;;  %v8059_v16 = vadd.s32 4294967169, %v4668_v38  ;;  %v4543_v11 = vsel %vm4458_vm1, %v4542_v47, %v4518_v2  ;;  %8389 = vmatpush3.bf16.msra.mxu0 %v8818_v17 }
 0x556   :  { %v4787_v44 = vor.u32 %v4786_v9, %v4785_v12  ;;  %v4790_v21 = vor.u32 %v4789_v46, %v4788_v6  ;;  %v4793_v52 = vor.u32 %v4792_v18, %v4791_v60  ;;  %v4797_v15 = vshll.u32 %v9112_v24, %v4782_v29  ;;  %v8819_v12 = vld [vmem:[%s14008_s4 + $0x28] sm:$0xff]  }
 0x557   :  { %v4644_v23 = vxor.u32 2147483648, %v4643_v59  ;;  %v4522_v20 = vsub.s32 0, %v12680_v30  ;;  %v4798_v35 = vshrl.u32 %v9113_v37, %v4783_v42  ;;  %v4784_v63 = vshrl.u32 %v9108_v31, %v4783_v42  ;;  %8390 = vmatprep.subr.bf16.mxu0 %v8819_v12 }
 0x558   :  { %v4796_v49 = vor.u32 %v4795_v40, %v4794_v3  ;;  %v4545_v50 = vsel %vm12664_vm4, 0, %v4543_v11  ;;  %vm4800_vm7 = vcmp.lt.s32.totalorder %v12675_v8, 1  ;;  %vm4803_vm13 = vcmp.lt.s32.totalorder %v12675_v8, 4  ;;  %v12742_v11 = vld [vmem:[#allocation2 + $0xc8] sm:$0xff] }
 0x559   :  { %v4645_v41 = vsel %vm4562_vm2, %v4644_v23, %v4643_v59  ;;  %v8052_v57 = vmin.u32 %v4522_v20, %v12680_v30  ;;  %v4799_v62 = vor.u32 %v4798_v35, %v4797_v15  ;;  %vm4801_vm2 = vcmp.lt.s32.totalorder %v12675_v8, 2  ;;  %8391 = vmatpush3.bf16.msra.mxu0 %v8819_v12 }
 0x55a   :  { %v4648_v19 = vsel %vm12598_vm0, %v12394_v32, %v4645_v41  ;;  %vm4802_vm3 = vcmp.lt.s32.totalorder %v12675_v8, 3  ;;  %v4805_v45 = vsel %vm4803_vm13, %v4793_v52, 2102212464  ;;  %v4808_v27 = vsel %vm4800_vm7, %v4787_v44, %v4790_v21 }
 0x55b   :  { %8920 = vcosq.f32 %v4648_v19  ;;  %v4524_v48 = vclz %v8052_v57  ;;  %v4809_v55 = vsel %vm4803_vm13, %v4796_v49, 920167782  ;;  %v4812_v25 = vsel %vm4800_vm7, %v4790_v21, %v4793_v52 }
 0x55c   :  { %8922 = vsinq.f32 %v4648_v19  ;;  %v4804_v29 = vsel %vm4800_vm7, %v4784_v63, %v4787_v44  ;;  %v4810_v10 = vsel %vm4802_vm3, %v4793_v52, %v4809_v55  ;;  %v4813_v2 = vsel %vm4803_vm13, %v4799_v62, 1326507024 }
 0x55d   :  { %v8053_v26 = vadd.s32 4294967294, %v4524_v48  ;;  %v4674_v38 = vadd.s32 1, %v8059_v16  ;;  %v4806_v28 = vsel %vm4802_vm3, %v4790_v21, %v4805_v45  ;;  %v4811_v42 = vsel %vm4801_vm2, %v4808_v27, %v4810_v10 }
 0x55e   :  { %v4814_v43 = vsel %vm4802_vm3, %v4796_v49, %v4813_v2  ;;  %v12719_v47 = vmul.u32.u64.low %v12668_v51, %v4811_v42  ;;  %v12720_v9 = vmul.u32.u64.high %v12668_v51, %v4811_v42, %v12719_v47  ;;  %v4512_v46 = vadd.s32 %v12630_v58, %v12628_v56 }
 0x55f   :  { %vm8054_vm0 = vcmp.lt.s32.totalorder %v8053_v26, 0  ;;  %v4815_v13 = vsel %vm4801_vm2, %v4812_v25, %v4814_v43  ;;  %vm4675_vm5 = vcmp.gt.s32.totalorder %v4674_v38, 0  ;;  %vm4652_vm6 = vweird.f32 %v12394_v32 }
 0x560   :  { %v4527_v36 = vsel %vm8054_vm0, 0, %v8053_v26  ;;  %v4807_v40 = vsel %vm4801_vm2, %v4804_v29, %v4806_v28  ;;  %v12732_v54 = vmul.u32.u64.low %v12668_v51, %v4815_v13  ;;  %v12733_v6 = vmul.u32.u64.high %v12668_v51, %v4815_v13, %v12732_v54 }
 0x561   :  { %v4528_v18 = vsub.s32 32, %v4527_v36  ;;  %v4532_v59 = vsub.s32 4294967266, %v4527_v36  ;;  %v4676_v60 = vsel %vm4675_vm5, %v4674_v38, 0  ;;  %v4529_v3 = vshll.u32 %v12680_v30, %v4527_v36 }
 0x562   :  { %v4678_v16 = vand.u32 31, %v4676_v60  ;;  %vm4655_vm8 = vcmp.lt.s32.totalorder %v12655_v7, 2  ;;  %v4549_v23 = vadd.s32 3, %v4545_v50  ;;  %v4826_v20 = vadd.s32 1, %v12720_v9 }
 0x563   :  { %v4530_v56 = vshrl.u32 %v4512_v46, %v4528_v18  ;;  %v4533_v58 = vadd.s32 127, %v4532_v59  ;;  %v12740_v8 = vand.u32 8388607, %v4664_v4  ;;  %vm4656_vm9 = vcmp.eq.s32.totalorder %v12655_v7, 0 }
 0x564   :  { %vm4659_vm11 = vcmp.eq.s32.totalorder %v12655_v7, 2  ;;  %v4823_v35 = vmul.u32 %v12668_v51, %v4807_v40  ;;  %vm4825_vm15 = vc.u32 %v12733_v6, %v12719_v47  ;;  %v4679_v41 = vsub.s32 32, %v4678_v16 }
 0x565   :  { %v8921_v44 = vpop.eup %8920  ;;  %v4531_v30 = vor.u32 %v4530_v56, %v4529_v3  ;;  %v4534_v21 = vshll.u32 %v4533_v58, 23  ;;  %v4827_v49 = vsel %vm4825_vm15, %v4826_v20, %v12720_v9  ;;  %v4976_v1 = vand.u32 2147483647, %v12742_v11 }
 0x566   :  { %v8923_v52 = vpop.eup %8922  ;;  %v4660_v15 = vxor.u32 2147483648, %v8921_v44  ;;  %v12751_v50 = vand.u32 3, %v4549_v23  ;;  %v4828_v62 = vadd.s32 %v4827_v49, %v4823_v35  ;;  %v4672_v48 = vor.u32 8388608, %v12740_v8  ;;  %v2272_v49 = vpop.permute.xlu0 %2271 }
 0x567   :  { %v4657_v57 = vxor.u32 2147483648, %v8923_v52  ;;  %v4535_v63 = vor.u32 4788187, %v4534_v21  ;;  %v4538_v27 = vcvt.s32.f32 %v4531_v30  ;;  %vm4770_vm7 = vcmp.lt.s32.totalorder %v12561_v34, 0  ;;  %2340 = vst.msk [vmem:[#allocation2 + $0xe0] sm:$0xff] %vm2311_vm12, %v2272_v49 }
 0x568   :  { %v4661_v19 = vsel %vm4659_vm11, %v4660_v15, %v8923_v52  ;;  %v12757_v26 = vshrl.u32 %v4676_v60, 5  ;;  %v4829_v25 = vadd.s32 536870912, %v4828_v62  ;;  %v4682_v17 = vshrl.u32 %v9109_v22, %v4679_v41 }
 0x569   :  { %v4658_v45 = vsel %vm4656_vm9, %v8921_v44, %v4657_v57  ;;  %v4536_v51 = vand.u32 2147483647, %v4535_v63  ;;  %v4685_v29 = vshrl.u32 %v9110_v14, %v4679_v41  ;;  %v4681_v38 = vshll.u32 %v9108_v31, %v4678_v16  ;;  %v2274_v63 = vpop.permute.xlu1 %2273 }
 0x56a   :  { %v4662_v55 = vsel %vm4655_vm8, %v4658_v45, %v4661_v19  ;;  %v4688_v28 = vshrl.u32 %v9111_v0, %v4679_v41  ;;  %v4830_v42 = vshrl.u32 %v4829_v25, 30  ;;  %v4684_v43 = vshll.u32 %v9109_v22, %v4678_v16  ;;  %2341 = vst.msk [vmem:[#allocation2 + $0xe8] sm:$0xff] %vm2311_vm12, %v2274_v63 }
 0x56b   :  { %v4663_v10 = vsel %vm4652_vm6, nan, %v4662_v55  ;;  %v4539_v2 = vmul.f32 %v4538_v27, %v4536_v51  ;;  %v4687_v7 = vshll.u32 %v9110_v14, %v4678_v16  ;;  %v4691_v36 = vshrl.u32 %v9112_v24, %v4679_v41 }
 0x56c   :  { %5726 = vst.msk [vmem:[#allocation2 + $0xa8] sm:$0xff] %vm5704_vm10, %v4663_v10  ;;  %vm12775_vm2 = vcmp.le.f32.partialorder %v4768_v39, 0.7853982  ;;  %v4690_v9 = vshll.u32 %v9111_v0, %v4678_v16  ;;  %v4693_v46 = vshll.u32 %v9112_v24, %v4678_v16  ;;  %v4694_v18 = vshrl.u32 %v9113_v37, %v4679_v41 }
 0x56d   :  { %5759 = vst.msk [vmem:[#allocation2 + $0xa8] sm:$0xff] %vm5737_vm14, %v9114_v5  ;;  %v4540_v13 = vxor.u32 2147483648, %v4539_v2  ;;  %v4831_v59 = vshll.u32 %v4830_v42, 30  ;;  %v4854_v12 = vsub.s32 4, %v4830_v42  ;;  %v4683_v40 = vor.u32 %v4682_v17, %v4681_v38 }
 0x56e   :  { %v4686_v54 = vor.u32 %v4685_v29, %v4684_v43  ;;  %v4689_v3 = vor.u32 %v4688_v28, %v4687_v7  ;;  %v4692_v56 = vor.u32 %v4691_v36, %v4690_v9  ;;  %v4695_v58 = vor.u32 %v4694_v18, %v4693_v46 }
 0x56f   :  { %v4541_v60 = vsel %vm4458_vm1, %v4540_v13, %v4539_v2  ;;  %v12787_v23 = vsub.s32 %v4828_v62, %v4831_v59  ;;  %v4680_v16 = vshrl.u32 %v9108_v31, %v4679_v41  ;;  %v4979_v20 = vand.u32 2139095040, %v12742_v11  ;;  %v2278_v13 = vpop.permute.xlu1 %2277 }
 0x570   :  { %v4544_v39 = vsel %vm12664_vm4, %v12488_v33, %v4541_v60  ;;  %vm4696_vm13 = vcmp.lt.s32.totalorder %v12757_v26, 1  ;;  %vm4698_vm3 = vcmp.lt.s32.totalorder %v12757_v26, 3  ;;  %vm4699_vm1 = vcmp.lt.s32.totalorder %v12757_v26, 4  ;;  %2343 = vst.msk [vmem:[#allocation2 + $0xf8] sm:$0xff] %vm2311_vm12, %v2278_v13 }
 0x571   :  { %8924 = vcosq.f32 %v4544_v39  ;;  %v4834_v8 = vsub.s32 0, %v12787_v23  ;;  %v4855_v53 = vsel %vm4770_vm7, %v4854_v12, %v4830_v42  ;;  %v4704_v44 = vsel %vm4696_vm13, %v4683_v40, %v4686_v54 }
 0x572   :  { %8926 = vsinq.f32 %v4544_v39  ;;  %v4701_v30 = vsel %vm4699_vm1, %v4689_v3, 2102212464  ;;  %v4705_v21 = vsel %vm4699_vm1, %v4692_v56, 920167782  ;;  %v4708_v52 = vsel %vm4696_vm13, %v4686_v54, %v4689_v3 }
 0x573   :  { %v4709_v15 = vsel %vm4699_vm1, %v4695_v58, 1326507024  ;;  %v8064_v35 = vmin.u32 %v4834_v8, %v12787_v23  ;;  %vm4697_vm4 = vcmp.lt.s32.totalorder %v12757_v26, 2  ;;  %v4706_v41 = vsel %vm4698_vm3, %v4689_v3, %v4705_v21 }
 0x574   :  { %v4710_v57 = vsel %vm4698_vm3, %v4692_v56, %v4709_v15  ;;  %v4707_v19 = vsel %vm4697_vm4, %v4704_v44, %v4706_v41  ;;  %v4712_v45 = vshll.u32 %v4672_v48, 8  ;;  %v4980_v51 = vshrl.u32 %v4979_v20, 23 }
 0x575   :  { %v4711_v62 = vsel %vm4697_vm4, %v4708_v52, %v4710_v57  ;;  %v4836_v27 = vclz %v8064_v35  ;;  %v4857_v55 = vsel %vm12775_vm2, 0, %v4855_v53  ;;  %v4700_v25 = vsel %vm4696_vm13, %v4680_v16, %v4683_v40 }
 0x576   :  { %v4702_v17 = vsel %vm4698_vm3, %v4686_v54, %v4701_v30  ;;  %v12819_v29 = vmul.u32.u64.low %v4712_v45, %v4711_v62  ;;  %v12820_v10 = vmul.u32.u64.high %v4712_v45, %v4711_v62, %v12819_v29  ;;  %vm4548_vm0 = vweird.f32 %v12488_v33 }
 0x577   :  { %v12822_v2 = vmul.u32.u64.low %v4712_v45, %v4707_v19  ;;  %v12823_v48 = vmul.u32.u64.high %v4712_v45, %v4707_v19, %v12822_v2  ;;  %v8065_v38 = vadd.s32 4294967294, %v4836_v27  ;;  %v8071_v28 = vadd.s32 4294967169, %v4980_v51 }
 0x578   :  { %vm4551_vm5 = vcmp.lt.s32.totalorder %v12751_v50, 2  ;;  %vm4552_vm6 = vcmp.eq.s32.totalorder %v12751_v50, 0  ;;  %vm4555_vm8 = vcmp.eq.s32.totalorder %v12751_v50, 2  ;;  %v4703_v42 = vsel %vm4697_vm4, %v4700_v25, %v4702_v17 }
 0x579   :  { %v4824_v43 = vadd.s32 %v12719_v47, %v12733_v6  ;;  %vm8066_vm9 = vcmp.lt.s32.totalorder %v8065_v38, 0  ;;  %v4861_v7 = vadd.s32 3, %v4857_v55  ;;  %v4986_v36 = vadd.s32 1, %v8071_v28  ;;  %v12838_v6 = vld [vmem:[#allocation2 + $0xc0] sm:$0xff] }
 0x57a   :  { %v4839_v46 = vsel %vm8066_vm9, 0, %v8065_v38  ;;  %vm4721_vm11 = vc.u32 %v12820_v10, %v12822_v2  ;;  %v4722_v18 = vadd.s32 1, %v12823_v48  ;;  %v4983_v59 = vand.u32 8388607, %v4976_v1 }
 0x57b   :  { %v8925_v9 = vpop.eup %8924  ;;  %v4840_v40 = vsub.s32 32, %v4839_v46  ;;  %v4844_v54 = vsub.s32 4294967266, %v4839_v46  ;;  %v4719_v47 = vmul.u32 %v4712_v45, %v4703_v42  ;;  %v4841_v3 = vshll.u32 %v12787_v23, %v4839_v46 }
 0x57c   :  { %v8927_v26 = vpop.eup %8926  ;;  %v4556_v12 = vxor.u32 2147483648, %v8925_v9  ;;  %v4723_v56 = vsel %vm4721_vm11, %v4722_v18, %v12823_v48  ;;  %vm4987_vm15 = vcmp.gt.s32.totalorder %v4986_v36, 0  ;;  %v4984_v53 = vor.u32 8388608, %v4983_v59 }
 0x57d   :  { %v4553_v60 = vxor.u32 2147483648, %v8927_v26  ;;  %v4842_v39 = vshrl.u32 %v4824_v43, %v4840_v40  ;;  %v4845_v16 = vadd.s32 127, %v4844_v54  ;;  %v4724_v20 = vadd.s32 %v4723_v56, %v4719_v47 }
 0x57e   :  { %v4557_v58 = vsel %vm4555_vm8, %v4556_v12, %v8927_v26  ;;  %v4988_v44 = vsel %vm4987_vm15, %v4986_v36, 0  ;;  %v4875_v30 = vand.u32 2139095040, %v12838_v6  ;;  %vm4666_vm13 = vcmp.lt.s32.totalorder %v12639_v61, 0  ;;  %v2276_v26 = vpop.permute.xlu0 %2275 }
 0x57f   :  { %v4554_v8 = vsel %vm4552_vm6, %v8925_v9, %v4553_v60  ;;  %v4843_v23 = vor.u32 %v4842_v39, %v4841_v3  ;;  %v4846_v52 = vshll.u32 %v4845_v16, 23  ;;  %v4725_v15 = vadd.s32 536870912, %v4724_v20  ;;  %2342 = vst.msk [vmem:[#allocation2 + $0xf0] sm:$0xff] %vm2311_vm12, %v2276_v26 }
 0x580   :  { %v4558_v21 = vsel %vm4551_vm5, %v4554_v8, %v4557_v58  ;;  %v4990_v41 = vand.u32 31, %v4988_v44  ;;  %v4872_v57 = vand.u32 2147483647, %v12838_v6  ;;  %v12854_v49 = vand.u32 3, %v4861_v7 }
 0x581   :  { %v4559_v35 = vsel %vm4548_vm0, nan, %v4558_v21  ;;  %v4847_v63 = vor.u32 4788187, %v4846_v52  ;;  %vm12858_vm3 = vcmp.le.f32.partialorder %v4664_v4, 0.7853982  ;;  %v4726_v19 = vshrl.u32 %v4725_v15, 30 }
 0x582   :  { %5725 = vst.msk [vmem:[#allocation2 + $0xa0] sm:$0xff] %vm5704_vm10, %v4559_v35  ;;  %v12865_v33 = vadd.s32 %v12822_v2, %v12820_v10  ;;  %v4991_v62 = vsub.s32 32, %v4990_v41  ;;  %v12867_v45 = vshll.u32 %v4984_v53, 8  ;;  %v4876_v51 = vshrl.u32 %v4875_v30, 23 }
 0x583   :  { %5758 = vst.msk [vmem:[#allocation2 + $0xa0] sm:$0xff] %vm5737_vm14, %v9114_v5  ;;  %v4848_v27 = vand.u32 2147483647, %v4847_v63  ;;  %v4850_v55 = vcvt.s32.f32 %v4843_v23  ;;  %v4727_v25 = vshll.u32 %v4726_v19, 30  ;;  %v4750_v17 = vsub.s32 4, %v4726_v19 }
 0x584   :  { %v4994_v4 = vshrl.u32 %v9109_v22, %v4991_v62  ;;  %v4997_v29 = vshrl.u32 %v9110_v14, %v4991_v62  ;;  %v5000_v48 = vshrl.u32 %v9111_v0, %v4991_v62  ;;  %v12874_v38 = vand.u32 8388607, %v4872_v57 }
 0x585   :  { %v4851_v10 = vmul.f32 %v4850_v55, %v4848_v27  ;;  %v12876_v2 = vsub.s32 %v4724_v20, %v4727_v25  ;;  %v4993_v28 = vshll.u32 %v9108_v31, %v4990_v41  ;;  %v5003_v42 = vshrl.u32 %v9112_v24, %v4991_v62 }
 0x586   :  { %v4989_v43 = vshrl.u32 %v4988_v44, 5  ;;  %v4996_v7 = vshll.u32 %v9109_v22, %v4990_v41  ;;  %v4999_v36 = vshll.u32 %v9110_v14, %v4990_v41  ;;  %v5002_v13 = vshll.u32 %v9111_v0, %v4990_v41 }
 0x587   :  { %v4852_v9 = vxor.u32 2147483648, %v4851_v10  ;;  %v4730_v46 = vsub.s32 0, %v12876_v2  ;;  %v4751_v18 = vsel %vm4666_vm13, %v4750_v17, %v4726_v19  ;;  %v4995_v59 = vor.u32 %v4994_v4, %v4993_v28 }
 0x588   :  { %v4998_v12 = vor.u32 %v4997_v29, %v4996_v7  ;;  %v5001_v40 = vor.u32 %v5000_v48, %v4999_v36  ;;  %v5005_v54 = vshll.u32 %v9112_v24, %v4990_v41  ;;  %v5006_v47 = vshrl.u32 %v9113_v37, %v4991_v62 }
 0x589   :  { %v4853_v60 = vsel %vm4770_vm7, %v4852_v9, %v4851_v10  ;;  %v8060_v3 = vmin.u32 %v4730_v46, %v12876_v2  ;;  %v5004_v56 = vor.u32 %v5003_v42, %v5002_v13  ;;  %v8067_v58 = vadd.s32 4294967169, %v4876_v51  ;;  %v12913_v46 = vld [vmem:[#allocation2 + $0xd8] sm:$0xff] }
 0x58a   :  { %v4856_v39 = vsel %vm12775_vm2, %v12561_v34, %v4853_v60  ;;  %v4753_v16 = vsel %vm12858_vm3, 0, %v4751_v18  ;;  %v4992_v20 = vshrl.u32 %v9108_v31, %v4991_v62  ;;  %v5007_v8 = vor.u32 %v5006_v47, %v5005_v54 }
 0x58b   :  { %8928 = vcosq.f32 %v4856_v39  ;;  %v4732_v53 = vclz %v8060_v3  ;;  %vm5008_vm12 = vcmp.lt.s32.totalorder %v4989_v43, 1  ;;  %vm5011_vm1 = vcmp.lt.s32.totalorder %v4989_v43, 4 }
 0x58c   :  { %8930 = vsinq.f32 %v4856_v39  ;;  %vm5009_vm7 = vcmp.lt.s32.totalorder %v4989_v43, 2  ;;  %v5013_v44 = vsel %vm5011_vm1, %v5001_v40, 2102212464  ;;  %v5016_v30 = vsel %vm5008_vm12, %v4995_v59, %v4998_v12 }
 0x58d   :  { %v8061_v21 = vadd.s32 4294967294, %v4732_v53  ;;  %vm5010_vm4 = vcmp.lt.s32.totalorder %v4989_v43, 3  ;;  %v5017_v23 = vsel %vm5011_vm1, %v5004_v56, 920167782  ;;  %v5020_v52 = vsel %vm5008_vm12, %v4998_v12, %v5001_v40 }
 0x58e   :  { %v5012_v32 = vsel %vm5008_vm12, %v4992_v20, %v4995_v59  ;;  %v5018_v15 = vsel %vm5010_vm4, %v5001_v40, %v5017_v23  ;;  %v5021_v35 = vsel %vm5011_vm1, %v5007_v8, 1326507024  ;;  %v4882_v41 = vadd.s32 1, %v8067_v58 }
 0x58f   :  { %vm8062_vm2 = vcmp.lt.s32.totalorder %v8061_v21, 0  ;;  %v5014_v63 = vsel %vm5010_vm4, %v4998_v12, %v5013_v44  ;;  %v5019_v19 = vsel %vm5009_vm7, %v5016_v30, %v5018_v15  ;;  %v5022_v62 = vsel %vm5010_vm4, %v5004_v56, %v5021_v35 }
 0x590   :  { %v4735_v51 = vsel %vm8062_vm2, 0, %v8061_v21  ;;  %v5023_v27 = vsel %vm5009_vm7, %v5020_v52, %v5022_v62  ;;  %v12901_v55 = vmul.u32.u64.low %v12867_v45, %v5019_v19  ;;  %v12902_v25 = vmul.u32.u64.high %v12867_v45, %v5019_v19, %v12901_v55 }
 0x591   :  { %v4736_v17 = vsub.s32 32, %v4735_v51  ;;  %v4740_v4 = vsub.s32 4294967266, %v4735_v51  ;;  %v4757_v29 = vadd.s32 3, %v4753_v16  ;;  %vm4883_vm0 = vcmp.gt.s32.totalorder %v4882_v41, 0 }
 0x592   :  { %vm4860_vm5 = vweird.f32 %v12561_v34  ;;  %v5015_v48 = vsel %vm5009_vm7, %v5012_v32, %v5014_v63  ;;  %v12908_v10 = vmul.u32.u64.low %v12867_v45, %v5023_v27  ;;  %v12909_v28 = vmul.u32.u64.high %v12867_v45, %v5023_v27, %v12908_v10 }
 0x593   :  { %v4884_v42 = vsel %vm4883_vm0, %v4882_v41, 0  ;;  %v4737_v7 = vshll.u32 %v12876_v2, %v4735_v51  ;;  %v4738_v36 = vshrl.u32 %v12865_v33, %v4736_v17  ;;  %v4741_v13 = vadd.s32 127, %v4740_v4 }
 0x594   :  { %v4886_v9 = vand.u32 31, %v4884_v42  ;;  %vm4863_vm6 = vcmp.lt.s32.totalorder %v12854_v49, 2  ;;  %vm4864_vm8 = vcmp.eq.s32.totalorder %v12854_v49, 0  ;;  %v5034_v43 = vadd.s32 1, %v12902_v25 }
 0x595   :  { %v4880_v18 = vor.u32 8388608, %v12874_v38  ;;  %v8929_v59 = vpop.eup %8928  ;;  %vm4867_vm9 = vcmp.eq.s32.totalorder %v12854_v49, 2  ;;  %v4739_v26 = vor.u32 %v4738_v36, %v4737_v7  ;;  %v4742_v12 = vshll.u32 %v4741_v13, 23 }
 0x596   :  { %v4887_v2 = vsub.s32 32, %v4886_v9  ;;  %v8931_v40 = vpop.eup %8930  ;;  %v4868_v33 = vxor.u32 2147483648, %v8929_v59  ;;  %v5031_v54 = vmul.u32 %v12867_v45, %v5015_v48  ;;  %vm5033_vm11 = vc.u32 %v12909_v28, %v12901_v55 }
 0x597   :  { %v5184_v47 = vand.u32 2147483647, %v12913_v46  ;;  %v4865_v60 = vxor.u32 2147483648, %v8931_v40  ;;  %v4743_v3 = vor.u32 4788187, %v4742_v12  ;;  %v12924_v56 = vand.u32 3, %v4757_v29 }
 0x598   :  { %v5035_v38 = vsel %vm5033_vm11, %v5034_v43, %v12902_v25  ;;  %v4869_v58 = vsel %vm4867_vm9, %v4868_v33, %v8931_v40  ;;  %v12927_v16 = vshrl.u32 %v4884_v42, 5  ;;  %v12929_v20 = vshll.u32 %v4880_v18, 8 }
 0x599   :  { %v5036_v39 = vadd.s32 %v5035_v38, %v5031_v54  ;;  %v4866_v45 = vsel %vm4864_vm8, %v8929_v59, %v4865_v60  ;;  %v4744_v8 = vand.u32 2147483647, %v4743_v3  ;;  %v4746_v53 = vcvt.s32.f32 %v4739_v26 }
 0x59a   :  { %v4890_v44 = vshrl.u32 %v9109_v22, %v4887_v2  ;;  %v4870_v30 = vsel %vm4863_vm6, %v4866_v45, %v4869_v58  ;;  %vm4978_vm15 = vcmp.lt.s32.totalorder %v12742_v11, 0  ;;  %v4893_v23 = vshrl.u32 %v9110_v14, %v4887_v2 }
 0x59b   :  { %v5037_v21 = vadd.s32 536870912, %v5036_v39  ;;  %v4896_v52 = vshrl.u32 %v9111_v0, %v4887_v2  ;;  %v4871_v32 = vsel %vm4860_vm5, nan, %v4870_v30  ;;  %v4747_v15 = vmul.f32 %v4746_v53, %v4744_v8 }
 0x59c   :  { %v4889_v35 = vshll.u32 %v9108_v31, %v4886_v9  ;;  %v5187_v41 = vand.u32 2139095040, %v12913_v46  ;;  %5728 = vst.msk [vmem:[#allocation2 + $0xb8] sm:$0xff] %vm5704_vm10, %v4871_v32  ;;  %v4892_v49 = vshll.u32 %v9109_v22, %v4886_v9  ;;  %v4895_v19 = vshll.u32 %v9110_v14, %v4886_v9 }
 0x59d   :  { %v5038_v63 = vshrl.u32 %v5037_v21, 30  ;;  %v4899_v62 = vshrl.u32 %v9112_v24, %v4887_v2  ;;  %5761 = vst.msk [vmem:[#allocation2 + $0xb8] sm:$0xff] %vm5737_vm14, %v9114_v5  ;;  %v4748_v51 = vxor.u32 2147483648, %v4747_v15  ;;  %vm12951_vm12 = vcmp.le.f32.partialorder %v4976_v1, 0.7853982 }
 0x59e   :  { %v4898_v27 = vshll.u32 %v9111_v0, %v4886_v9  ;;  %v4901_v25 = vshll.u32 %v9112_v24, %v4886_v9  ;;  %v4902_v17 = vshrl.u32 %v9113_v37, %v4887_v2  ;;  %v4891_v29 = vor.u32 %v4890_v44, %v4889_v35 }
 0x59f   :  { %v5039_v4 = vshll.u32 %v5038_v63, 30  ;;  %v4894_v48 = vor.u32 %v4893_v23, %v4892_v49  ;;  %v4897_v10 = vor.u32 %v4896_v52, %v4895_v19  ;;  %v4749_v42 = vsel %vm4666_vm13, %v4748_v51, %v4747_v15 }
 0x5a0   :  { %v5062_v7 = vsub.s32 4, %v5038_v63  ;;  %v4900_v36 = vor.u32 %v4899_v62, %v4898_v27  ;;  %v4903_v13 = vor.u32 %v4902_v17, %v4901_v25  ;;  %v4752_v1 = vsel %vm12858_vm3, %v12639_v61, %v4749_v42 }
 0x5a1   :  { %v12963_v43 = vsub.s32 %v5036_v39, %v5039_v4  ;;  %v4888_v9 = vshrl.u32 %v9108_v31, %v4887_v2  ;;  %vm4904_vm1 = vcmp.lt.s32.totalorder %v12927_v16, 1  ;;  %8932 = vcosq.f32 %v4752_v1 }
 0x5a2   :  { %vm4905_vm7 = vcmp.lt.s32.totalorder %v12927_v16, 2  ;;  %vm4906_vm4 = vcmp.lt.s32.totalorder %v12927_v16, 3  ;;  %vm4907_vm13 = vcmp.lt.s32.totalorder %v12927_v16, 4  ;;  %8934 = vsinq.f32 %v4752_v1 }
 0x5a3   :  { %v5042_v18 = vsub.s32 0, %v12963_v43  ;;  %v4909_v59 = vsel %vm4907_vm13, %v4897_v10, 2102212464  ;;  %v4912_v26 = vsel %vm4904_vm1, %v4891_v29, %v4894_v48  ;;  %v5063_v50 = vsel %vm4978_vm15, %v5062_v7, %v5038_v63 }
 0x5a4   :  { %v4913_v12 = vsel %vm4907_vm13, %v4900_v36, 920167782  ;;  %v4916_v40 = vsel %vm4904_vm1, %v4894_v48, %v4897_v10  ;;  %v4917_v2 = vsel %vm4907_vm13, %v4903_v13, 1326507024  ;;  %v4908_v54 = vsel %vm4904_vm1, %v4888_v9, %v4891_v29 }
 0x5a5   :  { %v8072_v33 = vmin.u32 %v5042_v18, %v12963_v43  ;;  %v4914_v60 = vsel %vm4906_vm4, %v4897_v10, %v4913_v12  ;;  %v4918_v3 = vsel %vm4906_vm4, %v4900_v36, %v4917_v2  ;;  %v4910_v38 = vsel %vm4906_vm4, %v4894_v48, %v4909_v59  ;;  %v13000_v48 = vld [vmem:[#allocation2 + $0xd0] sm:$0xff]  ;;  %v13012_v12 = vld [vmem:[#allocation2 + $0x8] sm:$0xff] }
 0x5a6   :  { %v4915_v58 = vsel %vm4905_vm7, %v4912_v26, %v4914_v60  ;;  %v4919_v39 = vsel %vm4905_vm7, %v4916_v40, %v4918_v3  ;;  %v5188_v45 = vshrl.u32 %v5187_v41, 23  ;;  %v5065_v53 = vsel %vm12951_vm12, 0, %v5063_v50  ;;  %v13010_v50 = vld [vmem:[#allocation2] sm:$0xff] }
 0x5a7   :  { %v5044_v8 = vclz %v8072_v33  ;;  %v12981_v44 = vmul.u32.u64.low %v12929_v20, %v4919_v39  ;;  %v12982_v30 = vmul.u32.u64.high %v12929_v20, %v4919_v39, %v12981_v44  ;;  %v4911_v32 = vsel %vm4905_vm7, %v4908_v54, %v4910_v38 }
 0x5a8   :  { %v12985_v21 = vmul.u32.u64.low %v12929_v20, %v4915_v58  ;;  %v12986_v23 = vmul.u32.u64.high %v12929_v20, %v4915_v58, %v12985_v21  ;;  %v8079_v15 = vadd.s32 4294967169, %v5188_v45  ;;  %v5191_v35 = vand.u32 8388607, %v5184_v47 }
 0x5a9   :  { %v8073_v52 = vadd.s32 4294967294, %v5044_v8  ;;  %vm4756_vm3 = vweird.f32 %v12639_v61  ;;  %vm4760_vm2 = vcmp.eq.s32.totalorder %v12924_v56, 0  ;;  %vm4763_vm0 = vcmp.eq.s32.totalorder %v12924_v56, 2 }
 0x5aa   :  { %v5032_v41 = vadd.s32 %v12901_v55, %v12909_v28  ;;  %v5069_v63 = vadd.s32 3, %v5065_v53  ;;  %v5194_v49 = vadd.s32 1, %v8079_v15  ;;  %v4927_v16 = vmul.u32 %v12929_v20, %v4911_v32 }
 0x5ab   :  { %vm8074_vm5 = vcmp.lt.s32.totalorder %v8073_v52, 0  ;;  %v8933_v19 = vpop.eup %8932  ;;  %vm4929_vm6 = vc.u32 %v12982_v30, %v12985_v21  ;;  %v4930_v51 = vadd.s32 1, %v12986_v23  ;;  %v5192_v29 = vor.u32 8388608, %v5191_v35 }
 0x5ac   :  { %v5047_v62 = vsel %vm8074_vm5, 0, %v8073_v52  ;;  %v8935_v27 = vpop.eup %8934  ;;  %v4764_v25 = vxor.u32 2147483648, %v8933_v19  ;;  %vm5195_vm8 = vcmp.gt.s32.totalorder %v5194_v49, 0  ;;  %vm4759_vm9 = vcmp.lt.s32.totalorder %v12924_v56, 2 }
 0x5ad   :  { %v5048_v17 = vsub.s32 32, %v5047_v62  ;;  %v5052_v4 = vsub.s32 4294967266, %v5047_v62  ;;  %v4761_v10 = vxor.u32 2147483648, %v8935_v27  ;;  %v5049_v55 = vshll.u32 %v12963_v43, %v5047_v62 }
 0x5ae   :  { %v4931_v28 = vsel %vm4929_vm6, %v4930_v51, %v12986_v23  ;;  %v4765_v20 = vsel %vm4763_vm0, %v4764_v25, %v8935_v27  ;;  %v5196_v1 = vsel %vm5195_vm8, %v5194_v49, 0  ;;  %v5083_v9 = vand.u32 2139095040, %v13000_v48 }
 0x5af   :  { %v5050_v42 = vshrl.u32 %v5032_v41, %v5048_v17  ;;  %v5053_v7 = vadd.s32 127, %v5052_v4  ;;  %v4932_v36 = vadd.s32 %v4931_v28, %v4927_v16  ;;  %v4762_v13 = vsel %vm4760_vm2, %v8933_v19, %v4761_v10 }
 0x5b0   :  { %v4766_v18 = vsel %vm4759_vm9, %v4762_v13, %v4765_v20  ;;  %vm4874_vm11 = vcmp.lt.s32.totalorder %v12838_v6, 0  ;;  %v5198_v2 = vand.u32 31, %v5196_v1  ;;  %v5080_v56 = vand.u32 2147483647, %v13000_v48 }
 0x5b1   :  { %v5051_v59 = vor.u32 %v5050_v42, %v5049_v55  ;;  %v5054_v43 = vshll.u32 %v5053_v7, 23  ;;  %v4933_v26 = vadd.s32 536870912, %v4932_v36  ;;  %v4767_v40 = vsel %vm4756_vm3, nan, %v4766_v18 }
 0x5b2   :  { %5727 = vst.msk [vmem:[#allocation2 + $0xb0] sm:$0xff] %vm5704_vm10, %v4767_v40  ;;  %v13019_v54 = vand.u32 3, %v5069_v63  ;;  %vm13023_vm1 = vcmp.le.f32.partialorder %v4872_v57, 0.7853982  ;;  %v13027_v38 = vshll.u32 %v5192_v29, 8  ;;  %v13032_v61 = vadd.s32 %v12985_v21, %v12982_v30 }
 0x5b3   :  { %v5055_v33 = vor.u32 4788187, %v5054_v43  ;;  %v4934_v3 = vshrl.u32 %v4933_v26, 30  ;;  %5760 = vst.msk [vmem:[#allocation2 + $0xb0] sm:$0xff] %vm5737_vm14, %v9114_v5  ;;  %v5199_v58 = vsub.s32 32, %v5198_v2  ;;  %v5084_v39 = vshrl.u32 %v5083_v9, 23 }
 0x5b4   :  { %v5802_v45 = vpack.c.bf16 %v13012_v12, %v13010_v50  ;;  %v5058_v53 = vcvt.s32.f32 %v5051_v59  ;;  %v13041_v15 = vand.u32 8388607, %v5080_v56  ;;  %v5201_v35 = vshll.u32 %v9108_v31, %v5198_v2 }
 0x5b5   :  { %v5056_v8 = vand.u32 2147483647, %v5055_v33  ;;  %v4935_v57 = vshll.u32 %v4934_v3, 30  ;;  %v4958_v44 = vsub.s32 4, %v4934_v3  ;;  %v5202_v23 = vshrl.u32 %v9109_v22, %v5199_v58 }
 0x5b6   :  { %v5205_v52 = vshrl.u32 %v9110_v14, %v5199_v58  ;;  %v5208_v32 = vshrl.u32 %v9111_v0, %v5199_v58  ;;  %v5211_v41 = vshrl.u32 %v9112_v24, %v5199_v58  ;;  %v5197_v63 = vshrl.u32 %v5196_v1, 5 }
 0x5b7   :  { %v5059_v30 = vmul.f32 %v5058_v53, %v5056_v8  ;;  %v13043_v21 = vsub.s32 %v4932_v36, %v4935_v57  ;;  %v5204_v49 = vshll.u32 %v9109_v22, %v5198_v2  ;;  %v5207_v19 = vshll.u32 %v9110_v14, %v5198_v2 }
 0x5b8   :  { %v5210_v62 = vshll.u32 %v9111_v0, %v5198_v2  ;;  %v4959_v27 = vsel %vm4874_vm11, %v4958_v44, %v4934_v3  ;;  %v5203_v25 = vor.u32 %v5202_v23, %v5201_v35  ;;  %v5213_v29 = vshll.u32 %v9112_v24, %v5198_v2 }
 0x5b9   :  { %v5060_v16 = vxor.u32 2147483648, %v5059_v30  ;;  %v4938_v51 = vsub.s32 0, %v13043_v21  ;;  %v5206_v17 = vor.u32 %v5205_v52, %v5204_v49  ;;  %v5209_v4 = vor.u32 %v5208_v32, %v5207_v19  ;;  %v5772_v52 = vld [vmem:[#allocation2 + $0x10] sm:$0xff]  ;;  %v5773_v32 = vld [vmem:[#allocation2 + $0x18] sm:$0xff]  ;;  %v5774_v49 = vld [vmem:[#allocation2 + $0x20] sm:$0xff] }
 0x5ba   :  { %v5214_v10 = vshrl.u32 %v9113_v37, %v5199_v58  ;;  %v5212_v20 = vor.u32 %v5211_v41, %v5210_v62  ;;  %v8075_v42 = vadd.s32 4294967169, %v5084_v39  ;;  %v4961_v36 = vsel %vm13023_vm1, 0, %v4959_v27  ;;  %v5775_v19 = vld [vmem:[#allocation2 + $0x28] sm:$0xff] }
 0x5bb   :  { %v5061_v55 = vsel %vm4978_vm15, %v5060_v16, %v5059_v30  ;;  %v8068_v28 = vmin.u32 %v4938_v51, %v13043_v21  ;;  %v5200_v13 = vshrl.u32 %v9108_v31, %v5199_v58  ;;  %vm5216_vm7 = vcmp.lt.s32.totalorder %v5197_v63, 1 }
 0x5bc   :  { %v5064_v7 = vsel %vm12951_vm12, %v12742_v11, %v5061_v55  ;;  %v5215_v1 = vor.u32 %v5214_v10, %v5213_v29  ;;  %vm5219_vm4 = vcmp.lt.s32.totalorder %v5197_v63, 4  ;;  %vm5217_vm15 = vcmp.lt.s32.totalorder %v5197_v63, 2 }
 0x5bd   :  { %8936 = vcosq.f32 %v5064_v7  ;;  %v4940_v9 = vclz %v8068_v28  ;;  %v5221_v18 = vsel %vm5219_vm4, %v5209_v4, 2102212464  ;;  %v5224_v59 = vsel %vm5216_vm7, %v5203_v25, %v5206_v17 }
 0x5be   :  { %8938 = vsinq.f32 %v5064_v7  ;;  %vm5218_vm13 = vcmp.lt.s32.totalorder %v5197_v63, 3  ;;  %v5225_v26 = vsel %vm5219_vm4, %v5212_v20, 920167782  ;;  %v5228_v40 = vsel %vm5216_vm7, %v5206_v17, %v5209_v4 }
 0x5bf   :  { %v8069_v43 = vadd.s32 4294967294, %v4940_v9  ;;  %v5220_v34 = vsel %vm5216_vm7, %v5200_v13, %v5203_v25  ;;  %v5226_v2 = vsel %vm5218_vm13, %v5209_v4, %v5225_v26  ;;  %v5229_v33 = vsel %vm5219_vm4, %v5215_v1, 1326507024 }
 0x5c0   :  { %v5090_v3 = vadd.s32 1, %v8075_v42  ;;  %v5222_v39 = vsel %vm5218_vm13, %v5206_v17, %v5221_v18  ;;  %v5227_v58 = vsel %vm5217_vm15, %v5224_v59, %v5226_v2  ;;  %v5230_v8 = vsel %vm5218_vm13, %v5212_v20, %v5229_v33 }
 0x5c1   :  { %vm8070_vm12 = vcmp.lt.s32.totalorder %v8069_v43, 0  ;;  %v5231_v57 = vsel %vm5217_vm15, %v5228_v40, %v5230_v8  ;;  %v13067_v44 = vmul.u32.u64.low %v13027_v38, %v5227_v58  ;;  %v13068_v23 = vmul.u32.u64.high %v13027_v38, %v5227_v58, %v13067_v44 }
 0x5c2   :  { %v4943_v53 = vsel %vm8070_vm12, 0, %v8069_v43  ;;  %v4965_v41 = vadd.s32 3, %v4961_v36  ;;  %vm5091_vm3 = vcmp.gt.s32.totalorder %v5090_v3, 0  ;;  %vm5068_vm2 = vweird.f32 %v12742_v11 }
 0x5c3   :  { %v4944_v30 = vsub.s32 32, %v4943_v53  ;;  %v4948_v35 = vsub.s32 4294967266, %v4943_v53  ;;  %v5223_v62 = vsel %vm5217_vm15, %v5220_v34, %v5222_v39  ;;  %v5092_v27 = vsel %vm5091_vm3, %v5090_v3, 0 }
 0x5c4   :  { %v13074_v16 = vmul.u32.u64.low %v13027_v38, %v5231_v57  ;;  %v13075_v51 = vmul.u32.u64.high %v13027_v38, %v5231_v57, %v13074_v16  ;;  %v4945_v25 = vshll.u32 %v13043_v21, %v4943_v53  ;;  %v5094_v29 = vand.u32 31, %v5092_v27 }
 0x5c5   :  { %v4946_v17 = vshrl.u32 %v13032_v61, %v4944_v30  ;;  %v4949_v4 = vadd.s32 127, %v4948_v35  ;;  %v5242_v10 = vadd.s32 1, %v13068_v23  ;;  %vm5866_vm0 = vcmask 785408  }
 0x5c6   :  { %v5803_v55 = vpack.c.bf16 %v5773_v32, %v5772_v52  ;;  %v5804_v28 = vpack.c.bf16 %v5775_v19, %v5774_v49  ;;  %vm5071_vm5 = vcmp.lt.s32.totalorder %v13019_v54, 2  ;;  %v5095_v7 = vsub.s32 32, %v5094_v29  ;;  %8392 = vmatprep.mubr.msk.bf16.mxu0 %vm5866_vm0, %v5802_v45 }
 0x5c7   :  { %v8937_v20 = vpop.eup %8936  ;;  %v4947_v63 = vor.u32 %v4946_v17, %v4945_v25  ;;  %v4950_v42 = vshll.u32 %v4949_v4, 23  ;;  %vm5072_vm6 = vcmp.eq.s32.totalorder %v13019_v54, 0  ;;  %v5239_v36 = vmul.u32 %v13027_v38, %v5223_v62 }
 0x5c8   :  { %v8939_v21 = vpop.eup %8938  ;;  %v5076_v61 = vxor.u32 2147483648, %v8937_v20  ;;  %vm5241_vm8 = vc.u32 %v13075_v51, %v13067_v44  ;;  %8393 = vmatmul.mubr.msk.bf16.vlgmr.msra.gmra.mrb[0].mxu0 %vm5866_vm0, %v5803_v55  ;;  %vm5075_vm9 = vcmp.eq.s32.totalorder %v13019_v54, 2  ;;  %v13093_v12 = vand.u32 3, %v4965_v41 }
 0x5c9   :  { %v5073_v13 = vxor.u32 2147483648, %v8939_v21  ;;  %v4951_v1 = vor.u32 4788187, %v4950_v42  ;;  %v5243_v9 = vsel %vm5241_vm8, %v5242_v10, %v13068_v23  ;;  %8396 = vmatprep.mubr.msk.bf16.mxu0 %vm5866_vm0, %v5804_v28  ;;  %v5088_v18 = vor.u32 8388608, %v13041_v15 }
 0x5ca   :  { %v5077_v50 = vsel %vm5075_vm9, %v5076_v61, %v8939_v21  ;;  %v5244_v45 = vadd.s32 %v5243_v9, %v5239_v36  ;;  %v4954_v43 = vcvt.s32.f32 %v4947_v63  ;;  %v5098_v26 = vshrl.u32 %v9109_v22, %v5095_v7  ;;  %v5777_v63 = vld [vmem:[#allocation2 + $0x38] sm:$0xff] }
 0x5cb   :  { %v5074_v38 = vsel %vm5072_vm6, %v8937_v20, %v5073_v13  ;;  %v4952_v59 = vand.u32 2147483647, %v4951_v1  ;;  %v5101_v2 = vshrl.u32 %v9110_v14, %v5095_v7  ;;  %v5104_v33 = vshrl.u32 %v9111_v0, %v5095_v7  ;;  %v5776_v20 = vld [vmem:[#allocation2 + $0x30] sm:$0xff] }
 0x5cc   :  { %v5078_v40 = vsel %vm5071_vm5, %v5074_v38, %v5077_v50  ;;  %v5245_v34 = vadd.s32 536870912, %v5244_v45  ;;  %v5093_v58 = vshrl.u32 %v5092_v27, 5  ;;  %v5097_v15 = vshll.u32 %v9108_v31, %v5094_v29 }
 0x5cd   :  { %v5079_v3 = vsel %vm5068_vm2, nan, %v5078_v40  ;;  %v4955_v39 = vmul.f32 %v4954_v43, %v4952_v59  ;;  %v5100_v53 = vshll.u32 %v9109_v22, %v5094_v29  ;;  %v5103_v54 = vshll.u32 %v9110_v14, %v5094_v29 }
 0x5ce   :  { %5730 = vst.msk [vmem:[#allocation2 + $0xc8] sm:$0xff] %vm5704_vm10, %v5079_v3  ;;  %v5246_v8 = vshrl.u32 %v5245_v34, 30  ;;  %v5107_v57 = vshrl.u32 %v9112_v24, %v5095_v7  ;;  %vm5186_vm7 = vcmp.lt.s32.totalorder %v12913_v46, 0  ;;  %v5106_v11 = vshll.u32 %v9111_v0, %v5094_v29 }
 0x5cf   :  { %5763 = vst.msk [vmem:[#allocation2 + $0xc8] sm:$0xff] %vm5737_vm14, %v9114_v5  ;;  %v4956_v23 = vxor.u32 2147483648, %v4955_v39  ;;  %v5109_v52 = vshll.u32 %v9112_v24, %v5094_v29  ;;  %v5110_v32 = vshrl.u32 %v9113_v37, %v5095_v7  ;;  %v5099_v35 = vor.u32 %v5098_v26, %v5097_v15 }
 0x5d0   :  { %v5247_v30 = vshll.u32 %v5246_v8, 30  ;;  %v5102_v41 = vor.u32 %v5101_v2, %v5100_v53  ;;  %v5105_v49 = vor.u32 %v5104_v33, %v5103_v54  ;;  %v5108_v62 = vor.u32 %v5107_v57, %v5106_v11 }
 0x5d1   :  { %v4957_v19 = vsel %vm4874_vm11, %v4956_v23, %v4955_v39  ;;  %v5111_v16 = vor.u32 %v5110_v32, %v5109_v52  ;;  %v13116_v27 = vshll.u32 %v5088_v18, 8  ;;  %v5096_v4 = vshrl.u32 %v9108_v31, %v5095_v7  ;;  %v13131_v18 = vld [vmem:[#allocation2 + $0xe8] sm:$0xff] }
 0x5d2   :  { %v4960_v25 = vsel %vm13023_vm1, %v12838_v6, %v4957_v19  ;;  %v13121_v17 = vsub.s32 %v5244_v45, %v5247_v30  ;;  %vm5112_vm4 = vcmp.lt.s32.totalorder %v5093_v58, 1  ;;  %v5270_v29 = vsub.s32 4, %v5246_v8 }
 0x5d3   :  { %8940 = vcosq.f32 %v4960_v25  ;;  %vm5113_vm15 = vcmp.lt.s32.totalorder %v5093_v58, 2  ;;  %vm5115_vm13 = vcmp.lt.s32.totalorder %v5093_v58, 4  ;;  %v5120_v28 = vsel %vm5112_vm4, %v5099_v35, %v5102_v41 }
 0x5d4   :  { %8942 = vsinq.f32 %v4960_v25  ;;  %v5250_v10 = vsub.s32 0, %v13121_v17  ;;  %v5117_v55 = vsel %vm5115_vm13, %v5105_v49, 2102212464  ;;  %vm5114_vm11 = vcmp.lt.s32.totalorder %v5093_v58, 3 }
 0x5d5   :  { %v5121_v60 = vsel %vm5115_vm13, %v5108_v62, 920167782  ;;  %v5124_v42 = vsel %vm5112_vm4, %v5102_v41, %v5105_v49  ;;  %v5125_v21 = vsel %vm5115_vm13, %v5111_v16, 1326507024  ;;  %v5116_v61 = vsel %vm5112_vm4, %v5096_v4, %v5099_v35  ;;  %v13170_v4 = vld [vmem:[#allocation2 + $0xe0] sm:$0xff] }
 0x5d6   :  { %v8080_v7 = vmin.u32 %v5250_v10, %v13121_v17  ;;  %v5122_v36 = vsel %vm5114_vm11, %v5105_v49, %v5121_v60  ;;  %v5126_v13 = vsel %vm5114_vm11, %v5108_v62, %v5125_v21  ;;  %v5118_v1 = vsel %vm5114_vm11, %v5102_v41, %v5117_v55 }
 0x5d7   :  { %v5123_v9 = vsel %vm5113_vm15, %v5120_v28, %v5122_v36  ;;  %v5127_v50 = vsel %vm5113_vm15, %v5124_v42, %v5126_v13  ;;  %v5805_v45 = vpack.c.bf16 %v5777_v63, %v5776_v20  ;;  %v5271_v59 = vsel %vm5186_vm7, %v5270_v29, %v5246_v8  ;;  %v5778_v28 = vld [vmem:[#allocation2 + $0x40] sm:$0xff] }
 0x5d8   :  { %v5252_v38 = vclz %v8080_v7  ;;  %v13136_v43 = vmul.u32.u64.low %v13116_v27, %v5127_v50  ;;  %v13137_v26 = vmul.u32.u64.high %v13116_v27, %v5127_v50, %v13136_v43  ;;  %v5119_v33 = vsel %vm5113_vm15, %v5116_v61, %v5118_v1 }
 0x5d9   :  { %v13140_v40 = vmul.u32.u64.low %v13116_v27, %v5123_v9  ;;  %v13141_v34 = vmul.u32.u64.high %v13116_v27, %v5123_v9, %v13140_v40  ;;  %8397 = vmatmul.mubr.msk.bf16.gmra.mrb[4].mxu0 %vm5866_vm0, %v5805_v45  ;;  %v5395_v3 = vand.u32 2139095040, %v13131_v18  ;;  %vm4968_vm1 = vcmp.eq.s32.totalorder %v13093_v12, 0 }
 0x5da   :  { %v8081_v2 = vadd.s32 4294967294, %v5252_v38  ;;  %vm4971_vm12 = vcmp.eq.s32.totalorder %v13093_v12, 2  ;;  %vm13150_vm3 = vcmp.le.f32.partialorder %v5184_v47, 0.7853982  ;;  %v5240_v15 = vadd.s32 %v13067_v44, %v13075_v51 }
 0x5db   :  { %v5273_v58 = vsel %vm13150_vm3, 0, %v5271_v59  ;;  %v5396_v8 = vshrl.u32 %v5395_v3, 23  ;;  %v5135_v57 = vmul.u32 %v13116_v27, %v5119_v33  ;;  %vm5137_vm5 = vc.u32 %v13137_v26, %v13140_v40 }
 0x5dc   :  { %vm8082_vm2 = vcmp.lt.s32.totalorder %v8081_v2, 0  ;;  %v5138_v23 = vadd.s32 1, %v13141_v34  ;;  %v5392_v30 = vand.u32 2147483647, %v13131_v18  ;;  %vm4964_vm6 = vweird.f32 %v12838_v6  ;;  %v5779_v6 = vld [vmem:[#allocation2 + $0x48] sm:$0xff] }
 0x5dd   :  { %v8941_v53 = vpop.eup %8940  ;;  %v5255_v54 = vsel %vm8082_vm2, 0, %v8081_v2  ;;  %v8087_v41 = vadd.s32 4294967169, %v5396_v8  ;;  %vm4967_vm8 = vcmp.lt.s32.totalorder %v13093_v12, 2  ;;  %v5277_v63 = vadd.s32 3, %v5273_v58 }
 0x5de   :  { %v8943_v47 = vpop.eup %8942  ;;  %v4972_v11 = vxor.u32 2147483648, %v8941_v53  ;;  %v5256_v52 = vsub.s32 32, %v5255_v54  ;;  %v5260_v32 = vsub.s32 4294967266, %v5255_v54  ;;  %v5257_v51 = vshll.u32 %v13121_v17, %v5255_v54 }
 0x5df   :  { %v4969_v44 = vxor.u32 2147483648, %v8943_v47  ;;  %v5139_v35 = vsel %vm5137_vm5, %v5138_v23, %v13141_v34  ;;  %v5402_v25 = vadd.s32 1, %v8087_v41  ;;  %v5399_v60 = vand.u32 8388607, %v5392_v30 }
 0x5e0   :  { %v4973_v49 = vsel %vm4971_vm12, %v4972_v11, %v8943_v47  ;;  %v5258_v19 = vshrl.u32 %v5240_v15, %v5256_v52  ;;  %v5261_v62 = vadd.s32 127, %v5260_v32  ;;  %v5140_v16 = vadd.s32 %v5139_v35, %v5135_v57 }
 0x5e1   :  { %v4970_v27 = vsel %vm4968_vm1, %v8941_v53, %v4969_v44  ;;  %vm5403_vm9 = vcmp.gt.s32.totalorder %v5402_v25, 0  ;;  %v5291_v7 = vand.u32 2139095040, %v13170_v4  ;;  %v5806_v9 = vpack.c.bf16 %v5779_v6, %v5778_v28 }
 0x5e2   :  { %v4974_v17 = vsel %vm4967_vm8, %v4970_v27, %v4973_v49  ;;  %v5259_v29 = vor.u32 %v5258_v19, %v5257_v51  ;;  %v5262_v10 = vshll.u32 %v5261_v62, 23  ;;  %v5141_v55 = vadd.s32 536870912, %v5140_v16 }
 0x5e3   :  { %v4975_v20 = vsel %vm4964_vm6, nan, %v4974_v17  ;;  %v5404_v21 = vsel %vm5403_vm9, %v5402_v25, 0  ;;  %v13181_v50 = vand.u32 3, %v5277_v63  ;;  %v13184_v45 = vadd.s32 %v13140_v40, %v13137_v26  ;;  %8400 = vmatprep.mubr.msk.bf16.mxu0 %vm5866_vm0, %v5806_v9 }
 0x5e4   :  { %5729 = vst.msk [vmem:[#allocation2 + $0xc0] sm:$0xff] %vm5704_vm10, %v4975_v20  ;;  %v5263_v42 = vor.u32 4788187, %v5262_v10  ;;  %v13175_v12 = vshrl.u32 %v5141_v55, 30  ;;  %v5406_v61 = vand.u32 31, %v5404_v21  ;;  %v5266_v13 = vcvt.s32.f32 %v5259_v29 }
 0x5e5   :  { %5762 = vst.msk [vmem:[#allocation2 + $0xc0] sm:$0xff] %vm5737_vm14, %v9114_v5  ;;  %v5288_v59 = vand.u32 2147483647, %v13170_v4  ;;  %v5400_v2 = vor.u32 8388608, %v5399_v60  ;;  %v5292_v33 = vshrl.u32 %v5291_v7, 23  ;;  %v13190_v3 = vshrl.u32 %v5404_v21, 5 }
 0x5e6   :  { %v5264_v36 = vand.u32 2147483647, %v5263_v42  ;;  %v5143_v1 = vshll.u32 %v13175_v12, 30  ;;  %v5407_v38 = vsub.s32 32, %v5406_v61  ;;  %v5409_v15 = vshll.u32 %v9108_v31, %v5406_v61 }
 0x5e7   :  { %v5412_v53 = vshll.u32 %v9109_v22, %v5406_v61  ;;  %v5415_v23 = vshll.u32 %v9110_v14, %v5406_v61  ;;  %v5418_v47 = vshll.u32 %v9111_v0, %v5406_v61  ;;  %v5421_v51 = vshll.u32 %v9112_v24, %v5406_v61 }
 0x5e8   :  { %v5267_v43 = vmul.f32 %v5266_v13, %v5264_v36  ;;  %v13187_v34 = vsub.s32 %v5140_v16, %v5143_v1  ;;  %v5410_v58 = vshrl.u32 %v9109_v22, %v5407_v38  ;;  %v5413_v8 = vshrl.u32 %v9110_v14, %v5407_v38 }
 0x5e9   :  { %v5416_v54 = vshrl.u32 %v9111_v0, %v5407_v38  ;;  %v5419_v11 = vshrl.u32 %v9112_v24, %v5407_v38  ;;  %v5422_v19 = vshrl.u32 %v9113_v37, %v5407_v38  ;;  %v13209_v16 = vshll.u32 %v5400_v2, 8 }
 0x5ea   :  { %v5268_v26 = vxor.u32 2147483648, %v5267_v43  ;;  %v5146_v40 = vsub.s32 0, %v13187_v34  ;;  %v5411_v57 = vor.u32 %v5410_v58, %v5409_v15  ;;  %v5414_v44 = vor.u32 %v5413_v8, %v5412_v53 }
 0x5eb   :  { %v5417_v41 = vor.u32 %v5416_v54, %v5415_v23  ;;  %v5420_v49 = vor.u32 %v5419_v11, %v5418_v47  ;;  %v8083_v27 = vadd.s32 4294967169, %v5292_v33  ;;  %v5166_v25 = vsub.s32 4, %v13175_v12 }
 0x5ec   :  { %v5269_v52 = vsel %vm5186_vm7, %v5268_v26, %v5267_v43  ;;  %v8076_v32 = vmin.u32 %v5146_v40, %v13187_v34  ;;  %v5408_v17 = vshrl.u32 %v9108_v31, %v5407_v38  ;;  %v5423_v29 = vor.u32 %v5422_v19, %v5421_v51  ;;  %v5780_v38 = vld [vmem:[#allocation2 + $0x50] sm:$0xff]  ;;  %v5781_v43 = vld [vmem:[#allocation2 + $0x58] sm:$0xff] }
 0x5ed   :  { %v5272_v35 = vsel %vm13150_vm3, %v12913_v46, %v5269_v52  ;;  %vm5082_vm7 = vcmp.lt.s32.totalorder %v13000_v48, 0  ;;  %vm5424_vm4 = vcmp.lt.s32.totalorder %v13190_v3, 1  ;;  %vm5426_vm15 = vcmp.lt.s32.totalorder %v13190_v3, 3 }
 0x5ee   :  { %8944 = vcosq.f32 %v5272_v35  ;;  %v5148_v62 = vclz %v8076_v32  ;;  %vm5427_vm13 = vcmp.lt.s32.totalorder %v13190_v3, 4  ;;  %v5432_v55 = vsel %vm5424_vm4, %v5411_v57, %v5414_v44 }
 0x5ef   :  { %8946 = vsinq.f32 %v5272_v35  ;;  %v5429_v39 = vsel %vm5427_vm13, %v5417_v41, 2102212464  ;;  %v5433_v28 = vsel %vm5427_vm13, %v5420_v49, 920167782  ;;  %v5436_v20 = vsel %vm5424_vm4, %v5414_v44, %v5417_v41 }
 0x5f0   :  { %v8077_v10 = vadd.s32 4294967294, %v5148_v62  ;;  %vm5425_vm1 = vcmp.lt.s32.totalorder %v13190_v3, 2  ;;  %v5434_v63 = vsel %vm5426_vm15, %v5417_v41, %v5433_v28  ;;  %v5437_v60 = vsel %vm5427_vm13, %v5423_v29, 1326507024 }
 0x5f1   :  { %v5428_v42 = vsel %vm5424_vm4, %v5408_v17, %v5411_v57  ;;  %v5435_v21 = vsel %vm5425_vm1, %v5432_v55, %v5434_v63  ;;  %v5438_v7 = vsel %vm5426_vm15, %v5420_v49, %v5437_v60  ;;  %vm13226_vm12 = vcmp.le.f32.partialorder %v5080_v56, 0.7853982 }
 0x5f2   :  { %vm8078_vm11 = vcmp.lt.s32.totalorder %v8077_v10, 0  ;;  %v5430_v1 = vsel %vm5426_vm15, %v5414_v44, %v5429_v39  ;;  %v5439_v9 = vsel %vm5425_vm1, %v5436_v20, %v5438_v7  ;;  %vm5276_vm3 = vweird.f32 %v12913_v46 }
 0x5f3   :  { %v5151_v6 = vsel %vm8078_vm11, 0, %v8077_v10  ;;  %v13236_v2 = vmul.u32.u64.low %v13209_v16, %v5439_v9  ;;  %v13237_v33 = vmul.u32.u64.high %v13209_v16, %v5439_v9, %v13236_v2  ;;  %v5298_v40 = vadd.s32 1, %v8083_v27 }
 0x5f4   :  { %v5152_v36 = vsub.s32 32, %v5151_v6  ;;  %v5156_v13 = vsub.s32 4294967266, %v5151_v6  ;;  %v13240_v56 = vmul.u32.u64.low %v13209_v16, %v5435_v21  ;;  %v13241_v15 = vmul.u32.u64.high %v13209_v16, %v5435_v21, %v13240_v56 }
 0x5f5   :  { %v5153_v58 = vshll.u32 %v13187_v34, %v5151_v6  ;;  %vm5279_vm2 = vcmp.lt.s32.totalorder %v13181_v50, 2  ;;  %vm5283_vm5 = vcmp.eq.s32.totalorder %v13181_v50, 2  ;;  %v5431_v53 = vsel %vm5425_vm1, %v5428_v42, %v5430_v1 }
 0x5f6   :  { %v5154_v8 = vshrl.u32 %v13184_v45, %v5152_v36  ;;  %v5157_v26 = vadd.s32 127, %v5156_v13  ;;  %v5807_v54 = vpack.c.bf16 %v5781_v43, %v5780_v38  ;;  %v5295_v11 = vand.u32 8388607, %v5288_v59 }
 0x5f7   :  { %vm5299_vm6 = vcmp.gt.s32.totalorder %v5298_v40, 0  ;;  %v5167_v45 = vsel %vm5082_vm7, %v5166_v25, %v13175_v12  ;;  %vm5449_vm8 = vc.u32 %v13237_v33, %v13240_v56  ;;  %v5450_v3 = vadd.s32 1, %v13241_v15 }
 0x5f8   :  { %v8945_v57 = vpop.eup %8944  ;;  %v5155_v23 = vor.u32 %v5154_v8, %v5153_v58  ;;  %v5158_v47 = vshll.u32 %v5157_v26, 23  ;;  %8401 = vmatmul.mubr.msk.bf16.gmra.mrb[8].mxu0 %vm5866_vm0, %v5807_v54  ;;  %v5447_v51 = vmul.u32 %v13209_v16, %v5431_v53  ;;  %v5300_v35 = vsel %vm5299_vm6, %v5298_v40, 0  ;;  %v13286_v58 = vld [vmem:[#allocation2 + $0xf8] sm:$0xff] }
 0x5f9   :  { %v8947_v34 = vpop.eup %8946  ;;  %v5284_v52 = vxor.u32 2147483648, %v8945_v57  ;;  %vm5280_vm9 = vcmp.eq.s32.totalorder %v13181_v50, 0  ;;  %v5451_v49 = vsel %vm5449_vm8, %v5450_v3, %v13241_v15  ;;  %v5302_v12 = vand.u32 31, %v5300_v35 }
 0x5fa   :  { %v5281_v32 = vxor.u32 2147483648, %v8947_v34  ;;  %v5159_v44 = vor.u32 4788187, %v5158_v47  ;;  %v5162_v27 = vcvt.s32.f32 %v5155_v23  ;;  %v5452_v25 = vadd.s32 %v5451_v49, %v5447_v51 }
 0x5fb   :  { %v5285_v41 = vsel %vm5283_vm5, %v5284_v52, %v8947_v34  ;;  %v5169_v29 = vsel %vm13226_vm12, 0, %v5167_v45  ;;  %v5296_v16 = vor.u32 8388608, %v5295_v11  ;;  %v5303_v10 = vsub.s32 32, %v5302_v12  ;;  %v8820_v34 = vld [vmem:[%s14008_s4 + $0x30] sm:$0xff]   ;;  %v8821_v52 = vld [vmem:[%s14008_s4 + $0x38] sm:$0xff]  }
 0x5fc   :  { %v5282_v19 = vsel %vm5280_vm9, %v8945_v57, %v5281_v32  ;;  %v5160_v62 = vand.u32 2147483647, %v5159_v44  ;;  %v5453_v28 = vadd.s32 536870912, %v5452_v25  ;;  %v5305_v20 = vshll.u32 %v9108_v31, %v5302_v12  ;;  %8424 = vmatprep.subr.bf16.mxu1 %v8820_v34 }
 0x5fd   :  { %v5286_v17 = vsel %vm5279_vm2, %v5282_v19, %v5285_v41  ;;  %v5306_v63 = vshrl.u32 %v9109_v22, %v5303_v10  ;;  %v5308_v60 = vshll.u32 %v9109_v22, %v5302_v12  ;;  %v5309_v50 = vshrl.u32 %v9110_v14, %v5303_v10  ;;  %8425 = vmatpush3.bf16.msra.mxu1 %v8820_v34 }
 0x5fe   :  { %v5287_v39 = vsel %vm5276_vm3, nan, %v5286_v17  ;;  %v5163_v55 = vmul.f32 %v5162_v27, %v5160_v62  ;;  %v5312_v6 = vshrl.u32 %v9111_v0, %v5303_v10  ;;  %v13278_v46 = vshrl.u32 %v5453_v28, 30  ;;  %8426 = vmatprep.subr.bf16.mxu1 %v8821_v52  ;;  %v8822_v17 = vld [vmem:[%s14008_s4 + $0x40] sm:$0xff]  }
 0x5ff   :  { %5732 = vst.msk [vmem:[#allocation2 + $0xd8] sm:$0xff] %vm5704_vm10, %v5287_v39  ;;  %v5311_v21 = vshll.u32 %v9110_v14, %v5302_v12  ;;  %v5315_v7 = vshrl.u32 %v9112_v24, %v5303_v10  ;;  %v5173_v36 = vadd.s32 3, %v5169_v29  ;;  %v5301_v13 = vshrl.u32 %v5300_v35, 5 }
 0x600   :  { %5765 = vst.msk [vmem:[#allocation2 + $0xd8] sm:$0xff] %vm5737_vm14, %v9114_v5  ;;  %v5164_v42 = vxor.u32 2147483648, %v5163_v55  ;;  %v5307_v1 = vor.u32 %v5306_v63, %v5305_v20  ;;  %v5314_v9 = vshll.u32 %v9111_v0, %v5302_v12  ;;  %v5455_v43 = vshll.u32 %v13278_v46, 30 }
 0x601   :  { %v5310_v2 = vor.u32 %v5309_v50, %v5308_v60  ;;  %v5313_v15 = vor.u32 %v5312_v6, %v5311_v21  ;;  %v5317_v40 = vshll.u32 %v9112_v24, %v5302_v12  ;;  %v5318_v53 = vshrl.u32 %v9113_v37, %v5303_v10  ;;  %8427 = vmatpush3.bf16.msra.mxu1 %v8821_v52 }
 0x602   :  { %v5165_v38 = vsel %vm5082_vm7, %v5164_v42, %v5163_v55  ;;  %v5316_v26 = vor.u32 %v5315_v7, %v5314_v9  ;;  %v13293_v54 = vsub.s32 %v5452_v25, %v5455_v43  ;;  %v13295_v57 = vand.u32 3, %v5173_v36  ;;  %8428 = vmatprep.subr.bf16.mxu1 %v8822_v17  ;;  %v8823_v36 = vld [vmem:[%s14008_s4 + $0x48] sm:$0xff]  }
 0x603   :  { %v5168_v8 = vsel %vm13226_vm12, %v13000_v48, %v5165_v38  ;;  %v5319_v23 = vor.u32 %v5318_v53, %v5317_v40  ;;  %v5603_v47 = vand.u32 2139095040, %v13286_v58  ;;  %vm5320_vm7 = vcmp.lt.s32.totalorder %v5301_v13, 1 }
 0x604   :  { %8948 = vcosq.f32 %v5168_v8  ;;  %v5458_v11 = vsub.s32 0, %v13293_v54  ;;  %vm5323_vm4 = vcmp.lt.s32.totalorder %v5301_v13, 4  ;;  %v13299_v61 = vshll.u32 %v5296_v16, 8 }
 0x605   :  { %8950 = vsinq.f32 %v5168_v8  ;;  %vm5322_vm15 = vcmp.lt.s32.totalorder %v5301_v13, 3  ;;  %v5325_v45 = vsel %vm5323_vm4, %v5313_v15, 2102212464  ;;  %v5328_v3 = vsel %vm5320_vm7, %v5307_v1, %v5310_v2  ;;  %8429 = vmatpush3.bf16.msra.mxu1 %v8822_v17 }
 0x606   :  { %v5329_v32 = vsel %vm5323_vm4, %v5316_v26, 920167782  ;;  %v8088_v44 = vmin.u32 %v5458_v11, %v13293_v54  ;;  %v5304_v51 = vshrl.u32 %v9108_v31, %v5303_v10  ;;  %vm5321_vm13 = vcmp.lt.s32.totalorder %v5301_v13, 2  ;;  %8430 = vmatprep.subr.bf16.mxu1 %v8823_v36 }
 0x607   :  { %v5330_v35 = vsel %vm5322_vm15, %v5313_v15, %v5329_v32  ;;  %v5332_v49 = vsel %vm5320_vm7, %v5310_v2, %v5313_v15  ;;  %v5333_v12 = vsel %vm5323_vm4, %v5319_v23, 1326507024  ;;  %v5604_v19 = vshrl.u32 %v5603_v47, 23 }
 0x608   :  { %v5331_v41 = vsel %vm5321_vm13, %v5328_v3, %v5330_v35  ;;  %vm5175_vm11 = vcmp.lt.s32.totalorder %v13295_v57, 2  ;;  %vm5394_vm1 = vcmp.lt.s32.totalorder %v13131_v18, 0  ;;  %v5460_v62 = vclz %v8088_v44 }
 0x609   :  { %v5324_v27 = vsel %vm5320_vm7, %v5304_v51, %v5307_v1  ;;  %v5326_v25 = vsel %vm5322_vm15, %v5310_v2, %v5325_v45  ;;  %vm5172_vm12 = vweird.f32 %v13000_v48  ;;  %v5334_v29 = vsel %vm5322_vm15, %v5316_v26, %v5333_v12  ;;  %8431 = vmatpush3.bf16.msra.mxu1 %v8823_v36 }
 0x60a   :  { %v13323_v16 = vmul.u32.u64.low %v13299_v61, %v5331_v41  ;;  %v13324_v10 = vmul.u32.u64.high %v13299_v61, %v5331_v41, %v13323_v16  ;;  %v8095_v39 = vadd.s32 4294967169, %v5604_v19  ;;  %vm5176_vm3 = vcmp.eq.s32.totalorder %v13295_v57, 0 }
 0x60b   :  { %vm5179_vm2 = vcmp.eq.s32.totalorder %v13295_v57, 2  ;;  %v8089_v55 = vadd.s32 4294967294, %v5460_v62  ;;  %v5335_v28 = vsel %vm5321_vm13, %v5332_v49, %v5334_v29  ;;  %v5327_v20 = vsel %vm5321_vm13, %v5324_v27, %v5326_v25 }
 0x60c   :  { %v13332_v63 = vmul.u32.u64.low %v13299_v61, %v5335_v28  ;;  %v13333_v60 = vmul.u32.u64.high %v13299_v61, %v5335_v28, %v13332_v63  ;;  %v5610_v50 = vadd.s32 1, %v8095_v39  ;;  %v5448_v42 = vadd.s32 %v13240_v56, %v13237_v33 }
 0x60d   :  { %vm8090_vm5 = vcmp.lt.s32.totalorder %v8089_v55, 0  ;;  %v5478_v21 = vsub.s32 4, %v13278_v46  ;;  %v5600_v7 = vand.u32 2147483647, %v13286_v58  ;;  %v5346_v38 = vadd.s32 1, %v13324_v10  ;;  %v13386_v63 = vld [vmem:[#allocation2 + $0xf0] sm:$0xff] }
 0x60e   :  { %v8949_v6 = vpop.eup %8948  ;;  %v5463_v9 = vsel %vm8090_vm5, 0, %v8089_v55  ;;  %vm5611_vm6 = vcmp.gt.s32.totalorder %v5610_v50, 0  ;;  %v5343_v33 = vmul.u32 %v13299_v61, %v5327_v20  ;;  %vm5345_vm8 = vc.u32 %v13333_v60, %v13323_v16 }
 0x60f   :  { %v8951_v13 = vpop.eup %8950  ;;  %v5180_v1 = vxor.u32 2147483648, %v8949_v6  ;;  %v5464_v2 = vsub.s32 32, %v5463_v9  ;;  %v5468_v15 = vsub.s32 4294967266, %v5463_v9  ;;  %v5465_v8 = vshll.u32 %v13293_v54, %v5463_v9 }
 0x610   :  { %v5177_v43 = vxor.u32 2147483648, %v8951_v13  ;;  %v5612_v26 = vsel %vm5611_vm6, %v5610_v50, 0  ;;  %v5347_v47 = vsel %vm5345_vm8, %v5346_v38, %v13324_v10  ;;  %v5479_v54 = vsel %vm5394_vm1, %v5478_v21, %v13278_v46 }
 0x611   :  { %v5181_v56 = vsel %vm5179_vm2, %v5180_v1, %v8951_v13  ;;  %v5466_v53 = vshrl.u32 %v5448_v42, %v5464_v2  ;;  %v5469_v23 = vadd.s32 127, %v5468_v15  ;;  %v5348_v61 = vadd.s32 %v5347_v47, %v5343_v33  ;;  %v8824_v2 = vld [vmem:[%s14008_s4 + $0x50] sm:$0xff]  }
 0x612   :  { %v5178_v40 = vsel %vm5176_vm3, %v8949_v6, %v5177_v43  ;;  %v5614_v34 = vand.u32 31, %v5612_v26  ;;  %vm13362_vm9 = vcmp.le.f32.partialorder %v5392_v30, 0.7853982  ;;  %v5607_v51 = vand.u32 8388607, %v5600_v7  ;;  %8432 = vmatprep.subr.bf16.mxu1 %v8824_v2 }
 0x613   :  { %v5182_v11 = vsel %vm5175_vm11, %v5178_v40, %v5181_v56  ;;  %v5467_v45 = vor.u32 %v5466_v53, %v5465_v8  ;;  %v5470_v3 = vshll.u32 %v5469_v23, 23  ;;  %v5349_v57 = vadd.s32 536870912, %v5348_v61  ;;  %8433 = vmatpush3.bf16.msra.mxu1 %v8824_v2 }
 0x614   :  { %v5183_v52 = vsel %vm5172_vm12, nan, %v5182_v11  ;;  %v5615_v44 = vsub.s32 32, %v5614_v34  ;;  %v5481_v48 = vsel %vm13362_vm9, 0, %v5479_v54  ;;  %v13372_v35 = vshrl.u32 %v5612_v26, 5  ;;  %v8825_v54 = vld [vmem:[%s14008_s4 + $0x58] sm:$0xff]  }
 0x615   :  { %5731 = vst.msk [vmem:[#allocation2 + $0xd0] sm:$0xff] %vm5704_vm10, %v5183_v52  ;;  %v5471_v46 = vor.u32 4788187, %v5470_v3  ;;  %v5474_v41 = vcvt.s32.f32 %v5467_v45  ;;  %v13374_v30 = vshrl.u32 %v5349_v57, 30  ;;  %v5626_v27 = vshll.u32 %v9111_v0, %v5614_v34  ;;  %8434 = vmatprep.subr.bf16.mxu1 %v8825_v54 }
 0x616   :  { %5764 = vst.msk [vmem:[#allocation2 + $0xd0] sm:$0xff] %vm5737_vm14, %v9114_v5  ;;  %v5618_v49 = vshrl.u32 %v9109_v22, %v5615_v44  ;;  %v5621_v12 = vshrl.u32 %v9110_v14, %v5615_v44  ;;  %v5624_v62 = vshrl.u32 %v9111_v0, %v5615_v44  ;;  %v5627_v25 = vshrl.u32 %v9112_v24, %v5615_v44 }
 0x617   :  { %v5472_v19 = vand.u32 2147483647, %v5471_v46  ;;  %v5351_v17 = vshll.u32 %v13374_v30, 30  ;;  %v5617_v29 = vshll.u32 %v9108_v31, %v5614_v34  ;;  %v5620_v10 = vshll.u32 %v9109_v22, %v5614_v34  ;;  %8435 = vmatpush3.bf16.msra.mxu1 %v8825_v54 }
 0x618   :  { %v5623_v39 = vshll.u32 %v9110_v14, %v5614_v34  ;;  %v5628_v28 = vor.u32 %v5627_v25, %v5626_v27  ;;  %v5630_v20 = vshrl.u32 %v9113_v37, %v5615_v44  ;;  %v5485_v13 = vadd.s32 3, %v5481_v48  ;;  %v5784_v27 = vld [vmem:[#allocation2 + $0x70] sm:$0xff] }
 0x619   :  { %v5475_v55 = vmul.f32 %v5474_v41, %v5472_v19  ;;  %v13388_v50 = vsub.s32 %v5348_v61, %v5351_v17  ;;  %v5619_v6 = vor.u32 %v5618_v49, %v5617_v29  ;;  %v5622_v42 = vor.u32 %v5621_v12, %v5620_v10  ;;  %v5783_v41 = vld [vmem:[#allocation2 + $0x68] sm:$0xff]  ;;  %v5785_v10 = vld [vmem:[#allocation2 + $0x78] sm:$0xff] }
 0x61a   :  { %v5625_v21 = vor.u32 %v5624_v62, %v5623_v39  ;;  %v5608_v1 = vor.u32 8388608, %v5607_v51  ;;  %v5629_v9 = vshll.u32 %v9112_v24, %v5614_v34  ;;  %vm5632_vm7 = vcmp.lt.s32.totalorder %v13372_v35, 1  ;;  %v5782_v51 = vld [vmem:[#allocation2 + $0x60] sm:$0xff] }
 0x61b   :  { %v5476_v36 = vxor.u32 2147483648, %v5475_v55  ;;  %v5354_v38 = vsub.s32 0, %v13388_v50  ;;  %vm5635_vm4 = vcmp.lt.s32.totalorder %v13372_v35, 4  ;;  %v5499_v43 = vand.u32 2139095040, %v13386_v63  ;;  %v5786_v39 = vld [vmem:[#allocation2 + $0x80] sm:$0xff] }
 0x61c   :  { %v5631_v33 = vor.u32 %v5630_v20, %v5629_v9  ;;  %vm5634_vm15 = vcmp.lt.s32.totalorder %v13372_v35, 3  ;;  %v5641_v56 = vsel %vm5635_vm4, %v5628_v28, 920167782  ;;  %v5637_v40 = vsel %vm5635_vm4, %v5625_v21, 2102212464 }
 0x61d   :  { %v5477_v15 = vsel %vm5394_vm1, %v5476_v36, %v5475_v55  ;;  %v8084_v26 = vmin.u32 %v5354_v38, %v13388_v50  ;;  %v5640_v53 = vsel %vm5632_vm7, %v5619_v6, %v5622_v42  ;;  %v5616_v23 = vshrl.u32 %v9108_v31, %v5615_v44  ;;  %v5787_v55 = vld [vmem:[#allocation2 + $0x88] sm:$0xff] }
 0x61e   :  { %v5480_v8 = vsel %vm13362_vm9, %v13131_v18, %v5477_v15  ;;  %v5642_v47 = vsel %vm5634_vm15, %v5625_v21, %v5641_v56  ;;  %v5648_v11 = vshll.u32 %v5608_v1, 8  ;;  %vm5633_vm13 = vcmp.lt.s32.totalorder %v13372_v35, 2  ;;  %v5788_v56 = vld [vmem:[#allocation2 + $0x90] sm:$0xff] }
 0x61f   :  { %8952 = vcosq.f32 %v5480_v8  ;;  %v5356_v61 = vclz %v8084_v26  ;;  %v5644_v34 = vsel %vm5632_vm7, %v5622_v42, %v5625_v21  ;;  %v5636_v52 = vsel %vm5632_vm7, %v5616_v23, %v5619_v6  ;;  %v5789_v23 = vld [vmem:[#allocation2 + $0x98] sm:$0xff] }
 0x620   :  { %8954 = vsinq.f32 %v5480_v8  ;;  %v5638_v45 = vsel %vm5634_vm15, %v5622_v42, %v5637_v40  ;;  %v5643_v3 = vsel %vm5633_vm13, %v5640_v53, %v5642_v47  ;;  %v5645_v32 = vsel %vm5635_vm4, %v5631_v33, 1326507024  ;;  %v5790_v47 = vld [vmem:[#allocation2 + $0xa0] sm:$0xff] }
 0x621   :  { %vm5290_vm11 = vcmp.lt.s32.totalorder %v13170_v4, 0  ;;  %v8085_v57 = vadd.s32 4294967294, %v5356_v61  ;;  %v5646_v44 = vsel %vm5634_vm15, %v5628_v28, %v5645_v32  ;;  %v13435_v49 = vand.u32 3, %v5485_v13 }
 0x622   :  { %v13431_v46 = vmul.u32.u64.low %v5648_v11, %v5643_v3  ;;  %v13432_v48 = vmul.u32.u64.high %v5648_v11, %v5643_v3, %v13431_v46  ;;  %v5647_v12 = vsel %vm5633_vm13, %v5644_v34, %v5646_v44  ;;  %v5496_v19 = vand.u32 2147483647, %v13386_v63 }
 0x623   :  { %v5500_v62 = vshrl.u32 %v5499_v43, 23  ;;  %vm8086_vm1 = vcmp.lt.s32.totalorder %v8085_v57, 0  ;;  %v5639_v25 = vsel %vm5633_vm13, %v5636_v52, %v5638_v45  ;;  %v5344_v28 = vadd.s32 %v13323_v16, %v13333_v60 }
 0x624   :  { %v13442_v17 = vmul.u32.u64.low %v5648_v11, %v5647_v12  ;;  %v13443_v29 = vmul.u32.u64.high %v5648_v11, %v5647_v12, %v13442_v17  ;;  %v5359_v20 = vsel %vm8086_vm1, 0, %v8085_v57  ;;  %v5808_v42 = vpack.c.bf16 %v5783_v41, %v5782_v51  ;;  %v5793_v41 = vld [vmem:[#allocation2 + $0xb8] sm:$0xff] }
 0x625   :  { %v8091_v6 = vadd.s32 4294967169, %v5500_v62  ;;  %vm5484_vm12 = vweird.f32 %v13131_v18  ;;  %v5360_v21 = vsub.s32 32, %v5359_v20  ;;  %v5364_v36 = vsub.s32 4294967266, %v5359_v20  ;;  %v5794_v17 = vld [vmem:[#allocation2 + $0xc0] sm:$0xff] }
 0x626   :  { %v5374_v13 = vsub.s32 4, %v13374_v30  ;;  %v5658_v35 = vadd.s32 1, %v13432_v48  ;;  %v5655_v1 = vmul.u32 %v5648_v11, %v5639_v25  ;;  %8404 = vmatprep.mubr.msk.bf16.mxu0 %vm5866_vm0, %v5808_v42  ;;  %v5809_v38 = vpack.c.bf16 %v5785_v10, %v5784_v27  ;;  %v5791_v11 = vld [vmem:[#allocation2 + $0xa8] sm:$0xff]  ;;  %v5792_v25 = vld [vmem:[#allocation2 + $0xb0] sm:$0xff] }
 0x627   :  { %v5506_v9 = vadd.s32 1, %v8091_v6  ;;  %v5810_v43 = vpack.c.bf16 %v5787_v55, %v5786_v39  ;;  %v5361_v2 = vshll.u32 %v13388_v50, %v5359_v20  ;;  %v5362_v16 = vshrl.u32 %v5344_v28, %v5360_v21  ;;  %v5795_v10 = vld [vmem:[#allocation2 + $0xc8] sm:$0xff] }
 0x628   :  { %v5365_v60 = vadd.s32 127, %v5364_v36  ;;  %vm5657_vm3 = vc.u32 %v13443_v29, %v13431_v46  ;;  %vm5487_vm2 = vcmp.lt.s32.totalorder %v13435_v49, 2  ;;  %vm5488_vm5 = vcmp.eq.s32.totalorder %v13435_v49, 0  ;;  %8405 = vmatmul.mubr.msk.bf16.gmra.mrb[12].mxu0 %vm5866_vm0, %v5809_v38 }
 0x629   :  { %v8953_v15 = vpop.eup %8952  ;;  %v5659_v33 = vsel %vm5657_vm3, %v5658_v35, %v13432_v48  ;;  %vm5507_vm6 = vcmp.gt.s32.totalorder %v5506_v9, 0  ;;  %v5363_v40 = vor.u32 %v5362_v16, %v5361_v2  ;;  %8408 = vmatprep.mubr.msk.bf16.mxu0 %vm5866_vm0, %v5810_v43  ;;  %vm5491_vm8 = vcmp.eq.s32.totalorder %v13435_v49, 2 }
 0x62a   :  { %v8955_v8 = vpop.eup %8954  ;;  %v5492_v26 = vxor.u32 2147483648, %v8953_v15  ;;  %v5366_v50 = vshll.u32 %v5365_v60, 23  ;;  %v5660_v53 = vadd.s32 %v5659_v33, %v5655_v1  ;;  %v5375_v61 = vsel %vm5290_vm11, %v5374_v13, %v13374_v30 }
 0x62b   :  { %v5489_v54 = vxor.u32 2147483648, %v8955_v8  ;;  %v5508_v34 = vsel %vm5507_vm6, %v5506_v9, 0  ;;  %v5503_v32 = vand.u32 8388607, %v5496_v19  ;;  %v5811_v48 = vpack.c.bf16 %v5789_v23, %v5788_v56 }
 0x62c   :  { %v5493_v52 = vsel %vm5491_vm8, %v5492_v26, %v8955_v8  ;;  %v5367_v45 = vor.u32 4788187, %v5366_v50  ;;  %v5661_v3 = vadd.s32 536870912, %v5660_v53  ;;  %v5510_v44 = vand.u32 31, %v5508_v34  ;;  %v5797_v50 = vld [vmem:[#allocation2 + $0xd8] sm:$0xff] }
 0x62d   :  { %v5490_v57 = vsel %vm5488_vm5, %v8953_v15, %v5489_v54  ;;  %v5812_v51 = vpack.c.bf16 %v5791_v11, %v5790_v47  ;;  %v5370_v27 = vcvt.s32.f32 %v5363_v40  ;;  %vm13475_vm9 = vcmp.le.f32.partialorder %v5288_v59, 0.7853982 }
 0x62e   :  { %v5494_v12 = vsel %vm5487_vm2, %v5490_v57, %v5493_v52  ;;  %v5368_v62 = vand.u32 2147483647, %v5367_v45  ;;  %v13469_v30 = vshrl.u32 %v5661_v3, 30  ;;  %v5511_v28 = vsub.s32 32, %v5510_v44 }
 0x62f   :  { %v5495_v39 = vsel %vm5484_vm12, nan, %v5494_v12  ;;  %v5377_v20 = vsel %vm13475_vm9, 0, %v5375_v61  ;;  %v5504_v42 = vor.u32 8388608, %v5503_v32  ;;  %v5813_v21 = vpack.c.bf16 %v5793_v41, %v5792_v25 }
 0x630   :  { %5734 = vst.msk [vmem:[#allocation2 + $0xe8] sm:$0xff] %vm5704_vm10, %v5495_v39  ;;  %v5371_v49 = vmul.f32 %v5370_v27, %v5368_v62  ;;  %v5663_v6 = vshll.u32 %v13469_v30, 30  ;;  %v5514_v18 = vshrl.u32 %v9109_v22, %v5511_v28  ;;  %v5517_v59 = vshrl.u32 %v9110_v14, %v5511_v28  ;;  %8409 = vmatmul.mubr.msk.bf16.gmra.mrb[16].mxu0 %vm5866_vm0, %v5811_v48 }
 0x631   :  { %5767 = vst.msk [vmem:[#allocation2 + $0xe8] sm:$0xff] %vm5737_vm14, %v9114_v5  ;;  %v5814_v36 = vpack.c.bf16 %v5795_v10, %v5794_v17  ;;  %v5513_v1 = vshll.u32 %v9108_v31, %v5510_v44  ;;  %v5520_v9 = vshrl.u32 %v9111_v0, %v5511_v28  ;;  %8412 = vmatprep.mubr.msk.bf16.mxu0 %vm5866_vm0, %v5812_v51  ;;  %v5509_v38 = vshrl.u32 %v5508_v34, 5 }
 0x632   :  { %v5372_v13 = vxor.u32 2147483648, %v5371_v49  ;;  %v13488_v35 = vsub.s32 %v5660_v53, %v5663_v6  ;;  %v5516_v43 = vshll.u32 %v9109_v22, %v5510_v44  ;;  %v5519_v2 = vshll.u32 %v9110_v14, %v5510_v44  ;;  %v5796_v14 = vld [vmem:[#allocation2 + $0xd0] sm:$0xff] }
 0x633   :  { %v5522_v16 = vshll.u32 %v9111_v0, %v5510_v44  ;;  %v5515_v33 = vor.u32 %v5514_v18, %v5513_v1  ;;  %v5523_v56 = vshrl.u32 %v9112_v24, %v5511_v28  ;;  %v5525_v40 = vshll.u32 %v9112_v24, %v5510_v44 }
 0x634   :  { %v5373_v60 = vsel %vm5290_vm11, %v5372_v13, %v5371_v49  ;;  %v5666_v15 = vsub.s32 0, %v13488_v35  ;;  %v5518_v26 = vor.u32 %v5517_v59, %v5516_v43  ;;  %v5526_v22 = vshrl.u32 %v9113_v37, %v5511_v28 }
 0x635   :  { %v5376_v8 = vsel %vm13475_vm9, %v13170_v4, %v5373_v60  ;;  %v5521_v53 = vor.u32 %v5520_v9, %v5519_v2  ;;  %v5524_v23 = vor.u32 %v5523_v56, %v5522_v16  ;;  %v5381_v47 = vadd.s32 3, %v5377_v20 }
 0x636   :  { %8956 = vcosq.f32 %v5376_v8  ;;  %v8096_v0 = vmin.u32 %v5666_v15, %v13488_v35  ;;  %v5527_v11 = vor.u32 %v5526_v22, %v5525_v40  ;;  %vm5528_vm7 = vcmp.lt.s32.totalorder %v5509_v38, 1 }
 0x637   :  { %8958 = vsinq.f32 %v5376_v8  ;;  %v5544_v61 = vshll.u32 %v5504_v42, 8  ;;  %v5815_v34 = vpack.c.bf16 %v5797_v50, %v5796_v14  ;;  %v5512_v52 = vshrl.u32 %v9108_v31, %v5511_v28 }
 0x638   :  { %v5668_v54 = vclz %v8096_v0  ;;  %vm5530_vm4 = vcmp.lt.s32.totalorder %v5509_v38, 3  ;;  %vm5531_vm15 = vcmp.lt.s32.totalorder %v5509_v38, 4  ;;  %v5536_v24 = vsel %vm5528_vm7, %v5515_v33, %v5518_v26  ;;  %8413 = vmatmul.mubr.msk.bf16.gmra.mrb[20].mxu0 %vm5866_vm0, %v5813_v21 }
 0x639   :  { %v5533_v45 = vsel %vm5531_vm15, %v5521_v53, 2102212464  ;;  %v5537_v3 = vsel %vm5531_vm15, %v5524_v23, 920167782  ;;  %v5540_v32 = vsel %vm5528_vm7, %v5518_v26, %v5521_v53  ;;  %8416 = vmatprep.mubr.msk.bf16.mxu0 %vm5866_vm0, %v5814_v36  ;;  %vm5529_vm13 = vcmp.lt.s32.totalorder %v5509_v38, 2 }
 0x63a   :  { %v8097_v37 = vadd.s32 4294967294, %v5668_v54  ;;  %v5532_v57 = vsel %vm5528_vm7, %v5512_v52, %v5515_v33  ;;  %v5538_v44 = vsel %vm5530_vm4, %v5521_v53, %v5537_v3  ;;  %v5541_v48 = vsel %vm5531_vm15, %v5527_v11, 1326507024 }
 0x63b   :  { %v5534_v51 = vsel %vm5530_vm4, %v5518_v26, %v5533_v45  ;;  %v5539_v31 = vsel %vm5529_vm13, %v5536_v24, %v5538_v44  ;;  %v5542_v41 = vsel %vm5530_vm4, %v5524_v23, %v5541_v48  ;;  %v5382_v17 = vand.u32 3, %v5381_v47  ;;  %v5799_v47 = vld [vmem:[#allocation2 + $0xe8] sm:$0xff] }
 0x63c   :  { %vm8098_vm11 = vcmp.lt.s32.totalorder %v8097_v37, 0  ;;  %v5543_v62 = vsel %vm5529_vm13, %v5540_v32, %v5542_v41  ;;  %v13514_v27 = vmul.u32.u64.low %v5544_v61, %v5539_v31  ;;  %v13515_v25 = vmul.u32.u64.high %v5544_v61, %v5539_v31, %v13514_v27 }
 0x63d   :  { %v5671_v12 = vsel %vm8098_vm11, 0, %v8097_v37  ;;  %v5656_v10 = vadd.s32 %v13431_v46, %v13443_v29  ;;  %v13520_v28 = vmul.u32.u64.low %v5544_v61, %v5543_v62  ;;  %v13521_v49 = vmul.u32.u64.high %v5544_v61, %v5543_v62, %v13520_v28 }
 0x63e   :  { %v5672_v39 = vsub.s32 32, %v5671_v12  ;;  %v5676_v55 = vsub.s32 4294967266, %v5671_v12  ;;  %v5673_v6 = vshll.u32 %v13488_v35, %v5671_v12  ;;  %v5535_v59 = vsel %vm5529_vm13, %v5532_v57, %v5534_v51 }
 0x63f   :  { %v5554_v13 = vadd.s32 1, %v13515_v25  ;;  %vm5387_vm1 = vcmp.eq.s32.totalorder %v5382_v17, 2  ;;  %vm5384_vm12 = vcmp.eq.s32.totalorder %v5382_v17, 0  ;;  %v5551_v43 = vmul.u32 %v5544_v61, %v5535_v59 }
 0x640   :  { %v8957_v20 = vpop.eup %8956  ;;  %v5674_v42 = vshrl.u32 %v5656_v10, %v5672_v39  ;;  %v5677_v18 = vadd.s32 127, %v5676_v55  ;;  %8417 = vmatmul.mubr.msk.bf16.gmra.mrb[24].mxu0 %vm5866_vm0, %v5815_v34  ;;  %vm5553_vm3 = vc.u32 %v13521_v49, %v13514_v27  ;;  %vm5383_vm2 = vcmp.lt.s32.totalorder %v5382_v17, 2 }
 0x641   :  { %v8959_v21 = vpop.eup %8958  ;;  %v5388_v36 = vxor.u32 2147483648, %v8957_v20  ;;  %v5555_v2 = vsel %vm5553_vm3, %v5554_v13, %v13515_v25  ;;  %vm5380_vm5 = vweird.f32 %v13170_v4  ;;  %v5686_v40 = vsub.s32 4, %v13469_v30 }
 0x642   :  { %v5385_v1 = vxor.u32 2147483648, %v8959_v21  ;;  %v5675_v46 = vor.u32 %v5674_v42, %v5673_v6  ;;  %v5678_v29 = vshll.u32 %v5677_v18, 23  ;;  %v5556_v60 = vadd.s32 %v5555_v2, %v5551_v43 }
 0x643   :  { %v5389_v9 = vsel %vm5387_vm1, %v5388_v36, %v8959_v21  ;;  %vm5602_vm6 = vcmp.lt.s32.totalorder %v13286_v58, 0  ;;  %vm5601_vm8 = vcmp.le.f32.partialorder %v5600_v7, 0.7853982  ;;  %v5552_v44 = vadd.s32 %v13514_v27, %v13521_v49 }
 0x644   :  { %v5386_v35 = vsel %vm5384_vm12, %v8957_v20, %v5385_v1  ;;  %v5679_v38 = vor.u32 4788187, %v5678_v29  ;;  %v5682_v56 = vcvt.s32.f32 %v5675_v46  ;;  %v5557_v8 = vadd.s32 536870912, %v5556_v60 }
 0x645   :  { %v5390_v16 = vsel %vm5383_vm2, %v5386_v35, %v5389_v9  ;;  %v5687_v0 = vsel %vm5602_vm6, %v5686_v40, %v13469_v30  ;;  %vm5692_vm13 = vweird.f32 %v13286_v58  ;;  %vm5498_vm11 = vcmp.lt.s32.totalorder %v13386_v63, 0 }
 0x646   :  { %v5391_v15 = vsel %vm5380_vm5, nan, %v5390_v16  ;;  %v5680_v33 = vand.u32 2147483647, %v5679_v38  ;;  %v5558_v22 = vshrl.u32 %v5557_v8, 30  ;;  %v5689_v11 = vsel %vm5601_vm8, 0, %v5687_v0 }
 0x647   :  { %5733 = vst.msk [vmem:[#allocation2 + $0xe0] sm:$0xff] %vm5704_vm10, %v5391_v15  ;;  %v5693_v24 = vadd.s32 3, %v5689_v11  ;;  %vm5497_vm1 = vcmp.le.f32.partialorder %v5496_v19, 0.7853982  ;;  %vm5588_vm5 = vweird.f32 %v13386_v63 }
 0x648   :  { %5766 = vst.msk [vmem:[#allocation2 + $0xe0] sm:$0xff] %vm5737_vm14, %v9114_v5  ;;  %v5683_v26 = vmul.f32 %v5682_v56, %v5680_v33  ;;  %v5559_v50 = vshll.u32 %v5558_v22, 30  ;;  %v5582_v42 = vsub.s32 4, %v5558_v22 }
 0x649   :  { %v5694_v7 = vand.u32 3, %v5693_v24 }
 0x64a   :  { %v5684_v14 = vxor.u32 2147483648, %v5683_v26  ;;  %v5560_v23 = vsub.s32 %v5556_v60, %v5559_v50  ;;  %v5583_v59 = vsel %vm5498_vm11, %v5582_v42, %v5558_v22 }
 0x64b   :  { %vm5696_vm7 = vcmp.eq.s32.totalorder %v5694_v7, 0  ;;  %vm5699_vm4 = vcmp.eq.s32.totalorder %v5694_v7, 2  ;;  %vm5695_vm15 = vcmp.lt.s32.totalorder %v5694_v7, 2  ;;  %v5585_v36 = vsel %vm5497_vm1, 0, %v5583_v59 }
 0x64c   :  { %v5685_v4 = vsel %vm5602_vm6, %v5684_v14, %v5683_v26  ;;  %v5562_v54 = vsub.s32 0, %v5560_v23  ;;  %v5589_v13 = vadd.s32 3, %v5585_v36 }
 0x64d   :  { %v5688_v53 = vsel %vm5601_vm8, %v13286_v58, %v5685_v4 }
 0x64e   :  { %8960 = vcosq.f32 %v5688_v53  ;;  %v8092_v52 = vmin.u32 %v5562_v54, %v5560_v23  ;;  %v5590_v1 = vand.u32 3, %v5589_v13 }
 0x64f   :  { %8962 = vsinq.f32 %v5688_v53  ;;  %v5798_v61 = vld [vmem:[#allocation2 + $0xe0] sm:$0xff] }
 0x650   :  { %v5816_v34 = vpack.c.bf16 %v5799_v47, %v5798_v61  ;;  %v5564_v37 = vclz %v8092_v52  ;;  %vm5595_vm12 = vcmp.eq.s32.totalorder %v5590_v1, 2  ;;  %vm5592_vm3 = vcmp.eq.s32.totalorder %v5590_v1, 0 }
 0x651   :  { %vm5591_vm2 = vcmp.lt.s32.totalorder %v5590_v1, 2 }
 0x652   :  { %8420 = vmatprep.mubr.msk.bf16.mxu0 %vm5866_vm0, %v5816_v34  ;;  %v8093_v45 = vadd.s32 4294967294, %v5564_v37 }
 0x654   :  { %vm8094_vm9 = vcmp.lt.s32.totalorder %v8093_v45, 0 }
 0x655   :  { %v5567_v30 = vsel %vm8094_vm9, 0, %v8093_v45 }
 0x656   :  { %v5568_v48 = vsub.s32 32, %v5567_v30  ;;  %v5572_v51 = vsub.s32 4294967266, %v5567_v30  ;;  %v5569_v12 = vshll.u32 %v5560_v23, %v5567_v30 }
 0x658   :  { %v8961_v3 = vpop.eup %8960  ;;  %v5570_v62 = vshrl.u32 %v5552_v44, %v5568_v48  ;;  %v5573_v25 = vadd.s32 127, %v5572_v51  ;;  %v8826_v51 = vld [vmem:[%s14008_s4 + $0x60] sm:$0xff]  }
 0x659   :  { %v8963_v32 = vpop.eup %8962  ;;  %v5700_v57 = vxor.u32 2147483648, %v8961_v3  ;;  %8468 = vmatprep.subr.bf16.mxu0 %v8826_v51 }
 0x65a   :  { %v5697_v31 = vxor.u32 2147483648, %v8963_v32  ;;  %v5571_v39 = vor.u32 %v5570_v62, %v5569_v12  ;;  %v5574_v55 = vshll.u32 %v5573_v25, 23  ;;  %8469 = vmatpush3.bf16.msra.mxu0 %v8826_v51  ;;  %v8829_v12 = vld [vmem:[%s14008_s4 + $0x78] sm:$0xff]   ;;  %v8830_v62 = vld [vmem:[%s14008_s4 + $0x80] sm:$0xff]  }
 0x65b   :  { %v5701_v41 = vsel %vm5699_vm4, %v5700_v57, %v8963_v32 }
 0x65c   :  { %v5698_v17 = vsel %vm5696_vm7, %v8961_v3, %v5697_v31  ;;  %v5575_v27 = vor.u32 4788187, %v5574_v55  ;;  %v5578_v20 = vcvt.s32.f32 %v5571_v39  ;;  %v8827_v31 = vld [vmem:[%s14008_s4 + $0x68] sm:$0xff]  }
 0x65d   :  { %v5702_v10 = vsel %vm5695_vm15, %v5698_v17, %v5701_v41  ;;  %8470 = vmatprep.subr.bf16.mxu0 %v8827_v31  ;;  %v8828_v41 = vld [vmem:[%s14008_s4 + $0x70] sm:$0xff]   ;;  %v8831_v17 = vld [vmem:[%s14008_s4 + $0x88] sm:$0xff]  }
 0x65e   :  { %v5703_v28 = vsel %vm5692_vm13, nan, %v5702_v10  ;;  %v5576_v49 = vand.u32 2147483647, %v5575_v27  ;;  %8471 = vmatpush3.bf16.msra.mxu0 %v8827_v31 }
 0x65f   :  { %5736 = vst.msk [vmem:[#allocation2 + $0xf8] sm:$0xff] %vm5704_vm10, %v5703_v28  ;;  %8472 = vmatprep.subr.bf16.mxu0 %v8828_v41 }
 0x660   :  { %5769 = vst.msk [vmem:[#allocation2 + $0xf8] sm:$0xff] %vm5737_vm14, %v9114_v5  ;;  %v5579_v6 = vmul.f32 %v5578_v20, %v5576_v49 }
 0x662   :  { %v5580_v18 = vxor.u32 2147483648, %v5579_v6  ;;  %8473 = vmatpush3.bf16.msra.mxu0 %v8828_v41 }
 0x663   :  { %8474 = vmatprep.subr.bf16.mxu0 %v8829_v12 }
 0x664   :  { %v5581_v58 = vsel %vm5498_vm11, %v5580_v18, %v5579_v6 }
 0x665   :  { %v5584_v21 = vsel %vm5497_vm1, %v13386_v63, %v5581_v58 }
 0x666   :  { %8964 = vcosq.f32 %v5584_v21  ;;  %8475 = vmatpush3.bf16.msra.mxu0 %v8829_v12 }
 0x667   :  { %8966 = vsinq.f32 %v5584_v21  ;;  %v5801_v16 = vld [vmem:[#allocation2 + $0xf8] sm:$0xff]  ;;  %8476 = vmatprep.subr.bf16.mxu0 %v8830_v62 }
 0x66a   :  { %8477 = vmatpush3.bf16.msra.mxu0 %v8830_v62 }
 0x66b   :  { %8478 = vmatprep.subr.bf16.mxu0 %v8831_v17 }
 0x66e   :  { %8479 = vmatpush3.bf16.msra.mxu0 %v8831_v17 }
 0x670   :  { %v8965_v46 = vpop.eup %8964 }
 0x671   :  { %v8967_v29 = vpop.eup %8966  ;;  %v5596_v9 = vxor.u32 2147483648, %v8965_v46 }
 0x672   :  { %v5593_v43 = vxor.u32 2147483648, %v8967_v29 }
 0x673   :  { %v5597_v35 = vsel %vm5595_vm12, %v5596_v9, %v8967_v29 }
 0x674   :  { %v5594_v38 = vsel %vm5592_vm3, %v8965_v46, %v5593_v43 }
 0x675   :  { %v5598_v19 = vsel %vm5591_vm2, %v5594_v38, %v5597_v35 }
 0x676   :  { %v5599_v2 = vsel %vm5588_vm5, nan, %v5598_v19 }
 0x677   :  { %5735 = vst.msk [vmem:[#allocation2 + $0xf0] sm:$0xff] %vm5704_vm10, %v5599_v2  ;;  %vm6741_vm10 = vcmask 523264  }
 0x678   :  { %5768 = vst.msk [vmem:[#allocation2 + $0xf0] sm:$0xff] %vm5737_vm14, %v9114_v5  ;;  %vm7015_vm14 = vcmask 261120  }
 0x67f   :  { %v5800_v60 = vld [vmem:[#allocation2 + $0xf0] sm:$0xff] }
 0x680   :  { %v5817_v15 = vpack.c.bf16 %v5801_v16, %v5800_v60 }
 0x682   :  { %8421 = vmatmul.mubr.msk.bf16.gmra.mrb[28].mxu0 %vm5866_vm0, %v5817_v15 }
 0x69b   :  { %v8394_v33 = vpop.f32.mrb[0].mxu0 }
 0x69c   :  { %v6078_v56 = vmax.f32 %v8394_v33, 0.0  ;;  %v5949_v8 = vpop.f32.mrb[1].mxu0 }
 0x69d   :  { %v6076_v26 = vmax.f32 %v5949_v8, 0.0  ;;  %v8395_v40 = vpop.f32.mrb[2].mxu0 }
 0x69e   :  { %v6079_v22 = vmax.f32 %v8395_v40, 0.0  ;;  %v5952_v14 = vpop.f32.mrb[3].mxu0 }
 0x69f   :  { %v6077_v63 = vmax.f32 %v5952_v14, 0.0 }
 0x6a0   :  { %v6109_v50 = vpack.c.bf16 %v6079_v22, %v6078_v56 }
 0x6a1   :  { %v6108_v4 = vpack.c.bf16 %v6077_v63, %v6076_v26 }
 0x6a3   :  { %8436 = vmatprep.mubr.msk.bf16.mxu1 %vm5866_vm0, %v6108_v4 }
 0x6a4   :  { %8437 = vmatmul.mubr.msk.bf16.vlgmr.msra.gmra.mrb[0].mxu1 %vm5866_vm0, %v6109_v50 }
 0x6ac   :  { %v8398_v5 = vpop.f32.mrb[4].mxu0 }
 0x6ad   :  { %v6082_v0 = vmax.f32 %v8398_v5, 0.0  ;;  %v5965_v53 = vpop.f32.mrb[5].mxu0 }
 0x6ae   :  { %v6080_v23 = vmax.f32 %v5965_v53, 0.0  ;;  %v8399_v47 = vpop.f32.mrb[6].mxu0 }
 0x6af   :  { %v6083_v11 = vmax.f32 %v8399_v47, 0.0  ;;  %v5968_v54 = vpop.f32.mrb[7].mxu0 }
 0x6b0   :  { %v6081_v61 = vmax.f32 %v5968_v54, 0.0 }
 0x6b1   :  { %v6111_v34 = vpack.c.bf16 %v6083_v11, %v6082_v0 }
 0x6b2   :  { %v6110_v52 = vpack.c.bf16 %v6081_v61, %v6080_v23 }
 0x6b4   :  { %8440 = vmatprep.mubr.msk.bf16.mxu1 %vm5866_vm0, %v6110_v52 }
 0x6b5   :  { %8441 = vmatmul.mubr.msk.bf16.gmra.mrb[4].mxu1 %vm5866_vm0, %v6111_v34 }
 0x6cb   :  { %v8402_v24 = vpop.f32.mrb[8].mxu0 }
 0x6cc   :  { %v6086_v37 = vmax.f32 %v8402_v24, 0.0  ;;  %v5981_v45 = vpop.f32.mrb[9].mxu0 }
 0x6cd   :  { %v6084_v7 = vmax.f32 %v5981_v45, 0.0  ;;  %v8403_v3 = vpop.f32.mrb[10].mxu0 }
 0x6ce   :  { %v6087_v30 = vmax.f32 %v8403_v3, 0.0  ;;  %v5984_v32 = vpop.f32.mrb[11].mxu0 }
 0x6cf   :  { %v6085_v57 = vmax.f32 %v5984_v32, 0.0 }
 0x6d0   :  { %v6113_v44 = vpack.c.bf16 %v6087_v30, %v6086_v37 }
 0x6d1   :  { %v6112_v48 = vpack.c.bf16 %v6085_v57, %v6084_v7 }
 0x6d3   :  { %8444 = vmatprep.mubr.msk.bf16.mxu1 %vm5866_vm0, %v6112_v48 }
 0x6d4   :  { %8445 = vmatmul.mubr.msk.bf16.gmra.mrb[8].mxu1 %vm5866_vm0, %v6113_v44 }
 0x6fb   :  { %v8406_v25 = vpop.f32.mrb[12].mxu0 }
 0x6fc   :  { %v6090_v10 = vmax.f32 %v8406_v25, 0.0  ;;  %v5997_v39 = vpop.f32.mrb[13].mxu0 }
 0x6fd   :  { %v6088_v55 = vmax.f32 %v5997_v39, 0.0  ;;  %v8407_v28 = vpop.f32.mrb[14].mxu0 }
 0x6fe   :  { %v6091_v27 = vmax.f32 %v8407_v28, 0.0  ;;  %v6000_v49 = vpop.f32.mrb[15].mxu0 }
 0x6ff   :  { %v6089_v20 = vmax.f32 %v6000_v49, 0.0 }
 0x700   :  { %v6115_v6 = vpack.c.bf16 %v6091_v27, %v6090_v10 }
 0x701   :  { %v6114_v42 = vpack.c.bf16 %v6089_v20, %v6088_v55 }
 0x703   :  { %v8410_v18 = vpop.f32.mrb[16].mxu0  ;;  %8448 = vmatprep.mubr.msk.bf16.mxu1 %vm5866_vm0, %v6114_v42 }
 0x704   :  { %v6094_v58 = vmax.f32 %v8410_v18, 0.0  ;;  %v6013_v59 = vpop.f32.mrb[17].mxu0  ;;  %8449 = vmatmul.mubr.msk.bf16.gmra.mrb[12].mxu1 %vm5866_vm0, %v6115_v6 }
 0x705   :  { %v6092_v21 = vmax.f32 %v6013_v59, 0.0  ;;  %v8411_v36 = vpop.f32.mrb[18].mxu0 }
 0x706   :  { %v6095_v13 = vmax.f32 %v8411_v36, 0.0  ;;  %v6016_v1 = vpop.f32.mrb[19].mxu0 }
 0x707   :  { %v6093_v46 = vmax.f32 %v6016_v1, 0.0  ;;  %v8832_v1 = vld [vmem:[%s14009_s5] sm:$0xff]  }
 0x708   :  { %v6117_v29 = vpack.c.bf16 %v6095_v13, %v6094_v58  ;;  %8512 = vmatprep.subr.bf16.mxu1 %v8832_v1 }
 0x709   :  { %v6116_v9 = vpack.c.bf16 %v6093_v46, %v6092_v21  ;;  %v8833_v46 = vld [vmem:[%s14009_s5 + $0x8] sm:$0xff]   ;;  %8513 = vmatpush3.bf16.msra.mxu1 %v8832_v1 }
 0x70a   :  { %8514 = vmatprep.subr.bf16.mxu1 %v8833_v46 }
 0x70b   :  { %v8414_v43 = vpop.f32.mrb[20].mxu0  ;;  %8452 = vmatprep.mubr.msk.bf16.mxu1 %vm5866_vm0, %v6116_v9  ;;  %v8835_v9 = vld [vmem:[%s14009_s5 + $0x18] sm:$0xff]  }
 0x70c   :  { %v6098_v35 = vmax.f32 %v8414_v43, 0.0  ;;  %v6029_v38 = vpop.f32.mrb[21].mxu0  ;;  %8453 = vmatmul.mubr.msk.bf16.gmra.mrb[16].mxu1 %vm5866_vm0, %v6117_v29  ;;  %v8834_v29 = vld [vmem:[%s14009_s5 + $0x10] sm:$0xff]  }
 0x70d   :  { %v6096_v19 = vmax.f32 %v6029_v38, 0.0  ;;  %v8415_v2 = vpop.f32.mrb[22].mxu0  ;;  %8515 = vmatpush3.bf16.msra.mxu1 %v8833_v46 }
 0x70e   :  { %v6099_v16 = vmax.f32 %v8415_v2, 0.0  ;;  %v6032_v60 = vpop.f32.mrb[23].mxu0  ;;  %8516 = vmatprep.subr.bf16.mxu1 %v8834_v29 }
 0x70f   :  { %v6097_v15 = vmax.f32 %v6032_v60, 0.0 }
 0x710   :  { %v6119_v33 = vpack.c.bf16 %v6099_v16, %v6098_v35 }
 0x711   :  { %v6118_v56 = vpack.c.bf16 %v6097_v15, %v6096_v19  ;;  %8517 = vmatpush3.bf16.msra.mxu1 %v8834_v29 }
 0x712   :  { %8518 = vmatprep.subr.bf16.mxu1 %v8835_v9 }
 0x713   :  { %8456 = vmatprep.mubr.msk.bf16.mxu1 %vm5866_vm0, %v6118_v56  ;;  %v8418_v8 = vpop.f32.mrb[24].mxu0 }
 0x714   :  { %8457 = vmatmul.mubr.msk.bf16.gmra.mrb[20].mxu1 %vm5866_vm0, %v6119_v33  ;;  %v6102_v26 = vmax.f32 %v8418_v8, 0.0  ;;  %v6045_v40 = vpop.f32.mrb[25].mxu0 }
 0x715   :  { %v6100_v22 = vmax.f32 %v6045_v40, 0.0  ;;  %v8419_v14 = vpop.f32.mrb[26].mxu0  ;;  %8519 = vmatpush3.bf16.msra.mxu1 %v8835_v9 }
 0x716   :  { %v6103_v63 = vmax.f32 %v8419_v14, 0.0  ;;  %v6048_v50 = vpop.f32.mrb[27].mxu0 }
 0x717   :  { %v6101_v4 = vmax.f32 %v6048_v50, 0.0 }
 0x718   :  { %v6121_v5 = vpack.c.bf16 %v6103_v63, %v6102_v26 }
 0x719   :  { %v6120_v0 = vpack.c.bf16 %v6101_v4, %v6100_v22 }
 0x71b   :  { %8460 = vmatprep.mubr.msk.bf16.mxu1 %vm5866_vm0, %v6120_v0 }
 0x71c   :  { %8461 = vmatmul.mubr.msk.bf16.gmra.mrb[24].mxu1 %vm5866_vm0, %v6121_v5 }
 0x755   :  { %v8422_v53 = vpop.f32.mrb[28].mxu0 }
 0x756   :  { %v6061_v23 = vpop.f32.mrb[29].mxu0  ;;  %v6106_v11 = vmax.f32 %v8422_v53, 0.0 }
 0x757   :  { %v8423_v47 = vpop.f32.mrb[30].mxu0  ;;  %v6104_v34 = vmax.f32 %v6061_v23, 0.0 }
 0x758   :  { %v6107_v54 = vmax.f32 %v8423_v47, 0.0  ;;  %v6064_v61 = vpop.f32.mrb[31].mxu0 }
 0x759   :  { %v6105_v52 = vmax.f32 %v6064_v61, 0.0 }
 0x75a   :  { %v6123_v24 = vpack.c.bf16 %v6107_v54, %v6106_v11 }
 0x75b   :  { %v6122_v37 = vpack.c.bf16 %v6105_v52, %v6104_v34 }
 0x75d   :  { %8464 = vmatprep.mubr.msk.bf16.mxu1 %vm5866_vm0, %v6122_v37 }
 0x75e   :  { %8465 = vmatmul.mubr.msk.bf16.gmra.mrb[28].mxu1 %vm5866_vm0, %v6123_v24 }
 0x777   :  { %v8438_v45 = vpop.f32.mrb[0].mxu1 }
 0x778   :  { %v6383_v7 = vmax.f32 %v8438_v45, 0.0  ;;  %v6254_v3 = vpop.f32.mrb[1].mxu1 }
 0x779   :  { %v6381_v30 = vmax.f32 %v6254_v3, 0.0  ;;  %v8439_v32 = vpop.f32.mrb[2].mxu1 }
 0x77a   :  { %v6384_v57 = vmax.f32 %v8439_v32, 0.0  ;;  %v6257_v44 = vpop.f32.mrb[3].mxu1 }
 0x77b   :  { %v6382_v48 = vmax.f32 %v6257_v44, 0.0 }
 0x77c   :  { %v6414_v51 = vpack.c.bf16 %v6384_v57, %v6383_v7 }
 0x77d   :  { %v6413_v31 = vpack.c.bf16 %v6382_v48, %v6381_v30 }
 0x77f   :  { %8480 = vmatprep.mubr.msk.bf16.mxu0 %vm5866_vm0, %v6413_v31 }
 0x780   :  { %8481 = vmatmul.mubr.msk.bf16.vlgmr.msra.gmra.mrb[32].mxu0 %vm5866_vm0, %v6414_v51 }
 0x788   :  { %v8442_v41 = vpop.f32.mrb[4].mxu1 }
 0x789   :  { %v6387_v12 = vmax.f32 %v8442_v41, 0.0  ;;  %v6270_v62 = vpop.f32.mrb[5].mxu1 }
 0x78a   :  { %v6385_v25 = vmax.f32 %v6270_v62, 0.0  ;;  %v8443_v17 = vpop.f32.mrb[6].mxu1 }
 0x78b   :  { %v6388_v10 = vmax.f32 %v8443_v17, 0.0  ;;  %v6273_v39 = vpop.f32.mrb[7].mxu1 }
 0x78c   :  { %v6386_v55 = vmax.f32 %v6273_v39, 0.0 }
 0x78d   :  { %v6416_v28 = vpack.c.bf16 %v6388_v10, %v6387_v12 }
 0x78e   :  { %v6415_v27 = vpack.c.bf16 %v6386_v55, %v6385_v25 }
 0x790   :  { %8484 = vmatprep.mubr.msk.bf16.mxu0 %vm5866_vm0, %v6415_v27 }
 0x791   :  { %8485 = vmatmul.mubr.msk.bf16.gmra.mrb[36].mxu0 %vm5866_vm0, %v6416_v28 }
 0x7a7   :  { %v8446_v49 = vpop.f32.mrb[8].mxu1 }
 0x7a8   :  { %v6391_v20 = vmax.f32 %v8446_v49, 0.0  ;;  %v6286_v6 = vpop.f32.mrb[9].mxu1 }
 0x7a9   :  { %v6389_v42 = vmax.f32 %v6286_v6, 0.0  ;;  %v8447_v18 = vpop.f32.mrb[10].mxu1 }
 0x7aa   :  { %v6392_v58 = vmax.f32 %v8447_v18, 0.0  ;;  %v6289_v59 = vpop.f32.mrb[11].mxu1 }
 0x7ab   :  { %v6390_v21 = vmax.f32 %v6289_v59, 0.0 }
 0x7ac   :  { %v6418_v36 = vpack.c.bf16 %v6392_v58, %v6391_v20 }
 0x7ad   :  { %v6417_v13 = vpack.c.bf16 %v6390_v21, %v6389_v42 }
 0x7af   :  { %8488 = vmatprep.mubr.msk.bf16.mxu0 %vm5866_vm0, %v6417_v13 }
 0x7b0   :  { %8489 = vmatmul.mubr.msk.bf16.gmra.mrb[40].mxu0 %vm5866_vm0, %v6418_v36 }
 0x7d7   :  { %v8450_v43 = vpop.f32.mrb[12].mxu1 }
 0x7d8   :  { %v6395_v35 = vmax.f32 %v8450_v43, 0.0  ;;  %v6302_v38 = vpop.f32.mrb[13].mxu1 }
 0x7d9   :  { %v6393_v19 = vmax.f32 %v6302_v38, 0.0  ;;  %v8451_v2 = vpop.f32.mrb[14].mxu1 }
 0x7da   :  { %v6396_v16 = vmax.f32 %v8451_v2, 0.0  ;;  %v6305_v60 = vpop.f32.mrb[15].mxu1 }
 0x7db   :  { %v6394_v15 = vmax.f32 %v6305_v60, 0.0 }
 0x7dc   :  { %v6420_v33 = vpack.c.bf16 %v6396_v16, %v6395_v35 }
 0x7dd   :  { %v6419_v56 = vpack.c.bf16 %v6394_v15, %v6393_v19 }
 0x7df   :  { %v8454_v8 = vpop.f32.mrb[16].mxu1  ;;  %8492 = vmatprep.mubr.msk.bf16.mxu0 %vm5866_vm0, %v6419_v56 }
 0x7e0   :  { %v6399_v26 = vmax.f32 %v8454_v8, 0.0  ;;  %v6318_v40 = vpop.f32.mrb[17].mxu1  ;;  %8493 = vmatmul.mubr.msk.bf16.gmra.mrb[44].mxu0 %vm5866_vm0, %v6420_v33 }
 0x7e1   :  { %v6397_v22 = vmax.f32 %v6318_v40, 0.0  ;;  %v8455_v14 = vpop.f32.mrb[18].mxu1 }
 0x7e2   :  { %v6400_v63 = vmax.f32 %v8455_v14, 0.0  ;;  %v6321_v50 = vpop.f32.mrb[19].mxu1 }
 0x7e3   :  { %v6398_v4 = vmax.f32 %v6321_v50, 0.0 }
 0x7e4   :  { %v6422_v5 = vpack.c.bf16 %v6400_v63, %v6399_v26 }
 0x7e5   :  { %v6421_v0 = vpack.c.bf16 %v6398_v4, %v6397_v22 }
 0x7e7   :  { %v8458_v53 = vpop.f32.mrb[20].mxu1  ;;  %8496 = vmatprep.mubr.msk.bf16.mxu0 %vm5866_vm0, %v6421_v0 }
 0x7e8   :  { %v6403_v23 = vmax.f32 %v8458_v53, 0.0  ;;  %v6334_v47 = vpop.f32.mrb[21].mxu1  ;;  %8497 = vmatmul.mubr.msk.bf16.gmra.mrb[48].mxu0 %vm5866_vm0, %v6422_v5 }
 0x7e9   :  { %v6401_v11 = vmax.f32 %v6334_v47, 0.0  ;;  %v8459_v54 = vpop.f32.mrb[22].mxu1 }
 0x7ea   :  { %v6404_v61 = vmax.f32 %v8459_v54, 0.0  ;;  %v6337_v34 = vpop.f32.mrb[23].mxu1 }
 0x7eb   :  { %v6402_v52 = vmax.f32 %v6337_v34, 0.0 }
 0x7ec   :  { %v6424_v24 = vpack.c.bf16 %v6404_v61, %v6403_v23 }
 0x7ed   :  { %v6423_v37 = vpack.c.bf16 %v6402_v52, %v6401_v11 }
 0x7ef   :  { %8500 = vmatprep.mubr.msk.bf16.mxu0 %vm5866_vm0, %v6423_v37  ;;  %v8462_v45 = vpop.f32.mrb[24].mxu1  ;;  %v8837_v37 = vld [vmem:[%s14009_s5 + $0x28] sm:$0xff]  }
 0x7f0   :  { %8501 = vmatmul.mubr.msk.bf16.gmra.mrb[52].mxu0 %vm5866_vm0, %v6424_v24  ;;  %v6407_v7 = vmax.f32 %v8462_v45, 0.0  ;;  %v6350_v3 = vpop.f32.mrb[25].mxu1  ;;  %v8836_v24 = vld [vmem:[%s14009_s5 + $0x20] sm:$0xff]  }
 0x7f1   :  { %v6405_v30 = vmax.f32 %v6350_v3, 0.0  ;;  %v8463_v32 = vpop.f32.mrb[26].mxu1  ;;  %8552 = vmatprep.subr.bf16.mxu0 %v8836_v24 }
 0x7f2   :  { %v6408_v57 = vmax.f32 %v8463_v32, 0.0  ;;  %v6353_v44 = vpop.f32.mrb[27].mxu1  ;;  %8553 = vmatpush3.bf16.msra.mxu0 %v8836_v24 }
 0x7f3   :  { %v6406_v48 = vmax.f32 %v6353_v44, 0.0  ;;  %8554 = vmatprep.subr.bf16.mxu0 %v8837_v37  ;;  %v13675_v44 = vld [vmem:[%s14010_s6] ss:$0 sm:$0xff] }
 0x7f4   :  { %v6426_v51 = vpack.c.bf16 %v6408_v57, %v6407_v7 }
 0x7f5   :  { %v6425_v31 = vpack.c.bf16 %v6406_v48, %v6405_v30 }
 0x7f6   :  { %8555 = vmatpush3.bf16.msra.mxu0 %v8837_v37 }
 0x7f7   :  { %8504 = vmatprep.mubr.msk.bf16.mxu0 %vm5866_vm0, %v6425_v31 }
 0x7f8   :  { %8505 = vmatmul.mubr.msk.bf16.gmra.mrb[56].mxu0 %vm5866_vm0, %v6426_v51 }
 0x831   :  { %v8466_v41 = vpop.f32.mrb[28].mxu1 }
 0x832   :  { %v6366_v12 = vpop.f32.mrb[29].mxu1  ;;  %v6411_v25 = vmax.f32 %v8466_v41, 0.0 }
 0x833   :  { %v8467_v62 = vpop.f32.mrb[30].mxu1  ;;  %v6409_v39 = vmax.f32 %v6366_v12, 0.0 }
 0x834   :  { %v6412_v17 = vmax.f32 %v8467_v62, 0.0  ;;  %v6369_v10 = vpop.f32.mrb[31].mxu1 }
 0x835   :  { %v6410_v55 = vmax.f32 %v6369_v10, 0.0 }
 0x836   :  { %v6428_v28 = vpack.c.bf16 %v6412_v17, %v6411_v25 }
 0x837   :  { %v6427_v27 = vpack.c.bf16 %v6410_v55, %v6409_v39 }
 0x839   :  { %8508 = vmatprep.mubr.msk.bf16.mxu0 %vm5866_vm0, %v6427_v27 }
 0x83a   :  { %8509 = vmatmul.mubr.msk.bf16.gmra.mrb[60].mxu0 %vm5866_vm0, %v6428_v28 }
 0x853   :  { %v8482_v49 = vpop.f32.mrb[32].mxu0 }
 0x854   :  { %7534 = vrot.lane.b32.xlu0 %v8482_v49, %s9115_s16  ;;  %v6559_v20 = vpop.f32.mrb[33].mxu0 }
 0x855   :  { %v8483_v6 = vpop.f32.mrb[34].mxu0 }
 0x856   :  { %v6687_v42 = vpack.c.bf16 %v8483_v6, %v8482_v49  ;;  %v6562_v18 = vpop.f32.mrb[35].mxu0 }
 0x857   :  { %v6686_v58 = vpack.c.bf16 %v6562_v18, %v6559_v20 }
 0x858   :  { %7530 = vrot.lane.b32.xlu0 %v6559_v20, %s9115_s16 }
 0x859   :  { %8520 = vmatprep.mubr.msk.bf16.mxu1 %vm6741_vm10, %v6686_v58 }
 0x85a   :  { %8521 = vmatmul.mubr.msk.bf16.vlgmr.msra.gmra.mrb[32].mxu1 %vm6741_vm10, %v6687_v42 }
 0x85c   :  { %7536 = vrot.lane.b32.xlu0 %v8483_v6, %s9115_s16 }
 0x860   :  { %7532 = vrot.lane.b32.xlu0 %v6562_v18, %s9115_s16 }
 0x864   :  { %v8486_v59 = vpop.f32.mrb[36].mxu0 }
 0x865   :  { %v6575_v21 = vpop.f32.mrb[37].mxu0  ;;  %7542 = vrot.lane.b32.xlu0 %v8486_v59, %s9115_s16 }
 0x866   :  { %v8487_v36 = vpop.f32.mrb[38].mxu0 }
 0x867   :  { %v6689_v13 = vpack.c.bf16 %v8487_v36, %v8486_v59  ;;  %v6578_v1 = vpop.f32.mrb[39].mxu0 }
 0x868   :  { %v6688_v46 = vpack.c.bf16 %v6578_v1, %v6575_v21 }
 0x869   :  { %7538 = vrot.lane.b32.xlu0 %v6575_v21, %s9115_s16 }
 0x86a   :  { %8524 = vmatprep.mubr.msk.bf16.mxu1 %vm6741_vm10, %v6688_v46 }
 0x86b   :  { %8525 = vmatmul.mubr.msk.bf16.gmra.mrb[36].mxu1 %vm6741_vm10, %v6689_v13 }
 0x86d   :  { %7544 = vrot.lane.b32.xlu0 %v8487_v36, %s9115_s16 }
 0x871   :  { %7540 = vrot.lane.b32.xlu0 %v6578_v1, %s9115_s16 }
 0x883   :  { %v8490_v29 = vpop.f32.mrb[40].mxu0 }
 0x884   :  { %v6591_v9 = vpop.f32.mrb[41].mxu0  ;;  %7550 = vrot.lane.b32.xlu0 %v8490_v29, %s9115_s16 }
 0x885   :  { %v8491_v43 = vpop.f32.mrb[42].mxu0 }
 0x886   :  { %v6691_v35 = vpack.c.bf16 %v8491_v43, %v8490_v29  ;;  %v6594_v38 = vpop.f32.mrb[43].mxu0 }
 0x887   :  { %v6690_v19 = vpack.c.bf16 %v6594_v38, %v6591_v9 }
 0x888   :  { %7546 = vrot.lane.b32.xlu0 %v6591_v9, %s9115_s16 }
 0x889   :  { %8528 = vmatprep.mubr.msk.bf16.mxu1 %vm6741_vm10, %v6690_v19 }
 0x88a   :  { %8529 = vmatmul.mubr.msk.bf16.gmra.mrb[40].mxu1 %vm6741_vm10, %v6691_v35 }
 0x88c   :  { %7552 = vrot.lane.b32.xlu0 %v8491_v43, %s9115_s16 }
 0x890   :  { %7548 = vrot.lane.b32.xlu0 %v6594_v38, %s9115_s16 }
 0x8b3   :  { %v8494_v2 = vpop.f32.mrb[44].mxu0 }
 0x8b4   :  { %v6607_v16 = vpop.f32.mrb[45].mxu0  ;;  %7558 = vrot.lane.b32.xlu0 %v8494_v2, %s9115_s16 }
 0x8b5   :  { %v8495_v60 = vpop.f32.mrb[46].mxu0 }
 0x8b6   :  { %v6693_v15 = vpack.c.bf16 %v8495_v60, %v8494_v2  ;;  %v6610_v33 = vpop.f32.mrb[47].mxu0 }
 0x8b7   :  { %v6692_v56 = vpack.c.bf16 %v6610_v33, %v6607_v16 }
 0x8b8   :  { %7554 = vrot.lane.b32.xlu0 %v6607_v16, %s9115_s16 }
 0x8b9   :  { %8532 = vmatprep.mubr.msk.bf16.mxu1 %vm6741_vm10, %v6692_v56 }
 0x8ba   :  { %8533 = vmatmul.mubr.msk.bf16.gmra.mrb[44].mxu1 %vm6741_vm10, %v6693_v15 }
 0x8bb   :  { %v8498_v8 = vpop.f32.mrb[48].mxu0 }
 0x8bc   :  { %v6623_v26 = vpop.f32.mrb[49].mxu0  ;;  %7566 = vrot.lane.b32.xlu1 %v8498_v8, %s9115_s16  ;;  %7556 = vrot.lane.b32.xlu0 %v6610_v33, %s9115_s16 }
 0x8bd   :  { %v8499_v40 = vpop.f32.mrb[50].mxu0 }
 0x8be   :  { %v6695_v22 = vpack.c.bf16 %v8499_v40, %v8498_v8  ;;  %v6626_v14 = vpop.f32.mrb[51].mxu0 }
 0x8bf   :  { %v6694_v63 = vpack.c.bf16 %v6626_v14, %v6623_v26 }
 0x8c0   :  { %7562 = vrot.lane.b32.xlu1 %v6623_v26, %s9115_s16  ;;  %7560 = vrot.lane.b32.xlu0 %v8495_v60, %s9115_s16 }
 0x8c1   :  { %8536 = vmatprep.mubr.msk.bf16.mxu1 %vm6741_vm10, %v6694_v63  ;;  %v8838_v63 = vld [vmem:[%s14009_s5 + $0x30] sm:$0xff]  }
 0x8c2   :  { %8537 = vmatmul.mubr.msk.bf16.gmra.mrb[48].mxu1 %vm6741_vm10, %v6695_v22  ;;  %8588 = vmatprep.subr.bf16.mxu1 %v8838_v63 }
 0x8c3   :  { %v8502_v50 = vpop.f32.mrb[52].mxu0  ;;  %8589 = vmatpush3.bf16.msra.mxu1 %v8838_v63 }
 0x8c4   :  { %v6639_v4 = vpop.f32.mrb[53].mxu0  ;;  %7568 = vrot.lane.b32.xlu1 %v8499_v40, %s9115_s16 }
 0x8c5   :  { %v8503_v5 = vpop.f32.mrb[54].mxu0 }
 0x8c6   :  { %v6697_v0 = vpack.c.bf16 %v8503_v5, %v8502_v50  ;;  %v6642_v53 = vpop.f32.mrb[55].mxu0 }
 0x8c7   :  { %v6696_v23 = vpack.c.bf16 %v6642_v53, %v6639_v4 }
 0x8c8   :  { %7564 = vrot.lane.b32.xlu1 %v6626_v14, %s9115_s16 }
 0x8c9   :  { %8540 = vmatprep.mubr.msk.bf16.mxu1 %vm6741_vm10, %v6696_v23 }
 0x8ca   :  { %8541 = vmatmul.mubr.msk.bf16.gmra.mrb[52].mxu1 %vm6741_vm10, %v6697_v0 }
 0x8cb   :  { %v8506_v47 = vpop.f32.mrb[56].mxu0 }
 0x8cc   :  { %v6655_v11 = vpop.f32.mrb[57].mxu0  ;;  %7574 = vrot.lane.b32.xlu1 %v8502_v50, %s9115_s16 }
 0x8cd   :  { %v8507_v54 = vpop.f32.mrb[58].mxu0 }
 0x8ce   :  { %v6699_v61 = vpack.c.bf16 %v8507_v54, %v8506_v47  ;;  %v6658_v34 = vpop.f32.mrb[59].mxu0 }
 0x8cf   :  { %v6698_v52 = vpack.c.bf16 %v6658_v34, %v6655_v11 }
 0x8d0   :  { %7570 = vrot.lane.b32.xlu1 %v6639_v4, %s9115_s16 }
 0x8d1   :  { %8544 = vmatprep.mubr.msk.bf16.mxu1 %vm6741_vm10, %v6698_v52 }
 0x8d2   :  { %8545 = vmatmul.mubr.msk.bf16.gmra.mrb[56].mxu1 %vm6741_vm10, %v6699_v61 }
 0x8d4   :  { %7576 = vrot.lane.b32.xlu1 %v8503_v5, %s9115_s16 }
 0x8d8   :  { %7572 = vrot.lane.b32.xlu1 %v6642_v53, %s9115_s16 }
 0x8dc   :  { %7582 = vrot.lane.b32.xlu1 %v8506_v47, %s9115_s16 }
 0x8e0   :  { %7578 = vrot.lane.b32.xlu1 %v6655_v11, %s9115_s16 }
 0x8e4   :  { %7584 = vrot.lane.b32.xlu1 %v8507_v54, %s9115_s16  ;;  %v8839_v54 = vld [vmem:[%s14009_s5 + $0x38] sm:$0xff]  }
 0x8e5   :  { %8590 = vmatprep.subr.bf16.mxu1 %v8839_v54 }
 0x8e6   :  { %8591 = vmatpush3.bf16.msra.mxu1 %v8839_v54 }
 0x8e8   :  { %7580 = vrot.lane.b32.xlu1 %v6658_v34, %s9115_s16 }
 0x90d   :  { %v8510_v45 = vpop.f32.mrb[60].mxu0 }
 0x90e   :  { %7590 = vrot.lane.b32.xlu1 %v8510_v45, %s9115_s16  ;;  %v6671_v7 = vpop.f32.mrb[61].mxu0 }
 0x90f   :  { %v8511_v3 = vpop.f32.mrb[62].mxu0 }
 0x910   :  { %v6701_v30 = vpack.c.bf16 %v8511_v3, %v8510_v45  ;;  %v6674_v32 = vpop.f32.mrb[63].mxu0 }
 0x911   :  { %v6700_v57 = vpack.c.bf16 %v6674_v32, %v6671_v7 }
 0x912   :  { %7586 = vrot.lane.b32.xlu1 %v6671_v7, %s9115_s16 }
 0x913   :  { %8548 = vmatprep.mubr.msk.bf16.mxu1 %vm6741_vm10, %v6700_v57 }
 0x914   :  { %8549 = vmatmul.mubr.msk.bf16.gmra.mrb[60].mxu1 %vm6741_vm10, %v6701_v30 }
 0x916   :  { %7588 = vrot.lane.b32.xlu1 %v6674_v32, %s9115_s16 }
 0x91a   :  { %7592 = vrot.lane.b32.xlu1 %v8511_v3, %s9115_s16 }
 0x92d   :  { %v8522_v48 = vpop.f32.mrb[32].mxu1 }
 0x92e   :  { %v6833_v51 = vadd.f32 %v8522_v48, %v13675_v44  ;;  %v6824_v31 = vpop.f32.mrb[33].mxu1 }
 0x92f   :  { %v6825_v41 = vadd.f32 %v13675_v44, %v6824_v31  ;;  %v8523_v12 = vpop.f32.mrb[34].mxu1 }
 0x930   :  { %v6953_v62 = vmax.f32 %v6833_v51, 0.0  ;;  %v6836_v25 = vadd.f32 %v8523_v12, %v13675_v44  ;;  %v6827_v17 = vpop.f32.mrb[35].mxu1 }
 0x931   :  { %v6951_v10 = vmax.f32 %v6825_v41, 0.0  ;;  %v6828_v55 = vadd.f32 %v13675_v44, %v6827_v17 }
 0x932   :  { %v6954_v39 = vmax.f32 %v6836_v25, 0.0 }
 0x933   :  { %v6952_v27 = vmax.f32 %v6828_v55, 0.0 }
 0x934   :  { %v6984_v28 = vpack.c.bf16 %v6954_v39, %v6953_v62 }
 0x935   :  { %v6983_v49 = vpack.c.bf16 %v6952_v27, %v6951_v10 }
 0x937   :  { %8556 = vmatprep.mubr.msk.bf16.mxu0 %vm7015_vm14, %v6983_v49 }
 0x938   :  { %8557 = vmatmul.mubr.msk.bf16.vlgmr.msra.gmra.mrb[64].mxu0 %vm7015_vm14, %v6984_v28 }
 0x93e   :  { %v8526_v20 = vpop.f32.mrb[36].mxu1 }
 0x93f   :  { %v6849_v6 = vadd.f32 %v8526_v20, %v13675_v44  ;;  %v6840_v42 = vpop.f32.mrb[37].mxu1 }
 0x940   :  { %v6841_v18 = vadd.f32 %v13675_v44, %v6840_v42  ;;  %v8527_v58 = vpop.f32.mrb[38].mxu1 }
 0x941   :  { %v6957_v59 = vmax.f32 %v6849_v6, 0.0  ;;  %v6852_v21 = vadd.f32 %v8527_v58, %v13675_v44  ;;  %v6843_v36 = vpop.f32.mrb[39].mxu1 }
 0x942   :  { %v6955_v13 = vmax.f32 %v6841_v18, 0.0  ;;  %v6844_v1 = vadd.f32 %v13675_v44, %v6843_v36 }
 0x943   :  { %v6958_v46 = vmax.f32 %v6852_v21, 0.0 }
 0x944   :  { %v6956_v29 = vmax.f32 %v6844_v1, 0.0 }
 0x945   :  { %v6986_v9 = vpack.c.bf16 %v6958_v46, %v6957_v59 }
 0x946   :  { %v6985_v43 = vpack.c.bf16 %v6956_v29, %v6955_v13 }
 0x948   :  { %8560 = vmatprep.mubr.msk.bf16.mxu0 %vm7015_vm14, %v6985_v43 }
 0x949   :  { %8561 = vmatmul.mubr.msk.bf16.gmra.mrb[68].mxu0 %vm7015_vm14, %v6986_v9 }
 0x95d   :  { %v8530_v35 = vpop.f32.mrb[40].mxu1 }
 0x95e   :  { %v6865_v38 = vadd.f32 %v8530_v35, %v13675_v44  ;;  %v6856_v19 = vpop.f32.mrb[41].mxu1 }
 0x95f   :  { %v6857_v2 = vadd.f32 %v13675_v44, %v6856_v19  ;;  %v8531_v16 = vpop.f32.mrb[42].mxu1 }
 0x960   :  { %v6961_v60 = vmax.f32 %v6865_v38, 0.0  ;;  %v6868_v15 = vadd.f32 %v8531_v16, %v13675_v44  ;;  %v6859_v33 = vpop.f32.mrb[43].mxu1 }
 0x961   :  { %v6959_v56 = vmax.f32 %v6857_v2, 0.0  ;;  %v6860_v8 = vadd.f32 %v13675_v44, %v6859_v33 }
 0x962   :  { %v6962_v26 = vmax.f32 %v6868_v15, 0.0 }
 0x963   :  { %v6960_v40 = vmax.f32 %v6860_v8, 0.0 }
 0x964   :  { %v6988_v22 = vpack.c.bf16 %v6962_v26, %v6961_v60 }
 0x965   :  { %v6987_v14 = vpack.c.bf16 %v6960_v40, %v6959_v56 }
 0x967   :  { %8564 = vmatprep.mubr.msk.bf16.mxu0 %vm7015_vm14, %v6987_v14 }
 0x968   :  { %8565 = vmatmul.mubr.msk.bf16.gmra.mrb[72].mxu0 %vm7015_vm14, %v6988_v22 }
 0x98d   :  { %v8534_v50 = vpop.f32.mrb[44].mxu1 }
 0x98e   :  { %v6881_v4 = vadd.f32 %v8534_v50, %v13675_v44  ;;  %v6872_v5 = vpop.f32.mrb[45].mxu1 }
 0x98f   :  { %v6873_v0 = vadd.f32 %v13675_v44, %v6872_v5  ;;  %v8535_v53 = vpop.f32.mrb[46].mxu1 }
 0x990   :  { %v6965_v23 = vmax.f32 %v6881_v4, 0.0  ;;  %v6884_v47 = vadd.f32 %v8535_v53, %v13675_v44  ;;  %v6875_v11 = vpop.f32.mrb[47].mxu1 }
 0x991   :  { %v6963_v61 = vmax.f32 %v6873_v0, 0.0  ;;  %v6876_v34 = vadd.f32 %v13675_v44, %v6875_v11 }
 0x992   :  { %v6966_v52 = vmax.f32 %v6884_v47, 0.0 }
 0x993   :  { %v6964_v24 = vmax.f32 %v6876_v34, 0.0 }
 0x994   :  { %v6990_v37 = vpack.c.bf16 %v6966_v52, %v6965_v23 }
 0x995   :  { %v6989_v45 = vpack.c.bf16 %v6964_v24, %v6963_v61  ;;  %v8538_v7 = vpop.f32.mrb[48].mxu1 }
 0x996   :  { %v6897_v3 = vadd.f32 %v8538_v7, %v13675_v44  ;;  %v6888_v30 = vpop.f32.mrb[49].mxu1 }
 0x997   :  { %v6889_v32 = vadd.f32 %v13675_v44, %v6888_v30  ;;  %v8539_v57 = vpop.f32.mrb[50].mxu1  ;;  %8568 = vmatprep.mubr.msk.bf16.mxu0 %vm7015_vm14, %v6989_v45 }
 0x998   :  { %v6969_v48 = vmax.f32 %v6897_v3, 0.0  ;;  %v6900_v51 = vadd.f32 %v8539_v57, %v13675_v44  ;;  %v6891_v31 = vpop.f32.mrb[51].mxu1  ;;  %8569 = vmatmul.mubr.msk.bf16.gmra.mrb[76].mxu0 %vm7015_vm14, %v6990_v37 }
 0x999   :  { %v6967_v41 = vmax.f32 %v6889_v32, 0.0  ;;  %v6892_v12 = vadd.f32 %v13675_v44, %v6891_v31 }
 0x99a   :  { %v6970_v62 = vmax.f32 %v6900_v51, 0.0 }
 0x99b   :  { %v6968_v25 = vmax.f32 %v6892_v12, 0.0 }
 0x99c   :  { %v6992_v17 = vpack.c.bf16 %v6970_v62, %v6969_v48 }
 0x99d   :  { %v6991_v10 = vpack.c.bf16 %v6968_v25, %v6967_v41  ;;  %v8542_v39 = vpop.f32.mrb[52].mxu1 }
 0x99e   :  { %v6913_v55 = vadd.f32 %v8542_v39, %v13675_v44  ;;  %v6904_v28 = vpop.f32.mrb[53].mxu1 }
 0x99f   :  { %v6905_v27 = vadd.f32 %v13675_v44, %v6904_v28  ;;  %v8543_v49 = vpop.f32.mrb[54].mxu1  ;;  %8572 = vmatprep.mubr.msk.bf16.mxu0 %vm7015_vm14, %v6991_v10 }
 0x9a0   :  { %v6973_v20 = vmax.f32 %v6913_v55, 0.0  ;;  %v6916_v6 = vadd.f32 %v8543_v49, %v13675_v44  ;;  %v6907_v42 = vpop.f32.mrb[55].mxu1  ;;  %8573 = vmatmul.mubr.msk.bf16.gmra.mrb[80].mxu0 %vm7015_vm14, %v6992_v17 }
 0x9a1   :  { %v6971_v18 = vmax.f32 %v6905_v27, 0.0  ;;  %v6908_v58 = vadd.f32 %v13675_v44, %v6907_v42 }
 0x9a2   :  { %v6974_v59 = vmax.f32 %v6916_v6, 0.0 }
 0x9a3   :  { %v6972_v21 = vmax.f32 %v6908_v58, 0.0 }
 0x9a4   :  { %v6994_v36 = vpack.c.bf16 %v6974_v59, %v6973_v20 }
 0x9a5   :  { %v6993_v13 = vpack.c.bf16 %v6972_v21, %v6971_v18  ;;  %v8546_v1 = vpop.f32.mrb[56].mxu1 }
 0x9a6   :  { %v6929_v46 = vadd.f32 %v8546_v1, %v13675_v44  ;;  %v6920_v29 = vpop.f32.mrb[57].mxu1 }
 0x9a7   :  { %8576 = vmatprep.mubr.msk.bf16.mxu0 %vm7015_vm14, %v6993_v13  ;;  %v6921_v9 = vadd.f32 %v13675_v44, %v6920_v29  ;;  %v8547_v43 = vpop.f32.mrb[58].mxu1 }
 0x9a8   :  { %8577 = vmatmul.mubr.msk.bf16.gmra.mrb[84].mxu0 %vm7015_vm14, %v6994_v36  ;;  %v6977_v35 = vmax.f32 %v6929_v46, 0.0  ;;  %v6932_v38 = vadd.f32 %v8547_v43, %v13675_v44  ;;  %v6923_v19 = vpop.f32.mrb[59].mxu1 }
 0x9a9   :  { %v6975_v2 = vmax.f32 %v6921_v9, 0.0  ;;  %v6924_v16 = vadd.f32 %v13675_v44, %v6923_v19 }
 0x9aa   :  { %v6978_v60 = vmax.f32 %v6932_v38, 0.0 }
 0x9ab   :  { %v6976_v15 = vmax.f32 %v6924_v16, 0.0 }
 0x9ac   :  { %v6996_v33 = vpack.c.bf16 %v6978_v60, %v6977_v35 }
 0x9ad   :  { %v6995_v56 = vpack.c.bf16 %v6976_v15, %v6975_v2 }
 0x9af   :  { %8580 = vmatprep.mubr.msk.bf16.mxu0 %vm7015_vm14, %v6995_v56 }
 0x9b0   :  { %8581 = vmatmul.mubr.msk.bf16.gmra.mrb[88].mxu0 %vm7015_vm14, %v6996_v33 }
 0x9e7   :  { %v8550_v8 = vpop.f32.mrb[60].mxu1 }
 0x9e8   :  { %v6945_v26 = vadd.f32 %v8550_v8, %v13675_v44  ;;  %v6936_v40 = vpop.f32.mrb[61].mxu1 }
 0x9e9   :  { %v6937_v22 = vadd.f32 %v13675_v44, %v6936_v40  ;;  %v8551_v14 = vpop.f32.mrb[62].mxu1 }
 0x9ea   :  { %v6948_v63 = vadd.f32 %v8551_v14, %v13675_v44  ;;  %v6939_v50 = vpop.f32.mrb[63].mxu1  ;;  %v6981_v5 = vmax.f32 %v6945_v26, 0.0 }
 0x9eb   :  { %v6940_v4 = vadd.f32 %v13675_v44, %v6939_v50  ;;  %v6979_v53 = vmax.f32 %v6937_v22, 0.0 }
 0x9ec   :  { %v6982_v0 = vmax.f32 %v6948_v63, 0.0 }
 0x9ed   :  { %v6980_v23 = vmax.f32 %v6940_v4, 0.0 }
 0x9ee   :  { %v6998_v47 = vpack.c.bf16 %v6982_v0, %v6981_v5 }
 0x9ef   :  { %v6997_v11 = vpack.c.bf16 %v6980_v23, %v6979_v53 }
 0x9f1   :  { %8584 = vmatprep.mubr.msk.bf16.mxu0 %vm7015_vm14, %v6997_v11 }
 0x9f2   :  { %8585 = vmatmul.mubr.msk.bf16.gmra.mrb[92].mxu0 %vm7015_vm14, %v6998_v47 }
 0xa0b   :  { %v8558_v54 = vpop.f32.mrb[64].mxu0 }
 0xa0c   :  { %v7227_v61 = vmax.f32 %v8558_v54, 0.0  ;;  %v7098_v34 = vpop.f32.mrb[65].mxu0 }
 0xa0d   :  { %v7225_v52 = vmax.f32 %v7098_v34, 0.0  ;;  %v8559_v24 = vpop.f32.mrb[66].mxu0 }
 0xa0e   :  { %v7228_v37 = vmax.f32 %v8559_v24, 0.0  ;;  %v7101_v45 = vpop.f32.mrb[67].mxu0 }
 0xa0f   :  { %v7226_v7 = vmax.f32 %v7101_v45, 0.0 }
 0xa10   :  { %v7258_v3 = vpack.c.bf16 %v7228_v37, %v7227_v61 }
 0xa11   :  { %v7257_v44 = vpack.c.bf16 %v7226_v7, %v7225_v52 }
 0xa13   :  { %8592 = vmatprep.mubr.msk.bf16.mxu1 %vm7015_vm14, %v7257_v44 }
 0xa14   :  { %8593 = vmatmul.mubr.msk.bf16.vlgmr.msra.gmra.mrb[64].mxu1 %vm7015_vm14, %v7258_v3 }
 0xa1c   :  { %v8562_v30 = vpop.f32.mrb[68].mxu0 }
 0xa1d   :  { %v7231_v32 = vmax.f32 %v8562_v30, 0.0  ;;  %v7114_v57 = vpop.f32.mrb[69].mxu0 }
 0xa1e   :  { %v7229_v48 = vmax.f32 %v7114_v57, 0.0  ;;  %v8563_v51 = vpop.f32.mrb[70].mxu0 }
 0xa1f   :  { %v7232_v31 = vmax.f32 %v8563_v51, 0.0  ;;  %v7117_v41 = vpop.f32.mrb[71].mxu0 }
 0xa20   :  { %v7230_v12 = vmax.f32 %v7117_v41, 0.0 }
 0xa21   :  { %v7260_v62 = vpack.c.bf16 %v7232_v31, %v7231_v32 }
 0xa22   :  { %v7259_v25 = vpack.c.bf16 %v7230_v12, %v7229_v48 }
 0xa24   :  { %8596 = vmatprep.mubr.msk.bf16.mxu1 %vm7015_vm14, %v7259_v25 }
 0xa25   :  { %8597 = vmatmul.mubr.msk.bf16.gmra.mrb[68].mxu1 %vm7015_vm14, %v7260_v62 }
 0xa3b   :  { %v8566_v17 = vpop.f32.mrb[72].mxu0 }
 0xa3c   :  { %v7235_v10 = vmax.f32 %v8566_v17, 0.0  ;;  %v7130_v39 = vpop.f32.mrb[73].mxu0 }
 0xa3d   :  { %v7233_v55 = vmax.f32 %v7130_v39, 0.0  ;;  %v8567_v28 = vpop.f32.mrb[74].mxu0 }
 0xa3e   :  { %v7236_v27 = vmax.f32 %v8567_v28, 0.0  ;;  %v7133_v49 = vpop.f32.mrb[75].mxu0  ;;  %v7535_v28 = vpop.permute.xlu0 %7534 }
 0xa3f   :  { %v7234_v20 = vmax.f32 %v7133_v49, 0.0 }
 0xa40   :  { %v7262_v6 = vpack.c.bf16 %v7236_v27, %v7235_v10 }
 0xa41   :  { %v7261_v42 = vpack.c.bf16 %v7234_v20, %v7233_v55 }
 0xa42   :  { %v7531_v49 = vpop.permute.xlu0 %7530 }
 0xa43   :  { %8600 = vmatprep.mubr.msk.bf16.mxu1 %vm7015_vm14, %v7261_v42 }
 0xa44   :  { %8601 = vmatmul.mubr.msk.bf16.gmra.mrb[72].mxu1 %vm7015_vm14, %v7262_v6 }
 0xa6b   :  { %v8570_v18 = vpop.f32.mrb[76].mxu0 }
 0xa6c   :  { %v7239_v58 = vmax.f32 %v8570_v18, 0.0  ;;  %v7146_v59 = vpop.f32.mrb[77].mxu0  ;;  %v7537_v18 = vpop.permute.xlu0 %7536 }
 0xa6d   :  { %v7237_v21 = vmax.f32 %v7146_v59, 0.0  ;;  %v8571_v36 = vpop.f32.mrb[78].mxu0 }
 0xa6e   :  { %v7240_v13 = vmax.f32 %v8571_v36, 0.0  ;;  %v7149_v1 = vpop.f32.mrb[79].mxu0 }
 0xa6f   :  { %v7238_v46 = vmax.f32 %v7149_v1, 0.0 }
 0xa70   :  { %v7264_v29 = vpack.c.bf16 %v7240_v13, %v7239_v58  ;;  %v7567_v58 = vpop.permute.xlu1 %7566  ;;  %v7533_v59 = vpop.permute.xlu0 %7532 }
 0xa71   :  { %v7263_v9 = vpack.c.bf16 %v7238_v46, %v7237_v21 }
 0xa73   :  { %v8574_v43 = vpop.f32.mrb[80].mxu0  ;;  %8604 = vmatprep.mubr.msk.bf16.mxu1 %vm7015_vm14, %v7263_v9 }
 0xa74   :  { %v7243_v35 = vmax.f32 %v8574_v43, 0.0  ;;  %v7162_v38 = vpop.f32.mrb[81].mxu0  ;;  %8605 = vmatmul.mubr.msk.bf16.gmra.mrb[76].mxu1 %vm7015_vm14, %v7264_v29  ;;  %v13755_v21 = vpop.permute.xlu1 %7562 }
 0xa75   :  { %v7241_v19 = vmax.f32 %v7162_v38, 0.0  ;;  %v8575_v2 = vpop.f32.mrb[82].mxu0  ;;  %v7543_v36 = vpop.permute.xlu0 %7542 }
 0xa76   :  { %v7244_v16 = vmax.f32 %v8575_v2, 0.0  ;;  %v7165_v60 = vpop.f32.mrb[83].mxu0 }
 0xa77   :  { %v7242_v15 = vmax.f32 %v7165_v60, 0.0 }
 0xa78   :  { %v7266_v33 = vpack.c.bf16 %v7244_v16, %v7243_v35  ;;  %v13757_v13 = vpop.permute.xlu1 %7568 }
 0xa79   :  { %v7265_v56 = vpack.c.bf16 %v7242_v15, %v7241_v19  ;;  %v7539_v1 = vpop.permute.xlu0 %7538 }
 0xa7b   :  { %v8578_v8 = vpop.f32.mrb[84].mxu0  ;;  %8608 = vmatprep.mubr.msk.bf16.mxu1 %vm7015_vm14, %v7265_v56 }
 0xa7c   :  { %v7247_v26 = vmax.f32 %v8578_v8, 0.0  ;;  %v7178_v40 = vpop.f32.mrb[85].mxu0  ;;  %8609 = vmatmul.mubr.msk.bf16.gmra.mrb[80].mxu1 %vm7015_vm14, %v7266_v33  ;;  %v13759_v46 = vpop.permute.xlu1 %7564 }
 0xa7d   :  { %v7245_v22 = vmax.f32 %v7178_v40, 0.0  ;;  %v8579_v14 = vpop.f32.mrb[86].mxu0  ;;  %v7545_v9 = vpop.permute.xlu0 %7544 }
 0xa7e   :  { %v7248_v63 = vmax.f32 %v8579_v14, 0.0  ;;  %v7181_v50 = vpop.f32.mrb[87].mxu0 }
 0xa7f   :  { %v7246_v4 = vmax.f32 %v7181_v50, 0.0 }
 0xa80   :  { %v7268_v5 = vpack.c.bf16 %v7248_v63, %v7247_v26  ;;  %v13769_v19 = vpop.permute.xlu1 %7574 }
 0xa81   :  { %v7267_v0 = vpack.c.bf16 %v7246_v4, %v7245_v22  ;;  %v7541_v56 = vpop.permute.xlu0 %7540 }
 0xa83   :  { %8612 = vmatprep.mubr.msk.bf16.mxu1 %vm7015_vm14, %v7267_v0  ;;  %v8582_v53 = vpop.f32.mrb[88].mxu0 }
 0xa84   :  { %8613 = vmatmul.mubr.msk.bf16.gmra.mrb[84].mxu1 %vm7015_vm14, %v7268_v5  ;;  %v7251_v23 = vmax.f32 %v8582_v53, 0.0  ;;  %v7194_v47 = vpop.f32.mrb[89].mxu0  ;;  %v13780_v40 = vpop.permute.xlu1 %7570 }
 0xa85   :  { %v7249_v11 = vmax.f32 %v7194_v47, 0.0  ;;  %v8583_v54 = vpop.f32.mrb[90].mxu0  ;;  %v7551_v63 = vpop.permute.xlu0 %7550 }
 0xa86   :  { %v7252_v61 = vmax.f32 %v8583_v54, 0.0  ;;  %v7197_v34 = vpop.f32.mrb[91].mxu0 }
 0xa87   :  { %v7250_v52 = vmax.f32 %v7197_v34, 0.0 }
 0xa88   :  { %v7270_v24 = vpack.c.bf16 %v7252_v61, %v7251_v23  ;;  %v13786_v4 = vpop.permute.xlu1 %7576 }
 0xa89   :  { %v7269_v37 = vpack.c.bf16 %v7250_v52, %v7249_v11  ;;  %v7547_v53 = vpop.permute.xlu0 %7546 }
 0xa8b   :  { %8616 = vmatprep.mubr.msk.bf16.mxu1 %vm7015_vm14, %v7269_v37 }
 0xa8c   :  { %8617 = vmatmul.mubr.msk.bf16.gmra.mrb[88].mxu1 %vm7015_vm14, %v7270_v24  ;;  %v13796_v24 = vpop.permute.xlu1 %7572 }
 0xac5   :  { %v8586_v45 = vpop.f32.mrb[92].mxu0 }
 0xac6   :  { %v7210_v7 = vpop.f32.mrb[93].mxu0  ;;  %v7255_v44 = vmax.f32 %v8586_v45, 0.0 }
 0xac7   :  { %v8587_v3 = vpop.f32.mrb[94].mxu0  ;;  %v7253_v57 = vmax.f32 %v7210_v7, 0.0 }
 0xac8   :  { %v7256_v30 = vmax.f32 %v8587_v3, 0.0  ;;  %v7213_v32 = vpop.f32.mrb[95].mxu0 }
 0xac9   :  { %v7254_v48 = vmax.f32 %v7213_v32, 0.0  ;;  %v7553_v32 = vpop.permute.xlu0 %7552 }
 0xaca   :  { %v7272_v51 = vpack.c.bf16 %v7256_v30, %v7255_v44 }
 0xacb   :  { %v7271_v31 = vpack.c.bf16 %v7254_v48, %v7253_v57 }
 0xacd   :  { %8620 = vmatprep.mubr.msk.bf16.mxu1 %vm7015_vm14, %v7271_v31 }
 0xace   :  { %8621 = vmatmul.mubr.msk.bf16.gmra.mrb[92].mxu1 %vm7015_vm14, %v7272_v51 }
 0xae7   :  { %v8594_v41 = vpop.f32.mrb[64].mxu1 }
 0xae8   :  { %v7371_v12 = vpop.f32.mrb[65].mxu1  ;;  %v13761_v29 = vadd.f32 %v8594_v41, %v7535_v28  ;;  %v13801_v41 = vpop.permute.xlu1 %7582 }
 0xae9   :  { %v8595_v62 = vpop.f32.mrb[66].mxu1  ;;  %v13763_v43 = vadd.f32 %v7531_v49, %v7371_v12 }
 0xaea   :  { %v7374_v25 = vpop.f32.mrb[67].mxu1  ;;  %v13765_v35 = vadd.f32 %v8595_v62, %v7537_v18  ;;  %v8224_v2 = vmul.f32 -1.442695, %v13761_v29 }
 0xaeb   :  { %v13767_v38 = vadd.f32 %v7533_v59, %v7374_v25  ;;  %v8222_v16 = vmul.f32 -1.442695, %v13763_v43 }
 0xaec   :  { %v8225_v15 = vmul.f32 -1.442695, %v13765_v35  ;;  %8968 = vpow2.f32 %v8224_v2  ;;  %v7579_v2 = vpop.permute.xlu1 %7578 }
 0xaed   :  { %v8223_v8 = vmul.f32 -1.442695, %v13767_v38  ;;  %8970 = vpow2.f32 %v8222_v16 }
 0xaee   :  { %8972 = vpow2.f32 %v8225_v15 }
 0xaef   :  { %8974 = vpow2.f32 %v8223_v8 }
 0xaf6   :  { %v8969_v5 = vpop.eup %8968 }
 0xaf7   :  { %v8971_v0 = vpop.eup %8970  ;;  %v7763_v61 = vadd.f32 1.0, %v8969_v5 }
 0xaf8   :  { %v8598_v17 = vpop.f32.mrb[68].mxu1  ;;  %v8973_v47 = vpop.eup %8972  ;;  %v7761_v37 = vadd.f32 1.0, %v8971_v0 }
 0xaf9   :  { %v7387_v10 = vpop.f32.mrb[69].mxu1  ;;  %v13773_v60 = vadd.f32 %v8598_v17, %v7543_v36  ;;  %v8975_v54 = vpop.eup %8974  ;;  %v7764_v3 = vadd.f32 1.0, %v8973_v47 }
 0xafa   :  { %v8599_v39 = vpop.f32.mrb[70].mxu1  ;;  %v13776_v33 = vadd.f32 %v7539_v1, %v7387_v10  ;;  %v7762_v30 = vadd.f32 1.0, %v8975_v54 }
 0xafb   :  { %v7390_v55 = vpop.f32.mrb[71].mxu1  ;;  %v8228_v26 = vmul.f32 -1.442695, %v13773_v60  ;;  %v13783_v14 = vadd.f32 %v8599_v39, %v7545_v9 }
 0xafc   :  { %v8226_v22 = vmul.f32 -1.442695, %v13776_v33  ;;  %v13792_v34 = vadd.f32 %v7541_v56, %v7390_v55 }
 0xafd   :  { %8976 = vpow2.f32 %v8228_v26  ;;  %v8229_v50 = vmul.f32 -1.442695, %v13783_v14 }
 0xafe   :  { %8978 = vpow2.f32 %v8226_v22  ;;  %v8227_v57 = vmul.f32 -1.442695, %v13792_v34  ;;  %v7658_v22 = vlaneseq }
 0xaff   :  { %8980 = vpow2.f32 %v8229_v50 }
 0xb00   :  { %8982 = vrcp.f32 %v7763_v61 }
 0xb01   :  { %8984 = vrcp.f32 %v7761_v37 }
 0xb02   :  { %8986 = vrcp.f32 %v7764_v3 }
 0xb03   :  { %8988 = vrcp.f32 %v7762_v30 }
 0xb04   :  { %8990 = vpow2.f32 %v8227_v57 }
 0xb07   :  { %v8977_v7 = vpop.eup %8976 }
 0xb08   :  { %v8979_v44 = vpop.eup %8978  ;;  %v7767_v48 = vadd.f32 1.0, %v8977_v7 }
 0xb09   :  { %v7765_v51 = vadd.f32 1.0, %v8979_v44  ;;  %v8981_v25 = vpop.eup %8980  ;;  %v7659_v44 = vand.u32 127, %v7658_v22 }
 0xb0a   :  { %8992 = vrcp.f32 %v7767_v48  ;;  %v7768_v36 = vadd.f32 1.0, %v8981_v25  ;;  %v13832_v16 = vpop.eup %8982 }
 0xb0b   :  { %8994 = vrcp.f32 %v7765_v51  ;;  %vm7661_vm0 = vcmp.ge.s32.totalorder %v7659_v44, 8  ;;  %vm7662_vm6 = vcmp.lt.s32.totalorder %v7659_v44, 12  ;;  %vm7660_vm8 = vcmp.lt.s32.totalorder %v7659_v44, 4 }
 0xb0c   :  { %vm7663_vm9 = vmand %vm7661_vm0, %vm7662_vm6 }
 0xb0d   :  { %vm13879_vm7 = vmor %vm7660_vm8, %vm7663_vm9 }
 0xb17   :  { %v13747_v27 = vpop.f32.mrb[72].mxu1 }
 0xb18   :  { %v13749_v20 = vpop.f32.mrb[73].mxu1  ;;  %v13806_v17 = vadd.f32 %v13747_v27, %v7551_v63 }
 0xb19   :  { %v13751_v6 = vpop.f32.mrb[74].mxu1  ;;  %v13812_v55 = vadd.f32 %v7547_v53, %v13749_v20 }
 0xb1a   :  { %v13753_v42 = vpop.f32.mrb[75].mxu1  ;;  %v13819_v59 = vadd.f32 %v13751_v6, %v7553_v32 }
 0xb1b   :  { %v8230_v6 = vmul.f32 -1.442695, %v13812_v55 }
 0xb47   :  { %v13788_v23 = vpop.f32.mrb[76].mxu1 }
 0xb48   :  { %v13790_v11 = vpop.f32.mrb[77].mxu1 }
 0xb49   :  { %v13794_v52 = vpop.f32.mrb[78].mxu1 }
 0xb4a   :  { %v13798_v45 = vpop.f32.mrb[79].mxu1 }
 0xb4f   :  { %v8610_v31 = vpop.f32.mrb[80].mxu1 }
 0xb50   :  { %v13803_v12 = vadd.f32 %v8610_v31, %v7567_v58  ;;  %v7435_v62 = vpop.f32.mrb[81].mxu1  ;;  %v7549_v58 = vpop.permute.xlu0 %7548 }
 0xb51   :  { %v13809_v10 = vadd.f32 %v13755_v21, %v7435_v62  ;;  %v8611_v39 = vpop.f32.mrb[82].mxu1  ;;  %v13826_v20 = vadd.f32 %v7549_v58, %v13753_v42  ;;  %v13835_v42 = vpop.eup %8984 }
 0xb52   :  { %v8240_v28 = vmul.f32 -1.442695, %v13803_v12  ;;  %v13816_v49 = vadd.f32 %v8611_v39, %v13757_v13  ;;  %v7438_v18 = vpop.f32.mrb[83].mxu1  ;;  %v8232_v13 = vmul.f32 -1.442695, %v13806_v17  ;;  %v13841_v63 = vpop.eup %8986 }
 0xb53   :  { %v8238_v27 = vmul.f32 -1.442695, %v13809_v10  ;;  %v13823_v21 = vadd.f32 %v13759_v46, %v7438_v18  ;;  %v8233_v46 = vmul.f32 -1.442695, %v13819_v59  ;;  %v8231_v56 = vmul.f32 -1.442695, %v13826_v20  ;;  %v13846_v0 = vpop.eup %8988 }
 0xb54   :  { %8996 = vpow2.f32 %v8240_v28  ;;  %v8241_v1 = vmul.f32 -1.442695, %v13816_v49 }
 0xb55   :  { %8998 = vpow2.f32 %v8238_v27  ;;  %v8239_v9 = vmul.f32 -1.442695, %v13823_v21 }
 0xb56   :  { %9000 = vpow2.f32 %v8241_v1 }
 0xb57   :  { %9002 = vpow2.f32 %v8239_v9  ;;  %v8614_v15 = vpop.f32.mrb[84].mxu1 }
 0xb58   :  { %9004 = vrcp.f32 %v7768_v36  ;;  %v13839_v8 = vadd.f32 %v8614_v15, %v13769_v19  ;;  %v7451_v26 = vpop.f32.mrb[85].mxu1  ;;  %v8991_v19 = vpop.eup %8990 }
 0xb59   :  { %9006 = vpow2.f32 %v8232_v13  ;;  %v13844_v50 = vadd.f32 %v13780_v40, %v7451_v26  ;;  %v8615_v5 = vpop.f32.mrb[86].mxu1  ;;  %v13856_v7 = vpop.eup %8992  ;;  %v7766_v22 = vadd.f32 1.0, %v8991_v19 }
 0xb5a   :  { %9008 = vpow2.f32 %v8230_v6  ;;  %v8244_v53 = vmul.f32 -1.442695, %v13839_v8  ;;  %v13850_v47 = vadd.f32 %v8615_v5, %v13786_v4  ;;  %v7454_v54 = vpop.f32.mrb[87].mxu1  ;;  %v7585_v40 = vpop.permute.xlu1 %7584 }
 0xb5b   :  { %9010 = vpow2.f32 %v8233_v46  ;;  %v8242_v61 = vmul.f32 -1.442695, %v13844_v50  ;;  %v13854_v37 = vadd.f32 %v13796_v24, %v7454_v54  ;;  %v13859_v30 = vpop.eup %8994 }
 0xb5c   :  { %9012 = vpow2.f32 %v8231_v56  ;;  %v8245_v3 = vmul.f32 -1.442695, %v13850_v47 }
 0xb5d   :  { %9014 = vpow2.f32 %v8244_v53  ;;  %v8243_v4 = vmul.f32 -1.442695, %v13854_v37 }
 0xb5e   :  { %v8997_v32 = vpop.eup %8996  ;;  %9016 = vpow2.f32 %v8242_v61  ;;  %v7581_v36 = vpop.permute.xlu1 %7580 }
 0xb5f   :  { %v8999_v57 = vpop.eup %8998  ;;  %v7779_v48 = vadd.f32 1.0, %v8997_v32  ;;  %9018 = vpow2.f32 %v8245_v3  ;;  %v8618_v51 = vpop.f32.mrb[88].mxu1 }
 0xb60   :  { %v9001_v24 = vpop.eup %9000  ;;  %v7777_v31 = vadd.f32 1.0, %v8999_v57  ;;  %9020 = vpow2.f32 %v8243_v4  ;;  %v13863_v62 = vadd.f32 %v8618_v51, %v13801_v41  ;;  %v7467_v25 = vpop.f32.mrb[89].mxu1 }
 0xb61   :  { %v9003_v39 = vpop.eup %9002  ;;  %9022 = vrcp.f32 %v7779_v48  ;;  %v7780_v28 = vadd.f32 1.0, %v9001_v24  ;;  %v13865_v18 = vadd.f32 %v7579_v2, %v7467_v25  ;;  %v8619_v58 = vpop.f32.mrb[90].mxu1 }
 0xb62   :  { %v13867_v27 = vpop.eup %9004  ;;  %9024 = vrcp.f32 %v7777_v31  ;;  %v7778_v1 = vadd.f32 1.0, %v9003_v39  ;;  %v8248_v13 = vmul.f32 -1.442695, %v13863_v62  ;;  %v13870_v9 = vadd.f32 %v8619_v58, %v7585_v40  ;;  %v7470_v41 = vpop.f32.mrb[91].mxu1 }
 0xb63   :  { %v9007_v6 = vpop.eup %9006  ;;  %9026 = vrcp.f32 %v7780_v28  ;;  %v8246_v46 = vmul.f32 -1.442695, %v13865_v18  ;;  %v13873_v15 = vadd.f32 %v7581_v36, %v7470_v41  ;;  %v7859_v31 = vsel %vm13879_vm7, %v13832_v16, %v13761_v29 }
 0xb64   :  { %v9009_v2 = vpop.eup %9008  ;;  %9028 = vrcp.f32 %v7778_v1  ;;  %v8249_v56 = vmul.f32 -1.442695, %v13870_v9  ;;  %v7771_v57 = vadd.f32 1.0, %v9007_v6  ;;  %v7857_v28 = vsel %vm13879_vm7, %v13835_v42, %v13763_v43 }
 0xb65   :  { %v9011_v26 = vpop.eup %9010  ;;  %9030 = vpow2.f32 %v8248_v13  ;;  %v8247_v5 = vmul.f32 -1.442695, %v13873_v15  ;;  %v7769_v51 = vadd.f32 1.0, %v9009_v2  ;;  %v7860_v43 = vsel %vm13879_vm7, %v13841_v63, %v13765_v35 }
 0xb66   :  { %v9013_v53 = vpop.eup %9012  ;;  %9032 = vpow2.f32 %v8246_v46  ;;  %v7772_v39 = vadd.f32 1.0, %v9011_v26 }
 0xb67   :  { %v9015_v54 = vpop.eup %9014  ;;  %9034 = vpow2.f32 %v8249_v56  ;;  %v7770_v1 = vadd.f32 1.0, %v9013_v53 }
 0xb68   :  { %v9017_v61 = vpop.eup %9016  ;;  %v7783_v40 = vadd.f32 1.0, %v9015_v54  ;;  %9036 = vpow2.f32 %v8247_v5 }
 0xb69   :  { %v9019_v4 = vpop.eup %9018  ;;  %9038 = vrcp.f32 %v7766_v22  ;;  %v7781_v19 = vadd.f32 1.0, %v9017_v61 }
 0xb6a   :  { %v9021_v32 = vpop.eup %9020  ;;  %9040 = vrcp.f32 %v7783_v40  ;;  %v7784_v48 = vadd.f32 1.0, %v9019_v4  ;;  %v7861_v40 = vsel %vm13879_vm7, %v13859_v30, %v13776_v33 }
 0xb6b   :  { %v9023_v44 = vpop.eup %9022  ;;  %9042 = vrcp.f32 %v7781_v19  ;;  %v7782_v24 = vadd.f32 1.0, %v9021_v32 }
 0xb6c   :  { %v9025_v25 = vpop.eup %9024  ;;  %9044 = vrcp.f32 %v7784_v48  ;;  %v7875_v58 = vsel %vm13879_vm7, %v9023_v44, %v13803_v12 }
 0xb6d   :  { %v9027_v36 = vpop.eup %9026  ;;  %9046 = vrcp.f32 %v7782_v24  ;;  %v7873_v13 = vsel %vm13879_vm7, %v9025_v25, %v13809_v10  ;;  %v8776_v29 = vpack.i.bf16 %v7875_v58, %v7859_v31  ;;  %v7858_v10 = vsel %vm13879_vm7, %v13846_v0, %v13767_v38 }
 0xb6e   :  { %v9029_v16 = vpop.eup %9028  ;;  %9048 = vrcp.f32 %v7771_v57  ;;  %v8772_v41 = vpack.i.bf16 %v7873_v13, %v7857_v28  ;;  %v7876_v12 = vsel %vm13879_vm7, %v9027_v36, %v13816_v49  ;;  %v7559_v13 = vpop.permute.xlu0 %7558 }
 0xb6f   :  { %v9031_v42 = vpop.eup %9030  ;;  %9050 = vrcp.f32 %v7769_v51  ;;  %v7874_v6 = vsel %vm13879_vm7, %v9029_v16, %v13823_v21  ;;  %v8778_v46 = vpack.i.bf16 %v7876_v12, %v7860_v43  ;;  %v7863_v21 = vsel %vm13879_vm7, %v13856_v7, %v13773_v60  ;;  %v7591_v16 = vpop.permute.xlu1 %7590 }
 0xb70   :  { %v9033_v2 = vpop.eup %9032  ;;  %9052 = vrcp.f32 %v7772_v39  ;;  %v7787_v56 = vadd.f32 1.0, %v9031_v42  ;;  %8773 = vxpose.xlu0.b32.start [1/16] (narrow) %v8772_v41, 16  ;;  %v8774_v35 = vpack.i.bf16 %v7874_v6, %v7858_v10  ;;  %v7864_v60 = vsel %vm13879_vm7, %v13867_v27, %v13783_v14 }
 0xb71   :  { %v9035_v63 = vpop.eup %9034  ;;  %9054 = vrcp.f32 %v7770_v1  ;;  %v7785_v49 = vadd.f32 1.0, %v9033_v2 }
 0xb72   :  { %v9037_v26 = vpop.eup %9036  ;;  %9056 = vrcp.f32 %v7787_v56  ;;  %v7788_v22 = vadd.f32 1.0, %v9035_v63 }
 0xb73   :  { %v9039_v5 = vpop.eup %9038  ;;  %9058 = vrcp.f32 %v7785_v49  ;;  %v7786_v53 = vadd.f32 1.0, %v9037_v26  ;;  %v7587_v41 = vpop.permute.xlu1 %7586 }
 0xb74   :  { %v9041_v38 = vpop.eup %9040  ;;  %9060 = vrcp.f32 %v7788_v22  ;;  %8775 = vxpose.xlu0.b32.cont [2/16] (narrow) %v8774_v35, 16  ;;  %v7862_v33 = vsel %vm13879_vm7, %v9039_v5, %v13792_v34 }
 0xb75   :  { %v9043_v0 = vpop.eup %9042  ;;  %9062 = vrcp.f32 %v7786_v53  ;;  %v7879_v54 = vsel %vm13879_vm7, %v9041_v38, %v13839_v8 }
 0xb76   :  { %v9045_v61 = vpop.eup %9044  ;;  %v7877_v4 = vsel %vm13879_vm7, %v9043_v0, %v13844_v50  ;;  %v8784_v19 = vpack.i.bf16 %v7879_v54, %v7863_v21 }
 0xb77   :  { %v9047_v32 = vpop.eup %9046  ;;  %v8780_v57 = vpack.i.bf16 %v7877_v4, %v7861_v40  ;;  %v7880_v8 = vsel %vm13879_vm7, %v9045_v61, %v13850_v47  ;;  %v7589_v6 = vpop.permute.xlu1 %7588 }
 0xb78   :  { %v9049_v7 = vpop.eup %9048  ;;  %8777 = vxpose.xlu0.b32.cont [3/16] (narrow) %v8776_v29, 16  ;;  %v7878_v50 = vsel %vm13879_vm7, %v9047_v32, %v13854_v37  ;;  %v8786_v30 = vpack.i.bf16 %v7880_v8, %v7864_v60 }
 0xb79   :  { %v9051_v48 = vpop.eup %9050  ;;  %v8782_v44 = vpack.i.bf16 %v7878_v50, %v7862_v33  ;;  %v7867_v47 = vsel %vm13879_vm7, %v9049_v7, %v13806_v17 }
 0xb7a   :  { %v9053_v51 = vpop.eup %9052  ;;  %v7865_v37 = vsel %vm13879_vm7, %v9051_v48, %v13812_v55 }
 0xb7b   :  { %v9055_v24 = vpop.eup %9054  ;;  %v7868_v17 = vsel %vm13879_vm7, %v9053_v51, %v13819_v59  ;;  %v7555_v59 = vpop.permute.xlu0 %7554 }
 0xb7c   :  { %v9057_v14 = vpop.eup %9056  ;;  %8779 = vxpose.xlu0.b32.cont [4/16] (narrow) %v8778_v46, 16  ;;  %v7866_v55 = vsel %vm13879_vm7, %v9055_v24, %v13826_v20  ;;  %v13966_v43 = vadd.f32 %v7555_v59, %v13790_v11  ;;  %v7593_v56 = vpop.permute.xlu1 %7592 }
 0xb7d   :  { %v9059_v27 = vpop.eup %9058  ;;  %v7883_v34 = vsel %vm13879_vm7, %v9057_v14, %v13863_v62 }
 0xb7e   :  { %v9061_v31 = vpop.eup %9060  ;;  %v7881_v25 = vsel %vm13879_vm7, %v9059_v27, %v13865_v18  ;;  %v8792_v39 = vpack.i.bf16 %v7883_v34, %v7867_v47  ;;  %v8234_v10 = vmul.f32 -1.442695, %v13966_v43 }
 0xb7f   :  { %v9063_v28 = vpop.eup %9062  ;;  %v8788_v58 = vpack.i.bf16 %v7881_v25, %v7865_v37  ;;  %v7884_v62 = vsel %vm13879_vm7, %v9061_v31, %v13870_v9  ;;  %v7557_v29 = vpop.permute.xlu0 %7556  ;;  %v13963_v9 = vadd.f32 %v13788_v23, %v7559_v13 }
 0xb80   :  { %8781 = vxpose.xlu0.b32.cont [5/16] (narrow) %v8780_v57, 16  ;;  %v7882_v18 = vsel %vm13879_vm7, %v9063_v28, %v13873_v15  ;;  %v8794_v36 = vpack.i.bf16 %v7884_v62, %v7868_v17  ;;  %v13972_v12 = vadd.f32 %v7557_v29, %v13798_v45 }
 0xb81   :  { %v8790_v1 = vpack.i.bf16 %v7882_v18, %v7866_v55  ;;  %v8236_v42 = vmul.f32 -1.442695, %v13963_v9 }
 0xb82   :  { %v8235_v46 = vmul.f32 -1.442695, %v13972_v12 }
 0xb83   :  { %v7561_v20 = vpop.permute.xlu0 %7560  ;;  %9064 = vpow2.f32 %v8236_v42 }
 0xb84   :  { %8783 = vxpose.xlu0.b32.cont [6/16] (narrow) %v8782_v44, 16  ;;  %v13969_v15 = vadd.f32 %v13794_v52, %v7561_v20  ;;  %9066 = vpow2.f32 %v8234_v10 }
 0xb86   :  { %v8237_v23 = vmul.f32 -1.442695, %v13969_v15 }
 0xb88   :  { %8785 = vxpose.xlu0.b32.cont [7/16] (narrow) %v8784_v19, 16  ;;  %9068 = vpow2.f32 %v8237_v23 }
 0xb89   :  { %9070 = vpow2.f32 %v8235_v46 }
 0xb8c   :  { %8787 = vxpose.xlu0.b32.cont [8/16] (narrow) %v8786_v30, 16 }
 0xb8d   :  { %v9065_v0 = vpop.eup %9064 }
 0xb8e   :  { %v9067_v21 = vpop.eup %9066  ;;  %v7775_v40 = vadd.f32 1.0, %v9065_v0 }
 0xb8f   :  { %v7773_v4 = vadd.f32 1.0, %v9067_v21 }
 0xb90   :  { %8789 = vxpose.xlu0.b32.cont [9/16] (narrow) %v8788_v58, 16 }
 0xb92   :  { %v9069_v54 = vpop.eup %9068 }
 0xb93   :  { %v9071_v61 = vpop.eup %9070  ;;  %v7776_v19 = vadd.f32 1.0, %v9069_v54 }
 0xb94   :  { %8791 = vxpose.xlu0.b32.cont [10/16] (narrow) %v8790_v1, 16  ;;  %v7774_v32 = vadd.f32 1.0, %v9071_v61 }
 0xb98   :  { %8793 = vxpose.xlu0.b32.cont [11/16] (narrow) %v8792_v39, 16 }
 0xb9c   :  { %8795 = vxpose.xlu0.b32.cont [12/16] (narrow) %v8794_v36, 16 }
 0xba1   :  { %v8622_v11 = vpop.f32.mrb[92].mxu1 }
 0xba2   :  { %v7656_v52 = vadd.f32 %v8622_v11, %v7591_v16  ;;  %v7483_v2 = vpop.f32.mrb[93].mxu1 }
 0xba3   :  { %v7654_v45 = vadd.f32 %v7587_v41, %v7483_v2  ;;  %v8623_v35 = vpop.f32.mrb[94].mxu1 }
 0xba4   :  { %v8252_v63 = vmul.f32 -1.442695, %v7656_v52  ;;  %v7657_v49 = vadd.f32 %v8623_v35, %v7593_v56  ;;  %v7486_v26 = vpop.f32.mrb[95].mxu1 }
 0xba5   :  { %v8250_v22 = vmul.f32 -1.442695, %v7654_v45  ;;  %v7655_v5 = vadd.f32 %v7589_v6, %v7486_v26 }
 0xba6   :  { %9072 = vpow2.f32 %v8252_v63  ;;  %v8253_v53 = vmul.f32 -1.442695, %v7657_v49 }
 0xba7   :  { %9074 = vpow2.f32 %v8250_v22  ;;  %v8251_v38 = vmul.f32 -1.442695, %v7655_v5 }
 0xba8   :  { %9076 = vpow2.f32 %v8253_v53 }
 0xba9   :  { %9078 = vpow2.f32 %v8251_v38 }
 0xbaa   :  { %9080 = vrcp.f32 %v7775_v40 }
 0xbab   :  { %9082 = vrcp.f32 %v7773_v4 }
 0xbac   :  { %9084 = vrcp.f32 %v7776_v19 }
 0xbad   :  { %9086 = vrcp.f32 %v7774_v32 }
 0xbb0   :  { %v9073_v57 = vpop.eup %9072 }
 0xbb1   :  { %v9075_v60 = vpop.eup %9074  ;;  %v7791_v8 = vadd.f32 1.0, %v9073_v57 }
 0xbb2   :  { %v9077_v7 = vpop.eup %9076  ;;  %v7789_v33 = vadd.f32 1.0, %v9075_v60 }
 0xbb3   :  { %v9079_v50 = vpop.eup %9078  ;;  %9088 = vrcp.f32 %v7791_v8  ;;  %v7792_v30 = vadd.f32 1.0, %v9077_v7 }
 0xbb4   :  { %9090 = vrcp.f32 %v7789_v33  ;;  %v7790_v48 = vadd.f32 1.0, %v9079_v50  ;;  %v9081_v44 = vpop.eup %9080 }
 0xbb5   :  { %9092 = vrcp.f32 %v7792_v30  ;;  %v9083_v51 = vpop.eup %9082  ;;  %v7871_v34 = vsel %vm13879_vm7, %v9081_v44, %v13963_v9 }
 0xbb6   :  { %9094 = vrcp.f32 %v7790_v48  ;;  %v9085_v24 = vpop.eup %9084  ;;  %v7869_v25 = vsel %vm13879_vm7, %v9083_v51, %v13966_v43 }
 0xbb7   :  { %v9087_v14 = vpop.eup %9086  ;;  %v7872_v62 = vsel %vm13879_vm7, %v9085_v24, %v13969_v15 }
 0xbb8   :  { %v7870_v18 = vsel %vm13879_vm7, %v9087_v14, %v13972_v12 }
 0xbbd   :  { %v9089_v27 = vpop.eup %9088 }
 0xbbe   :  { %v9091_v47 = vpop.eup %9090  ;;  %v7887_v31 = vsel %vm13879_vm7, %v9089_v27, %v7656_v52 }
 0xbbf   :  { %v9093_v37 = vpop.eup %9092  ;;  %v7885_v39 = vsel %vm13879_vm7, %v9091_v47, %v7654_v45  ;;  %v8800_v28 = vpack.i.bf16 %v7887_v31, %v7871_v34 }
 0xbc0   :  { %v9095_v58 = vpop.eup %9094  ;;  %v8796_v17 = vpack.i.bf16 %v7885_v39, %v7869_v25  ;;  %v7888_v55 = vsel %vm13879_vm7, %v9093_v37, %v7657_v49 }
 0xbc1   :  { %v7886_v36 = vsel %vm13879_vm7, %v9095_v58, %v7655_v5  ;;  %v8802_v1 = vpack.i.bf16 %v7888_v55, %v7872_v62 }
 0xbc2   :  { %8797 = vxpose.xlu0.b32.cont [13/16] (narrow) %v8796_v17, 16  ;;  %v8798_v13 = vpack.i.bf16 %v7886_v36, %v7870_v18 }
 0xbc6   :  { %8799 = vxpose.xlu0.b32.cont [14/16] (narrow) %v8798_v13, 16 }
 0xbca   :  { %8801 = vxpose.xlu0.b32.cont [15/16] (narrow) %v8800_v28, 16 }
 0xbce   :  { %8803 = vxpose.xlu0.b32.end [16/16] (narrow) %v8802_v1, 16 }
 0xc12   :  { %v8804_v59 = vpop.trf.xlu0 }
 0xc13   :  { %v8808_v29 = vunpack.i.h.bf16 %v8804_v59  ;;  %v8805_v16 = vunpack.i.l.bf16 %v8804_v59 }
 0xc15   :  { %v8256_v9 = vpack.c.bf16 %v8808_v29, %v8805_v16 }
 0xc16   :  { %v8809_v20 = vpop.trf.xlu0 }
 0xc17   :  { %v8813_v41 = vunpack.i.h.bf16 %v8809_v20  ;;  %v8810_v43 = vunpack.i.l.bf16 %v8809_v20  ;;  %7965 = vst [vmem:[%s14011_s7] sm:$0xff] %v8256_v9 }
 0xc19   :  { %v8257_v15 = vpack.c.bf16 %v8813_v41, %v8810_v43 }
 0xc1b   :  { %7966 = vst [vmem:[%s14011_s7 + $0x8] sm:$0xff] %v8257_v15 }

</bundles_post_ra>
